<compile_context>
chip_gen: v6e
topology: v6e:2x2x1
jax: 0.10.0
libtpu: 0.0.40
codegen_flags: <defaults>
</compile_context>

<pallas_src>
import jax
import jax.numpy as jnp
import numpy as np
from jax.experimental import pallas as pl
from jax.experimental.pallas import tpu as pltpu


_QUERY_SLAB = 32   # query rows per slab; keeps the live exp slab ~32 vregs


def head_kernel(x_ref, wqkv_ref, o_ref):
    B, n_embd = x_ref.shape
    H = o_ref.shape[1]
    scale = float(n_embd) ** -0.5          # static scalar, baked in

    x = x_ref[...]                                                    # (B, n_embd)

    # Fused q/k/v projection: one (B, n_embd) x (n_embd, 3H) MXU call.
    qkv = jnp.dot(x, wqkv_ref[...], preferred_element_type=jnp.float32)
    q = qkv[:, :H] * scale                 # scale q (B*H elems), not attn (B*H*H)
    k = qkv[:, H:2 * H]
    v = qkv[:, 2 * H:]

    # Row max of the outer-product logits, computed WITHOUT forming them:
    #   max_j q[b,i]*k[b,j] = q[b,i]*kmax[b] if q[b,i] >= 0 else q[b,i]*kmin[b]
    kmax = jnp.max(k, axis=-1, keepdims=True)                         # (B, 1)
    kmin = jnp.min(k, axis=-1, keepdims=True)                         # (B, 1)
    m = q * jnp.where(q >= 0, kmax, kmin)                             # (B, H) == exact row max

    # RHS for the fused (attn @ v, softmax denominator) contraction: [v | 1].
    col = jax.lax.broadcasted_iota(jnp.int32, (B, H, 2), dimension=2)
    v_aug = jnp.where(col == 0, v[:, :, None], jnp.float32(1.0))      # (B, H, 2)

    # Process query rows in slabs so only one (B, TI, H) f32 temp is live.
    for i0 in range(0, H, _QUERY_SLAB):
        i1 = min(i0 + _QUERY_SLAB, H)
        q_s = q[:, i0:i1]                                             # (B, TI)
        m_s = m[:, i0:i1]                                             # (B, TI)
        # exp(q_i*k_j - m_i): one fused elementwise pass -> (B, TI, H).
        # (q_s/m_s relayout lanes->sublanes once per small (8,TI) slab.)
        e = jnp.exp(q_s[:, :, None] * k[:, None, :] - m_s[:, :, None])
        # One batched MXU contraction yields both sum_j e*v and sum_j e.
        pvd = jnp.einsum('bij,bjc->bic', e, v_aug,
                         preferred_element_type=jnp.float32)          # (B, TI, 2)
        inv_denom = pl.reciprocal(pvd[:, :, 1], approx=True)          # EUP rcp
        o_ref[:, i0:i1] = (pvd[:, :, 0] * inv_denom).astype(o_ref.dtype)

    # TODO(synk): dropout (p=0.1) on the attention matrix is an identity here
    # (eval mode); training would use pltpu.prng_seed + pltpu.stateful_bernoulli.


def head_forward(x, wq, wk, wv):
    """x: (B, n_embd); wq/wk/wv: (n_embd, head_size) == PyTorch weight.T."""
    B, n_embd = x.shape
    H = wq.shape[1]
    # Stack the three projection weights once here (in real use, pre-stack and
    # store them fused); the kernel sees a single (n_embd, 3H) weight + 1 DMA.
    w_qkv = jnp.concatenate([wq, wk, wv], axis=1)

    # NOTE(v7x): for large B, tile the batch axis via the grid with
    # dimension_semantics=("parallel",) and constant weight index_maps so both
    # TensorCores are used and the weights stay VMEM-resident; keep per-tile
    # (Bt,H,H)-scale temps well under v7x's 64 MiB VMEM.
    # NOTE(v6e/v7x): bf16 x/w_qkv for the projection is possible but buys
    # nothing at these shapes and would break f32-reference parity.
    return pl.pallas_call(
        head_kernel,
        out_shape=jax.ShapeDtypeStruct((B, H), jnp.float32),
        grid=(1,),
        in_specs=[
            pl.BlockSpec((B, n_embd), lambda i: (0, 0)),
            pl.BlockSpec((n_embd, 3 * H), lambda i: (0, 0)),
        ],
        out_specs=pl.BlockSpec((B, H), lambda i: (0, 0)),
        compiler_params=pltpu.CompilerParams(
            dimension_semantics=("arbitrary",)),
    )(x, w_qkv)


def head_reference(x, wq, wk, wv):
    n_embd = x.shape[1]
    q = x @ wq
    k = x @ wk
    v = x @ wv
    attn = jnp.einsum('bi,bj->bij', q, k) * (n_embd ** -0.5)
    attn = jax.nn.softmax(attn, axis=-1)
    return jnp.einsum('bij,bj->bi', attn, v)


if __name__ == "__main__":
    # Small shapes consistent with the forward pass: x is (B, n_embd).
    B, N_EMBD, HEAD_SIZE = 8, 256, 128

    key = jax.random.PRNGKey(0)
    kx, kq, kk, kv = jax.random.split(key, 4)
    x = jax.random.normal(kx, (B, N_EMBD), dtype=jnp.float32)
    # deterministic "Linear(n_embd, head_size, bias=False)" weights, stored (n_embd, head_size)
    wq = jax.random.normal(kq, (N_EMBD, HEAD_SIZE), dtype=jnp.float32) * 0.02
    wk = jax.random.normal(kk, (N_EMBD, HEAD_SIZE), dtype=jnp.float32) * 0.02
    wv = jax.random.normal(kv, (N_EMBD, HEAD_SIZE), dtype=jnp.float32) * 0.02

    out = head_forward(x, wq, wk, wv)
    jax.block_until_ready(out)

    ref = head_reference(x, wq, wk, wv)
    # 1e-3 tolerance: accounts for the approximate (EUP) reciprocal used on the
    # softmax denominator (~2^-12 relative); the rest is f32 math matching the
    # reference to ~1e-6.
    np.testing.assert_allclose(np.asarray(out), np.asarray(ref),
                               rtol=1e-3, atol=1e-3)

    print("KERNEL_OK")
</pallas_src>

<mosaic_0001>
module attributes {stable_mosaic.version = 11 : i64} {
  func.func @head_kernel(%arg0: i32, %arg1: memref<8x256xf32, #tpu.memory_space<vmem>>, %arg2: memref<256x384xf32, #tpu.memory_space<vmem>>, %arg3: memref<8x128xf32, #tpu.memory_space<vmem>>) attributes {dimension_semantics = [#tpu.dimension_semantics<arbitrary>], iteration_bounds = array<i64: 1>, scalar_prefetch = 0 : i64, scratch_operands = 0 : i64, tpu.core_type = #tpu.core_type<tc>, window_params = [{pipeline_mode = #tpu.pipeline_mode<synchronous>, transform_indices = @transform_0, window_bounds = array<i64: 8, 256>}, {pipeline_mode = #tpu.pipeline_mode<synchronous>, transform_indices = @transform_1, window_bounds = array<i64: 256, 384>}, {pipeline_mode = #tpu.pipeline_mode<synchronous>, transform_indices = @transform_2, window_bounds = array<i64: 8, 128>}]} {
    %c0 = arith.constant 0 : index
    %c0_0 = arith.constant 0 : index
    %0 = vector.load %arg1[%c0, %c0_0] : memref<8x256xf32, #tpu.memory_space<vmem>>, vector<8x256xf32>
    %c0_1 = arith.constant 0 : index
    %c0_2 = arith.constant 0 : index
    %1 = vector.load %arg2[%c0_1, %c0_2] : memref<256x384xf32, #tpu.memory_space<vmem>>, vector<256x384xf32>
    %cst = arith.constant dense<0.000000e+00> : vector<8x384xf32>
    %2 = tpu.matmul %0, %1, %cst {dimension_numbers = #tpu.dot_dimension_numbers<[1], [0], [0], [1], [0, 0, 1, 1], [], []>} : vector<8x256xf32>, vector<256x384xf32>, vector<8x384xf32> -> vector<8x384xf32>
    %3 = vector.extract_strided_slice %2 {offsets = [0, 0], sizes = [8, 128], strides = [1, 1]} : vector<8x384xf32> to vector<8x128xf32>
    %cst_3 = arith.constant 6.250000e-02 : f32
    %4 = vector.broadcast %cst_3 : f32 to vector<8x128xf32>
    %5 = arith.mulf %3, %4 : vector<8x128xf32>
    %6 = vector.extract_strided_slice %2 {offsets = [0, 128], sizes = [8, 128], strides = [1, 1]} : vector<8x384xf32> to vector<8x128xf32>
    %7 = vector.extract_strided_slice %2 {offsets = [0, 256], sizes = [8, 128], strides = [1, 1]} : vector<8x384xf32> to vector<8x128xf32>
    %cst_4 = arith.constant dense<0xFF800000> : vector<8xf32>
    %8 = vector.multi_reduction <maximumf>, %6, %cst_4 [1] : vector<8x128xf32> to vector<8xf32>
    %9 = vector.shape_cast %8 : vector<8xf32> to vector<8x1xf32>
    %cst_5 = arith.constant dense<0x7F800000> : vector<8xf32>
    %10 = vector.multi_reduction <minimumf>, %6, %cst_5 [1] : vector<8x128xf32> to vector<8xf32>
    %11 = vector.shape_cast %10 : vector<8xf32> to vector<8x1xf32>
    %cst_6 = arith.constant 0.000000e+00 : f32
    %12 = vector.broadcast %cst_6 : f32 to vector<8x128xf32>
    %13 = arith.cmpf oge, %5, %12 : vector<8x128xf32>
    %14 = vector.shape_cast %9 : vector<8x1xf32> to vector<8x1xf32>
    %15 = vector.broadcast %14 : vector<8x1xf32> to vector<8x128xf32>
    %16 = vector.shape_cast %11 : vector<8x1xf32> to vector<8x1xf32>
    %17 = vector.broadcast %16 : vector<8x1xf32> to vector<8x128xf32>
    %18 = arith.select %13, %15, %17 : vector<8x128xi1>, vector<8x128xf32>
    %19 = arith.mulf %5, %18 : vector<8x128xf32>
    %20 = tpu.iota {dimensions = array<i32: 2>} : vector<8x128x2xi32>
    %c0_i32 = arith.constant 0 : i32
    %21 = vector.broadcast %c0_i32 : i32 to vector<8x128x2xi32>
    %22 = arith.cmpi eq, %20, %21 : vector<8x128x2xi32>
    %23 = vector.shape_cast %7 : vector<8x128xf32> to vector<8x128x1xf32>
    %cst_7 = arith.constant 1.000000e+00 : f32
    %24 = vector.shape_cast %23 : vector<8x128x1xf32> to vector<8x128x1xf32>
    %25 = vector.broadcast %24 : vector<8x128x1xf32> to vector<8x128x2xf32>
    %26 = vector.broadcast %cst_7 : f32 to vector<8x128x2xf32>
    %27 = arith.select %22, %25, %26 : vector<8x128x2xi1>, vector<8x128x2xf32>
    %28 = vector.extract_strided_slice %5 {offsets = [0, 0], sizes = [8, 32], strides = [1, 1]} : vector<8x128xf32> to vector<8x32xf32>
    %29 = vector.extract_strided_slice %19 {offsets = [0, 0], sizes = [8, 32], strides = [1, 1]} : vector<8x128xf32> to vector<8x32xf32>
    %30 = vector.shape_cast %28 : vector<8x32xf32> to vector<8x32x1xf32>
    %31 = vector.shape_cast %6 : vector<8x128xf32> to vector<8x1x128xf32>
    %32 = vector.broadcast %30 : vector<8x32x1xf32> to vector<8x32x128xf32>
    %33 = vector.broadcast %31 : vector<8x1x128xf32> to vector<8x32x128xf32>
    %34 = arith.mulf %32, %33 : vector<8x32x128xf32>
    %35 = vector.shape_cast %29 : vector<8x32xf32> to vector<8x32x1xf32>
    %36 = vector.broadcast %35 : vector<8x32x1xf32> to vector<8x32x128xf32>
    %37 = arith.subf %34, %36 : vector<8x32x128xf32>
    %38 = math.exp %37 : vector<8x32x128xf32>
    "tpu.trace_start"() <{level = 10 : i32, message = "bij,bjc->bic"}> : () -> ()
    %cst_8 = arith.constant dense<0.000000e+00> : vector<8x32x2xf32>
    %39 = tpu.matmul %38, %27, %cst_8 {dimension_numbers = #tpu.dot_dimension_numbers<[2], [1], [1], [2], [0, 0, 0, 1, 1, 2], [0], [0]>} : vector<8x32x128xf32>, vector<8x128x2xf32>, vector<8x32x2xf32> -> vector<8x32x2xf32>
    "tpu.trace_stop"() : () -> ()
    %40 = vector.extract_strided_slice %39 {offsets = [0, 0, 1], sizes = [8, 32, 1], strides = [1, 1, 1]} : vector<8x32x2xf32> to vector<8x32x1xf32>
    %41 = vector.shape_cast %40 : vector<8x32x1xf32> to vector<8x32xf32>
    %42 = tpu.reciprocal %41 {approx = true} : vector<8x32xf32> -> vector<8x32xf32>
    %43 = vector.extract_strided_slice %39 {offsets = [0, 0, 0], sizes = [8, 32, 1], strides = [1, 1, 1]} : vector<8x32x2xf32> to vector<8x32x1xf32>
    %44 = vector.shape_cast %43 : vector<8x32x1xf32> to vector<8x32xf32>
    %45 = arith.mulf %44, %42 : vector<8x32xf32>
    %c0_9 = arith.constant 0 : index
    %c0_10 = arith.constant 0 : index
    %46 = vector.load %arg3[%c0_9, %c0_10] : memref<8x128xf32, #tpu.memory_space<vmem>>, vector<8x32xf32>
    tpu.vector_store %arg3[%c0_9, %c0_10], %45 {strides = array<i32>} : memref<8x128xf32, #tpu.memory_space<vmem>>, vector<8x32xf32>,
    %47 = vector.extract_strided_slice %5 {offsets = [0, 32], sizes = [8, 32], strides = [1, 1]} : vector<8x128xf32> to vector<8x32xf32>
    %48 = vector.extract_strided_slice %19 {offsets = [0, 32], sizes = [8, 32], strides = [1, 1]} : vector<8x128xf32> to vector<8x32xf32>
    %49 = vector.shape_cast %47 : vector<8x32xf32> to vector<8x32x1xf32>
    %50 = vector.shape_cast %6 : vector<8x128xf32> to vector<8x1x128xf32>
    %51 = vector.broadcast %49 : vector<8x32x1xf32> to vector<8x32x128xf32>
    %52 = vector.broadcast %50 : vector<8x1x128xf32> to vector<8x32x128xf32>
    %53 = arith.mulf %51, %52 : vector<8x32x128xf32>
    %54 = vector.shape_cast %48 : vector<8x32xf32> to vector<8x32x1xf32>
    %55 = vector.broadcast %54 : vector<8x32x1xf32> to vector<8x32x128xf32>
    %56 = arith.subf %53, %55 : vector<8x32x128xf32>
    %57 = math.exp %56 : vector<8x32x128xf32>
    "tpu.trace_start"() <{level = 10 : i32, message = "bij,bjc->bic"}> : () -> ()
    %cst_11 = arith.constant dense<0.000000e+00> : vector<8x32x2xf32>
    %58 = tpu.matmul %57, %27, %cst_11 {dimension_numbers = #tpu.dot_dimension_numbers<[2], [1], [1], [2], [0, 0, 0, 1, 1, 2], [0], [0]>} : vector<8x32x128xf32>, vector<8x128x2xf32>, vector<8x32x2xf32> -> vector<8x32x2xf32>
    "tpu.trace_stop"() : () -> ()
    %59 = vector.extract_strided_slice %58 {offsets = [0, 0, 1], sizes = [8, 32, 1], strides = [1, 1, 1]} : vector<8x32x2xf32> to vector<8x32x1xf32>
    %60 = vector.shape_cast %59 : vector<8x32x1xf32> to vector<8x32xf32>
    %61 = tpu.reciprocal %60 {approx = true} : vector<8x32xf32> -> vector<8x32xf32>
    %62 = vector.extract_strided_slice %58 {offsets = [0, 0, 0], sizes = [8, 32, 1], strides = [1, 1, 1]} : vector<8x32x2xf32> to vector<8x32x1xf32>
    %63 = vector.shape_cast %62 : vector<8x32x1xf32> to vector<8x32xf32>
    %64 = arith.mulf %63, %61 : vector<8x32xf32>
    %c0_12 = arith.constant 0 : index
    %c32 = arith.constant 32 : index
    %65 = vector.load %arg3[%c0_12, %c32] : memref<8x128xf32, #tpu.memory_space<vmem>>, vector<8x32xf32>
    tpu.vector_store %arg3[%c0_12, %c32], %64 {strides = array<i32>} : memref<8x128xf32, #tpu.memory_space<vmem>>, vector<8x32xf32>,
    %66 = vector.extract_strided_slice %5 {offsets = [0, 64], sizes = [8, 32], strides = [1, 1]} : vector<8x128xf32> to vector<8x32xf32>
    %67 = vector.extract_strided_slice %19 {offsets = [0, 64], sizes = [8, 32], strides = [1, 1]} : vector<8x128xf32> to vector<8x32xf32>
    %68 = vector.shape_cast %66 : vector<8x32xf32> to vector<8x32x1xf32>
    %69 = vector.shape_cast %6 : vector<8x128xf32> to vector<8x1x128xf32>
    %70 = vector.broadcast %68 : vector<8x32x1xf32> to vector<8x32x128xf32>
    %71 = vector.broadcast %69 : vector<8x1x128xf32> to vector<8x32x128xf32>
    %72 = arith.mulf %70, %71 : vector<8x32x128xf32>
    %73 = vector.shape_cast %67 : vector<8x32xf32> to vector<8x32x1xf32>
    %74 = vector.broadcast %73 : vector<8x32x1xf32> to vector<8x32x128xf32>
    %75 = arith.subf %72, %74 : vector<8x32x128xf32>
    %76 = math.exp %75 : vector<8x32x128xf32>
    "tpu.trace_start"() <{level = 10 : i32, message = "bij,bjc->bic"}> : () -> ()
    %cst_13 = arith.constant dense<0.000000e+00> : vector<8x32x2xf32>
    %77 = tpu.matmul %76, %27, %cst_13 {dimension_numbers = #tpu.dot_dimension_numbers<[2], [1], [1], [2], [0, 0, 0, 1, 1, 2], [0], [0]>} : vector<8x32x128xf32>, vector<8x128x2xf32>, vector<8x32x2xf32> -> vector<8x32x2xf32>
    "tpu.trace_stop"() : () -> ()
    %78 = vector.extract_strided_slice %77 {offsets = [0, 0, 1], sizes = [8, 32, 1], strides = [1, 1, 1]} : vector<8x32x2xf32> to vector<8x32x1xf32>
    %79 = vector.shape_cast %78 : vector<8x32x1xf32> to vector<8x32xf32>
    %80 = tpu.reciprocal %79 {approx = true} : vector<8x32xf32> -> vector<8x32xf32>
    %81 = vector.extract_strided_slice %77 {offsets = [0, 0, 0], sizes = [8, 32, 1], strides = [1, 1, 1]} : vector<8x32x2xf32> to vector<8x32x1xf32>
    %82 = vector.shape_cast %81 : vector<8x32x1xf32> to vector<8x32xf32>
    %83 = arith.mulf %82, %80 : vector<8x32xf32>
    %c0_14 = arith.constant 0 : index
    %c64 = arith.constant 64 : index
    %84 = vector.load %arg3[%c0_14, %c64] : memref<8x128xf32, #tpu.memory_space<vmem>>, vector<8x32xf32>
    tpu.vector_store %arg3[%c0_14, %c64], %83 {strides = array<i32>} : memref<8x128xf32, #tpu.memory_space<vmem>>, vector<8x32xf32>,
    %85 = vector.extract_strided_slice %5 {offsets = [0, 96], sizes = [8, 32], strides = [1, 1]} : vector<8x128xf32> to vector<8x32xf32>
    %86 = vector.extract_strided_slice %19 {offsets = [0, 96], sizes = [8, 32], strides = [1, 1]} : vector<8x128xf32> to vector<8x32xf32>
    %87 = vector.shape_cast %85 : vector<8x32xf32> to vector<8x32x1xf32>
    %88 = vector.shape_cast %6 : vector<8x128xf32> to vector<8x1x128xf32>
    %89 = vector.broadcast %87 : vector<8x32x1xf32> to vector<8x32x128xf32>
    %90 = vector.broadcast %88 : vector<8x1x128xf32> to vector<8x32x128xf32>
    %91 = arith.mulf %89, %90 : vector<8x32x128xf32>
    %92 = vector.shape_cast %86 : vector<8x32xf32> to vector<8x32x1xf32>
    %93 = vector.broadcast %92 : vector<8x32x1xf32> to vector<8x32x128xf32>
    %94 = arith.subf %91, %93 : vector<8x32x128xf32>
    %95 = math.exp %94 : vector<8x32x128xf32>
    "tpu.trace_start"() <{level = 10 : i32, message = "bij,bjc->bic"}> : () -> ()
    %cst_15 = arith.constant dense<0.000000e+00> : vector<8x32x2xf32>
    %96 = tpu.matmul %95, %27, %cst_15 {dimension_numbers = #tpu.dot_dimension_numbers<[2], [1], [1], [2], [0, 0, 0, 1, 1, 2], [0], [0]>} : vector<8x32x128xf32>, vector<8x128x2xf32>, vector<8x32x2xf32> -> vector<8x32x2xf32>
    "tpu.trace_stop"() : () -> ()
    %97 = vector.extract_strided_slice %96 {offsets = [0, 0, 1], sizes = [8, 32, 1], strides = [1, 1, 1]} : vector<8x32x2xf32> to vector<8x32x1xf32>
    %98 = vector.shape_cast %97 : vector<8x32x1xf32> to vector<8x32xf32>
    %99 = tpu.reciprocal %98 {approx = true} : vector<8x32xf32> -> vector<8x32xf32>
    %100 = vector.extract_strided_slice %96 {offsets = [0, 0, 0], sizes = [8, 32, 1], strides = [1, 1, 1]} : vector<8x32x2xf32> to vector<8x32x1xf32>
    %101 = vector.shape_cast %100 : vector<8x32x1xf32> to vector<8x32xf32>
    %102 = arith.mulf %101, %99 : vector<8x32xf32>
    %c0_16 = arith.constant 0 : index
    %c96 = arith.constant 96 : index
    %103 = vector.load %arg3[%c0_16, %c96] : memref<8x128xf32, #tpu.memory_space<vmem>>, vector<8x32xf32>
    tpu.vector_store %arg3[%c0_16, %c96], %102 {strides = array<i32>} : memref<8x128xf32, #tpu.memory_space<vmem>>, vector<8x32xf32>,
    return
  }
  func.func @transform_0(%arg0: i32) -> (i32, i32) {
    %c0_i32 = arith.constant 0 : i32
    %c0_i32_0 = arith.constant 0 : i32
    %c0_i32_1 = arith.constant 0 : i32
    return %c0_i32, %c0_i32_0 : i32, i32
  }
  func.func @transform_1(%arg0: i32) -> (i32, i32) {
    %c0_i32 = arith.constant 0 : i32
    %c0_i32_0 = arith.constant 0 : i32
    %c0_i32_1 = arith.constant 0 : i32
    return %c0_i32, %c0_i32_0 : i32, i32
  }
  func.func @transform_2(%arg0: i32) -> (i32, i32) {
    %c0_i32 = arith.constant 0 : i32
    %c0_i32_0 = arith.constant 0 : i32
    %c0_i32_1 = arith.constant 0 : i32
    return %c0_i32, %c0_i32_0 : i32, i32
  }
}

</mosaic_0001>

<bundles_post_ra>
// kernel: tpu_custom_call.1
= control target key start
LH: loop header
LB: loop body
LE: loop exit
PB: predicated region body
PF: predicated region fallthrough
CT: control target
= control target key end

     0   :  { %7 = vsyncpa [#allocation3], 0  ;;  %s14343_s0 = inlined_call_operand.hbm [shape: f32[8,256], index: 0, kind: input, shape index: {}]   ;;  %s14344_s1 = inlined_call_operand.hbm [shape: f32[256,384], index: 1, kind: input, shape index: {}]   ;;  %s14345_s2 = inlined_call_operand.hbm [shape: f32[8,128], index: 2, kind: output, shape index: {}]  }
   0x1   :  { %8 = vsyncpa [#allocation6], 0 }
   0x2   :  { %9 = vsyncpa [#allocation4], 0  ;;  %s9835_s9 = smov [#allocation2]   ;;  %s9836_s11 = smov [#allocation5]  }
   0x3   :  { %s16_s10 = sshll.u32 %s9835_s9, 4  ;;  %s25_s12 = sshll.u32 %s9836_s11, 4  ;;  %s17_s10 = int_to_ptr.vmem [resolvable:$true] %s16_s10  ;;  %s26_s12 = int_to_ptr.vmem [resolvable:$true] %s25_s12 }
   0x4   :  { %s9777_s13 = scalar_lea.vmem %s17_s10, 256  ;;  %p9782_p1 = scmp.lt.s32.totalorder %s17_s10, %s17_s10 }
   0x5   :  { %p9778_p0 = scmp.ne.s32.totalorder %s17_s10, %s9777_s13  ;;  %p9783_p2 = scmp.lt.s32.totalorder %s9777_s13, %s9777_s13 }
   0x7   :  { %p9784_p3 = por %p9783_p2, %p9782_p1 }
   0x9   :  { %p9785_p4 = pnand %p9784_p3, %p9778_p0 }
   0xb   :  { %9788 = shalt.err (!%p9785_p4)
}
   0xc   :  { %19 = dma.hbm_to_vmem [thread:$0]  %s14343_s0, 256, %s17_s10, [#allocation3]  }
   0xd   :  { %s9797_s16 = scalar_lea.vmem %s26_s12, 12288  ;;  %p9802_p6 = scmp.lt.s32.totalorder %s26_s12, %s26_s12 }
   0xe   :  { %p9798_p5 = scmp.ne.s32.totalorder %s26_s12, %s9797_s16  ;;  %p9803_p7 = scmp.lt.s32.totalorder %s9797_s16, %s9797_s16 }
  0x10   :  { %p9804_p8 = por %p9803_p7, %p9802_p6 }
  0x12   :  { %p9805_p9 = pnand %p9804_p8, %p9798_p5 }
  0x14   :  { %9808 = shalt.err (!%p9805_p9)
}
  0x15   :  { %s9837_s17 = smov 384   ;;  %s9838_s18 = smov 24  }
  0x16   :  { %31 = dma.hbm_to_vmem [thread:$0]  %s14344_s1, 12288, %s26_s12, [#allocation6], %s9837_s17, %s9837_s17, %s9838_s18  }
  0x17   :  { %9829 = dma.done.wait [#allocation3], 256  }
  0x18   :  { %9830 = vsyncadd [#allocation3], 4294967040 }
  0x19   :  { %9831 = dma.done.wait [#allocation6], 12288  }
  0x1a   :  { %9832 = vsyncadd [#allocation6], 4294955008  ;;  %v135_v0 = vld [vmem:[#allocation5 + $0x2f8] sm:$0xff]  ;;  %v132_v2 = vld [vmem:[#allocation5 + $0x2e0] sm:$0xff]  ;;  %s9840_s0 = smov 127   ;;  %vm2483_vm2 = vcmask 130112  }
  0x1b   :  { %v87_v1 = vld [vmem:[#allocation5 + $0x178] sm:$0xff]  ;;  %7324 = vmatprep.subr.mxu1 %v135_v0  ;;  %v84_v3 = vld [vmem:[#allocation5 + $0x160] sm:$0xff]  ;;  %v129_v4 = vld [vmem:[#allocation5 + $0x2c8] sm:$0xff]  ;;  %vm2490_vm3 = vcmask 195712   ;;  %vm2497_vm4 = vcmask 261312   ;;  %vm2632_vm5 = vcmask 1041409  }
  0x1c   :  { %7325 = vmatpush3.msra.mxu1 %v87_v1  ;;  %v81_v5 = vld [vmem:[#allocation5 + $0x148] sm:$0xff]  ;;  %v126_v6 = vld [vmem:[#allocation5 + $0x2b0] sm:$0xff]  ;;  %v123_v8 = vld [vmem:[#allocation5 + $0x298] sm:$0xff]  ;;  %vm2634_vm6 = vcmask 1042434   ;;  %vm2636_vm7 = vcmask 1043459   ;;  %vm2638_vm8 = vcmask 1044484  }
  0x1d   :  { %7326 = vmatprep.subr.mxu1 %v132_v2  ;;  %v78_v7 = vld [vmem:[#allocation5 + $0x130] sm:$0xff]  ;;  %v75_v9 = vld [vmem:[#allocation5 + $0x118] sm:$0xff]  ;;  %v120_v10 = vld [vmem:[#allocation5 + $0x280] sm:$0xff]  ;;  %vm2640_vm9 = vcmask 1045509   ;;  %vm2642_vm10 = vcmask 1046534   ;;  %vm2644_vm11 = vcmask 1047559  }
  0x1e   :  { %7327 = vmatpush3.msra.mxu1 %v84_v3  ;;  %v72_v11 = vld [vmem:[#allocation5 + $0x100] sm:$0xff]  ;;  %v117_v12 = vld [vmem:[#allocation5 + $0x268] sm:$0xff]  ;;  %v39_v13 = vld [vmem:[#allocation2 + $0x8] sm:$0xff]  ;;  %vm2647_vm12 = vcmask 261120   ;;  %vm4043_vm13 = vcmask 392512   ;;  %vm4050_vm14 = vcmask 458112  }
  0x1f   :  { %7328 = vmatprep.subr.mxu1 %v129_v4  ;;  %v69_v14 = vld [vmem:[#allocation5 + $0xe8] sm:$0xff]  ;;  %271 = vmatprep.mubr.f32.mxu1 %v39_v13  ;;  %v114_v15 = vld [vmem:[#allocation5 + $0x250] sm:$0xff]  ;;  %v111_v17 = vld [vmem:[#allocation5 + $0x238] sm:$0xff]  ;;  %vm4057_vm15 = vcmask 523712   ;;  %s9842_s1 = smov [#allocation7]  }
  0x20   :  { %7329 = vmatpush3.msra.mxu1 %v81_v5  ;;  %200 = vmatprep.mubr.f32.mxu0 %v39_v13  ;;  %v66_v16 = vld [vmem:[#allocation5 + $0xd0] sm:$0xff]  ;;  %v63_v18 = vld [vmem:[#allocation5 + $0xb8] sm:$0xff]  ;;  %v108_v19 = vld [vmem:[#allocation5 + $0x220] sm:$0xff]  ;;  %s7314_s21 = sshll.u32 %s9842_s1, 4  ;;  %s7315_s21 = int_to_ptr.vmem [resolvable:$true] %s7314_s21 }
  0x21   :  { %7330 = vmatprep.subr.mxu1 %v126_v6  ;;  %v60_v20 = vld [vmem:[#allocation5 + $0xa0] sm:$0xff]  ;;  %v105_v21 = vld [vmem:[#allocation5 + $0x208] sm:$0xff]  ;;  %v102_v23 = vld [vmem:[#allocation5 + $0x1f0] sm:$0xff]  ;;  %s9809_s22 = scalar_lea.vmem %s7315_s21, 128  ;;  %p9814_p11 = scmp.lt.s32.totalorder %s7315_s21, %s7315_s21 }
  0x22   :  { %7331 = vmatpush3.msra.mxu1 %v78_v7  ;;  %v57_v22 = vld [vmem:[#allocation5 + $0x88] sm:$0xff]  ;;  %v54_v24 = vld [vmem:[#allocation5 + $0x70] sm:$0xff]  ;;  %v99_v25 = vld [vmem:[#allocation5 + $0x1d8] sm:$0xff]  ;;  %p9810_p10 = scmp.ne.s32.totalorder %s7315_s21, %s9809_s22  ;;  %p9815_p12 = scmp.lt.s32.totalorder %s9809_s22, %s9809_s22 }
  0x23   :  { %7332 = vmatprep.subr.mxu1 %v123_v8  ;;  %v51_v26 = vld [vmem:[#allocation5 + $0x58] sm:$0xff]  ;;  %v96_v27 = vld [vmem:[#allocation5 + $0x1c0] sm:$0xff]  ;;  %v93_v29 = vld [vmem:[#allocation5 + $0x1a8] sm:$0xff] }
  0x24   :  { %7333 = vmatpush3.msra.mxu1 %v75_v9  ;;  %v48_v28 = vld [vmem:[#allocation5 + $0x40] sm:$0xff]  ;;  %v45_v30 = vld [vmem:[#allocation5 + $0x28] sm:$0xff]  ;;  %v90_v31 = vld [vmem:[#allocation5 + $0x190] sm:$0xff]  ;;  %p9816_p13 = por %p9815_p12, %p9814_p11 }
  0x25   :  { %7334 = vmatprep.subr.mxu1 %v120_v10  ;;  %v42_v32 = vld [vmem:[#allocation5 + $0x10] sm:$0xff]  ;;  %v85_v35 = vld [vmem:[#allocation5 + $0x168] sm:$0xff]  ;;  %v83_v36 = vld [vmem:[#allocation5 + $0x158] sm:$0xff] }
  0x26   :  { %7335 = vmatpush3.msra.mxu1 %v72_v11  ;;  %v9864_v33 = vld [vmem:[#allocation2] sm:$0xff]  ;;  %v80_v38 = vld [vmem:[#allocation5 + $0x140] sm:$0xff]  ;;  %v79_v39 = vld [vmem:[#allocation5 + $0x138] sm:$0xff]  ;;  %p9817_p0 = pnand %p9816_p13, %p9810_p10 }
  0x27   :  { %7336 = vmatprep.subr.mxu1 %v117_v12  ;;  %v86_v34 = vld [vmem:[#allocation5 + $0x170] sm:$0xff]  ;;  %v77_v40 = vld [vmem:[#allocation5 + $0x128] sm:$0xff]  ;;  %v76_v41 = vld [vmem:[#allocation5 + $0x120] sm:$0xff] }
  0x28   :  { %7337 = vmatpush3.msra.mxu1 %v69_v14  ;;  %136 = vmatprep.subr.mxu0 %v86_v34  ;;  %v82_v37 = vld [vmem:[#allocation5 + $0x150] sm:$0xff]  ;;  %v73_v43 = vld [vmem:[#allocation5 + $0x108] sm:$0xff]  ;;  %v71_v44 = vld [vmem:[#allocation5 + $0xf8] sm:$0xff] }
  0x29   :  { %7338 = vmatprep.subr.mxu1 %v114_v15  ;;  %137 = vmatpush1.msra.mxu0 %v85_v35  ;;  %v74_v42 = vld [vmem:[#allocation5 + $0x110] sm:$0xff]  ;;  %v68_v46 = vld [vmem:[#allocation5 + $0xe0] sm:$0xff]  ;;  %v67_v47 = vld [vmem:[#allocation5 + $0xd8] sm:$0xff]  ;;  %v285_v35 = vlaneseq }
  0x2a   :  { %7339 = vmatpush3.msra.mxu1 %v66_v16  ;;  %138 = vmatprep.subr.mxu0 %v83_v36  ;;  %v70_v45 = vld [vmem:[#allocation5 + $0xf0] sm:$0xff]  ;;  %v65_v48 = vld [vmem:[#allocation5 + $0xc8] sm:$0xff]  ;;  %v64_v49 = vld [vmem:[#allocation5 + $0xc0] sm:$0xff] }
  0x2b   :  { %7340 = vmatprep.subr.mxu1 %v111_v17  ;;  %139 = vmatpush1.msra.mxu0 %v82_v37  ;;  %v62_v50 = vld [vmem:[#allocation5 + $0xb0] sm:$0xff]  ;;  %v61_v51 = vld [vmem:[#allocation5 + $0xa8] sm:$0xff]  ;;  %v59_v52 = vld [vmem:[#allocation5 + $0x98] sm:$0xff]  ;;  %v9869_v36 = vshrl.u32 %v285_v35, 7 }
  0x2c   :  { %7341 = vmatpush3.msra.mxu1 %v63_v18  ;;  %140 = vmatprep.subr.mxu0 %v80_v38  ;;  %v58_v53 = vld [vmem:[#allocation5 + $0x90] sm:$0xff]  ;;  %v56_v54 = vld [vmem:[#allocation5 + $0x80] sm:$0xff]  ;;  %v55_v55 = vld [vmem:[#allocation5 + $0x78] sm:$0xff] }
  0x2d   :  { %7342 = vmatprep.subr.mxu1 %v108_v19  ;;  %141 = vmatpush1.msra.mxu0 %v79_v39  ;;  %v53_v56 = vld [vmem:[#allocation5 + $0x68] sm:$0xff]  ;;  %v52_v57 = vld [vmem:[#allocation5 + $0x60] sm:$0xff]  ;;  %v50_v58 = vld [vmem:[#allocation5 + $0x50] sm:$0xff]  ;;  %14922 = vst [vmem:[#allocation11_spill] sm:$0xff] %v9869_v36  ;;  %v9872_v38 = vsub.s32 0, %v9869_v36 }
  0x2e   :  { %7343 = vmatpush3.msra.mxu1 %v60_v20  ;;  %142 = vmatprep.subr.mxu0 %v77_v40  ;;  %v49_v59 = vld [vmem:[#allocation5 + $0x48] sm:$0xff]  ;;  %v47_v60 = vld [vmem:[#allocation5 + $0x38] sm:$0xff]  ;;  %v46_v61 = vld [vmem:[#allocation5 + $0x30] sm:$0xff] }
  0x2f   :  { %7344 = vmatprep.subr.mxu1 %v105_v21  ;;  %143 = vmatpush1.msra.mxu0 %v76_v41  ;;  %v44_v62 = vld [vmem:[#allocation5 + $0x20] sm:$0xff]  ;;  %v43_v63 = vld [vmem:[#allocation5 + $0x18] sm:$0xff]  ;;  %v41_v0 = vld [vmem:[#allocation5 + $0x8] sm:$0xff] }
  0x30   :  { %7345 = vmatpush3.msra.mxu1 %v57_v22  ;;  %144 = vmatprep.subr.mxu0 %v74_v42  ;;  %v40_v1 = vld [vmem:[#allocation5] sm:$0xff]  ;;  %v134_v2 = vld [vmem:[#allocation5 + $0x2f0] sm:$0xff]  ;;  %v133_v3 = vld [vmem:[#allocation5 + $0x2e8] sm:$0xff] }
  0x31   :  { %7346 = vmatprep.subr.mxu1 %v102_v23  ;;  %145 = vmatpush1.msra.mxu0 %v73_v43  ;;  %v131_v4 = vld [vmem:[#allocation5 + $0x2d8] sm:$0xff]  ;;  %v130_v5 = vld [vmem:[#allocation5 + $0x2d0] sm:$0xff]  ;;  %v128_v6 = vld [vmem:[#allocation5 + $0x2c0] sm:$0xff]  ;;  %v9884_v43 = vsub.s32 2, %v9869_v36 }
  0x32   :  { %7347 = vmatpush3.msra.mxu1 %v54_v24  ;;  %146 = vmatprep.subr.mxu0 %v71_v44  ;;  %v127_v7 = vld [vmem:[#allocation5 + $0x2b8] sm:$0xff]  ;;  %v125_v8 = vld [vmem:[#allocation5 + $0x2a8] sm:$0xff]  ;;  %v124_v9 = vld [vmem:[#allocation5 + $0x2a0] sm:$0xff] }
  0x33   :  { %7348 = vmatprep.subr.mxu1 %v99_v25  ;;  %147 = vmatpush1.msra.mxu0 %v70_v45  ;;  %v122_v10 = vld [vmem:[#allocation5 + $0x290] sm:$0xff]  ;;  %v121_v11 = vld [vmem:[#allocation5 + $0x288] sm:$0xff]  ;;  %v119_v12 = vld [vmem:[#allocation5 + $0x278] sm:$0xff]  ;;  %v9889_v45 = vsub.s32 3, %v9869_v36 }
  0x34   :  { %7349 = vmatpush3.msra.mxu1 %v51_v26  ;;  %148 = vmatprep.subr.mxu0 %v68_v46  ;;  %v118_v13 = vld [vmem:[#allocation5 + $0x270] sm:$0xff]  ;;  %v116_v14 = vld [vmem:[#allocation5 + $0x260] sm:$0xff]  ;;  %v115_v15 = vld [vmem:[#allocation5 + $0x258] sm:$0xff] }
  0x35   :  { %7350 = vmatprep.subr.mxu1 %v96_v27  ;;  %149 = vmatpush1.msra.mxu0 %v67_v47  ;;  %v113_v16 = vld [vmem:[#allocation5 + $0x248] sm:$0xff]  ;;  %v112_v17 = vld [vmem:[#allocation5 + $0x240] sm:$0xff]  ;;  %v110_v18 = vld [vmem:[#allocation5 + $0x230] sm:$0xff]  ;;  %v9894_v47 = vsub.s32 4, %v9869_v36 }
  0x36   :  { %7351 = vmatpush3.msra.mxu1 %v48_v28  ;;  %150 = vmatprep.subr.mxu0 %v65_v48  ;;  %v109_v19 = vld [vmem:[#allocation5 + $0x228] sm:$0xff]  ;;  %v107_v20 = vld [vmem:[#allocation5 + $0x218] sm:$0xff]  ;;  %v106_v21 = vld [vmem:[#allocation5 + $0x210] sm:$0xff] }
  0x37   :  { %7352 = vmatprep.subr.mxu1 %v93_v29  ;;  %151 = vmatpush1.msra.mxu0 %v64_v49  ;;  %v104_v22 = vld [vmem:[#allocation5 + $0x200] sm:$0xff]  ;;  %v103_v23 = vld [vmem:[#allocation5 + $0x1f8] sm:$0xff]  ;;  %v101_v24 = vld [vmem:[#allocation5 + $0x1e8] sm:$0xff] }
  0x38   :  { %7353 = vmatpush3.msra.mxu1 %v45_v30  ;;  %152 = vmatprep.subr.mxu0 %v62_v50  ;;  %v100_v25 = vld [vmem:[#allocation5 + $0x1e0] sm:$0xff]  ;;  %v98_v26 = vld [vmem:[#allocation5 + $0x1d0] sm:$0xff]  ;;  %v97_v27 = vld [vmem:[#allocation5 + $0x1c8] sm:$0xff] }
  0x39   :  { %7354 = vmatprep.subr.mxu1 %v90_v31  ;;  %153 = vmatpush1.msra.mxu0 %v61_v51  ;;  %v95_v28 = vld [vmem:[#allocation5 + $0x1b8] sm:$0xff]  ;;  %v94_v29 = vld [vmem:[#allocation5 + $0x1b0] sm:$0xff]  ;;  %v92_v30 = vld [vmem:[#allocation5 + $0x1a0] sm:$0xff] }
  0x3a   :  { %7355 = vmatpush3.msra.mxu1 %v42_v32  ;;  %154 = vmatprep.subr.mxu0 %v59_v52  ;;  %v91_v31 = vld [vmem:[#allocation5 + $0x198] sm:$0xff]  ;;  %v89_v32 = vld [vmem:[#allocation5 + $0x188] sm:$0xff]  ;;  %v88_v34 = vld [vmem:[#allocation5 + $0x180] sm:$0xff] }
  0x3b   :  { %272 = vmatmul.mubr.f32.vlgmr.msra.gmra.mxu1 %v9864_v33  ;;  %155 = vmatpush1.msra.mxu0 %v58_v53 }
  0x3c   :  { %156 = vmatprep.subr.mxu0 %v56_v54 }
  0x3d   :  { %157 = vmatpush1.msra.mxu0 %v55_v55  ;;  %v9914_v55 = vand.u32 127, %v285_v35 }
  0x3e   :  { %158 = vmatprep.subr.mxu0 %v53_v56 }
  0x3f   :  { %159 = vmatpush1.msra.mxu0 %v52_v57  ;;  %14923 = vst [vmem:[#allocation12_spill] sm:$0xff] %v9914_v55  ;;  %vm287_vm0 = vcmp.eq.s32.totalorder %v9914_v55, 0 }
  0x40   :  { %160 = vmatprep.subr.mxu0 %v50_v58 }
  0x41   :  { %161 = vmatpush1.msra.mxu0 %v49_v59 }
  0x42   :  { %162 = vmatprep.subr.mxu0 %v47_v60 }
  0x43   :  { %163 = vmatpush1.msra.mxu0 %v46_v61 }
  0x44   :  { %164 = vmatprep.subr.mxu0 %v44_v62 }
  0x45   :  { %165 = vmatpush1.msra.mxu0 %v43_v63 }
  0x46   :  { %166 = vmatprep.subr.mxu0 %v41_v0 }
  0x47   :  { %167 = vmatpush1.msra.mxu0 %v40_v1  ;;  %v9939_v1 = vsub.s32 5, %v9869_v36 }
  0x48   :  { %168 = vmatprep.subr.mxu0 %v134_v2 }
  0x49   :  { %169 = vmatpush2.msra.mxu0 %v133_v3 }
  0x4a   :  { %170 = vmatprep.subr.mxu0 %v131_v4 }
  0x4b   :  { %171 = vmatpush2.msra.mxu0 %v130_v5 }
  0x4c   :  { %172 = vmatprep.subr.mxu0 %v128_v6 }
  0x4d   :  { %173 = vmatpush2.msra.mxu0 %v127_v7 }
  0x4e   :  { %174 = vmatprep.subr.mxu0 %v125_v8 }
  0x4f   :  { %175 = vmatpush2.msra.mxu0 %v124_v9 }
  0x50   :  { %176 = vmatprep.subr.mxu0 %v122_v10 }
  0x51   :  { %177 = vmatpush2.msra.mxu0 %v121_v11 }
  0x52   :  { %178 = vmatprep.subr.mxu0 %v119_v12 }
  0x53   :  { %179 = vmatpush2.msra.mxu0 %v118_v13 }
  0x54   :  { %180 = vmatprep.subr.mxu0 %v116_v14 }
  0x55   :  { %181 = vmatpush2.msra.mxu0 %v115_v15 }
  0x56   :  { %182 = vmatprep.subr.mxu0 %v113_v16 }
  0x57   :  { %183 = vmatpush2.msra.mxu0 %v112_v17 }
  0x58   :  { %184 = vmatprep.subr.mxu0 %v110_v18 }
  0x59   :  { %185 = vmatpush2.msra.mxu0 %v109_v19 }
  0x5a   :  { %186 = vmatprep.subr.mxu0 %v107_v20 }
  0x5b   :  { %187 = vmatpush2.msra.mxu0 %v106_v21 }
  0x5c   :  { %188 = vmatprep.subr.mxu0 %v104_v22 }
  0x5d   :  { %189 = vmatpush2.msra.mxu0 %v103_v23 }
  0x5e   :  { %190 = vmatprep.subr.mxu0 %v101_v24 }
  0x5f   :  { %191 = vmatpush2.msra.mxu0 %v100_v25 }
  0x60   :  { %192 = vmatprep.subr.mxu0 %v98_v26 }
  0x61   :  { %193 = vmatpush2.msra.mxu0 %v97_v27 }
  0x62   :  { %194 = vmatprep.subr.mxu0 %v95_v28 }
  0x63   :  { %195 = vmatpush2.msra.mxu0 %v94_v29  ;;  %v10045_v29 = vsub.s32 6, %v9869_v36 }
  0x64   :  { %196 = vmatprep.subr.mxu0 %v92_v30 }
  0x65   :  { %197 = vmatpush2.msra.mxu0 %v91_v31 }
  0x66   :  { %198 = vmatprep.subr.mxu0 %v89_v32 }
  0x67   :  { %199 = vmatpush2.msra.mxu0 %v88_v34 }
  0x68   :  { %201 = vmatmul.mubr.f32.vlgmr.msra.gmra.mxu0 %v9864_v33  ;;  %v9879_v33 = vsub.s32 1, %v9869_v36 }
  0xfb   :  { %v7356_v37 = vpop.f32.mrf.mxu1 }
  0xfd   :  { %v7357_v39 = vpop.f32.mrf.mxu1 }
  0xfe   :  { %v9874_v40 = vadd.f32 %v7357_v39, %v7356_v37 }
 0x100   :  { %v291_v41 = vrot.slane %v9874_v40, %v9872_v38  ;;  %v358_v42 = vrot.slane %v9874_v40, %v9879_v33  ;;  %v425_v44 = vrot.slane %v9874_v40, %v9884_v43  ;;  %v492_v46 = vrot.slane %v9874_v40, %v9889_v45 }
 0x101   :  { %v9898_v48 = vrot.slane %v9874_v40, %v9894_v47  ;;  %v9947_v4 = vrot.slane %v9874_v40, %v9939_v1  ;;  %v10067_v35 = vrot.slane %v9874_v40, %v10045_v29 }
 0x102   :  { %301 = vbcast.lane.b32.xlu0 %v291_v41, 272  ;;  %293 = vbcast.lane.b32.xlu1 %v291_v41, 256 }
 0x106   :  { %329 = vbcast.lane.b32.xlu0 %v291_v41, 328  ;;  %297 = vbcast.lane.b32.xlu1 %v291_v41, 264 }
 0x10a   :  { %337 = vbcast.lane.b32.xlu0 %v291_v41, 344  ;;  %305 = vbcast.lane.b32.xlu1 %v291_v41, 280 }
 0x10e   :  { %345 = vbcast.lane.b32.xlu0 %v291_v41, 360  ;;  %309 = vbcast.lane.b32.xlu1 %v291_v41, 288 }
 0x112   :  { %353 = vbcast.lane.b32.xlu0 %v291_v41, 376  ;;  %313 = vbcast.lane.b32.xlu1 %v291_v41, 296 }
 0x116   :  { %364 = vbcast.lane.b32.xlu0 %v358_v42, 264  ;;  %317 = vbcast.lane.b32.xlu1 %v291_v41, 304 }
 0x11a   :  { %372 = vbcast.lane.b32.xlu0 %v358_v42, 280  ;;  %321 = vbcast.lane.b32.xlu1 %v291_v41, 312 }
 0x11e   :  { %380 = vbcast.lane.b32.xlu0 %v358_v42, 296  ;;  %325 = vbcast.lane.b32.xlu1 %v291_v41, 320 }
 0x122   :  { %388 = vbcast.lane.b32.xlu0 %v358_v42, 312  ;;  %333 = vbcast.lane.b32.xlu1 %v291_v41, 336 }
 0x126   :  { %396 = vbcast.lane.b32.xlu0 %v358_v42, 328  ;;  %341 = vbcast.lane.b32.xlu1 %v291_v41, 352 }
 0x12a   :  { %404 = vbcast.lane.b32.xlu0 %v358_v42, 344  ;;  %349 = vbcast.lane.b32.xlu1 %v291_v41, 368 }
 0x12e   :  { %412 = vbcast.lane.b32.xlu0 %v358_v42, 360  ;;  %360 = vbcast.lane.b32.xlu1 %v358_v42, 256 }
 0x132   :  { %420 = vbcast.lane.b32.xlu0 %v358_v42, 376  ;;  %368 = vbcast.lane.b32.xlu1 %v358_v42, 272 }
 0x136   :  { %431 = vbcast.lane.b32.xlu0 %v425_v44, 264  ;;  %376 = vbcast.lane.b32.xlu1 %v358_v42, 288 }
 0x13a   :  { %439 = vbcast.lane.b32.xlu0 %v425_v44, 280  ;;  %384 = vbcast.lane.b32.xlu1 %v358_v42, 304 }
 0x13e   :  { %447 = vbcast.lane.b32.xlu0 %v425_v44, 296  ;;  %392 = vbcast.lane.b32.xlu1 %v358_v42, 320 }
 0x142   :  { %455 = vbcast.lane.b32.xlu0 %v425_v44, 312  ;;  %400 = vbcast.lane.b32.xlu1 %v358_v42, 336 }
 0x146   :  { %463 = vbcast.lane.b32.xlu0 %v425_v44, 328  ;;  %408 = vbcast.lane.b32.xlu1 %v358_v42, 352 }
 0x14a   :  { %471 = vbcast.lane.b32.xlu0 %v425_v44, 344  ;;  %416 = vbcast.lane.b32.xlu1 %v358_v42, 368 }
 0x14e   :  { %479 = vbcast.lane.b32.xlu0 %v425_v44, 360  ;;  %427 = vbcast.lane.b32.xlu1 %v425_v44, 256 }
 0x152   :  { %487 = vbcast.lane.b32.xlu0 %v425_v44, 376  ;;  %435 = vbcast.lane.b32.xlu1 %v425_v44, 272 }
 0x156   :  { %498 = vbcast.lane.b32.xlu0 %v492_v46, 264  ;;  %443 = vbcast.lane.b32.xlu1 %v425_v44, 288 }
 0x15a   :  { %506 = vbcast.lane.b32.xlu0 %v492_v46, 280  ;;  %451 = vbcast.lane.b32.xlu1 %v425_v44, 304 }
 0x15e   :  { %514 = vbcast.lane.b32.xlu0 %v492_v46, 296  ;;  %459 = vbcast.lane.b32.xlu1 %v425_v44, 320 }
 0x162   :  { %522 = vbcast.lane.b32.xlu0 %v492_v46, 312  ;;  %467 = vbcast.lane.b32.xlu1 %v425_v44, 336 }
 0x166   :  { %530 = vbcast.lane.b32.xlu0 %v492_v46, 328  ;;  %475 = vbcast.lane.b32.xlu1 %v425_v44, 352 }
 0x16a   :  { %538 = vbcast.lane.b32.xlu0 %v492_v46, 344  ;;  %483 = vbcast.lane.b32.xlu1 %v425_v44, 368 }
 0x16e   :  { %546 = vbcast.lane.b32.xlu0 %v492_v46, 360  ;;  %494 = vbcast.lane.b32.xlu1 %v492_v46, 256 }
 0x172   :  { %554 = vbcast.lane.b32.xlu0 %v492_v46, 376  ;;  %502 = vbcast.lane.b32.xlu1 %v492_v46, 272 }
 0x174   :  { %v9900_v49 = vpop.permute.xlu0 %301  ;;  %v9902_v50 = vpop.permute.xlu1 %293 }
 0x175   :  { %v10081_v42 = vsel %vm287_vm0, %v9900_v49, 1.0  ;;  %v10099_v49 = vsel %vm287_vm0, %v9902_v50, 1.0 }
 0x176   :  { %565 = vbcast.lane.b32.xlu0 %v9898_v48, 264  ;;  %510 = vbcast.lane.b32.xlu1 %v492_v46, 288  ;;  %14939 = vst [vmem:[#allocation28_spill] sm:$0xff] %v10081_v42  ;;  %14941 = vst [vmem:[#allocation30_spill] sm:$0xff] %v10099_v49 }
 0x178   :  { %v9905_v51 = vpop.permute.xlu0 %329  ;;  %v9907_v52 = vpop.permute.xlu1 %297 }
 0x179   :  { %v10008_v21 = vsel %vm287_vm0, %v9905_v51, 1.0  ;;  %v10090_v44 = vsel %vm287_vm0, %v9907_v52, 1.0 }
 0x17a   :  { %573 = vbcast.lane.b32.xlu0 %v9898_v48, 280  ;;  %518 = vbcast.lane.b32.xlu1 %v492_v46, 304  ;;  %14931 = vst [vmem:[#allocation20_spill] sm:$0xff] %v10008_v21  ;;  %14940 = vst [vmem:[#allocation29_spill] sm:$0xff] %v10090_v44 }
 0x17c   :  { %v338_v53 = vpop.permute.xlu0 %337  ;;  %v9910_v54 = vpop.permute.xlu1 %305 }
 0x17d   :  { %v9985_v16 = vsel %vm287_vm0, %v338_v53, 1.0  ;;  %v10072_v37 = vsel %vm287_vm0, %v9910_v54, 1.0 }
 0x17e   :  { %581 = vbcast.lane.b32.xlu0 %v9898_v48, 296  ;;  %526 = vbcast.lane.b32.xlu1 %v492_v46, 320  ;;  %14928 = vst [vmem:[#allocation17_spill] sm:$0xff] %v9985_v16  ;;  %14938 = vst [vmem:[#allocation27_spill] sm:$0xff] %v10072_v37 }
 0x180   :  { %v346_v56 = vpop.permute.xlu0 %345  ;;  %v9916_v57 = vpop.permute.xlu1 %309 }
 0x181   :  { %v9967_v12 = vsel %vm287_vm0, %v346_v56, 1.0  ;;  %v10059_v34 = vsel %vm287_vm0, %v9916_v57, 1.0 }
 0x182   :  { %589 = vbcast.lane.b32.xlu0 %v9898_v48, 312  ;;  %534 = vbcast.lane.b32.xlu1 %v492_v46, 336  ;;  %14926 = vst [vmem:[#allocation15_spill] sm:$0xff] %v9967_v12  ;;  %14937 = vst [vmem:[#allocation26_spill] sm:$0xff] %v10059_v34 }
 0x184   :  { %v354_v58 = vpop.permute.xlu0 %353  ;;  %v9920_v59 = vpop.permute.xlu1 %313 }
 0x185   :  { %v9924_v60 = vsel %vm287_vm0, %v354_v58, 1.0  ;;  %v10050_v30 = vsel %vm287_vm0, %v9920_v59, 1.0 }
 0x186   :  { %14924 = vst [vmem:[#allocation13_spill] sm:$0xff] %v9924_v60  ;;  %597 = vbcast.lane.b32.xlu0 %v9898_v48, 328  ;;  %7999 = vmatprep.subr.mxu1 %v9924_v60  ;;  %14936 = vst [vmem:[#allocation25_spill] sm:$0xff] %v10050_v30 }
 0x187   :  { %542 = vbcast.lane.b32.xlu1 %v492_v46, 352  ;;  %8000 = vmatpush3.msra.mxu1 %v9924_v60 }
 0x188   :  { %v9929_v61 = vpop.permute.xlu0 %364  ;;  %v9931_v62 = vpop.permute.xlu1 %317 }
 0x189   :  { %v10038_v28 = vsel %vm287_vm0, %v9931_v62, 1.0 }
 0x18a   :  { %605 = vbcast.lane.b32.xlu0 %v9898_v48, 344  ;;  %14935 = vst [vmem:[#allocation24_spill] sm:$0xff] %v10038_v28 }
 0x18b   :  { %550 = vbcast.lane.b32.xlu1 %v492_v46, 368 }
 0x18c   :  { %v9934_v63 = vpop.permute.xlu0 %372  ;;  %v322_v0 = vpop.permute.xlu1 %321 }
 0x18d   :  { %v10027_v25 = vsel %vm287_vm0, %v322_v0, 1.0 }
 0x18e   :  { %613 = vbcast.lane.b32.xlu0 %v9898_v48, 360  ;;  %14934 = vst [vmem:[#allocation23_spill] sm:$0xff] %v10027_v25 }
 0x18f   :  { %561 = vbcast.lane.b32.xlu1 %v9898_v48, 256 }
 0x190   :  { %v9941_v2 = vpop.permute.xlu0 %380  ;;  %v326_v3 = vpop.permute.xlu1 %325 }
 0x191   :  { %v10019_v24 = vsel %vm287_vm0, %v326_v3, 1.0 }
 0x192   :  { %621 = vbcast.lane.b32.xlu0 %v9898_v48, 376  ;;  %14933 = vst [vmem:[#allocation22_spill] sm:$0xff] %v10019_v24 }
 0x193   :  { %569 = vbcast.lane.b32.xlu1 %v9898_v48, 272 }
 0x194   :  { %v9949_v5 = vpop.permute.xlu0 %388  ;;  %v334_v6 = vpop.permute.xlu1 %333 }
 0x195   :  { %v9999_v20 = vsel %vm287_vm0, %v334_v6, 1.0 }
 0x196   :  { %632 = vbcast.lane.b32.xlu0 %v9947_v4, 264  ;;  %14930 = vst [vmem:[#allocation19_spill] sm:$0xff] %v9999_v20 }
 0x197   :  { %577 = vbcast.lane.b32.xlu1 %v9898_v48, 288 }
 0x198   :  { %v9953_v7 = vpop.permute.xlu0 %396  ;;  %v342_v8 = vpop.permute.xlu1 %341 }
 0x199   :  { %v9978_v15 = vsel %vm287_vm0, %v342_v8, 1.0  ;;  %v10159_v6 = vsel %vm287_vm0, %v9953_v7, 1.0  ;;  %v10178_v7 = vsel %vm287_vm0, %v9949_v5, 1.0  ;;  %v10201_v5 = vsel %vm287_vm0, %v9941_v2, 1.0 }
 0x19a   :  { %640 = vbcast.lane.b32.xlu0 %v9947_v4, 280  ;;  %14927 = vst [vmem:[#allocation16_spill] sm:$0xff] %v9978_v15  ;;  %14949 = vst [vmem:[#allocation38_spill] sm:$0xff] %v10159_v6 }
 0x19b   :  { %585 = vbcast.lane.b32.xlu1 %v9898_v48, 304  ;;  %14952 = vst [vmem:[#allocation41_spill] sm:$0xff] %v10178_v7  ;;  %14955 = vst [vmem:[#allocation44_spill] sm:$0xff] %v10201_v5 }
 0x19c   :  { %v9957_v9 = vpop.permute.xlu0 %404  ;;  %v350_v10 = vpop.permute.xlu1 %349 }
 0x19d   :  { %v9961_v11 = vsel %vm287_vm0, %v350_v10, 1.0  ;;  %v10136_v58 = vsel %vm287_vm0, %v9957_v9, 1.0 }
 0x19e   :  { %14925 = vst [vmem:[#allocation14_spill] sm:$0xff] %v9961_v11  ;;  %648 = vbcast.lane.b32.xlu0 %v9947_v4, 296  ;;  %8001 = vmatprep.subr.mxu1 %v9961_v11  ;;  %14946 = vst [vmem:[#allocation35_spill] sm:$0xff] %v10136_v58 }
 0x19f   :  { %593 = vbcast.lane.b32.xlu1 %v9898_v48, 320  ;;  %8002 = vmatpush3.msra.mxu1 %v9961_v11 }
 0x1a0   :  { %v9971_v13 = vpop.permute.xlu0 %412  ;;  %8003 = vmatprep.subr.mxu1 %v9967_v12  ;;  %v9974_v14 = vpop.permute.xlu1 %360 }
 0x1a1   :  { %8004 = vmatpush3.msra.mxu1 %v9967_v12  ;;  %v10117_v50 = vsel %vm287_vm0, %v9971_v13, 1.0 }
 0x1a2   :  { %656 = vbcast.lane.b32.xlu0 %v9947_v4, 312  ;;  %8005 = vmatprep.subr.mxu1 %v9978_v15  ;;  %14943 = vst [vmem:[#allocation32_spill] sm:$0xff] %v10117_v50 }
 0x1a3   :  { %601 = vbcast.lane.b32.xlu1 %v9898_v48, 336  ;;  %8006 = vmatpush3.msra.mxu1 %v9978_v15 }
 0x1a4   :  { %v421_v17 = vpop.permute.xlu0 %420  ;;  %8007 = vmatprep.subr.mxu1 %v9985_v16  ;;  %v9990_v18 = vpop.permute.xlu1 %368 }
 0x1a5   :  { %v9994_v19 = vsel %vm287_vm0, %v421_v17, 1.0  ;;  %8008 = vmatpush3.msra.mxu1 %v9985_v16 }
 0x1a6   :  { %14929 = vst [vmem:[#allocation18_spill] sm:$0xff] %v9994_v19  ;;  %664 = vbcast.lane.b32.xlu0 %v9947_v4, 328  ;;  %8037 = vmatprep.subr.mxu0 %v9994_v19 }
 0x1a7   :  { %609 = vbcast.lane.b32.xlu1 %v9898_v48, 352  ;;  %8009 = vmatprep.subr.mxu1 %v9999_v20 }
 0x1a8   :  { %8010 = vmatpush3.msra.mxu1 %v9999_v20  ;;  %8038 = vmatpush3.msra.mxu0 %v9994_v19  ;;  %v10012_v22 = vpop.permute.xlu0 %431  ;;  %v10014_v23 = vpop.permute.xlu1 %376 }
 0x1a9   :  { %14932 = vst [vmem:[#allocation21_spill] sm:$0xff] %v10012_v22  ;;  %8011 = vmatprep.subr.mxu1 %v10008_v21 }
 0x1aa   :  { %8012 = vmatpush3.msra.mxu1 %v10008_v21  ;;  %672 = vbcast.lane.b32.xlu0 %v9947_v4, 344 }
 0x1ab   :  { %617 = vbcast.lane.b32.xlu1 %v9898_v48, 368  ;;  %8013 = vmatprep.subr.mxu1 %v10019_v24 }
 0x1ac   :  { %8014 = vmatpush3.msra.mxu1 %v10019_v24  ;;  %v10030_v26 = vpop.permute.xlu0 %439  ;;  %v10032_v27 = vpop.permute.xlu1 %384 }
 0x1ad   :  { %8015 = vmatprep.subr.mxu1 %v10027_v25 }
 0x1ae   :  { %8016 = vmatpush3.msra.mxu1 %v10027_v25  ;;  %680 = vbcast.lane.b32.xlu0 %v9947_v4, 360  ;;  %v202_v25 = vpop.f32.mrf.mxu0 }
 0x1af   :  { %628 = vbcast.lane.b32.xlu1 %v9947_v4, 256  ;;  %8017 = vmatprep.subr.mxu1 %v10038_v28 }
 0x1b0   :  { %8018 = vmatpush3.msra.mxu1 %v10038_v28  ;;  %v10053_v31 = vpop.permute.xlu0 %447  ;;  %v393_v32 = vpop.permute.xlu1 %392 }
 0x1b1   :  { %8019 = vmatprep.subr.mxu1 %v10050_v30  ;;  %v10169_v10 = vsel %vm287_vm0, %v393_v32, 1.0  ;;  %v10189_v32 = vsel %vm287_vm0, %v10032_v27, 1.0  ;;  %v10341_v16 = vpop.f32.mrf.mxu0 }
 0x1b2   :  { %8020 = vmatpush3.msra.mxu1 %v10050_v30  ;;  %688 = vbcast.lane.b32.xlu0 %v9947_v4, 376  ;;  %14951 = vst [vmem:[#allocation40_spill] sm:$0xff] %v10169_v10  ;;  %14954 = vst [vmem:[#allocation43_spill] sm:$0xff] %v10189_v32 }
 0x1b3   :  { %636 = vbcast.lane.b32.xlu1 %v9947_v4, 272  ;;  %8021 = vmatprep.subr.mxu1 %v10059_v34 }
 0x1b4   :  { %8022 = vmatpush3.msra.mxu1 %v10059_v34  ;;  %v10075_v39 = vpop.permute.xlu0 %455  ;;  %v401_v41 = vpop.permute.xlu1 %400 }
 0x1b5   :  { %8023 = vmatprep.subr.mxu1 %v10072_v37  ;;  %v10145_v0 = vsel %vm287_vm0, %v401_v41, 1.0 }
 0x1b6   :  { %8024 = vmatpush3.msra.mxu1 %v10072_v37  ;;  %699 = vbcast.lane.b32.xlu0 %v10067_v35, 264  ;;  %14947 = vst [vmem:[#allocation36_spill] sm:$0xff] %v10145_v0 }
 0x1b7   :  { %644 = vbcast.lane.b32.xlu1 %v9947_v4, 288  ;;  %8025 = vmatprep.subr.mxu1 %v10081_v42 }
 0x1b8   :  { %8026 = vmatpush3.msra.mxu1 %v10081_v42  ;;  %v10093_v46 = vpop.permute.xlu0 %463  ;;  %v409_v48 = vpop.permute.xlu1 %408 }
 0x1b9   :  { %8027 = vmatprep.subr.mxu1 %v10090_v44  ;;  %v10128_v57 = vsel %vm287_vm0, %v409_v48, 1.0  ;;  %v10212_v48 = vsel %vm287_vm0, %v10014_v23, 1.0 }
 0x1ba   :  { %8028 = vmatpush3.msra.mxu1 %v10090_v44  ;;  %707 = vbcast.lane.b32.xlu0 %v10067_v35, 280  ;;  %14945 = vst [vmem:[#allocation34_spill] sm:$0xff] %v10128_v57  ;;  %14957 = vst [vmem:[#allocation46_spill] sm:$0xff] %v10212_v48 }
 0x1bb   :  { %652 = vbcast.lane.b32.xlu1 %v9947_v4, 304  ;;  %8029 = vmatprep.subr.mxu1 %v10099_v49 }
 0x1bc   :  { %8030 = vmatpush3.msra.mxu1 %v10099_v49  ;;  %v10106_v51 = vpop.permute.xlu0 %471  ;;  %v417_v52 = vpop.permute.xlu1 %416  ;;  %v10236_v49 = vsel %vm287_vm0, %v9990_v18, 1.0  ;;  %v10256_v18 = vsel %vm287_vm0, %v9974_v14, 1.0 }
 0x1bd   :  { %v10110_v53 = vsel %vm287_vm0, %v417_v52, 1.0  ;;  %v10225_v52 = vsel %vm287_vm0, %v9934_v63, 1.0  ;;  %14959 = vst [vmem:[#allocation48_spill] sm:$0xff] %v10236_v49  ;;  %14961 = vst [vmem:[#allocation50_spill] sm:$0xff] %v10256_v18 }
 0x1be   :  { %14942 = vst [vmem:[#allocation31_spill] sm:$0xff] %v10110_v53  ;;  %715 = vbcast.lane.b32.xlu0 %v10067_v35, 296  ;;  %8039 = vmatprep.subr.mxu0 %v10110_v53  ;;  %14958 = vst [vmem:[#allocation47_spill] sm:$0xff] %v10225_v52 }
 0x1bf   :  { %660 = vbcast.lane.b32.xlu1 %v9947_v4, 320  ;;  %8040 = vmatpush3.msra.mxu0 %v10110_v53 }
 0x1c0   :  { %v10121_v54 = vpop.permute.xlu0 %479  ;;  %v10123_v56 = vpop.permute.xlu1 %427  ;;  %8041 = vmatprep.subr.mxu0 %v10117_v50 }
 0x1c1   :  { %14944 = vst [vmem:[#allocation33_spill] sm:$0xff] %v10123_v56  ;;  %8042 = vmatpush3.msra.mxu0 %v10117_v50  ;;  %v10327_v50 = vmul.f32 0.0625, %v202_v25 }
 0x1c2   :  { %723 = vbcast.lane.b32.xlu0 %v10067_v35, 312  ;;  %8043 = vmatprep.subr.mxu0 %v10128_v57 }
 0x1c3   :  { %668 = vbcast.lane.b32.xlu1 %v9947_v4, 336  ;;  %8044 = vmatpush3.msra.mxu0 %v10128_v57  ;;  %v10333_v53 = vrot.slane %v10327_v50, %v9872_v38  ;;  %v10351_v12 = vrot.slane %v10327_v50, %v9879_v33  ;;  %vm282_vm1 = vcmp.ge.f32.partialorder %v10327_v50, 0.0 }
 0x1c4   :  { %v488_v59 = vpop.permute.xlu0 %487  ;;  %v10140_v62 = vpop.permute.xlu1 %435  ;;  %8045 = vmatprep.subr.mxu0 %v10136_v58 }
 0x1c5   :  { %v10149_v3 = vsel %vm287_vm0, %v488_v59, 1.0  ;;  %8046 = vmatpush3.msra.mxu0 %v10136_v58  ;;  %14978 = vst [vmem:[#allocation67_spill] sm:$0xff] %v10333_v53  ;;  %14983 = vst [vmem:[#allocation72_spill] sm:$0xff] %v10351_v12 }
 0x1c6   :  { %14948 = vst [vmem:[#allocation37_spill] sm:$0xff] %v10149_v3  ;;  %731 = vbcast.lane.b32.xlu0 %v10067_v35, 328  ;;  %8047 = vmatprep.subr.mxu0 %v10145_v0 }
 0x1c7   :  { %676 = vbcast.lane.b32.xlu1 %v9947_v4, 352  ;;  %8075 = vmatprep.subr.mxu1 %v10149_v3 }
 0x1c8   :  { %8048 = vmatpush3.msra.mxu0 %v10145_v0  ;;  %v10162_v8 = vpop.permute.xlu0 %498  ;;  %v10164_v9 = vpop.permute.xlu1 %443 }
 0x1c9   :  { %14950 = vst [vmem:[#allocation39_spill] sm:$0xff] %v10162_v8  ;;  %8049 = vmatprep.subr.mxu0 %v10159_v6 }
 0x1ca   :  { %8050 = vmatpush3.msra.mxu0 %v10159_v6  ;;  %739 = vbcast.lane.b32.xlu0 %v10067_v35, 344 }
 0x1cb   :  { %684 = vbcast.lane.b32.xlu1 %v9947_v4, 368  ;;  %8051 = vmatprep.subr.mxu0 %v10169_v10  ;;  %v10196_v4 = vsub.s32 7, %v9869_v36 }
 0x1cc   :  { %8052 = vmatpush3.msra.mxu0 %v10169_v10  ;;  %v10181_v13 = vpop.permute.xlu0 %506  ;;  %v10183_v17 = vpop.permute.xlu1 %451 }
 0x1cd   :  { %14953 = vst [vmem:[#allocation42_spill] sm:$0xff] %v10181_v13  ;;  %8053 = vmatprep.subr.mxu0 %v10178_v7  ;;  %v10220_v2 = vrot.slane %v9874_v40, %v10196_v4  ;;  %v10245_v40 = vsel %vm287_vm0, %v9929_v61, 1.0 }
 0x1ce   :  { %8054 = vmatpush3.msra.mxu0 %v10178_v7  ;;  %747 = vbcast.lane.b32.xlu0 %v10067_v35, 360  ;;  %14960 = vst [vmem:[#allocation49_spill] sm:$0xff] %v10245_v40 }
 0x1cf   :  { %695 = vbcast.lane.b32.xlu1 %v10067_v35, 256  ;;  %8055 = vmatprep.subr.mxu0 %v10189_v32 }
 0x1d0   :  { %8056 = vmatpush3.msra.mxu0 %v10189_v32  ;;  %v10204_v27 = vpop.permute.xlu0 %514  ;;  %v10206_v41 = vpop.permute.xlu1 %459 }
 0x1d1   :  { %14956 = vst [vmem:[#allocation45_spill] sm:$0xff] %v10204_v27  ;;  %8057 = vmatprep.subr.mxu0 %v10201_v5 }
 0x1d2   :  { %8058 = vmatpush3.msra.mxu0 %v10201_v5  ;;  %755 = vbcast.lane.b32.xlu0 %v10067_v35, 376 }
 0x1d3   :  { %703 = vbcast.lane.b32.xlu1 %v10067_v35, 272  ;;  %8059 = vmatprep.subr.mxu0 %v10212_v48 }
 0x1d4   :  { %8060 = vmatpush3.msra.mxu0 %v10212_v48  ;;  %v10228_v23 = vpop.permute.xlu0 %522  ;;  %v10230_v59 = vpop.permute.xlu1 %467 }
 0x1d5   :  { %8061 = vmatprep.subr.mxu0 %v10225_v52 }
 0x1d6   :  { %8062 = vmatpush3.msra.mxu0 %v10225_v52  ;;  %766 = vbcast.lane.b32.xlu0 %v10220_v2, 264 }
 0x1d7   :  { %711 = vbcast.lane.b32.xlu1 %v10067_v35, 288  ;;  %8063 = vmatprep.subr.mxu0 %v10236_v49 }
 0x1d8   :  { %8064 = vmatpush3.msra.mxu0 %v10236_v49  ;;  %v10248_v63 = vpop.permute.xlu0 %530  ;;  %v10250_v48 = vpop.permute.xlu1 %475 }
 0x1d9   :  { %8065 = vmatprep.subr.mxu0 %v10245_v40 }
 0x1da   :  { %8066 = vmatpush3.msra.mxu0 %v10245_v40  ;;  %774 = vbcast.lane.b32.xlu0 %v10220_v2, 280 }
 0x1db   :  { %719 = vbcast.lane.b32.xlu1 %v10067_v35, 304  ;;  %8067 = vmatprep.subr.mxu0 %v10256_v18 }
 0x1dc   :  { %8068 = vmatpush3.msra.mxu0 %v10256_v18  ;;  %v10263_v61 = vpop.permute.xlu0 %538  ;;  %v10265_v49 = vpop.permute.xlu1 %483 }
 0x1de   :  { %782 = vbcast.lane.b32.xlu0 %v10220_v2, 296 }
 0x1df   :  { %727 = vbcast.lane.b32.xlu1 %v10067_v35, 320 }
 0x1e0   :  { %v10269_v14 = vpop.permute.xlu0 %546  ;;  %v10271_v52 = vpop.permute.xlu1 %494 }
 0x1e1   :  { %14962 = vst [vmem:[#allocation51_spill] sm:$0xff] %v10271_v52 }
 0x1e2   :  { %790 = vbcast.lane.b32.xlu0 %v10220_v2, 312 }
 0x1e3   :  { %735 = vbcast.lane.b32.xlu1 %v10067_v35, 336 }
 0x1e4   :  { %v555_v40 = vpop.permute.xlu0 %554  ;;  %v10275_v5 = vpop.permute.xlu1 %502 }
 0x1e5   :  { %14963 = vst [vmem:[#allocation52_spill] sm:$0xff] %v10275_v5  ;;  %v10279_v18 = vsel %vm287_vm0, %v555_v40, 1.0 }
 0x1e6   :  { %14964 = vst [vmem:[#allocation53_spill] sm:$0xff] %v10279_v18  ;;  %798 = vbcast.lane.b32.xlu0 %v10220_v2, 328  ;;  %8113 = vmatprep.subr.mxu0 %v10279_v18 }
 0x1e7   :  { %743 = vbcast.lane.b32.xlu1 %v10067_v35, 352 }
 0x1e8   :  { %v10284_v44 = vpop.permute.xlu0 %565  ;;  %v10286_v32 = vpop.permute.xlu1 %510 }
 0x1e9   :  { %14965 = vst [vmem:[#allocation54_spill] sm:$0xff] %v10284_v44  ;;  %14966 = vst [vmem:[#allocation55_spill] sm:$0xff] %v10286_v32 }
 0x1ea   :  { %806 = vbcast.lane.b32.xlu0 %v10220_v2, 344 }
 0x1eb   :  { %751 = vbcast.lane.b32.xlu1 %v10067_v35, 368 }
 0x1ec   :  { %v10290_v42 = vpop.permute.xlu0 %573  ;;  %v10292_v7 = vpop.permute.xlu1 %518 }
 0x1ed   :  { %14967 = vst [vmem:[#allocation56_spill] sm:$0xff] %v10290_v42  ;;  %14968 = vst [vmem:[#allocation57_spill] sm:$0xff] %v10292_v7 }
 0x1ee   :  { %814 = vbcast.lane.b32.xlu0 %v10220_v2, 360 }
 0x1ef   :  { %762 = vbcast.lane.b32.xlu1 %v10220_v2, 256 }
 0x1f0   :  { %v10296_v40 = vpop.permute.xlu0 %581  ;;  %v10298_v37 = vpop.permute.xlu1 %526 }
 0x1f1   :  { %14969 = vst [vmem:[#allocation58_spill] sm:$0xff] %v10296_v40 }
 0x1f2   :  { %822 = vbcast.lane.b32.xlu0 %v10220_v2, 376 }
 0x1f3   :  { %770 = vbcast.lane.b32.xlu1 %v10220_v2, 272 }
 0x1f4   :  { %v10302_v10 = vpop.permute.xlu0 %589  ;;  %v10304_v34 = vpop.permute.xlu1 %534 }
 0x1f5   :  { %14970 = vst [vmem:[#allocation59_spill] sm:$0xff] %v10302_v10  ;;  %v10421_v10 = vrot.slane %v10327_v50, %v10045_v29 }
 0x1f7   :  { %778 = vbcast.lane.b32.xlu1 %v10220_v2, 288  ;;  %15005 = vst [vmem:[#allocation94_spill] sm:$0xff] %v10421_v10 }
 0x1f8   :  { %v10307_v35 = vpop.permute.xlu0 %597 }
 0x1f9   :  { %14971 = vst [vmem:[#allocation60_spill] sm:$0xff] %v10307_v35  ;;  %v10309_v6 = vpop.permute.xlu1 %542 }
 0x1fb   :  { %786 = vbcast.lane.b32.xlu1 %v10220_v2, 304 }
 0x1fc   :  { %v10312_v30 = vpop.permute.xlu0 %605 }
 0x1fd   :  { %14972 = vst [vmem:[#allocation61_spill] sm:$0xff] %v10312_v30  ;;  %v10314_v0 = vpop.permute.xlu1 %550 }
 0x1ff   :  { %794 = vbcast.lane.b32.xlu1 %v10220_v2, 320 }
 0x200   :  { %v10317_v28 = vpop.permute.xlu0 %613 }
 0x201   :  { %14973 = vst [vmem:[#allocation62_spill] sm:$0xff] %v10317_v28  ;;  %v10319_v58 = vpop.permute.xlu1 %561 }
 0x202   :  { %14974 = vst [vmem:[#allocation63_spill] sm:$0xff] %v10319_v58 }
 0x203   :  { %802 = vbcast.lane.b32.xlu1 %v10220_v2, 336 }
 0x204   :  { %v10324_v24 = vpop.permute.xlu0 %621 }
 0x205   :  { %v10322_v57 = vpop.permute.xlu1 %569  ;;  %14976 = vst [vmem:[#allocation65_spill] sm:$0xff] %v10324_v24 }
 0x206   :  { %14975 = vst [vmem:[#allocation64_spill] sm:$0xff] %v10322_v57 }
 0x207   :  { %810 = vbcast.lane.b32.xlu1 %v10220_v2, 352 }
 0x208   :  { %v10336_v20 = vpop.permute.xlu0 %632 }
 0x209   :  { %v10329_v21 = vpop.permute.xlu1 %577  ;;  %14979 = vst [vmem:[#allocation68_spill] sm:$0xff] %v10336_v20  ;;  %v10364_v20 = vrot.slane %v10327_v50, %v9884_v43 }
 0x20a   :  { %14977 = vst [vmem:[#allocation66_spill] sm:$0xff] %v10329_v21 }
 0x20b   :  { %818 = vbcast.lane.b32.xlu1 %v10220_v2, 368  ;;  %14987 = vst [vmem:[#allocation76_spill] sm:$0xff] %v10364_v20 }
 0x20c   :  { %v10346_v25 = vpop.permute.xlu0 %640 }
 0x20d   :  { %v10338_v19 = vpop.permute.xlu1 %585  ;;  %14982 = vst [vmem:[#allocation71_spill] sm:$0xff] %v10346_v25 }
 0x20e   :  { %14980 = vst [vmem:[#allocation69_spill] sm:$0xff] %v10338_v19 }
 0x20f   :  { %957 = vbcast.lane.b32.xlu1 %v10333_v53, 256 }
 0x210   :  { %v10357_v11 = vpop.permute.xlu0 %648 }
 0x211   :  { %v10343_v15 = vpop.permute.xlu1 %593  ;;  %278 = vmax.xlane.f32.xlu0 %v10341_v16  ;;  %14985 = vst [vmem:[#allocation74_spill] sm:$0xff] %v10357_v11  ;;  %v10378_v11 = vrot.slane %v10327_v50, %v9889_v45 }
 0x212   :  { %14981 = vst [vmem:[#allocation70_spill] sm:$0xff] %v10343_v15 }
 0x213   :  { %965 = vbcast.lane.b32.xlu1 %v10333_v53, 272  ;;  %14992 = vst [vmem:[#allocation81_spill] sm:$0xff] %v10378_v11 }
 0x214   :  { %v10368_v58 = vpop.permute.xlu0 %656 }
 0x215   :  { %v10353_v2 = vpop.permute.xlu1 %601  ;;  %280 = vmin.xlane.f32.xlu0 %v10341_v16  ;;  %14989 = vst [vmem:[#allocation78_spill] sm:$0xff] %v10368_v58 }
 0x216   :  { %14984 = vst [vmem:[#allocation73_spill] sm:$0xff] %v10353_v2 }
 0x217   :  { %976 = vbcast.lane.b32.xlu1 %v10351_v12, 256 }
 0x218   :  { %v10374_v57 = vpop.permute.xlu0 %664 }
 0x219   :  { %v10359_v60 = vpop.permute.xlu1 %609  ;;  %14991 = vst [vmem:[#allocation80_spill] sm:$0xff] %v10374_v57 }
 0x21a   :  { %14986 = vst [vmem:[#allocation75_spill] sm:$0xff] %v10359_v60 }
 0x21b   :  { %984 = vbcast.lane.b32.xlu1 %v10351_v12, 272 }
 0x21c   :  { %v10385_v40 = vpop.permute.xlu0 %672 }
 0x21d   :  { %v10366_v25 = vpop.permute.xlu1 %617  ;;  %14995 = vst [vmem:[#allocation84_spill] sm:$0xff] %v10385_v40 }
 0x21e   :  { %14988 = vst [vmem:[#allocation77_spill] sm:$0xff] %v10366_v25 }
 0x21f   :  { %995 = vbcast.lane.b32.xlu1 %v10364_v20, 256 }
 0x221   :  { %v10371_v44 = vpop.permute.xlu1 %628 }
 0x222   :  { %14990 = vst [vmem:[#allocation79_spill] sm:$0xff] %v10371_v44  ;;  %v10391_v44 = vrot.slane %v10327_v50, %v9894_v47 }
 0x223   :  { %1003 = vbcast.lane.b32.xlu1 %v10364_v20, 272 }
 0x224   :  { %14996 = vst [vmem:[#allocation85_spill] sm:$0xff] %v10391_v44 }
 0x225   :  { %v10380_v42 = vpop.permute.xlu1 %636 }
 0x226   :  { %14993 = vst [vmem:[#allocation82_spill] sm:$0xff] %v10380_v42  ;;  %v10397_v42 = vpop.permute.xlu0 %680 }
 0x227   :  { %1014 = vbcast.lane.b32.xlu1 %v10378_v11, 256  ;;  %14998 = vst [vmem:[#allocation87_spill] sm:$0xff] %v10397_v42 }
 0x229   :  { %v10383_v21 = vpop.permute.xlu1 %644 }
 0x22a   :  { %14994 = vst [vmem:[#allocation83_spill] sm:$0xff] %v10383_v21  ;;  %v10405_v21 = vrot.slane %v10327_v50, %v9939_v1  ;;  %v10409_v40 = vpop.permute.xlu0 %688 }
 0x22b   :  { %1022 = vbcast.lane.b32.xlu1 %v10378_v11, 272  ;;  %961 = vbcast.lane.b32.xlu0 %v10333_v53, 264  ;;  %15002 = vst [vmem:[#allocation91_spill] sm:$0xff] %v10409_v40 }
 0x22c   :  { %15000 = vst [vmem:[#allocation89_spill] sm:$0xff] %v10405_v21 }
 0x22d   :  { %v10393_v58 = vpop.permute.xlu1 %652 }
 0x22e   :  { %14997 = vst [vmem:[#allocation86_spill] sm:$0xff] %v10393_v58 }
 0x22f   :  { %1033 = vbcast.lane.b32.xlu1 %v10391_v44, 256  ;;  %969 = vbcast.lane.b32.xlu0 %v10333_v53, 280 }
 0x231   :  { %v10399_v57 = vpop.permute.xlu1 %660 }
 0x232   :  { %14999 = vst [vmem:[#allocation88_spill] sm:$0xff] %v10399_v57  ;;  %v10417_v57 = vpop.permute.xlu0 %699 }
 0x233   :  { %1041 = vbcast.lane.b32.xlu1 %v10391_v44, 272  ;;  %980 = vbcast.lane.b32.xlu0 %v10351_v12, 264  ;;  %15004 = vst [vmem:[#allocation93_spill] sm:$0xff] %v10417_v57  ;;  %v10435_v57 = vrot.slane %v10327_v50, %v10196_v4 }
 0x235   :  { %v10407_v19 = vpop.permute.xlu1 %668  ;;  %15009 = vst [vmem:[#allocation98_spill] sm:$0xff] %v10435_v57 }
 0x236   :  { %15001 = vst [vmem:[#allocation90_spill] sm:$0xff] %v10407_v19  ;;  %v10429_v42 = vpop.permute.xlu0 %707 }
 0x237   :  { %1052 = vbcast.lane.b32.xlu1 %v10405_v21, 256  ;;  %988 = vbcast.lane.b32.xlu0 %v10351_v12, 280  ;;  %15008 = vst [vmem:[#allocation97_spill] sm:$0xff] %v10429_v42 }
 0x239   :  { %v10413_v58 = vpop.permute.xlu1 %676 }
 0x23a   :  { %15003 = vst [vmem:[#allocation92_spill] sm:$0xff] %v10413_v58  ;;  %v10441_v35 = vpop.permute.xlu0 %715 }
 0x23b   :  { %1060 = vbcast.lane.b32.xlu1 %v10405_v21, 272  ;;  %999 = vbcast.lane.b32.xlu0 %v10364_v20, 264  ;;  %15011 = vst [vmem:[#allocation100_spill] sm:$0xff] %v10441_v35 }
 0x23d   :  { %v10423_v15 = vpop.permute.xlu1 %684 }
 0x23e   :  { %15006 = vst [vmem:[#allocation95_spill] sm:$0xff] %v10423_v15  ;;  %v10447_v42 = vpop.permute.xlu0 %723 }
 0x23f   :  { %1071 = vbcast.lane.b32.xlu1 %v10421_v10, 256  ;;  %1007 = vbcast.lane.b32.xlu0 %v10364_v20, 280  ;;  %15013 = vst [vmem:[#allocation102_spill] sm:$0xff] %v10447_v42 }
 0x241   :  { %v10427_v19 = vpop.permute.xlu1 %695 }
 0x242   :  { %15007 = vst [vmem:[#allocation96_spill] sm:$0xff] %v10427_v19 }
 0x243   :  { %1079 = vbcast.lane.b32.xlu1 %v10421_v10, 272  ;;  %1018 = vbcast.lane.b32.xlu0 %v10378_v11, 264 }
 0x245   :  { %v10437_v58 = vpop.permute.xlu1 %703 }
 0x246   :  { %15010 = vst [vmem:[#allocation99_spill] sm:$0xff] %v10437_v58  ;;  %v10455_v58 = vpop.permute.xlu0 %731 }
 0x247   :  { %1090 = vbcast.lane.b32.xlu1 %v10435_v57, 256  ;;  %1026 = vbcast.lane.b32.xlu0 %v10378_v11, 280  ;;  %15015 = vst [vmem:[#allocation104_spill] sm:$0xff] %v10455_v58 }
 0x249   :  { %v10445_v19 = vpop.permute.xlu1 %711 }
 0x24a   :  { %15012 = vst [vmem:[#allocation101_spill] sm:$0xff] %v10445_v19  ;;  %v10461_v19 = vpop.permute.xlu0 %739 }
 0x24b   :  { %1098 = vbcast.lane.b32.xlu1 %v10435_v57, 272  ;;  %1037 = vbcast.lane.b32.xlu0 %v10391_v44, 264  ;;  %15017 = vst [vmem:[#allocation106_spill] sm:$0xff] %v10461_v19 }
 0x24d   :  { %v10451_v15 = vpop.permute.xlu1 %719 }
 0x24e   :  { %15014 = vst [vmem:[#allocation103_spill] sm:$0xff] %v10451_v15  ;;  %v10468_v15 = vpop.permute.xlu0 %747 }
 0x24f   :  { %2655 = vbcast.lane.b32.xlu1 %v10333_v53, 296  ;;  %1045 = vbcast.lane.b32.xlu0 %v10391_v44, 280  ;;  %15019 = vst [vmem:[#allocation108_spill] sm:$0xff] %v10468_v15 }
 0x251   :  { %v10459_v35 = vpop.permute.xlu1 %727 }
 0x252   :  { %15016 = vst [vmem:[#allocation105_spill] sm:$0xff] %v10459_v35  ;;  %v10473_v2 = vpop.permute.xlu0 %755 }
 0x253   :  { %2663 = vbcast.lane.b32.xlu1 %v10333_v53, 312  ;;  %1056 = vbcast.lane.b32.xlu0 %v10405_v21, 264  ;;  %15021 = vst [vmem:[#allocation110_spill] sm:$0xff] %v10473_v2 }
 0x255   :  { %v10465_v42 = vpop.permute.xlu1 %735 }
 0x256   :  { %15018 = vst [vmem:[#allocation107_spill] sm:$0xff] %v10465_v42  ;;  %v10479_v19 = vpop.permute.xlu0 %766 }
 0x257   :  { %2671 = vbcast.lane.b32.xlu1 %v10351_v12, 296  ;;  %1064 = vbcast.lane.b32.xlu0 %v10405_v21, 280  ;;  %15023 = vst [vmem:[#allocation112_spill] sm:$0xff] %v10479_v19 }
 0x259   :  { %v10471_v58 = vpop.permute.xlu1 %743 }
 0x25a   :  { %15020 = vst [vmem:[#allocation109_spill] sm:$0xff] %v10471_v58  ;;  %v10484_v40 = vpop.permute.xlu0 %774 }
 0x25b   :  { %2679 = vbcast.lane.b32.xlu1 %v10351_v12, 312  ;;  %1075 = vbcast.lane.b32.xlu0 %v10421_v10, 264  ;;  %15025 = vst [vmem:[#allocation114_spill] sm:$0xff] %v10484_v40 }
 0x25d   :  { %v10476_v35 = vpop.permute.xlu1 %751 }
 0x25e   :  { %15022 = vst [vmem:[#allocation111_spill] sm:$0xff] %v10476_v35  ;;  %v10490_v58 = vpop.permute.xlu0 %782 }
 0x25f   :  { %1083 = vbcast.lane.b32.xlu0 %v10421_v10, 280  ;;  %15027 = vst [vmem:[#allocation116_spill] sm:$0xff] %v10490_v58 }
 0x261   :  { %v10482_v42 = vpop.permute.xlu1 %762 }
 0x262   :  { %15024 = vst [vmem:[#allocation113_spill] sm:$0xff] %v10482_v42  ;;  %v10494_v35 = vpop.permute.xlu0 %790 }
 0x263   :  { %1094 = vbcast.lane.b32.xlu0 %v10435_v57, 264  ;;  %15029 = vst [vmem:[#allocation118_spill] sm:$0xff] %v10494_v35 }
 0x265   :  { %v10487_v15 = vpop.permute.xlu1 %770 }
 0x266   :  { %15026 = vst [vmem:[#allocation115_spill] sm:$0xff] %v10487_v15  ;;  %v10498_v19 = vpop.permute.xlu0 %798 }
 0x267   :  { %1102 = vbcast.lane.b32.xlu0 %v10435_v57, 280  ;;  %15031 = vst [vmem:[#allocation120_spill] sm:$0xff] %v10498_v19 }
 0x269   :  { %v10492_v2 = vpop.permute.xlu1 %778 }
 0x26a   :  { %15028 = vst [vmem:[#allocation117_spill] sm:$0xff] %v10492_v2  ;;  %v10502_v42 = vpop.permute.xlu0 %806 }
 0x26b   :  { %2651 = vbcast.lane.b32.xlu0 %v10333_v53, 288  ;;  %15033 = vst [vmem:[#allocation122_spill] sm:$0xff] %v10502_v42 }
 0x26d   :  { %v10496_v30 = vpop.permute.xlu1 %786 }
 0x26e   :  { %15030 = vst [vmem:[#allocation119_spill] sm:$0xff] %v10496_v30  ;;  %v10506_v60 = vpop.permute.xlu0 %814 }
 0x26f   :  { %2659 = vbcast.lane.b32.xlu0 %v10333_v53, 304  ;;  %15035 = vst [vmem:[#allocation124_spill] sm:$0xff] %v10506_v60 }
 0x271   :  { %v10500_v53 = vpop.permute.xlu1 %794 }
 0x272   :  { %15032 = vst [vmem:[#allocation121_spill] sm:$0xff] %v10500_v53 }
 0x273   :  { %2667 = vbcast.lane.b32.xlu0 %v10351_v12, 288 }
 0x275   :  { %v10504_v40 = vpop.permute.xlu1 %802 }
 0x276   :  { %15034 = vst [vmem:[#allocation123_spill] sm:$0xff] %v10504_v40 }
 0x277   :  { %2675 = vbcast.lane.b32.xlu0 %v10351_v12, 304  ;;  %v10510_v12 = vpop.permute.xlu0 %822 }
 0x278   :  { %15037 = vst [vmem:[#allocation126_spill] sm:$0xff] %v10510_v12 }
 0x279   :  { %v10508_v15 = vpop.permute.xlu1 %810 }
 0x27a   :  { %15036 = vst [vmem:[#allocation125_spill] sm:$0xff] %v10508_v15 }
 0x27d   :  { %v10512_v58 = vpop.permute.xlu1 %818 }
 0x27e   :  { %15038 = vst [vmem:[#allocation127_spill] sm:$0xff] %v10512_v58 }
 0x281   :  { %v10515_v19 = vpop.permute.xlu1 %957 }
 0x285   :  { %v10525_v15 = vpop.permute.xlu1 %965 }
 0x29a   :  { %v279_v2 = vpop.xlane.xlu0 %278 }
 0x29e   :  { %v281_v30 = vpop.xlane.xlu0 %280 }
 0x29f   :  { %v283_v35 = vsel %vm282_vm1, %v279_v2, %v281_v30  ;;  %vm5596_vm1 = vcmask 654912  }
 0x2a0   :  { %v284_v53 = vmul.f32 %v283_v35, %v10327_v50  ;;  %v10534_v50 = vpop.permute.xlu1 %976 }
 0x2a2   :  { %v10519_v42 = vrot.slane %v284_v53, %v9872_v38  ;;  %v10521_v40 = vpop.permute.xlu0 %961  ;;  %v10532_v30 = vrot.slane %v284_v53, %v9879_v33  ;;  %v10545_v58 = vrot.slane %v284_v53, %v9884_v43  ;;  %v10558_v28 = vrot.slane %v284_v53, %v9889_v45 }
 0x2a3   :  { %v10569_v25 = vrot.slane %v284_v53, %v9894_v47  ;;  %v10582_v13 = vrot.slane %v284_v53, %v9939_v1  ;;  %v10595_v27 = vrot.slane %v284_v53, %v10045_v29 }
 0x2a4   :  { %15039 = vst [vmem:[#allocation128_spill] sm:$0xff] %v10519_v42  ;;  %1235 = vbcast.lane.b32.xlu0 %v10519_v42, 264  ;;  %1231 = vbcast.lane.b32.xlu1 %v10519_v42, 256  ;;  %15040 = vst [vmem:[#allocation129_spill] sm:$0xff] %v10532_v30  ;;  %v10542_v2 = vpop.permute.xlu1 %984 }
 0x2a5   :  { %15041 = vst [vmem:[#allocation130_spill] sm:$0xff] %v10545_v58  ;;  %15042 = vst [vmem:[#allocation131_spill] sm:$0xff] %v10558_v28 }
 0x2a6   :  { %v10527_v60 = vpop.permute.xlu0 %969  ;;  %15045 = vst [vmem:[#allocation134_spill] sm:$0xff] %v10595_v27 }
 0x2a8   :  { %1243 = vbcast.lane.b32.xlu0 %v10519_v42, 280  ;;  %1239 = vbcast.lane.b32.xlu1 %v10519_v42, 272  ;;  %v10551_v33 = vpop.permute.xlu1 %995 }
 0x2aa   :  { %v10536_v35 = vpop.permute.xlu0 %980 }
 0x2ac   :  { %1254 = vbcast.lane.b32.xlu0 %v10532_v30, 264  ;;  %1250 = vbcast.lane.b32.xlu1 %v10532_v30, 256  ;;  %v10562_v43 = vpop.permute.xlu1 %1003 }
 0x2ae   :  { %v10547_v12 = vpop.permute.xlu0 %988 }
 0x2b0   :  { %1262 = vbcast.lane.b32.xlu0 %v10532_v30, 280  ;;  %1258 = vbcast.lane.b32.xlu1 %v10532_v30, 272  ;;  %v10571_v5 = vpop.permute.xlu1 %1014 }
 0x2b2   :  { %v10553_v52 = vpop.permute.xlu0 %999 }
 0x2b4   :  { %1273 = vbcast.lane.b32.xlu0 %v10545_v58, 264  ;;  %1269 = vbcast.lane.b32.xlu1 %v10545_v58, 256  ;;  %v10579_v45 = vpop.permute.xlu1 %1022 }
 0x2b6   :  { %v10564_v8 = vpop.permute.xlu0 %1007 }
 0x2b8   :  { %1281 = vbcast.lane.b32.xlu0 %v10545_v58, 280  ;;  %1277 = vbcast.lane.b32.xlu1 %v10545_v58, 272  ;;  %v10588_v47 = vpop.permute.xlu1 %1033 }
 0x2ba   :  { %v10573_v24 = vpop.permute.xlu0 %1018 }
 0x2bc   :  { %1292 = vbcast.lane.b32.xlu0 %v10558_v28, 264  ;;  %1288 = vbcast.lane.b32.xlu1 %v10558_v28, 256  ;;  %v10599_v1 = vpop.permute.xlu1 %1041 }
 0x2bd   :  { %15046 = vst [vmem:[#allocation135_spill] sm:$0xff] %v10599_v1 }
 0x2be   :  { %v10584_v32 = vpop.permute.xlu0 %1026 }
 0x2bf   :  { %15043 = vst [vmem:[#allocation132_spill] sm:$0xff] %v10584_v32 }
 0x2c0   :  { %1300 = vbcast.lane.b32.xlu0 %v10558_v28, 280  ;;  %1296 = vbcast.lane.b32.xlu1 %v10558_v28, 272  ;;  %v10608_v22 = vpop.permute.xlu1 %1052 }
 0x2c1   :  { %15049 = vst [vmem:[#allocation138_spill] sm:$0xff] %v10608_v22 }
 0x2c2   :  { %v10590_v56 = vpop.permute.xlu0 %1037 }
 0x2c3   :  { %15044 = vst [vmem:[#allocation133_spill] sm:$0xff] %v10590_v56  ;;  %v10606_v56 = vrot.slane %v284_v53, %v10196_v4 }
 0x2c4   :  { %1311 = vbcast.lane.b32.xlu0 %v10569_v25, 264  ;;  %1307 = vbcast.lane.b32.xlu1 %v10569_v25, 256  ;;  %v10616_v29 = vpop.permute.xlu1 %1060 }
 0x2c5   :  { %15048 = vst [vmem:[#allocation137_spill] sm:$0xff] %v10606_v56  ;;  %15051 = vst [vmem:[#allocation140_spill] sm:$0xff] %v10616_v29 }
 0x2c6   :  { %v10601_v32 = vpop.permute.xlu0 %1045 }
 0x2c7   :  { %15047 = vst [vmem:[#allocation136_spill] sm:$0xff] %v10601_v32 }
 0x2c8   :  { %1319 = vbcast.lane.b32.xlu0 %v10569_v25, 280  ;;  %1315 = vbcast.lane.b32.xlu1 %v10569_v25, 272  ;;  %v10622_v53 = vpop.permute.xlu1 %1071 }
 0x2c9   :  { %15053 = vst [vmem:[#allocation142_spill] sm:$0xff] %v10622_v53 }
 0x2ca   :  { %v10610_v7 = vpop.permute.xlu0 %1056 }
 0x2cb   :  { %15050 = vst [vmem:[#allocation139_spill] sm:$0xff] %v10610_v7 }
 0x2cc   :  { %1330 = vbcast.lane.b32.xlu0 %v10582_v13, 264  ;;  %1326 = vbcast.lane.b32.xlu1 %v10582_v13, 256  ;;  %v10630_v7 = vpop.permute.xlu1 %1079 }
 0x2cd   :  { %15055 = vst [vmem:[#allocation144_spill] sm:$0xff] %v10630_v7 }
 0x2ce   :  { %v10618_v32 = vpop.permute.xlu0 %1064 }
 0x2cf   :  { %15052 = vst [vmem:[#allocation141_spill] sm:$0xff] %v10618_v32 }
 0x2d0   :  { %1338 = vbcast.lane.b32.xlu0 %v10582_v13, 280  ;;  %1334 = vbcast.lane.b32.xlu1 %v10582_v13, 272  ;;  %v10636_v32 = vpop.permute.xlu1 %1090 }
 0x2d1   :  { %15057 = vst [vmem:[#allocation146_spill] sm:$0xff] %v10636_v32 }
 0x2d2   :  { %v10624_v4 = vpop.permute.xlu0 %1075 }
 0x2d3   :  { %15054 = vst [vmem:[#allocation143_spill] sm:$0xff] %v10624_v4 }
 0x2d4   :  { %1349 = vbcast.lane.b32.xlu0 %v10595_v27, 264  ;;  %1345 = vbcast.lane.b32.xlu1 %v10595_v27, 256  ;;  %v10644_v4 = vpop.permute.xlu1 %1098 }
 0x2d5   :  { %15059 = vst [vmem:[#allocation148_spill] sm:$0xff] %v10644_v4 }
 0x2d6   :  { %v10632_v29 = vpop.permute.xlu0 %1083 }
 0x2d7   :  { %15056 = vst [vmem:[#allocation145_spill] sm:$0xff] %v10632_v29 }
 0x2d8   :  { %1357 = vbcast.lane.b32.xlu0 %v10595_v27, 280  ;;  %1353 = vbcast.lane.b32.xlu1 %v10595_v27, 272 }
 0x2da   :  { %v10638_v53 = vpop.permute.xlu0 %1094 }
 0x2db   :  { %15058 = vst [vmem:[#allocation147_spill] sm:$0xff] %v10638_v53 }
 0x2dc   :  { %1368 = vbcast.lane.b32.xlu0 %v10606_v56, 264  ;;  %1364 = vbcast.lane.b32.xlu1 %v10606_v56, 256 }
 0x2de   :  { %v10646_v7 = vpop.permute.xlu0 %1102 }
 0x2df   :  { %15060 = vst [vmem:[#allocation149_spill] sm:$0xff] %v10646_v7 }
 0x2e0   :  { %1376 = vbcast.lane.b32.xlu0 %v10606_v56, 280  ;;  %1372 = vbcast.lane.b32.xlu1 %v10606_v56, 272 }
 0x2e2   :  { %v10652_v53 = vpop.permute.xlu0 %2651 }
 0x2e3   :  { %15062 = vst [vmem:[#allocation151_spill] sm:$0xff] %v10652_v53 }
 0x2e4   :  { %2683 = vbcast.lane.b32.xlu0 %v10364_v20, 288  ;;  %2687 = vbcast.lane.b32.xlu1 %v10364_v20, 296 }
 0x2e6   :  { %v10660_v7 = vpop.permute.xlu0 %2659 }
 0x2e7   :  { %15064 = vst [vmem:[#allocation153_spill] sm:$0xff] %v10660_v7 }
 0x2e8   :  { %2691 = vbcast.lane.b32.xlu0 %v10364_v20, 304  ;;  %2695 = vbcast.lane.b32.xlu1 %v10364_v20, 312  ;;  %v10650_v20 = vpop.permute.xlu1 %2655 }
 0x2e9   :  { %15061 = vst [vmem:[#allocation150_spill] sm:$0xff] %v10650_v20 }
 0x2ec   :  { %2699 = vbcast.lane.b32.xlu0 %v10378_v11, 288  ;;  %2703 = vbcast.lane.b32.xlu1 %v10378_v11, 296 }
 0x2f0   :  { %2707 = vbcast.lane.b32.xlu0 %v10378_v11, 304  ;;  %2711 = vbcast.lane.b32.xlu1 %v10378_v11, 312  ;;  %v9839_v11 = vmov 1966171168  }
 0x2f1   :  { %v1107_v29 = vunpack.c.l.s4 %v9839_v11 }
 0x2f3   :  { %v1108_v32 = vunpack.c.0.s8 %v1107_v29  ;;  %v10671_v29 = vpop.permute.xlu0 %2667 }
 0x2f4   :  { %2715 = vbcast.lane.b32.xlu0 %v10391_v44, 288  ;;  %2719 = vbcast.lane.b32.xlu1 %v10391_v44, 296  ;;  %15066 = vst [vmem:[#allocation155_spill] sm:$0xff] %v10671_v29 }
 0x2f5   :  { %v10663_v4 = vsub.s32 %v1108_v32, %v9869_v36 }
 0x2f7   :  { %v1112_v11 = vrot.slane %v10341_v16, %v10663_v4  ;;  %v10680_v36 = vpop.permute.xlu0 %2675 }
 0x2f8   :  { %2723 = vbcast.lane.b32.xlu0 %v10391_v44, 304  ;;  %2727 = vbcast.lane.b32.xlu1 %v10391_v44, 312  ;;  %v10658_v44 = vpop.permute.xlu1 %2663  ;;  %15068 = vst [vmem:[#allocation157_spill] sm:$0xff] %v10680_v36 }
 0x2f9   :  { %15063 = vst [vmem:[#allocation152_spill] sm:$0xff] %v10658_v44  ;;  %v1128_v44 = vrot.slane %v1112_v11, %v10663_v4 }
 0x2fb   :  { %v10683_v7 = vrot.slane %v1128_v44, %v9872_v38 }
 0x2fc   :  { %2731 = vbcast.lane.b32.xlu0 %v10405_v21, 288  ;;  %2735 = vbcast.lane.b32.xlu1 %v10405_v21, 296 }
 0x2fd   :  { %15069 = vst [vmem:[#allocation158_spill] sm:$0xff] %v10683_v7  ;;  %v1195_v20 = vmul.f32 %v10683_v7, %v10521_v40  ;;  %v1196_v53 = vmul.f32 %v10683_v7, %v10525_v15 }
 0x300   :  { %2739 = vbcast.lane.b32.xlu0 %v10405_v21, 304  ;;  %2743 = vbcast.lane.b32.xlu1 %v10405_v21, 312  ;;  %v10669_v21 = vpop.permute.xlu1 %2671 }
 0x301   :  { %15065 = vst [vmem:[#allocation154_spill] sm:$0xff] %v10669_v21  ;;  %v1194_v21 = vmul.f32 %v10683_v7, %v10515_v19  ;;  %v1197_v19 = vmul.f32 %v10683_v7, %v10527_v60  ;;  %v1150_v7 = vcombine.high %v1128_v44, %v1128_v44 }
 0x303   :  { %v10717_v44 = vrot.slane %v1150_v7, %v9872_v38 }
 0x304   :  { %2747 = vbcast.lane.b32.xlu0 %v10421_v10, 288  ;;  %2751 = vbcast.lane.b32.xlu1 %v10421_v10, 296  ;;  %v10678_v32 = vpop.permute.xlu1 %2679 }
 0x305   :  { %15067 = vst [vmem:[#allocation156_spill] sm:$0xff] %v10678_v32 }
 0x308   :  { %2755 = vbcast.lane.b32.xlu0 %v10421_v10, 304  ;;  %2759 = vbcast.lane.b32.xlu1 %v10421_v10, 312  ;;  %v1120_v10 = vcombine.high %v1112_v11, %v1112_v11 }
 0x30a   :  { %v10692_v32 = vrot.slane %v1120_v10, %v10663_v4 }
 0x30c   :  { %2763 = vbcast.lane.b32.xlu0 %v10435_v57, 288  ;;  %2767 = vbcast.lane.b32.xlu1 %v10435_v57, 296  ;;  %v10702_v10 = vrot.slane %v10692_v32, %v9872_v38 }
 0x30e   :  { %v1198_v15 = vmul.f32 %v10702_v10, %v10534_v50 }
 0x310   :  { %2771 = vbcast.lane.b32.xlu0 %v10435_v57, 304  ;;  %2775 = vbcast.lane.b32.xlu1 %v10435_v57, 312 }
 0x314   :  { %2811 = vbcast.lane.b32.xlu0 %v10519_v42, 288  ;;  %2815 = vbcast.lane.b32.xlu1 %v10519_v42, 296 }
 0x316   :  { %v1232_v29 = vpop.permute.xlu1 %1231  ;;  %v1236_v57 = vpop.permute.xlu0 %1235 }
 0x317   :  { %v1378_v36 = vsub.f32 %v1194_v21, %v1232_v29  ;;  %v1379_v11 = vsub.f32 %v1195_v20, %v1236_v57 }
 0x318   :  { %2823 = vbcast.lane.b32.xlu1 %v10519_v42, 312  ;;  %2819 = vbcast.lane.b32.xlu0 %v10519_v42, 304 }
 0x319   :  { %v1410_v1 = vmul.f32 1.442695, %v1378_v36  ;;  %v1412_v56 = vmul.f32 1.442695, %v1379_v11  ;;  %v1199_v36 = vmul.f32 %v10702_v10, %v10536_v35 }
 0x31a   :  { %v1240_v40 = vpop.permute.xlu1 %1239  ;;  %v1244_v22 = vpop.permute.xlu0 %1243 }
 0x31b   :  { %9257 = vpow2.f32 %v1410_v1  ;;  %v1380_v20 = vsub.f32 %v1196_v53, %v1240_v40  ;;  %v1381_v21 = vsub.f32 %v1197_v19, %v1244_v22  ;;  %v1200_v22 = vmul.f32 %v10702_v10, %v10542_v2 }
 0x31c   :  { %9259 = vpow2.f32 %v1412_v56  ;;  %2831 = vbcast.lane.b32.xlu1 %v10532_v30, 296  ;;  %2827 = vbcast.lane.b32.xlu0 %v10532_v30, 288  ;;  %v1201_v56 = vmul.f32 %v10702_v10, %v10547_v12  ;;  %v1202_v2 = vmul.f32 %v10717_v44, %v10551_v33 }
 0x31d   :  { %v1414_v60 = vmul.f32 1.442695, %v1380_v20  ;;  %v1416_v57 = vmul.f32 1.442695, %v1381_v21 }
 0x31e   :  { %v1251_v29 = vpop.permute.xlu1 %1250  ;;  %v1255_v11 = vpop.permute.xlu0 %1254 }
 0x31f   :  { %9261 = vpow2.f32 %v1414_v60  ;;  %v1382_v1 = vsub.f32 %v1198_v15, %v1251_v29  ;;  %v1383_v53 = vsub.f32 %v1199_v36, %v1255_v11  ;;  %v1152_v11 = vcombine.high %v10692_v32, %v10692_v32 }
 0x320   :  { %9263 = vpow2.f32 %v1416_v57  ;;  %2839 = vbcast.lane.b32.xlu1 %v10532_v30, 312  ;;  %2835 = vbcast.lane.b32.xlu0 %v10532_v30, 304 }
 0x321   :  { %v1418_v50 = vmul.f32 1.442695, %v1382_v1  ;;  %v1420_v35 = vmul.f32 1.442695, %v1383_v53 }
 0x322   :  { %v1259_v19 = vpop.permute.xlu1 %1258  ;;  %v1263_v40 = vpop.permute.xlu0 %1262 }
 0x323   :  { %9265 = vpow2.f32 %v1418_v50  ;;  %v1384_v20 = vsub.f32 %v1200_v22, %v1259_v19  ;;  %v1385_v21 = vsub.f32 %v1201_v56, %v1263_v40  ;;  %v10736_v22 = vsel %vm287_vm0, %v10265_v49, 1.0 }
 0x324   :  { %9267 = vpow2.f32 %v1420_v35  ;;  %2847 = vbcast.lane.b32.xlu1 %v10545_v58, 296  ;;  %2843 = vbcast.lane.b32.xlu0 %v10545_v58, 288  ;;  %15070 = vst [vmem:[#allocation159_spill] sm:$0xff] %v10736_v22  ;;  %v10744_v50 = vsel %vm287_vm0, %v10121_v54, 1.0  ;;  %v10747_v35 = vrot.slane %v1152_v11, %v9872_v38  ;;  %v10801_v11 = vsel %vm287_vm0, %v10093_v46, 1.0 }
 0x325   :  { %v1422_v15 = vmul.f32 1.442695, %v1384_v20  ;;  %v1424_v12 = vmul.f32 1.442695, %v1385_v21  ;;  %15071 = vst [vmem:[#allocation160_spill] sm:$0xff] %v10744_v50  ;;  %v10759_v20 = vsel %vm287_vm0, %v10250_v48, 1.0 }
 0x326   :  { %v1270_v36 = vpop.permute.xlu1 %1269  ;;  %v10723_v60 = vpop.permute.xlu0 %1273  ;;  %15072 = vst [vmem:[#allocation161_spill] sm:$0xff] %v10747_v35  ;;  %v1206_v40 = vmul.f32 %v10747_v35, %v10571_v5  ;;  %15073 = vst [vmem:[#allocation162_spill] sm:$0xff] %v10759_v20  ;;  %v10768_v5 = vsel %vm287_vm0, %v10106_v51, 1.0  ;;  %v10784_v51 = vsel %vm287_vm0, %v10314_v0, 1.0  ;;  %v10818_v46 = vsel %vm287_vm0, %v10206_v41, 1.0 }
 0x327   :  { %v1386_v57 = vsub.f32 %v1202_v2, %v1270_v36  ;;  %9269 = vpow2.f32 %v1422_v15  ;;  %15074 = vst [vmem:[#allocation163_spill] sm:$0xff] %v10768_v5  ;;  %15076 = vst [vmem:[#allocation165_spill] sm:$0xff] %v10784_v51  ;;  %v10842_v41 = vsel %vm287_vm0, %v10075_v39, 1.0 }
 0x328   :  { %v9258_v29 = vpop.eup %9257  ;;  %2855 = vbcast.lane.b32.xlu1 %v10545_v58, 312  ;;  %2851 = vbcast.lane.b32.xlu0 %v10545_v58, 304  ;;  %9271 = vpow2.f32 %v1424_v12  ;;  %v10779_v12 = vsel %vm287_vm0, %v10230_v59, 1.0  ;;  %15077 = vst [vmem:[#allocation166_spill] sm:$0xff] %v10801_v11  ;;  %15079 = vst [vmem:[#allocation168_spill] sm:$0xff] %v10818_v46 }
 0x329   :  { %v9260_v7 = vpop.eup %9259  ;;  %8031 = vmatprep.mubr.f32.mxu1 %v9258_v29  ;;  %v1426_v1 = vmul.f32 1.442695, %v1386_v57  ;;  %15075 = vst [vmem:[#allocation164_spill] sm:$0xff] %v10779_v12  ;;  %v1105_v57 = vcombine.high %v10341_v16, %v10341_v16  ;;  %v10808_v16 = vsel %vm287_vm0, %v10269_v14, 1.0  ;;  %v10823_v14 = vsel %vm287_vm0, %v10309_v6, 1.0  ;;  %15081 = vst [vmem:[#allocation170_spill] sm:$0xff] %v10842_v41 }
 0x32a   :  { %v10729_v33 = vpop.permute.xlu1 %1277  ;;  %v10731_v53 = vpop.permute.xlu0 %1281  ;;  %8032 = vmatmul.mubr.f32.vlgmr.msra.gmra.mxu1 %v9260_v7  ;;  %15078 = vst [vmem:[#allocation167_spill] sm:$0xff] %v10808_v16  ;;  %15080 = vst [vmem:[#allocation169_spill] sm:$0xff] %v10823_v14  ;;  %v1204_v6 = vmul.f32 %v10717_v44, %v10562_v43  ;;  %v10854_v43 = vsel %vm287_vm0, %v10263_v61, 1.0  ;;  %v10872_v61 = vsel %vm287_vm0, %v10304_v34, 1.0  ;;  %v10887_v34 = vsel %vm287_vm0, %v10053_v31, 1.0 }
 0x32b   :  { %8076 = vmatpush3.msra.mxu1 %v10149_v3  ;;  %9273 = vpow2.f32 %v1426_v1  ;;  %v10812_v1 = vrot.slane %v1105_v57, %v10663_v4  ;;  %15082 = vst [vmem:[#allocation171_spill] sm:$0xff] %v10854_v43  ;;  %15084 = vst [vmem:[#allocation173_spill] sm:$0xff] %v10872_v61 }
 0x32c   :  { %v9262_v56 = vpop.eup %9261  ;;  %8077 = vmatprep.subr.mxu1 %v10736_v22  ;;  %2863 = vbcast.lane.b32.xlu1 %v10558_v28, 296  ;;  %15085 = vst [vmem:[#allocation174_spill] sm:$0xff] %v10887_v34 }
 0x32d   :  { %v9264_v32 = vpop.eup %9263  ;;  %2859 = vbcast.lane.b32.xlu0 %v10558_v28, 288  ;;  %8078 = vmatpush3.msra.mxu1 %v10736_v22 }
 0x32e   :  { %8034 = vmatprep.mubr.f32.mxu1 %v9262_v56  ;;  %8079 = vmatprep.subr.mxu1 %v10744_v50  ;;  %v1289_v49 = vpop.permute.xlu1 %1288  ;;  %v10752_v19 = vpop.permute.xlu0 %1292 }
 0x32f   :  { %8035 = vmatmul.mubr.f32.gmra.mxu1 %v9264_v32  ;;  %v1390_v2 = vsub.f32 %v1206_v40, %v1289_v49  ;;  %v1203_v40 = vmul.f32 %v10717_v44, %v10553_v52 }
 0x330   :  { %v9266_v54 = vpop.eup %9265  ;;  %8080 = vmatpush3.msra.mxu1 %v10744_v50  ;;  %2871 = vbcast.lane.b32.xlu1 %v10558_v28, 312 }
 0x331   :  { %v9268_v21 = vpop.eup %9267  ;;  %8081 = vmatprep.subr.mxu1 %v10759_v20  ;;  %2867 = vbcast.lane.b32.xlu0 %v10558_v28, 304  ;;  %v1434_v29 = vmul.f32 1.442695, %v1390_v2  ;;  %v1387_v52 = vsub.f32 %v1203_v40, %v10723_v60  ;;  %v10865_v60 = vsel %vm287_vm0, %v10183_v17, 1.0  ;;  %v1205_v17 = vmul.f32 %v10717_v44, %v10564_v8 }
 0x332   :  { %8082 = vmatpush3.msra.mxu1 %v10759_v20  ;;  %8069 = vmatprep.mubr.f32.mxu0 %v9266_v54  ;;  %v10771_v48 = vpop.permute.xlu1 %1296  ;;  %v10773_v15 = vpop.permute.xlu0 %1300  ;;  %v10846_v54 = vrot.slane %v10812_v1, %v10663_v4  ;;  %15083 = vst [vmem:[#allocation172_spill] sm:$0xff] %v10865_v60  ;;  %v10898_v8 = vsel %vm287_vm0, %v10248_v63, 1.0  ;;  %v10908_v40 = vsel %vm287_vm0, %v10164_v9, 1.0  ;;  %v10917_v63 = vsel %vm287_vm0, %v10298_v37, 1.0 }
 0x333   :  { %8083 = vmatprep.subr.mxu1 %v10768_v5  ;;  %8070 = vmatmul.mubr.f32.vlgmr.msra.gmra.mxu0 %v9268_v21  ;;  %9275 = vpow2.f32 %v1434_v29  ;;  %v1388_v21 = vsub.f32 %v1204_v6, %v10729_v33  ;;  %15086 = vst [vmem:[#allocation175_spill] sm:$0xff] %v10898_v8  ;;  %v1389_v31 = vsub.f32 %v1205_v17, %v10731_v53  ;;  %15087 = vst [vmem:[#allocation176_spill] sm:$0xff] %v10908_v40 }
 0x334   :  { %8084 = vmatpush3.msra.mxu1 %v10768_v5  ;;  %8114 = vmatpush3.msra.mxu0 %v10279_v18  ;;  %v9270_v36 = vpop.eup %9269  ;;  %v10878_v33 = vrot.slane %v10846_v54, %v9872_v38  ;;  %v1121_v6 = vcombine.high %v10812_v1, %v10812_v1  ;;  %15088 = vst [vmem:[#allocation177_spill] sm:$0xff] %v10917_v63  ;;  %v10931_v37 = vsel %vm287_vm0, %v10030_v26, 1.0 }
 0x335   :  { %8085 = vmatprep.subr.mxu1 %v10779_v12  ;;  %8115 = vmatprep.subr.mxu0 %v10784_v51  ;;  %v9272_v59 = vpop.eup %9271  ;;  %v1430_v57 = vmul.f32 1.442695, %v1388_v21  ;;  %15089 = vst [vmem:[#allocation178_spill] sm:$0xff] %v10931_v37  ;;  %v10940_v21 = vsel %vm287_vm0, %v10228_v23, 1.0  ;;  %v1208_v26 = vmul.f32 %v10747_v35, %v10579_v45  ;;  %v10954_v23 = vsel %vm287_vm0, %v10140_v62, 1.0  ;;  %v15094_v62 = vld [vmem:[#allocation21_spill] sm:$0xff] }
 0x336   :  { %2879 = vbcast.lane.b32.xlu1 %v10569_v25, 296  ;;  %2875 = vbcast.lane.b32.xlu0 %v10569_v25, 288  ;;  %v10794_v0 = vpop.permute.xlu1 %1307  ;;  %v10796_v7 = vpop.permute.xlu0 %1311  ;;  %15090 = vst [vmem:[#allocation179_spill] sm:$0xff] %v10940_v21  ;;  %v10943_v17 = vrot.slane %v1121_v6, %v10663_v4  ;;  %15091 = vst [vmem:[#allocation180_spill] sm:$0xff] %v10954_v23  ;;  %v15092_v4 = vld [vmem:[#allocation57_spill] sm:$0xff] }
 0x337   :  { %8086 = vmatpush3.msra.mxu1 %v10779_v12  ;;  %8116 = vmatpush3.msra.mxu0 %v10784_v51  ;;  %v1392_v45 = vsub.f32 %v1208_v26, %v10771_v48  ;;  %v15097_v6 = vld [vmem:[#allocation45_spill] sm:$0xff] }
 0x338   :  { %8072 = vmatprep.mubr.f32.mxu0 %v9270_v36  ;;  %8087 = vmatprep.subr.mxu1 %v10801_v11  ;;  %v9274_v49 = vpop.eup %9273  ;;  %v1428_v36 = vmul.f32 1.442695, %v1387_v52  ;;  %v1432_v52 = vmul.f32 1.442695, %v1389_v31  ;;  %v10973_v31 = vsel %vm287_vm0, %v15094_v62, 1.0  ;;  %v10977_v48 = vrot.slane %v10943_v17, %v9872_v38 }
 0x339   :  { %8117 = vmatprep.subr.mxu0 %v10808_v16  ;;  %8073 = vmatmul.mubr.f32.gmra.mxu0 %v9272_v59  ;;  %15095 = vst [vmem:[#allocation21_spill] sm:$0xff] %v10973_v31  ;;  %v1438_v26 = vmul.f32 1.442695, %v1392_v45 }
 0x33a   :  { %8088 = vmatpush3.msra.mxu1 %v10801_v11  ;;  %8118 = vmatpush3.msra.mxu0 %v10808_v16  ;;  %v10827_v56 = vpop.permute.xlu1 %1315  ;;  %v10829_v32 = vpop.permute.xlu0 %1319  ;;  %9277 = vpow2.f32 %v1428_v36  ;;  %15096 = vst [vmem:[#allocation181_spill] sm:$0xff] %v10977_v48 }
 0x33b   :  { %8089 = vmatprep.subr.mxu1 %v10818_v46  ;;  %8119 = vmatprep.subr.mxu0 %v10823_v14  ;;  %9279 = vpow2.f32 %v1430_v57  ;;  %v10959_v57 = vsel %vm287_vm0, %v15092_v4, 1.0 }
 0x33c   :  { %2887 = vbcast.lane.b32.xlu1 %v10569_v25, 312  ;;  %2883 = vbcast.lane.b32.xlu0 %v10569_v25, 304  ;;  %15093 = vst [vmem:[#allocation57_spill] sm:$0xff] %v10959_v57  ;;  %9281 = vpow2.f32 %v1432_v52 }
 0x33d   :  { %8090 = vmatpush3.msra.mxu1 %v10818_v46  ;;  %8120 = vmatpush3.msra.mxu0 %v10823_v14 }
 0x33e   :  { %8091 = vmatprep.subr.mxu1 %v10842_v41  ;;  %8107 = vmatprep.mubr.f32.mxu1 %v9274_v49  ;;  %v10858_v39 = vpop.permute.xlu1 %1326  ;;  %v10860_v2 = vpop.permute.xlu0 %1330  ;;  %v1210_v49 = vmul.f32 %v10878_v33, %v10588_v47 }
 0x33f   :  { %8121 = vmatprep.subr.mxu0 %v10854_v43  ;;  %8092 = vmatpush3.msra.mxu1 %v10842_v41 }
 0x340   :  { %8122 = vmatpush3.msra.mxu0 %v10854_v43  ;;  %8093 = vmatprep.subr.mxu1 %v10865_v60  ;;  %v1394_v47 = vsub.f32 %v1210_v49, %v10794_v0  ;;  %v9276_v9 = vpop.eup %9275  ;;  %v1207_v0 = vmul.f32 %v10747_v35, %v10573_v24 }
 0x341   :  { %8123 = vmatprep.subr.mxu0 %v10872_v61  ;;  %2895 = vbcast.lane.b32.xlu1 %v10582_v13, 296 }
 0x342   :  { %2891 = vbcast.lane.b32.xlu0 %v10582_v13, 288  ;;  %8094 = vmatpush3.msra.mxu1 %v10865_v60  ;;  %v10891_v29 = vpop.permute.xlu1 %1334  ;;  %v10893_v59 = vpop.permute.xlu0 %1338  ;;  %v1391_v24 = vsub.f32 %v1207_v0, %v10752_v19  ;;  %v1442_v36 = vmul.f32 1.442695, %v1394_v47  ;;  %v10984_v47 = vsel %vm287_vm0, %v15097_v6, 1.0  ;;  %v15100_v6 = vld [vmem:[#allocation33_spill] sm:$0xff] }
 0x343   :  { %8124 = vmatpush3.msra.mxu0 %v10872_v61  ;;  %8095 = vmatprep.subr.mxu1 %v10887_v34  ;;  %15098 = vst [vmem:[#allocation45_spill] sm:$0xff] %v10984_v47 }
 0x344   :  { %8125 = vmatprep.subr.mxu0 %v10898_v8  ;;  %8096 = vmatpush3.msra.mxu1 %v10887_v34  ;;  %v1436_v52 = vmul.f32 1.442695, %v1391_v24  ;;  %9283 = vpow2.f32 %v1442_v36  ;;  %v15102_v24 = vld [vmem:[#allocation55_spill] sm:$0xff] }
 0x345   :  { %8126 = vmatpush3.msra.mxu0 %v10898_v8  ;;  %8097 = vmatprep.subr.mxu1 %v10908_v40  ;;  %v11004_v36 = vsel %vm287_vm0, %v15102_v24, 1.0 }
 0x346   :  { %8127 = vmatprep.subr.mxu0 %v10917_v63  ;;  %2903 = vbcast.lane.b32.xlu1 %v10582_v13, 312  ;;  %v10924_v53 = vpop.permute.xlu1 %1345  ;;  %v10926_v1 = vpop.permute.xlu0 %1349  ;;  %15103 = vst [vmem:[#allocation33_spill] sm:$0xff] %v11004_v36  ;;  %9285 = vpow2.f32 %v1436_v52 }
 0x347   :  { %2899 = vbcast.lane.b32.xlu0 %v10582_v13, 304  ;;  %8098 = vmatpush3.msra.mxu1 %v10908_v40  ;;  %v9278_v24 = vpop.eup %9277  ;;  %9287 = vpow2.f32 %v1438_v26  ;;  %v15142_v40 = vld [vmem:[#allocation92_spill] sm:$0xff] }
 0x348   :  { %8128 = vmatpush3.msra.mxu0 %v10917_v63  ;;  %8099 = vmatprep.subr.mxu1 %v10931_v37 }
 0x349   :  { %8129 = vmatprep.subr.mxu0 %v10940_v21  ;;  %8145 = vmatprep.mubr.f32.mxu0 %v9276_v9  ;;  %v15099_v9 = vld [vmem:[#allocation132_spill] sm:$0xff] }
 0x34a   :  { %8100 = vmatpush3.msra.mxu1 %v10931_v37  ;;  %8130 = vmatpush3.msra.mxu0 %v10940_v21  ;;  %v10964_v19 = vpop.permute.xlu1 %1353  ;;  %v10966_v49 = vpop.permute.xlu0 %1357  ;;  %v1209_v0 = vmul.f32 %v10747_v35, %v15099_v9  ;;  %v10999_v21 = vsel %vm287_vm0, %v15100_v6, 1.0  ;;  %v15104_v9 = vld [vmem:[#allocation138_spill] sm:$0xff]  ;;  %v15125_v37 = vld [vmem:[#allocation91_spill] sm:$0xff] }
 0x34b   :  { %8101 = vmatprep.subr.mxu1 %v10954_v23  ;;  %8131 = vmatprep.subr.mxu0 %v10959_v57  ;;  %15101 = vst [vmem:[#allocation132_spill] sm:$0xff] %v10999_v21  ;;  %v1214_v45 = vmul.f32 %v10977_v48, %v15104_v9  ;;  %v15107_v9 = vld [vmem:[#allocation65_spill] sm:$0xff]  ;;  %v11102_v63 = vsel %vm287_vm0, %v15125_v37, 1.0 }
 0x34c   :  { %2911 = vbcast.lane.b32.xlu1 %v10595_v27, 296  ;;  %2907 = vbcast.lane.b32.xlu0 %v10595_v27, 288 }
 0x34d   :  { %8102 = vmatpush3.msra.mxu1 %v10954_v23  ;;  %8132 = vmatpush3.msra.mxu0 %v10959_v57  ;;  %v1393_v57 = vsub.f32 %v1209_v0, %v10773_v15  ;;  %v1398_v6 = vsub.f32 %v1214_v45, %v10858_v39  ;;  %v15105_v23 = vld [vmem:[#allocation42_spill] sm:$0xff]  ;;  %v9280_v39 = vpop.eup %9279  ;;  %v11030_v45 = vsel %vm287_vm0, %v15107_v9, 1.0  ;;  %v15114_v9 = vld [vmem:[#allocation39_spill] sm:$0xff] }
 0x34e   :  { %8103 = vmatprep.subr.mxu1 %v10973_v31  ;;  %8133 = vmatprep.subr.mxu0 %v10984_v47  ;;  %v10992_v4 = vpop.permute.xlu1 %1364  ;;  %v10994_v62 = vpop.permute.xlu0 %1368  ;;  %v11019_v15 = vsel %vm287_vm0, %v15105_v23, 1.0  ;;  %15108 = vst [vmem:[#allocation138_spill] sm:$0xff] %v11030_v45  ;;  %v15109_v23 = vld [vmem:[#allocation52_spill] sm:$0xff] }
 0x34f   :  { %8104 = vmatpush3.msra.mxu1 %v10973_v31  ;;  %8134 = vmatpush3.msra.mxu0 %v10984_v47  ;;  %15106 = vst [vmem:[#allocation55_spill] sm:$0xff] %v11019_v15  ;;  %v1440_v47 = vmul.f32 1.442695, %v1393_v57  ;;  %v11037_v26 = vsel %vm287_vm0, %v15109_v23, 1.0  ;;  %v1450_v31 = vmul.f32 1.442695, %v1398_v6 }
 0x350   :  { %8105 = vmatprep.subr.mxu1 %v10999_v21  ;;  %8135 = vmatprep.subr.mxu0 %v11004_v36  ;;  %15110 = vst [vmem:[#allocation42_spill] sm:$0xff] %v11037_v26  ;;  %v11057_v6 = vsel %vm287_vm0, %v15114_v9, 1.0  ;;  %v15116_v23 = vld [vmem:[#allocation62_spill] sm:$0xff] }
 0x351   :  { %2919 = vbcast.lane.b32.xlu1 %v10595_v27, 312  ;;  %2915 = vbcast.lane.b32.xlu0 %v10595_v27, 304  ;;  %9289 = vpow2.f32 %v1440_v47  ;;  %15115 = vst [vmem:[#allocation52_spill] sm:$0xff] %v11057_v6 }
 0x352   :  { %8106 = vmatpush3.msra.mxu1 %v10999_v21  ;;  %8136 = vmatpush3.msra.mxu0 %v11004_v36  ;;  %v11023_v0 = vpop.permute.xlu1 %1372  ;;  %v11025_v52 = vpop.permute.xlu0 %1376  ;;  %v15111_v36 = vld [vmem:[#allocation77_spill] sm:$0xff]  ;;  %9291 = vpow2.f32 %v1450_v31 }
 0x353   :  { %8108 = vmatmul.mubr.f32.vlgmr.msra.gmra.mxu1 %v9278_v24  ;;  %8137 = vmatprep.subr.mxu0 %v11019_v15  ;;  %v11042_v21 = vsel %vm287_vm0, %v15111_v36, 1.0  ;;  %v9282_v36 = vpop.eup %9281 }
 0x354   :  { %8151 = vmatprep.subr.mxu1 %v11030_v45  ;;  %8110 = vmatprep.mubr.f32.mxu1 %v9280_v39  ;;  %15112 = vst [vmem:[#allocation65_spill] sm:$0xff] %v11042_v21  ;;  %v15113_v39 = vld [vmem:[#allocation137_spill] sm:$0xff]  ;;  %v9284_v47 = vpop.eup %9283 }
 0x355   :  { %8138 = vmatpush3.msra.mxu0 %v11019_v15  ;;  %8152 = vmatpush3.msra.mxu1 %v11030_v45  ;;  %v11064_v45 = vsel %vm287_vm0, %v15116_v23, 1.0  ;;  %v15120_v23 = vld [vmem:[#allocation75_spill] sm:$0xff] }
 0x356   :  { %8139 = vmatprep.subr.mxu0 %v11037_v26  ;;  %8153 = vmatprep.subr.mxu1 %v11042_v21  ;;  %v11048_v57 = vpop.permute.xlu1 %2687  ;;  %v11050_v24 = vpop.permute.xlu0 %2683  ;;  %15117 = vst [vmem:[#allocation77_spill] sm:$0xff] %v11064_v45  ;;  %v11081_v31 = vsel %vm287_vm0, %v15120_v23, 1.0 }
 0x357   :  { %2927 = vbcast.lane.b32.xlu1 %v15113_v39, 296  ;;  %2923 = vbcast.lane.b32.xlu0 %v15113_v39, 288  ;;  %15121 = vst [vmem:[#allocation62_spill] sm:$0xff] %v11081_v31 }
 0x358   :  { %8140 = vmatpush3.msra.mxu0 %v11037_v26  ;;  %8154 = vmatpush3.msra.mxu1 %v11042_v21  ;;  %v15118_v26 = vld [vmem:[#allocation51_spill] sm:$0xff] }
 0x359   :  { %8111 = vmatmul.mubr.f32.gmra.mxu1 %v9282_v36  ;;  %8141 = vmatprep.subr.mxu0 %v11057_v6  ;;  %v11076_v21 = vsel %vm287_vm0, %v15118_v26, 1.0  ;;  %v9286_v36 = vpop.eup %9285 }
 0x35a   :  { %8155 = vmatprep.subr.mxu1 %v11064_v45  ;;  %8142 = vmatpush3.msra.mxu0 %v11057_v6  ;;  %v11069_v9 = vpop.permute.xlu1 %2695  ;;  %v11071_v15 = vpop.permute.xlu0 %2691  ;;  %15119 = vst [vmem:[#allocation39_spill] sm:$0xff] %v11076_v21  ;;  %v15122_v6 = vld [vmem:[#allocation61_spill] sm:$0xff] }
 0x35b   :  { %8156 = vmatpush3.msra.mxu1 %v11064_v45  ;;  %8183 = vmatprep.mubr.f32.mxu1 %v9284_v47  ;;  %v11091_v26 = vsel %vm287_vm0, %v15122_v6, 1.0  ;;  %v9288_v45 = vpop.eup %9287  ;;  %15126 = vst [vmem:[#allocation61_spill] sm:$0xff] %v11102_v63  ;;  %v15127_v6 = vld [vmem:[#allocation73_spill] sm:$0xff] }
 0x35c   :  { %8143 = vmatprep.subr.mxu0 %v11076_v21  ;;  %8157 = vmatprep.subr.mxu1 %v11081_v31  ;;  %15123 = vst [vmem:[#allocation51_spill] sm:$0xff] %v11091_v26 }
 0x35d   :  { %2935 = vbcast.lane.b32.xlu1 %v15113_v39, 312  ;;  %2931 = vbcast.lane.b32.xlu0 %v15113_v39, 304 }
 0x35e   :  { %8144 = vmatpush3.msra.mxu0 %v11076_v21  ;;  %8158 = vmatpush3.msra.mxu1 %v11081_v31  ;;  %v11095_v23 = vpop.permute.xlu1 %2703  ;;  %v11097_v47 = vpop.permute.xlu0 %2699  ;;  %v11109_v31 = vsel %vm287_vm0, %v15127_v6, 1.0  ;;  %v15129_v21 = vld [vmem:[#allocation95_spill] sm:$0xff] }
 0x35f   :  { %15124 = vst [vmem:[#allocation75_spill] sm:$0xff] %v11095_v23  ;;  %8146 = vmatmul.mubr.f32.vlgmr.msra.gmra.mxu0 %v9286_v36  ;;  %8159 = vmatprep.subr.mxu1 %v11091_v26  ;;  %15128 = vst [vmem:[#allocation91_spill] sm:$0xff] %v11109_v31  ;;  %v11114_v39 = vsel %vm287_vm0, %v15129_v21, 1.0  ;;  %v15133_v36 = vld [vmem:[#allocation67_spill] sm:$0xff]  ;;  %v9290_v6 = vpop.eup %9289  ;;  %v15134_v23 = vld [vmem:[#allocation60_spill] sm:$0xff] }
 0x360   :  { %8189 = vmatprep.subr.mxu0 %v11102_v63  ;;  %8148 = vmatprep.mubr.f32.mxu0 %v9288_v45  ;;  %15130 = vst [vmem:[#allocation73_spill] sm:$0xff] %v11114_v39  ;;  %v11129_v21 = vsel %vm287_vm0, %v15134_v23, 1.0 }
 0x361   :  { %8160 = vmatpush3.msra.mxu1 %v11091_v26  ;;  %8190 = vmatpush3.msra.mxu0 %v11102_v63  ;;  %15135 = vst [vmem:[#allocation60_spill] sm:$0xff] %v11129_v21  ;;  %v15136_v63 = vld [vmem:[#allocation87_spill] sm:$0xff] }
 0x362   :  { %8161 = vmatprep.subr.mxu1 %v11109_v31  ;;  %8191 = vmatprep.subr.mxu0 %v11114_v39  ;;  %v11120_v37 = vpop.permute.xlu1 %2711  ;;  %v11122_v45 = vpop.permute.xlu0 %2707  ;;  %v11136_v26 = vsel %vm287_vm0, %v15136_v63, 1.0  ;;  %v11153_v63 = vsel %vm287_vm0, %v15142_v40, 1.0  ;;  %v15146_v40 = vld [vmem:[#allocation59_spill] sm:$0xff] }
 0x363   :  { %15131 = vst [vmem:[#allocation95_spill] sm:$0xff] %v11120_v37  ;;  %15132 = vst [vmem:[#allocation182_spill] sm:$0xff] %v11122_v45  ;;  %4208 = vbcast.lane.b32.xlu1 %v15133_v36, 328  ;;  %4204 = vbcast.lane.b32.xlu0 %v15133_v36, 320  ;;  %v9292_v37 = vpop.eup %9291 }
 0x364   :  { %8162 = vmatpush3.msra.mxu1 %v11109_v31  ;;  %8192 = vmatpush3.msra.mxu0 %v11114_v39  ;;  %15137 = vst [vmem:[#allocation87_spill] sm:$0xff] %v11136_v26  ;;  %v15140_v31 = vld [vmem:[#allocation70_spill] sm:$0xff]  ;;  %15143 = vst [vmem:[#allocation92_spill] sm:$0xff] %v11153_v63 }
 0x365   :  { %8149 = vmatmul.mubr.f32.gmra.mxu0 %v9290_v6  ;;  %8163 = vmatprep.subr.mxu1 %v11129_v21  ;;  %v11148_v39 = vsel %vm287_vm0, %v15140_v31, 1.0  ;;  %v15144_v6 = vld [vmem:[#allocation133_spill] sm:$0xff]  ;;  %v1151_v31 = vcombine.high %v10846_v54, %v10846_v54 }
 0x366   :  { %8193 = vmatprep.subr.mxu0 %v11136_v26  ;;  %8164 = vmatpush3.msra.mxu1 %v11129_v21  ;;  %v11141_v45 = vpop.permute.xlu1 %2719  ;;  %v11143_v23 = vpop.permute.xlu0 %2715  ;;  %15141 = vst [vmem:[#allocation70_spill] sm:$0xff] %v11148_v39  ;;  %v1211_v8 = vmul.f32 %v10878_v33, %v15144_v6  ;;  %v15145_v21 = vld [vmem:[#allocation135_spill] sm:$0xff]  ;;  %v15148_v6 = vld [vmem:[#allocation84_spill] sm:$0xff] }
 0x367   :  { %15138 = vst [vmem:[#allocation183_spill] sm:$0xff] %v11141_v45  ;;  %15139 = vst [vmem:[#allocation184_spill] sm:$0xff] %v11143_v23  ;;  %8194 = vmatpush3.msra.mxu0 %v11136_v26  ;;  %8221 = vmatprep.mubr.f32.mxu0 %v9292_v37  ;;  %v1212_v45 = vmul.f32 %v10878_v33, %v15145_v21  ;;  %v11170_v37 = vsel %vm287_vm0, %v15146_v40, 1.0  ;;  %v11175_v21 = vsel %vm287_vm0, %v15148_v6, 1.0  ;;  %v15154_v6 = vld [vmem:[#allocation90_spill] sm:$0xff] }
 0x368   :  { %8165 = vmatprep.subr.mxu1 %v11148_v39  ;;  %8195 = vmatprep.subr.mxu0 %v11153_v63  ;;  %v1395_v34 = vsub.f32 %v1211_v8, %v10796_v7  ;;  %15147 = vst [vmem:[#allocation133_spill] sm:$0xff] %v11170_v37  ;;  %15149 = vst [vmem:[#allocation135_spill] sm:$0xff] %v11175_v21  ;;  %v15152_v8 = vld [vmem:[#allocation69_spill] sm:$0xff] }
 0x369   :  { %4368 = vbcast.lane.b32.xlu1 %v10519_v42, 328  ;;  %4364 = vbcast.lane.b32.xlu0 %v10519_v42, 320  ;;  %v1396_v26 = vsub.f32 %v1212_v45, %v10827_v56  ;;  %v11189_v40 = vsel %vm287_vm0, %v15152_v8, 1.0  ;;  %v11194_v56 = vsel %vm287_vm0, %v15154_v6, 1.0  ;;  %v11199_v45 = vrot.slane %v1151_v31, %v9872_v38 }
 0x36a   :  { %8166 = vmatpush3.msra.mxu1 %v11148_v39  ;;  %8196 = vmatpush3.msra.mxu0 %v11153_v63  ;;  %v11180_v7 = vpop.permute.xlu1 %2727  ;;  %v11182_v54 = vpop.permute.xlu0 %2723  ;;  %15153 = vst [vmem:[#allocation69_spill] sm:$0xff] %v11189_v40  ;;  %15155 = vst [vmem:[#allocation90_spill] sm:$0xff] %v11194_v56  ;;  %v1444_v39 = vmul.f32 1.442695, %v1395_v34 }
 0x36b   :  { %15150 = vst [vmem:[#allocation59_spill] sm:$0xff] %v11180_v7  ;;  %15151 = vst [vmem:[#allocation84_spill] sm:$0xff] %v11182_v54  ;;  %8167 = vmatprep.subr.mxu1 %v11170_v37  ;;  %8197 = vmatprep.subr.mxu0 %v11175_v21  ;;  %v15157_v7 = vld [vmem:[#allocation136_spill] sm:$0xff]  ;;  %v1446_v8 = vmul.f32 1.442695, %v1396_v26  ;;  %v15164_v54 = vld [vmem:[#allocation142_spill] sm:$0xff] }
 0x36c   :  { %8168 = vmatpush3.msra.mxu1 %v11170_v37  ;;  %8198 = vmatpush3.msra.mxu0 %v11175_v21  ;;  %15156 = vst [vmem:[#allocation185_spill] sm:$0xff] %v11199_v45  ;;  %v1213_v63 = vmul.f32 %v10878_v33, %v15157_v7  ;;  %v15160_v21 = vld [vmem:[#allocation58_spill] sm:$0xff]  ;;  %v15162_v7 = vld [vmem:[#allocation80_spill] sm:$0xff]  ;;  %v1218_v26 = vmul.f32 %v11199_v45, %v15164_v54  ;;  %9293 = vpow2.f32 %v1444_v39 }
 0x36d   :  { %8169 = vmatprep.subr.mxu1 %v11189_v40  ;;  %8199 = vmatprep.subr.mxu0 %v11194_v56  ;;  %v11214_v31 = vsel %vm287_vm0, %v15160_v21, 1.0  ;;  %v11219_v34 = vsel %vm287_vm0, %v15162_v7, 1.0  ;;  %v15165_v21 = vld [vmem:[#allocation66_spill] sm:$0xff]  ;;  %v15167_v7 = vld [vmem:[#allocation88_spill] sm:$0xff]  ;;  %9295 = vpow2.f32 %v1446_v8 }
 0x36e   :  { %4212 = vbcast.lane.b32.xlu1 %v15133_v36, 336  ;;  %4216 = vbcast.lane.b32.xlu0 %v15133_v36, 344  ;;  %v11207_v6 = vpop.permute.xlu1 %2735  ;;  %v11209_v37 = vpop.permute.xlu0 %2731  ;;  %15161 = vst [vmem:[#allocation58_spill] sm:$0xff] %v11214_v31  ;;  %15163 = vst [vmem:[#allocation80_spill] sm:$0xff] %v11219_v34  ;;  %v1397_v23 = vsub.f32 %v1213_v63, %v10829_v32  ;;  %v11236_v36 = vsel %vm287_vm0, %v15167_v7, 1.0  ;;  %v1402_v32 = vsub.f32 %v1218_v26, %v10924_v53  ;;  %v15172_v53 = vld [vmem:[#allocation72_spill] sm:$0xff] }
 0x36f   :  { %15158 = vst [vmem:[#allocation136_spill] sm:$0xff] %v11207_v6  ;;  %15159 = vst [vmem:[#allocation186_spill] sm:$0xff] %v11209_v37  ;;  %8170 = vmatpush3.msra.mxu1 %v11189_v40  ;;  %8200 = vmatpush3.msra.mxu0 %v11194_v56  ;;  %v11231_v6 = vsel %vm287_vm0, %v15165_v21, 1.0  ;;  %v15171_v21 = vld [vmem:[#allocation139_spill] sm:$0xff]  ;;  %v15173_v39 = vld [vmem:[#allocation56_spill] sm:$0xff]  ;;  %v1153_v26 = vcombine.high %v10943_v17, %v10943_v17 }
 0x370   :  { %8171 = vmatprep.subr.mxu1 %v11214_v31  ;;  %8201 = vmatprep.subr.mxu0 %v11219_v34  ;;  %15166 = vst [vmem:[#allocation142_spill] sm:$0xff] %v11231_v6  ;;  %15168 = vst [vmem:[#allocation66_spill] sm:$0xff] %v11236_v36  ;;  %v1215_v7 = vmul.f32 %v10977_v48, %v15171_v21  ;;  %v1448_v56 = vmul.f32 1.442695, %v1397_v23  ;;  %v11254_v8 = vsel %vm287_vm0, %v15173_v39, 1.0  ;;  %v15178_v17 = vld [vmem:[#allocation64_spill] sm:$0xff] }
 0x371   :  { %8172 = vmatpush3.msra.mxu1 %v11214_v31  ;;  %8202 = vmatpush3.msra.mxu0 %v11219_v34  ;;  %15174 = vst [vmem:[#allocation139_spill] sm:$0xff] %v11254_v8  ;;  %v15175_v34 = vld [vmem:[#allocation78_spill] sm:$0xff]  ;;  %v1458_v31 = vmul.f32 1.442695, %v1402_v32  ;;  %v11273_v39 = vsel %vm287_vm0, %v15178_v17, 1.0 }
 0x372   :  { %8173 = vmatprep.subr.mxu1 %v11231_v6  ;;  %8203 = vmatprep.subr.mxu0 %v11236_v36  ;;  %v11243_v63 = vpop.permute.xlu1 %2743  ;;  %v11245_v54 = vpop.permute.xlu0 %2739  ;;  %v1399_v21 = vsub.f32 %v1215_v7, %v10860_v2  ;;  %15179 = vst [vmem:[#allocation78_spill] sm:$0xff] %v11273_v39  ;;  %9297 = vpow2.f32 %v1448_v56  ;;  %v15184_v7 = vld [vmem:[#allocation54_spill] sm:$0xff] }
 0x373   :  { %15169 = vst [vmem:[#allocation88_spill] sm:$0xff] %v11243_v63  ;;  %15170 = vst [vmem:[#allocation187_spill] sm:$0xff] %v11245_v54  ;;  %4372 = vbcast.lane.b32.xlu1 %v10519_v42, 336  ;;  %4220 = vbcast.lane.b32.xlu0 %v15172_v53, 320  ;;  %v11261_v63 = vsel %vm287_vm0, %v15175_v34, 1.0  ;;  %v15177_v54 = vld [vmem:[#allocation140_spill] sm:$0xff]  ;;  %9299 = vpow2.f32 %v1458_v31 }
 0x374   :  { %15176 = vst [vmem:[#allocation56_spill] sm:$0xff] %v11261_v63  ;;  %v1216_v23 = vmul.f32 %v10977_v48, %v15177_v54  ;;  %8174 = vmatpush3.msra.mxu1 %v11231_v6  ;;  %8204 = vmatpush3.msra.mxu0 %v11236_v36  ;;  %v15180_v34 = vld [vmem:[#allocation86_spill] sm:$0xff]  ;;  %v11292_v17 = vsel %vm287_vm0, %v15184_v7, 1.0 }
 0x375   :  { %8175 = vmatprep.subr.mxu1 %v11254_v8  ;;  %8205 = vmatprep.subr.mxu0 %v11261_v63  ;;  %v11278_v54 = vsel %vm287_vm0, %v15180_v34, 1.0  ;;  %15185 = vst [vmem:[#allocation54_spill] sm:$0xff] %v11292_v17  ;;  %v15189_v34 = vld [vmem:[#allocation141_spill] sm:$0xff] }
 0x376   :  { %15181 = vst [vmem:[#allocation140_spill] sm:$0xff] %v11278_v54  ;;  %v1400_v6 = vsub.f32 %v1216_v23, %v10891_v29  ;;  %8176 = vmatpush3.msra.mxu1 %v11254_v8  ;;  %8206 = vmatpush3.msra.mxu0 %v11261_v63  ;;  %v11283_v2 = vpop.permute.xlu1 %2751  ;;  %v11285_v32 = vpop.permute.xlu0 %2747  ;;  %v11295_v29 = vrot.slane %v1153_v26, %v9872_v38  ;;  %v15187_v23 = vld [vmem:[#allocation74_spill] sm:$0xff]  ;;  %v1452_v63 = vmul.f32 1.442695, %v1399_v21  ;;  %v15194_v21 = vld [vmem:[#allocation83_spill] sm:$0xff] }
 0x377   :  { %15182 = vst [vmem:[#allocation64_spill] sm:$0xff] %v11283_v2  ;;  %15183 = vst [vmem:[#allocation86_spill] sm:$0xff] %v11285_v32  ;;  %8177 = vmatprep.subr.mxu1 %v11273_v39  ;;  %8207 = vmatprep.subr.mxu0 %v11278_v54  ;;  %v11302_v56 = vsel %vm287_vm0, %v15187_v23, 1.0  ;;  %v1217_v2 = vmul.f32 %v10977_v48, %v15189_v34  ;;  %v15192_v23 = vld [vmem:[#allocation63_spill] sm:$0xff]  ;;  %v11322_v31 = vsel %vm287_vm0, %v15194_v21, 1.0  ;;  %v15196_v34 = vld [vmem:[#allocation146_spill] sm:$0xff] }
 0x378   :  { %15186 = vst [vmem:[#allocation188_spill] sm:$0xff] %v11295_v29  ;;  %4376 = vbcast.lane.b32.xlu1 %v10519_v42, 344  ;;  %4224 = vbcast.lane.b32.xlu0 %v15172_v53, 328  ;;  %15188 = vst [vmem:[#allocation74_spill] sm:$0xff] %v11302_v56  ;;  %v1454_v38 = vmul.f32 1.442695, %v1400_v6  ;;  %v1222_v6 = vmul.f32 %v11295_v29, %v15196_v34  ;;  %9301 = vpow2.f32 %v1452_v63 }
 0x379   :  { %8178 = vmatpush3.msra.mxu1 %v11273_v39  ;;  %8208 = vmatpush3.msra.mxu0 %v11278_v54  ;;  %v11317_v8 = vsel %vm287_vm0, %v15192_v23, 1.0  ;;  %15195 = vst [vmem:[#allocation83_spill] sm:$0xff] %v11322_v31  ;;  %v1401_v54 = vsub.f32 %v1217_v2, %v10893_v59  ;;  %v9294_v21 = vpop.eup %9293  ;;  %v15202_v34 = vld [vmem:[#allocation110_spill] sm:$0xff]  ;;  %v15232_v39 = vld [vmem:[#allocation125_spill] sm:$0xff] }
 0x37a   :  { %8179 = vmatprep.subr.mxu1 %v11292_v17  ;;  %8209 = vmatprep.subr.mxu0 %v11302_v56  ;;  %v11310_v26 = vpop.permute.xlu1 %2759  ;;  %v11312_v7 = vpop.permute.xlu0 %2755  ;;  %15193 = vst [vmem:[#allocation63_spill] sm:$0xff] %v11317_v8  ;;  %v1406_v23 = vsub.f32 %v1222_v6, %v10992_v4  ;;  %9303 = vpow2.f32 %v1454_v38  ;;  %v11348_v6 = vsel %vm287_vm0, %v15202_v34, 1.0  ;;  %v15204_v38 = vld [vmem:[#allocation82_spill] sm:$0xff]  ;;  %v15212_v34 = vld [vmem:[#allocation108_spill] sm:$0xff] }
 0x37b   :  { %15190 = vst [vmem:[#allocation141_spill] sm:$0xff] %v11310_v26  ;;  %15191 = vst [vmem:[#allocation189_spill] sm:$0xff] %v11312_v7  ;;  %8180 = vmatpush3.msra.mxu1 %v11292_v17  ;;  %8210 = vmatpush3.msra.mxu0 %v11302_v56  ;;  %v15197_v26 = vld [vmem:[#allocation76_spill] sm:$0xff]  ;;  %v15198_v7 = vld [vmem:[#allocation71_spill] sm:$0xff]  ;;  %v9296_v4 = vpop.eup %9295  ;;  %v1456_v56 = vmul.f32 1.442695, %v1401_v54 }
 0x37c   :  { %8181 = vmatprep.subr.mxu1 %v11317_v8  ;;  %8211 = vmatprep.subr.mxu0 %v11322_v31  ;;  %v11337_v59 = vsel %vm287_vm0, %v15198_v7, 1.0  ;;  %15203 = vst [vmem:[#allocation110_spill] sm:$0xff] %v11348_v6  ;;  %v11355_v7 = vsel %vm287_vm0, %v15204_v38, 1.0  ;;  %v11382_v38 = vsel %vm287_vm0, %v15212_v34, 1.0  ;;  %v15216_v34 = vld [vmem:[#allocation109_spill] sm:$0xff] }
 0x37d   :  { %4236 = vbcast.lane.b32.xlu1 %v15197_v26, 320  ;;  %4240 = vbcast.lane.b32.xlu0 %v15197_v26, 328  ;;  %15199 = vst [vmem:[#allocation146_spill] sm:$0xff] %v11337_v59  ;;  %15205 = vst [vmem:[#allocation82_spill] sm:$0xff] %v11355_v7  ;;  %9305 = vpow2.f32 %v1456_v56 }
 0x37e   :  { %8182 = vmatpush3.msra.mxu1 %v11317_v8  ;;  %8212 = vmatpush3.msra.mxu0 %v11322_v31  ;;  %v11341_v2 = vpop.permute.xlu1 %2767  ;;  %v11343_v63 = vpop.permute.xlu0 %2763  ;;  %v1466_v8 = vmul.f32 1.442695, %v1406_v23  ;;  %15213 = vst [vmem:[#allocation108_spill] sm:$0xff] %v11382_v38 }
 0x37f   :  { %15200 = vst [vmem:[#allocation71_spill] sm:$0xff] %v11341_v2  ;;  %15201 = vst [vmem:[#allocation190_spill] sm:$0xff] %v11343_v63  ;;  %8184 = vmatmul.mubr.f32.vlgmr.msra.gmra.mxu1 %v9294_v21  ;;  %8213 = vmatprep.subr.mxu0 %v11337_v59  ;;  %v15206_v2 = vld [vmem:[#allocation111_spill] sm:$0xff] }
 0x380   :  { %8227 = vmatprep.subr.mxu1 %v11348_v6  ;;  %8186 = vmatprep.mubr.f32.mxu1 %v9296_v4  ;;  %v11360_v31 = vsel %vm287_vm0, %v15206_v2, 1.0  ;;  %v9298_v2 = vpop.eup %9297  ;;  %v15210_v4 = vld [vmem:[#allocation68_spill] sm:$0xff]  ;;  %9307 = vpow2.f32 %v1466_v8  ;;  %v11399_v8 = vsel %vm287_vm0, %v15216_v34, 1.0 }
 0x381   :  { %15207 = vst [vmem:[#allocation111_spill] sm:$0xff] %v11360_v31  ;;  %8214 = vmatpush3.msra.mxu0 %v11337_v59  ;;  %8228 = vmatpush3.msra.mxu1 %v11348_v6  ;;  %v11375_v23 = vsel %vm287_vm0, %v15210_v4, 1.0  ;;  %v9300_v56 = vpop.eup %9299  ;;  %15217 = vst [vmem:[#allocation109_spill] sm:$0xff] %v11399_v8 }
 0x382   :  { %8215 = vmatprep.subr.mxu0 %v11355_v7  ;;  %8229 = vmatprep.subr.mxu1 %v11360_v31  ;;  %v11366_v54 = vpop.permute.xlu1 %2775  ;;  %v11368_v21 = vpop.permute.xlu0 %2771  ;;  %15211 = vst [vmem:[#allocation68_spill] sm:$0xff] %v11375_v23 }
 0x383   :  { %15208 = vst [vmem:[#allocation191_spill] sm:$0xff] %v11366_v54  ;;  %15209 = vst [vmem:[#allocation192_spill] sm:$0xff] %v11368_v21  ;;  %4380 = vbcast.lane.b32.xlu1 %v10532_v30, 320  ;;  %4384 = vbcast.lane.b32.xlu0 %v10532_v30, 328  ;;  %v15214_v21 = vld [vmem:[#allocation79_spill] sm:$0xff] }
 0x384   :  { %8216 = vmatpush3.msra.mxu0 %v11355_v7  ;;  %8230 = vmatpush3.msra.mxu1 %v11360_v31  ;;  %v11394_v31 = vsel %vm287_vm0, %v15214_v21, 1.0  ;;  %v15220_v7 = vld [vmem:[#allocation126_spill] sm:$0xff] }
 0x385   :  { %8187 = vmatmul.mubr.f32.gmra.mxu1 %v9298_v2  ;;  %8217 = vmatprep.subr.mxu0 %v11375_v23  ;;  %15215 = vst [vmem:[#allocation79_spill] sm:$0xff] %v11394_v31  ;;  %v9302_v2 = vpop.eup %9301  ;;  %v11420_v6 = vsel %vm287_vm0, %v15220_v7, 1.0 }
 0x386   :  { %8231 = vmatprep.subr.mxu1 %v11382_v38  ;;  %8218 = vmatpush3.msra.mxu0 %v11375_v23  ;;  %v11387_v4 = vpop.permute.xlu1 %2815  ;;  %v11389_v54 = vpop.permute.xlu0 %2811  ;;  %v15218_v23 = vld [vmem:[#allocation106_spill] sm:$0xff]  ;;  %15221 = vst [vmem:[#allocation126_spill] sm:$0xff] %v11420_v6 }
 0x387   :  { %8232 = vmatpush3.msra.mxu1 %v11382_v38  ;;  %8259 = vmatprep.mubr.f32.mxu1 %v9300_v56  ;;  %v11409_v21 = vsel %vm287_vm0, %v15218_v23, 1.0  ;;  %v9304_v38 = vpop.eup %9303  ;;  %v15222_v23 = vld [vmem:[#allocation107_spill] sm:$0xff] }
 0x388   :  { %8219 = vmatprep.subr.mxu0 %v11394_v31  ;;  %8233 = vmatprep.subr.mxu1 %v11399_v8  ;;  %15219 = vst [vmem:[#allocation106_spill] sm:$0xff] %v11409_v21 }
 0x389   :  { %4396 = vbcast.lane.b32.xlu1 %v10545_v58, 320  ;;  %4400 = vbcast.lane.b32.xlu0 %v10545_v58, 328 }
 0x38a   :  { %8220 = vmatpush3.msra.mxu0 %v11394_v31  ;;  %8234 = vmatpush3.msra.mxu1 %v11399_v8  ;;  %v11413_v34 = vpop.permute.xlu1 %2823  ;;  %v11415_v56 = vpop.permute.xlu0 %2819  ;;  %v11427_v8 = vsel %vm287_vm0, %v15222_v23, 1.0  ;;  %v15224_v31 = vld [vmem:[#allocation127_spill] sm:$0xff]  ;;  %v15226_v23 = vld [vmem:[#allocation104_spill] sm:$0xff] }
 0x38b   :  { %8222 = vmatmul.mubr.f32.vlgmr.msra.gmra.mxu0 %v9302_v2  ;;  %8235 = vmatprep.subr.mxu1 %v11409_v21  ;;  %15223 = vst [vmem:[#allocation107_spill] sm:$0xff] %v11427_v8  ;;  %v11432_v59 = vsel %vm287_vm0, %v15224_v31, 1.0  ;;  %v9306_v2 = vpop.eup %9305  ;;  %v11447_v31 = vsel %vm287_vm0, %v15226_v23, 1.0 }
 0x38c   :  { %8265 = vmatprep.subr.mxu0 %v11420_v6  ;;  %8224 = vmatprep.mubr.f32.mxu0 %v9304_v38  ;;  %15225 = vst [vmem:[#allocation127_spill] sm:$0xff] %v11432_v59  ;;  %15227 = vst [vmem:[#allocation104_spill] sm:$0xff] %v11447_v31 }
 0x38d   :  { %8236 = vmatpush3.msra.mxu1 %v11409_v21  ;;  %8266 = vmatpush3.msra.mxu0 %v11420_v6  ;;  %v15228_v6 = vld [vmem:[#allocation124_spill] sm:$0xff]  ;;  %v9308_v63 = vpop.eup %9307 }
 0x38e   :  { %8237 = vmatprep.subr.mxu1 %v11427_v8  ;;  %8267 = vmatprep.subr.mxu0 %v11432_v59  ;;  %v11438_v7 = vpop.permute.xlu1 %2831  ;;  %v11440_v38 = vpop.permute.xlu0 %2827  ;;  %v11454_v21 = vsel %vm287_vm0, %v15228_v6, 1.0  ;;  %v11471_v6 = vsel %vm287_vm0, %v15232_v39, 1.0  ;;  %v15236_v39 = vld [vmem:[#allocation102_spill] sm:$0xff] }
 0x38f   :  { %4228 = vbcast.lane.b32.xlu1 %v15172_v53, 336  ;;  %4232 = vbcast.lane.b32.xlu0 %v15172_v53, 344  ;;  %15229 = vst [vmem:[#allocation124_spill] sm:$0xff] %v11454_v21  ;;  %15233 = vst [vmem:[#allocation125_spill] sm:$0xff] %v11471_v6 }
 0x390   :  { %8238 = vmatpush3.msra.mxu1 %v11427_v8  ;;  %8268 = vmatpush3.msra.mxu0 %v11432_v59  ;;  %v15230_v8 = vld [vmem:[#allocation105_spill] sm:$0xff] }
 0x391   :  { %8225 = vmatmul.mubr.f32.gmra.mxu0 %v9306_v2  ;;  %8239 = vmatprep.subr.mxu1 %v11447_v31  ;;  %v11466_v59 = vsel %vm287_vm0, %v15230_v8, 1.0  ;;  %v15234_v2 = vld [vmem:[#allocation143_spill] sm:$0xff] }
 0x392   :  { %8269 = vmatprep.subr.mxu0 %v11454_v21  ;;  %8240 = vmatpush3.msra.mxu1 %v11447_v31  ;;  %v11459_v17 = vpop.permute.xlu1 %2839  ;;  %v11461_v23 = vpop.permute.xlu0 %2835  ;;  %15231 = vst [vmem:[#allocation105_spill] sm:$0xff] %v11466_v59  ;;  %v1219_v53 = vmul.f32 %v11199_v45, %v15234_v2  ;;  %v15235_v31 = vld [vmem:[#allocation144_spill] sm:$0xff]  ;;  %v11486_v2 = vsel %vm287_vm0, %v15236_v39, 1.0  ;;  %v15240_v39 = vld [vmem:[#allocation103_spill] sm:$0xff] }
 0x393   :  { %8270 = vmatpush3.msra.mxu0 %v11454_v21  ;;  %8297 = vmatprep.mubr.f32.mxu0 %v9308_v63  ;;  %v1220_v36 = vmul.f32 %v11199_v45, %v15235_v31  ;;  %15237 = vst [vmem:[#allocation143_spill] sm:$0xff] %v11486_v2  ;;  %v15238_v21 = vld [vmem:[#allocation122_spill] sm:$0xff] }
 0x394   :  { %8241 = vmatprep.subr.mxu1 %v11466_v59  ;;  %8271 = vmatprep.subr.mxu0 %v11471_v6  ;;  %v1403_v8 = vsub.f32 %v1219_v53, %v10926_v1  ;;  %v11491_v63 = vsel %vm287_vm0, %v15238_v21, 1.0  ;;  %v15242_v21 = vld [vmem:[#allocation123_spill] sm:$0xff] }
 0x395   :  { %4244 = vbcast.lane.b32.xlu1 %v15197_v26, 336  ;;  %4248 = vbcast.lane.b32.xlu0 %v15197_v26, 344  ;;  %15239 = vst [vmem:[#allocation144_spill] sm:$0xff] %v11491_v63  ;;  %v1404_v31 = vsub.f32 %v1220_v36, %v10964_v19  ;;  %v11505_v26 = vsel %vm287_vm0, %v15240_v39, 1.0  ;;  %v11510_v19 = vsel %vm287_vm0, %v15242_v21, 1.0  ;;  %v15244_v36 = vld [vmem:[#allocation145_spill] sm:$0xff] }
 0x396   :  { %8242 = vmatpush3.msra.mxu1 %v11466_v59  ;;  %8272 = vmatpush3.msra.mxu0 %v11471_v6  ;;  %v11496_v1 = vpop.permute.xlu1 %2847  ;;  %v11498_v53 = vpop.permute.xlu0 %2843  ;;  %15241 = vst [vmem:[#allocation102_spill] sm:$0xff] %v11505_v26  ;;  %15243 = vst [vmem:[#allocation122_spill] sm:$0xff] %v11510_v19  ;;  %v1221_v6 = vmul.f32 %v11199_v45, %v15244_v36  ;;  %v1460_v59 = vmul.f32 1.442695, %v1403_v8  ;;  %v15247_v36 = vld [vmem:[#allocation120_spill] sm:$0xff]  ;;  %v15251_v45 = vld [vmem:[#allocation121_spill] sm:$0xff] }
 0x397   :  { %8243 = vmatprep.subr.mxu1 %v11486_v2  ;;  %8273 = vmatprep.subr.mxu0 %v11491_v63  ;;  %v1462_v32 = vmul.f32 1.442695, %v1404_v31  ;;  %v11532_v8 = vsel %vm287_vm0, %v15247_v36, 1.0  ;;  %v11547_v36 = vsel %vm287_vm0, %v15251_v45, 1.0  ;;  %v15254_v45 = vld [vmem:[#allocation81_spill] sm:$0xff] }
 0x398   :  { %8244 = vmatpush3.msra.mxu1 %v11486_v2  ;;  %8274 = vmatpush3.msra.mxu0 %v11491_v63  ;;  %v15245_v2 = vld [vmem:[#allocation100_spill] sm:$0xff]  ;;  %15248 = vst [vmem:[#allocation123_spill] sm:$0xff] %v11532_v8  ;;  %v1405_v31 = vsub.f32 %v1221_v6, %v10966_v49  ;;  %9309 = vpow2.f32 %v1460_v59  ;;  %v15253_v49 = vld [vmem:[#allocation147_spill] sm:$0xff] }
 0x399   :  { %8245 = vmatprep.subr.mxu1 %v11505_v26  ;;  %8275 = vmatprep.subr.mxu0 %v11510_v19  ;;  %v11527_v63 = vsel %vm287_vm0, %v15245_v2, 1.0  ;;  %15252 = vst [vmem:[#allocation100_spill] sm:$0xff] %v11547_v36  ;;  %v1223_v6 = vmul.f32 %v11295_v29, %v15253_v49  ;;  %9311 = vpow2.f32 %v1462_v32  ;;  %v15257_v49 = vld [vmem:[#allocation118_spill] sm:$0xff] }
 0x39a   :  { %4388 = vbcast.lane.b32.xlu1 %v10532_v30, 336  ;;  %4392 = vbcast.lane.b32.xlu0 %v10532_v30, 344  ;;  %v11520_v39 = vpop.permute.xlu1 %2855  ;;  %v11522_v21 = vpop.permute.xlu0 %2851  ;;  %15246 = vst [vmem:[#allocation103_spill] sm:$0xff] %v11527_v63  ;;  %v15249_v30 = vld [vmem:[#allocation101_spill] sm:$0xff]  ;;  %v11569_v32 = vsel %vm287_vm0, %v15257_v49, 1.0  ;;  %v15262_v49 = vld [vmem:[#allocation119_spill] sm:$0xff] }
 0x39b   :  { %8246 = vmatpush3.msra.mxu1 %v11505_v26  ;;  %8276 = vmatpush3.msra.mxu0 %v11510_v19  ;;  %v11542_v2 = vsel %vm287_vm0, %v15249_v30, 1.0  ;;  %v1464_v19 = vmul.f32 1.442695, %v1405_v31  ;;  %15258 = vst [vmem:[#allocation101_spill] sm:$0xff] %v11569_v32  ;;  %v15259_v26 = vld [vmem:[#allocation148_spill] sm:$0xff]  ;;  %v1407_v31 = vsub.f32 %v1223_v6, %v10994_v62  ;;  %v11586_v37 = vsel %vm287_vm0, %v15262_v49, 1.0 }
 0x39c   :  { %8247 = vmatprep.subr.mxu1 %v11527_v63  ;;  %8277 = vmatprep.subr.mxu0 %v11532_v8  ;;  %15250 = vst [vmem:[#allocation145_spill] sm:$0xff] %v11542_v2  ;;  %v1224_v40 = vmul.f32 %v11295_v29, %v15259_v26  ;;  %15263 = vst [vmem:[#allocation147_spill] sm:$0xff] %v11586_v37  ;;  %v15264_v49 = vld [vmem:[#allocation93_spill] sm:$0xff] }
 0x39d   :  { %8248 = vmatpush3.msra.mxu1 %v11527_v63  ;;  %8278 = vmatpush3.msra.mxu0 %v11532_v8  ;;  %v15255_v63 = vld [vmem:[#allocation97_spill] sm:$0xff]  ;;  %9313 = vpow2.f32 %v1464_v19 }
 0x39e   :  { %8249 = vmatprep.subr.mxu1 %v11542_v2  ;;  %8279 = vmatprep.subr.mxu0 %v11547_v36  ;;  %v11555_v30 = vpop.permute.xlu1 %2863  ;;  %v11564_v8 = vsel %vm287_vm0, %v15255_v63, 1.0  ;;  %v15260_v63 = vld [vmem:[#allocation99_spill] sm:$0xff]  ;;  %v1408_v62 = vsub.f32 %v1224_v40, %v11023_v0  ;;  %v11602_v0 = vsel %vm287_vm0, %v15264_v49, 1.0  ;;  %v15266_v40 = vld [vmem:[#allocation116_spill] sm:$0xff] }
 0x39f   :  { %4404 = vbcast.lane.b32.xlu1 %v10545_v58, 336  ;;  %4252 = vbcast.lane.b32.xlu0 %v15254_v45, 320  ;;  %v11559_v59 = vpop.permute.xlu0 %2859  ;;  %15256 = vst [vmem:[#allocation120_spill] sm:$0xff] %v11564_v8  ;;  %v11581_v42 = vsel %vm287_vm0, %v15260_v63, 1.0  ;;  %v1468_v63 = vmul.f32 1.442695, %v1407_v31 }
 0x3a0   :  { %8250 = vmatpush3.msra.mxu1 %v11542_v2  ;;  %8280 = vmatpush3.msra.mxu0 %v11547_v36  ;;  %15261 = vst [vmem:[#allocation121_spill] sm:$0xff] %v11581_v42  ;;  %15265 = vst [vmem:[#allocation97_spill] sm:$0xff] %v11602_v0  ;;  %v11607_v19 = vsel %vm287_vm0, %v15266_v40, 1.0  ;;  %v1470_v31 = vmul.f32 1.442695, %v1408_v62  ;;  %v15269_v36 = vld [vmem:[#allocation96_spill] sm:$0xff] }
 0x3a1   :  { %8251 = vmatprep.subr.mxu1 %v11564_v8  ;;  %8281 = vmatprep.subr.mxu0 %v11569_v32  ;;  %15267 = vst [vmem:[#allocation118_spill] sm:$0xff] %v11607_v19  ;;  %v11618_v49 = vsel %vm287_vm0, %v15269_v36, 1.0  ;;  %v15271_v2 = vld [vmem:[#allocation117_spill] sm:$0xff]  ;;  %v15273_v62 = vld [vmem:[#allocation158_spill] sm:$0xff]  ;;  %9315 = vpow2.f32 %v1468_v63 }
 0x3a2   :  { %8252 = vmatpush3.msra.mxu1 %v11564_v8  ;;  %8282 = vmatpush3.msra.mxu0 %v11569_v32  ;;  %v11591_v26 = vpop.permute.xlu1 %2871  ;;  %v15268_v32 = vld [vmem:[#allocation149_spill] sm:$0xff]  ;;  %15270 = vst [vmem:[#allocation148_spill] sm:$0xff] %v11618_v49  ;;  %v11623_v40 = vsel %vm287_vm0, %v15271_v2, 1.0  ;;  %9317 = vpow2.f32 %v1470_v31 }
 0x3a3   :  { %8253 = vmatprep.subr.mxu1 %v11581_v42  ;;  %8283 = vmatprep.subr.mxu0 %v11586_v37  ;;  %v11595_v6 = vpop.permute.xlu0 %2867  ;;  %v1225_v8 = vmul.f32 %v11295_v29, %v15268_v32  ;;  %15272 = vst [vmem:[#allocation99_spill] sm:$0xff] %v11623_v40  ;;  %v15276_v2 = vld [vmem:[#allocation85_spill] sm:$0xff] }
 0x3a4   :  { %4408 = vbcast.lane.b32.xlu1 %v10545_v58, 344  ;;  %4256 = vbcast.lane.b32.xlu0 %v15254_v45, 328  ;;  %v15279_v29 = vld [vmem:[#allocation13_spill] sm:$0xff] }
 0x3a5   :  { %8254 = vmatpush3.msra.mxu1 %v11581_v42  ;;  %8284 = vmatpush3.msra.mxu0 %v11586_v37  ;;  %v1409_v32 = vsub.f32 %v1225_v8, %v11025_v52  ;;  %v15274_v37 = vld [vmem:[#allocation151_spill] sm:$0xff]  ;;  %v9310_v52 = vpop.eup %9309  ;;  %v15277_v8 = vld [vmem:[#allocation114_spill] sm:$0xff] }
 0x3a6   :  { %8255 = vmatprep.subr.mxu1 %v11602_v0  ;;  %8285 = vmatprep.subr.mxu0 %v11607_v19  ;;  %v2777_v42 = vmul.f32 %v15274_v37, %v15273_v62  ;;  %v9312_v63 = vpop.eup %9311 }
 0x3a7   :  { %8256 = vmatpush3.msra.mxu1 %v11602_v0  ;;  %8286 = vmatpush3.msra.mxu0 %v11607_v19  ;;  %v11641_v19 = vsel %vm287_vm0, %v15277_v8, 1.0  ;;  %v1472_v0 = vmul.f32 1.442695, %v1409_v32 }
 0x3a8   :  { %8257 = vmatprep.subr.mxu1 %v11618_v49  ;;  %8287 = vmatprep.subr.mxu0 %v11623_v40  ;;  %v11632_v36 = vpop.permute.xlu1 %2879  ;;  %v11634_v58 = vpop.permute.xlu0 %2875  ;;  %15278 = vst [vmem:[#allocation93_spill] sm:$0xff] %v11641_v19  ;;  %v2937_v37 = vsub.f32 %v2777_v42, %v11389_v54  ;;  %v15282_v54 = vld [vmem:[#allocation14_spill] sm:$0xff] }
 0x3a9   :  { %15275 = vst [vmem:[#allocation119_spill] sm:$0xff] %v11632_v36  ;;  %4268 = vbcast.lane.b32.xlu1 %v15276_v2, 320  ;;  %4272 = vbcast.lane.b32.xlu0 %v15276_v2, 328  ;;  %v15280_v36 = vld [vmem:[#allocation115_spill] sm:$0xff]  ;;  %9319 = vpow2.f32 %v1472_v0 }
 0x3aa   :  { %8258 = vmatpush3.msra.mxu1 %v11618_v49  ;;  %8288 = vmatpush3.msra.mxu0 %v11623_v40  ;;  %v11651_v8 = vsel %vm287_vm0, %v15280_v36, 1.0  ;;  %v2969_v42 = vmul.f32 1.442695, %v2937_v37  ;;  %v9314_v36 = vpop.eup %9313  ;;  %v15285_v37 = vld [vmem:[#allocation113_spill] sm:$0xff] }
 0x3ab   :  { %8260 = vmatmul.mubr.f32.vlgmr.msra.gmra.mxu1 %v9310_v52  ;;  %8289 = vmatprep.subr.mxu0 %v11641_v19  ;;  %15281 = vst [vmem:[#allocation116_spill] sm:$0xff] %v11651_v8  ;;  %v15283_v52 = vld [vmem:[#allocation112_spill] sm:$0xff]  ;;  %v11674_v0 = vsel %vm287_vm0, %v15285_v37, 1.0 }
 0x3ac   :  { %8303 = vmatprep.subr.mxu1 %v15279_v29  ;;  %8262 = vmatprep.mubr.f32.mxu1 %v9312_v63  ;;  %v11666_v63 = vsel %vm287_vm0, %v15283_v52, 1.0  ;;  %15286 = vst [vmem:[#allocation96_spill] sm:$0xff] %v11674_v0  ;;  %9321 = vpow2.f32 %v2969_v42  ;;  %v15288_v52 = vld [vmem:[#allocation155_spill] sm:$0xff]  ;;  %vm4200_vm0 = vcmask 523520  }
 0x3ad   :  { %8290 = vmatpush3.msra.mxu0 %v11641_v19  ;;  %8304 = vmatpush3.msra.mxu1 %v15279_v29  ;;  %15284 = vst [vmem:[#allocation149_spill] sm:$0xff] %v11666_v63  ;;  %v15287_v29 = vld [vmem:[#allocation15_spill] sm:$0xff]  ;;  %v2781_v19 = vmul.f32 %v15288_v52, %v10702_v10 }
 0x3ae   :  { %8291 = vmatprep.subr.mxu0 %v11651_v8  ;;  %8305 = vmatprep.subr.mxu1 %v15282_v54  ;;  %v11657_v31 = vpop.permute.xlu1 %2887  ;;  %v11659_v32 = vpop.permute.xlu0 %2883 }
 0x3af   :  { %4412 = vbcast.lane.b32.xlu1 %v10558_v28, 320  ;;  %4416 = vbcast.lane.b32.xlu0 %v10558_v28, 328  ;;  %v9316_v42 = vpop.eup %9315  ;;  %v2941_v55 = vsub.f32 %v2781_v19, %v11440_v38  ;;  %v15293_v38 = vld [vmem:[#allocation19_spill] sm:$0xff] }
 0x3b0   :  { %8292 = vmatpush3.msra.mxu0 %v11651_v8  ;;  %8306 = vmatpush3.msra.mxu1 %v15282_v54  ;;  %v15289_v54 = vld [vmem:[#allocation16_spill] sm:$0xff]  ;;  %v9318_v52 = vpop.eup %9317 }
 0x3b1   :  { %8263 = vmatmul.mubr.f32.gmra.mxu1 %v9314_v36  ;;  %8293 = vmatprep.subr.mxu0 %v11666_v63  ;;  %v2977_v40 = vmul.f32 1.442695, %v2941_v55  ;;  %v15296_v55 = vld [vmem:[#allocation32_spill] sm:$0xff] }
 0x3b2   :  { %8307 = vmatprep.subr.mxu1 %v15287_v29  ;;  %8294 = vmatpush3.msra.mxu0 %v11666_v63  ;;  %v15291_v63 = vld [vmem:[#allocation18_spill] sm:$0xff] }
 0x3b3   :  { %8308 = vmatpush3.msra.mxu1 %v15287_v29  ;;  %8295 = vmatprep.subr.mxu0 %v11674_v0  ;;  %v11682_v36 = vpop.permute.xlu1 %2895  ;;  %v15290_v29 = vld [vmem:[#allocation17_spill] sm:$0xff]  ;;  %9323 = vpow2.f32 %v2977_v40 }
 0x3b4   :  { %8309 = vmatprep.subr.mxu1 %v15289_v54  ;;  %4428 = vbcast.lane.b32.xlu1 %v10569_v25, 320  ;;  %v11686_v37 = vpop.permute.xlu0 %2891  ;;  %v15301_v40 = vld [vmem:[#allocation153_spill] sm:$0xff] }
 0x3b5   :  { %4432 = vbcast.lane.b32.xlu0 %v10569_v25, 328  ;;  %8296 = vmatpush3.msra.mxu0 %v11674_v0  ;;  %v15294_v0 = vld [vmem:[#allocation31_spill] sm:$0xff] }
 0x3b6   :  { %8310 = vmatpush3.msra.mxu1 %v15289_v54  ;;  %8298 = vmatmul.mubr.f32.vlgmr.msra.gmra.mxu0 %v9316_v42  ;;  %v9320_v42 = vpop.eup %9319 }
 0x3b7   :  { %8311 = vmatprep.subr.mxu1 %v15290_v29  ;;  %8341 = vmatprep.subr.mxu0 %v15291_v63 }
 0x3b8   :  { %8300 = vmatprep.mubr.f32.mxu0 %v9318_v52  ;;  %8312 = vmatpush3.msra.mxu1 %v15290_v29  ;;  %v11695_v8 = vpop.permute.xlu1 %2903  ;;  %v15295_v52 = vld [vmem:[#allocation20_spill] sm:$0xff] }
 0x3b9   :  { %15292 = vst [vmem:[#allocation117_spill] sm:$0xff] %v11695_v8  ;;  %8342 = vmatpush3.msra.mxu0 %v15291_v63  ;;  %8313 = vmatprep.subr.mxu1 %v15293_v38  ;;  %v11699_v19 = vpop.permute.xlu0 %2899  ;;  %v9322_v54 = vpop.eup %9321 }
 0x3ba   :  { %8343 = vmatprep.subr.mxu0 %v15294_v0  ;;  %4260 = vbcast.lane.b32.xlu1 %v15254_v45, 336 }
 0x3bb   :  { %4264 = vbcast.lane.b32.xlu0 %v15254_v45, 344  ;;  %8314 = vmatpush3.msra.mxu1 %v15293_v38  ;;  %v15298_v38 = vld [vmem:[#allocation150_spill] sm:$0xff] }
 0x3bc   :  { %8344 = vmatpush3.msra.mxu0 %v15294_v0  ;;  %8315 = vmatprep.subr.mxu1 %v15295_v52  ;;  %v2778_v49 = vmul.f32 %v15298_v38, %v15273_v62  ;;  %v15299_v45 = vld [vmem:[#allocation22_spill] sm:$0xff]  ;;  %v15302_v38 = vld [vmem:[#allocation23_spill] sm:$0xff] }
 0x3bd   :  { %8301 = vmatmul.mubr.f32.gmra.mxu0 %v9320_v42  ;;  %8345 = vmatprep.subr.mxu0 %v15296_v55  ;;  %v15300_v0 = vld [vmem:[#allocation34_spill] sm:$0xff]  ;;  %v2779_v42 = vmul.f32 %v15301_v40, %v15273_v62 }
 0x3be   :  { %8316 = vmatpush3.msra.mxu1 %v15295_v52  ;;  %8346 = vmatpush3.msra.mxu0 %v15296_v55  ;;  %v11710_v63 = vpop.permute.xlu1 %2911  ;;  %v11712_v29 = vpop.permute.xlu0 %2907  ;;  %v2938_v55 = vsub.f32 %v2778_v49, %v11387_v4  ;;  %v15304_v4 = vld [vmem:[#allocation24_spill] sm:$0xff] }
 0x3bf   :  { %15297 = vst [vmem:[#allocation158_spill] sm:$0xff] %v11710_v63  ;;  %8317 = vmatprep.subr.mxu1 %v15299_v45  ;;  %8347 = vmatprep.subr.mxu0 %v15300_v0  ;;  %v2939_v52 = vsub.f32 %v2779_v42, %v11415_v56  ;;  %v15303_v63 = vld [vmem:[#allocation35_spill] sm:$0xff]  ;;  %v15305_v49 = vld [vmem:[#allocation152_spill] sm:$0xff]  ;;  %v2785_v42 = vmul.f32 %v11050_v24, %v10717_v44 }
 0x3c0   :  { %4276 = vbcast.lane.b32.xlu1 %v15276_v2, 336  ;;  %4280 = vbcast.lane.b32.xlu0 %v15276_v2, 344  ;;  %v15306_v56 = vld [vmem:[#allocation36_spill] sm:$0xff] }
 0x3c1   :  { %8318 = vmatpush3.msra.mxu1 %v15299_v45  ;;  %8348 = vmatpush3.msra.mxu0 %v15300_v0  ;;  %v2780_v0 = vmul.f32 %v15305_v49, %v15273_v62  ;;  %v2971_v45 = vmul.f32 1.442695, %v2938_v55  ;;  %v15308_v49 = vld [vmem:[#allocation38_spill] sm:$0xff] }
 0x3c2   :  { %8319 = vmatprep.subr.mxu1 %v15302_v38  ;;  %8335 = vmatprep.mubr.f32.mxu1 %v9322_v54  ;;  %v2973_v54 = vmul.f32 1.442695, %v2939_v52  ;;  %v2945_v52 = vsub.f32 %v2785_v42, %v11498_v53  ;;  %v15309_v55 = vld [vmem:[#allocation26_spill] sm:$0xff]  ;;  %v15314_v53 = vld [vmem:[#allocation157_spill] sm:$0xff] }
 0x3c3   :  { %8349 = vmatprep.subr.mxu0 %v15303_v63  ;;  %8320 = vmatpush3.msra.mxu1 %v15302_v38  ;;  %v11729_v40 = vpop.permute.xlu1 %2919  ;;  %v11731_v8 = vpop.permute.xlu0 %2915  ;;  %v15307_v38 = vld [vmem:[#allocation25_spill] sm:$0xff]  ;;  %9325 = vpow2.f32 %v2971_v45  ;;  %v2783_v42 = vmul.f32 %v15314_v53, %v10702_v10  ;;  %v15318_v53 = vld [vmem:[#allocation43_spill] sm:$0xff] }
 0x3c4   :  { %8350 = vmatpush3.msra.mxu0 %v15303_v63  ;;  %8321 = vmatprep.subr.mxu1 %v15304_v4  ;;  %v2940_v63 = vsub.f32 %v2780_v0, %v11413_v34  ;;  %v9324_v34 = vpop.eup %9323  ;;  %9327 = vpow2.f32 %v2973_v54  ;;  %v15311_v0 = vld [vmem:[#allocation40_spill] sm:$0xff]  ;;  %v2985_v2 = vmul.f32 1.442695, %v2945_v52 }
 0x3c5   :  { %8351 = vmatprep.subr.mxu0 %v15306_v56  ;;  %4420 = vbcast.lane.b32.xlu1 %v10558_v28, 336 }
 0x3c6   :  { %4424 = vbcast.lane.b32.xlu0 %v10558_v28, 344  ;;  %8322 = vmatpush3.msra.mxu1 %v15304_v4  ;;  %v2975_v45 = vmul.f32 1.442695, %v2940_v63  ;;  %v15313_v28 = vld [vmem:[#allocation89_spill] sm:$0xff]  ;;  %v15317_v63 = vld [vmem:[#allocation28_spill] sm:$0xff] }
 0x3c7   :  { %8352 = vmatpush3.msra.mxu0 %v15306_v56  ;;  %8323 = vmatprep.subr.mxu1 %v15307_v38  ;;  %v15312_v56 = vld [vmem:[#allocation154_spill] sm:$0xff] }
 0x3c8   :  { %8353 = vmatprep.subr.mxu0 %v15308_v49  ;;  %8324 = vmatpush3.msra.mxu1 %v15307_v38  ;;  %v2782_v38 = vmul.f32 %v15312_v56, %v10702_v10  ;;  %v2943_v56 = vsub.f32 %v2783_v42, %v11461_v23  ;;  %9329 = vpow2.f32 %v2975_v45  ;;  %v15321_v45 = vld [vmem:[#allocation44_spill] sm:$0xff]  ;;  %v2789_v42 = vmul.f32 %v11097_v47, %v10747_v35 }
 0x3c9   :  { %8354 = vmatpush3.msra.mxu0 %v15308_v49  ;;  %8325 = vmatprep.subr.mxu1 %v15309_v55  ;;  %v11751_v4 = vpop.permute.xlu1 %2927  ;;  %v11753_v24 = vpop.permute.xlu0 %2923  ;;  %v15315_v49 = vld [vmem:[#allocation27_spill] sm:$0xff]  ;;  %9331 = vpow2.f32 %v2985_v2  ;;  %v15323_v2 = vld [vmem:[#allocation46_spill] sm:$0xff] }
 0x3ca   :  { %15310 = vst [vmem:[#allocation151_spill] sm:$0xff] %v11751_v4  ;;  %8355 = vmatprep.subr.mxu0 %v15311_v0  ;;  %4436 = vbcast.lane.b32.xlu1 %v10569_v25, 336  ;;  %v2942_v54 = vsub.f32 %v2782_v38, %v11438_v7  ;;  %v15316_v4 = vld [vmem:[#allocation41_spill] sm:$0xff]  ;;  %v15319_v7 = vld [vmem:[#allocation156_spill] sm:$0xff]  ;;  %v2981_v52 = vmul.f32 1.442695, %v2943_v56  ;;  %v2949_v56 = vsub.f32 %v2789_v42, %v11559_v59 }
 0x3cb   :  { %4284 = vbcast.lane.b32.xlu0 %v15313_v28, 320  ;;  %8326 = vmatpush3.msra.mxu1 %v15309_v55  ;;  %v2784_v23 = vmul.f32 %v15319_v7, %v10702_v10  ;;  %v15324_v7 = vld [vmem:[#allocation94_spill] sm:$0xff]  ;;  %v15326_v42 = vld [vmem:[#allocation48_spill] sm:$0xff] }
 0x3cc   :  { %8356 = vmatpush3.msra.mxu0 %v15311_v0  ;;  %8327 = vmatprep.subr.mxu1 %v15315_v49  ;;  %v2979_v38 = vmul.f32 1.442695, %v2942_v54  ;;  %v15322_v54 = vld [vmem:[#allocation30_spill] sm:$0xff]  ;;  %v2993_v59 = vmul.f32 1.442695, %v2949_v56  ;;  %v15327_v56 = vld [vmem:[#allocation49_spill] sm:$0xff] }
 0x3cd   :  { %8357 = vmatprep.subr.mxu0 %v15316_v4  ;;  %8373 = vmatprep.mubr.f32.mxu0 %v9324_v34  ;;  %v15320_v34 = vld [vmem:[#allocation29_spill] sm:$0xff] }
 0x3ce   :  { %8328 = vmatpush3.msra.mxu1 %v15315_v49  ;;  %8358 = vmatpush3.msra.mxu0 %v15316_v4  ;;  %v2944_v4 = vsub.f32 %v2784_v23, %v11459_v17  ;;  %9333 = vpow2.f32 %v2979_v38  ;;  %v15325_v38 = vld [vmem:[#allocation47_spill] sm:$0xff] }
 0x3cf   :  { %8329 = vmatprep.subr.mxu1 %v15317_v63  ;;  %8359 = vmatprep.subr.mxu0 %v15318_v53  ;;  %v11772_v0 = vpop.permute.xlu1 %2935  ;;  %v11774_v55 = vpop.permute.xlu0 %2931  ;;  %9335 = vpow2.f32 %v2981_v52 }
 0x3d0   :  { %4440 = vbcast.lane.b32.xlu1 %v10569_v25, 344  ;;  %4288 = vbcast.lane.b32.xlu0 %v15313_v28, 328  ;;  %v9326_v17 = vpop.eup %9325 }
 0x3d1   :  { %8330 = vmatpush3.msra.mxu1 %v15317_v63  ;;  %8360 = vmatpush3.msra.mxu0 %v15318_v53  ;;  %v9328_v23 = vpop.eup %9327 }
 0x3d2   :  { %8331 = vmatprep.subr.mxu1 %v15320_v34  ;;  %8361 = vmatprep.subr.mxu0 %v15321_v45 }
 0x3d3   :  { %8332 = vmatpush3.msra.mxu1 %v15320_v34  ;;  %8362 = vmatpush3.msra.mxu0 %v15321_v45  ;;  %v2983_v45 = vmul.f32 1.442695, %v2944_v4 }
 0x3d4   :  { %8333 = vmatprep.subr.mxu1 %v15322_v54  ;;  %8363 = vmatprep.subr.mxu0 %v15323_v2 }
 0x3d5   :  { %4300 = vbcast.lane.b32.xlu1 %v15324_v7, 320  ;;  %4304 = vbcast.lane.b32.xlu0 %v15324_v7, 328  ;;  %v11794_v53 = vpop.permute.xlu1 %4208  ;;  %v11796_v47 = vpop.permute.xlu0 %4204  ;;  %9337 = vpow2.f32 %v2983_v45  ;;  %v15328_v45 = vld [vmem:[#allocation50_spill] sm:$0xff] }
 0x3d6   :  { %8334 = vmatpush3.msra.mxu1 %v15322_v54  ;;  %8364 = vmatpush3.msra.mxu0 %v15323_v2  ;;  %9339 = vpow2.f32 %v2993_v59 }
 0x3d7   :  { %8336 = vmatmul.mubr.f32.vlgmr.msra.gmra.mxu1 %v9326_v17  ;;  %8365 = vmatprep.subr.mxu0 %v15325_v38  ;;  %v9330_v17 = vpop.eup %9329 }
 0x3d8   :  { %8379 = vmatprep.subr.mxu1 %v10149_v3  ;;  %8338 = vmatprep.mubr.f32.mxu1 %v9328_v23  ;;  %v9332_v23 = vpop.eup %9331 }
 0x3d9   :  { %8366 = vmatpush3.msra.mxu0 %v15325_v38  ;;  %8380 = vmatpush3.msra.mxu1 %v10149_v3 }
 0x3da   :  { %8367 = vmatprep.subr.mxu0 %v15326_v42  ;;  %8381 = vmatprep.subr.mxu1 %v10736_v22 }
 0x3db   :  { %4444 = vbcast.lane.b32.xlu1 %v10582_v13, 320  ;;  %4448 = vbcast.lane.b32.xlu0 %v10582_v13, 328  ;;  %v11808_v4 = vpop.permute.xlu1 %4368  ;;  %v11810_v52 = vpop.permute.xlu0 %4364 }
 0x3dc   :  { %8368 = vmatpush3.msra.mxu0 %v15326_v42  ;;  %8382 = vmatpush3.msra.mxu1 %v10736_v22 }
 0x3dd   :  { %8339 = vmatmul.mubr.f32.gmra.mxu1 %v9330_v17  ;;  %8369 = vmatprep.subr.mxu0 %v15327_v56  ;;  %v9334_v17 = vpop.eup %9333 }
 0x3de   :  { %8383 = vmatprep.subr.mxu1 %v10744_v50  ;;  %8370 = vmatpush3.msra.mxu0 %v15327_v56  ;;  %v9336_v56 = vpop.eup %9335 }
 0x3df   :  { %8384 = vmatpush3.msra.mxu1 %v10744_v50  ;;  %8411 = vmatprep.mubr.f32.mxu1 %v9332_v23 }
 0x3e0   :  { %8371 = vmatprep.subr.mxu0 %v15328_v45  ;;  %8385 = vmatprep.subr.mxu1 %v10759_v20  ;;  %v11820_v3 = vpop.permute.xlu1 %4212  ;;  %v11824_v59 = vpop.permute.xlu0 %4216 }
 0x3e1   :  { %4460 = vbcast.lane.b32.xlu1 %v10595_v27, 320  ;;  %4464 = vbcast.lane.b32.xlu0 %v10595_v27, 328 }
 0x3e2   :  { %8372 = vmatpush3.msra.mxu0 %v15328_v45  ;;  %8386 = vmatpush3.msra.mxu1 %v10759_v20  ;;  %v9338_v20 = vpop.eup %9337 }
 0x3e3   :  { %8374 = vmatmul.mubr.f32.vlgmr.msra.gmra.mxu0 %v9334_v17  ;;  %8387 = vmatprep.subr.mxu1 %v10768_v5 }
 0x3e4   :  { %8417 = vmatprep.subr.mxu0 %v10279_v18  ;;  %8376 = vmatprep.mubr.f32.mxu0 %v9336_v56  ;;  %v9340_v56 = vpop.eup %9339 }
 0x3e5   :  { %8388 = vmatpush3.msra.mxu1 %v10768_v5  ;;  %8418 = vmatpush3.msra.mxu0 %v10279_v18  ;;  %v11832_v23 = vpop.permute.xlu1 %4372  ;;  %v11838_v17 = vpop.permute.xlu0 %4220  ;;  %v2786_v5 = vmul.f32 %v11048_v57, %v10717_v44 }
 0x3e6   :  { %8389 = vmatprep.subr.mxu1 %v10779_v12  ;;  %8419 = vmatprep.subr.mxu0 %v10784_v51 }
 0x3e7   :  { %4292 = vbcast.lane.b32.xlu1 %v15313_v28, 336  ;;  %4296 = vbcast.lane.b32.xlu0 %v15313_v28, 344 }
 0x3e8   :  { %8390 = vmatpush3.msra.mxu1 %v10779_v12  ;;  %8420 = vmatpush3.msra.mxu0 %v10784_v51  ;;  %v2787_v12 = vmul.f32 %v11071_v15, %v10717_v44 }
 0x3e9   :  { %8377 = vmatmul.mubr.f32.gmra.mxu0 %v9338_v20  ;;  %8391 = vmatprep.subr.mxu1 %v10801_v11  ;;  %v2946_v20 = vsub.f32 %v2786_v5, %v11496_v1  ;;  %v2788_v5 = vmul.f32 %v11069_v9, %v10717_v44 }
 0x3ea   :  { %8421 = vmatprep.subr.mxu0 %v10808_v16  ;;  %8392 = vmatpush3.msra.mxu1 %v10801_v11  ;;  %v11845_v18 = vpop.permute.xlu1 %4376  ;;  %v11857_v11 = vpop.permute.xlu0 %4224  ;;  %v2947_v57 = vsub.f32 %v2787_v12, %v11522_v21  ;;  %v15329_v21 = vld [vmem:[#allocation184_spill] sm:$0xff] }
 0x3eb   :  { %8422 = vmatpush3.msra.mxu0 %v10808_v16  ;;  %8449 = vmatprep.mubr.f32.mxu0 %v9340_v56  ;;  %v2987_v1 = vmul.f32 1.442695, %v2946_v20  ;;  %v2793_v56 = vmul.f32 %v15329_v21, %v10878_v33  ;;  %v15331_v20 = vld [vmem:[#allocation174_spill] sm:$0xff]  ;;  %v15374_v16 = vld [vmem:[#allocation119_spill] sm:$0xff] }
 0x3ec   :  { %8393 = vmatprep.subr.mxu1 %v10818_v46  ;;  %8423 = vmatprep.subr.mxu0 %v10823_v14  ;;  %v2989_v12 = vmul.f32 1.442695, %v2947_v57 }
 0x3ed   :  { %4308 = vbcast.lane.b32.xlu1 %v15324_v7, 336  ;;  %4312 = vbcast.lane.b32.xlu0 %v15324_v7, 344  ;;  %9341 = vpow2.f32 %v2987_v1  ;;  %v2953_v57 = vsub.f32 %v2793_v56, %v11634_v58  ;;  %v15336_v1 = vld [vmem:[#allocation98_spill] sm:$0xff] }
 0x3ee   :  { %8394 = vmatpush3.msra.mxu1 %v10818_v46  ;;  %8424 = vmatpush3.msra.mxu0 %v10823_v14  ;;  %9343 = vpow2.f32 %v2989_v12  ;;  %v15337_v58 = vld [vmem:[#allocation182_spill] sm:$0xff]  ;;  %v15339_v46 = vld [vmem:[#allocation179_spill] sm:$0xff] }
 0x3ef   :  { %8395 = vmatprep.subr.mxu1 %v10842_v41  ;;  %8425 = vmatprep.subr.mxu0 %v10854_v43  ;;  %v11864_v15 = vpop.permute.xlu1 %4236  ;;  %v11879_v9 = vpop.permute.xlu0 %4240  ;;  %v2791_v56 = vmul.f32 %v15337_v58, %v10747_v35  ;;  %v15340_v58 = vld [vmem:[#allocation180_spill] sm:$0xff] }
 0x3f0   :  { %8396 = vmatpush3.msra.mxu1 %v10842_v41  ;;  %8426 = vmatpush3.msra.mxu0 %v10854_v43  ;;  %v2948_v41 = vsub.f32 %v2788_v5, %v11520_v39  ;;  %15330 = vst [vmem:[#allocation114_spill] sm:$0xff] %v11879_v9  ;;  %v15332_v43 = vld [vmem:[#allocation175_spill] sm:$0xff]  ;;  %v15333_v39 = vld [vmem:[#allocation176_spill] sm:$0xff]  ;;  %v15334_v5 = vld [vmem:[#allocation177_spill] sm:$0xff] }
 0x3f1   :  { %8397 = vmatprep.subr.mxu1 %v10865_v60  ;;  %8427 = vmatprep.subr.mxu0 %v10872_v61  ;;  %v15373_v9 = vld [vmem:[#allocation92_spill] sm:$0xff] }
 0x3f2   :  { %4452 = vbcast.lane.b32.xlu1 %v10582_v13, 336  ;;  %4456 = vbcast.lane.b32.xlu0 %v10582_v13, 344  ;;  %v2991_v14 = vmul.f32 1.442695, %v2948_v41  ;;  %v2951_v41 = vsub.f32 %v2791_v56, %v11595_v6  ;;  %v15343_v6 = vld [vmem:[#allocation21_spill] sm:$0xff] }
 0x3f3   :  { %8398 = vmatpush3.msra.mxu1 %v10865_v60  ;;  %8428 = vmatpush3.msra.mxu0 %v10872_v61  ;;  %v15335_v61 = vld [vmem:[#allocation75_spill] sm:$0xff]  ;;  %v15344_v56 = vld [vmem:[#allocation45_spill] sm:$0xff] }
 0x3f4   :  { %8399 = vmatprep.subr.mxu1 %v15331_v20  ;;  %8429 = vmatprep.subr.mxu0 %v15332_v43  ;;  %v2790_v60 = vmul.f32 %v15335_v61, %v10747_v35  ;;  %9345 = vpow2.f32 %v2991_v14  ;;  %v2997_v14 = vmul.f32 1.442695, %v2951_v41 }
 0x3f5   :  { %8400 = vmatpush3.msra.mxu1 %v15331_v20  ;;  %8430 = vmatpush3.msra.mxu0 %v15332_v43  ;;  %v11886_v21 = vpop.permute.xlu1 %4380  ;;  %v3001_v43 = vmul.f32 1.442695, %v2953_v57  ;;  %v15338_v20 = vld [vmem:[#allocation178_spill] sm:$0xff]  ;;  %v11901_v61 = vpop.permute.xlu0 %4384 }
 0x3f6   :  { %8401 = vmatprep.subr.mxu1 %v15333_v39  ;;  %8431 = vmatprep.subr.mxu0 %v15334_v5  ;;  %v2950_v12 = vsub.f32 %v2790_v60, %v11555_v30  ;;  %v15342_v60 = vld [vmem:[#allocation95_spill] sm:$0xff] }
 0x3f7   :  { %4468 = vbcast.lane.b32.xlu1 %v10595_v27, 336  ;;  %4316 = vbcast.lane.b32.xlu0 %v15336_v1, 320  ;;  %v2792_v30 = vmul.f32 %v15342_v60, %v10747_v35  ;;  %9347 = vpow2.f32 %v3001_v43  ;;  %v15347_v43 = vld [vmem:[#allocation132_spill] sm:$0xff]  ;;  %v15348_v60 = vld [vmem:[#allocation33_spill] sm:$0xff] }
 0x3f8   :  { %8402 = vmatpush3.msra.mxu1 %v15333_v39  ;;  %8432 = vmatpush3.msra.mxu0 %v15334_v5  ;;  %v15341_v39 = vld [vmem:[#allocation57_spill] sm:$0xff]  ;;  %v2995_v57 = vmul.f32 1.442695, %v2950_v12 }
 0x3f9   :  { %8403 = vmatprep.subr.mxu1 %v15338_v20  ;;  %8433 = vmatprep.subr.mxu0 %v15339_v46 }
 0x3fa   :  { %8404 = vmatpush3.msra.mxu1 %v15338_v20  ;;  %8434 = vmatpush3.msra.mxu0 %v15339_v46  ;;  %v15345_v46 = vld [vmem:[#allocation186_spill] sm:$0xff]  ;;  %9349 = vpow2.f32 %v2995_v57 }
 0x3fb   :  { %8405 = vmatprep.subr.mxu1 %v15340_v58  ;;  %8435 = vmatprep.subr.mxu0 %v15341_v39  ;;  %v11908_v5 = vpop.permute.xlu1 %4396  ;;  %v2797_v20 = vmul.f32 %v15345_v46, %v10977_v48  ;;  %v11923_v12 = vpop.permute.xlu0 %4400  ;;  %9351 = vpow2.f32 %v2997_v14  ;;  %v15352_v57 = vld [vmem:[#allocation138_spill] sm:$0xff] }
 0x3fc   :  { %4472 = vbcast.lane.b32.xlu1 %v10595_v27, 344  ;;  %4320 = vbcast.lane.b32.xlu0 %v15336_v1, 328  ;;  %v2952_v27 = vsub.f32 %v2792_v30, %v11591_v26  ;;  %15346 = vst [vmem:[#allocation115_spill] sm:$0xff] %v11923_v12  ;;  %v9342_v26 = vpop.eup %9341  ;;  %v15353_v14 = vld [vmem:[#allocation42_spill] sm:$0xff]  ;;  %v15365_v12 = vld [vmem:[#allocation91_spill] sm:$0xff] }
 0x3fd   :  { %8406 = vmatpush3.msra.mxu1 %v15340_v58  ;;  %8436 = vmatpush3.msra.mxu0 %v15341_v39  ;;  %v2957_v41 = vsub.f32 %v2797_v20, %v11686_v37  ;;  %v15349_v39 = vld [vmem:[#allocation67_spill] sm:$0xff]  ;;  %v15350_v58 = vld [vmem:[#allocation137_spill] sm:$0xff]  ;;  %v9344_v30 = vpop.eup %9343 }
 0x3fe   :  { %8407 = vmatprep.subr.mxu1 %v15343_v6  ;;  %8437 = vmatprep.subr.mxu0 %v15344_v56 }
 0x3ff   :  { %8408 = vmatpush3.msra.mxu1 %v15343_v6  ;;  %8438 = vmatpush3.msra.mxu0 %v15344_v56  ;;  %v2999_v56 = vmul.f32 1.442695, %v2952_v27  ;;  %v15351_v6 = vld [vmem:[#allocation55_spill] sm:$0xff]  ;;  %v3009_v37 = vmul.f32 1.442695, %v2957_v41  ;;  %v15356_v41 = vld [vmem:[#allocation52_spill] sm:$0xff] }
 0x400   :  { %8409 = vmatprep.subr.mxu1 %v15347_v43  ;;  %8439 = vmatprep.subr.mxu0 %v15348_v60 }
 0x401   :  { %5757 = vbcast.lane.b32.xlu1 %v15349_v39, 352  ;;  %4476 = vbcast.lane.b32.xlu0 %v15350_v58, 320  ;;  %v11930_v46 = vpop.permute.xlu1 %4228  ;;  %v11938_v20 = vpop.permute.xlu0 %4232  ;;  %9353 = vpow2.f32 %v2999_v56 }
 0x402   :  { %8410 = vmatpush3.msra.mxu1 %v15347_v43  ;;  %8440 = vmatpush3.msra.mxu0 %v15348_v60  ;;  %v15354_v43 = vld [vmem:[#allocation65_spill] sm:$0xff]  ;;  %9355 = vpow2.f32 %v3009_v37  ;;  %v15360_v60 = vld [vmem:[#allocation62_spill] sm:$0xff]  ;;  %v15361_v37 = vld [vmem:[#allocation128_spill] sm:$0xff] }
 0x403   :  { %8412 = vmatmul.mubr.f32.vlgmr.msra.gmra.mxu1 %v9342_v26  ;;  %8441 = vmatprep.subr.mxu0 %v15351_v6  ;;  %v9346_v26 = vpop.eup %9345 }
 0x404   :  { %8455 = vmatprep.subr.mxu1 %v15352_v57  ;;  %8414 = vmatprep.mubr.f32.mxu1 %v9344_v30  ;;  %v9348_v30 = vpop.eup %9347 }
 0x405   :  { %8442 = vmatpush3.msra.mxu0 %v15351_v6  ;;  %8456 = vmatpush3.msra.mxu1 %v15352_v57  ;;  %v15357_v57 = vld [vmem:[#allocation77_spill] sm:$0xff]  ;;  %v15359_v6 = vld [vmem:[#allocation39_spill] sm:$0xff] }
 0x406   :  { %8443 = vmatprep.subr.mxu0 %v15353_v14  ;;  %8457 = vmatprep.subr.mxu1 %v15354_v43 }
 0x407   :  { %5761 = vbcast.lane.b32.xlu1 %v15349_v39, 360  ;;  %4480 = vbcast.lane.b32.xlu0 %v15350_v58, 328  ;;  %v11944_v27 = vpop.permute.xlu1 %4244  ;;  %v11952_v56 = vpop.permute.xlu0 %4248 }
 0x408   :  { %15355 = vst [vmem:[#allocation112_spill] sm:$0xff] %v11944_v27  ;;  %8444 = vmatpush3.msra.mxu0 %v15353_v14  ;;  %8458 = vmatpush3.msra.mxu1 %v15354_v43  ;;  %15358 = vst [vmem:[#allocation113_spill] sm:$0xff] %v11952_v56 }
 0x409   :  { %8415 = vmatmul.mubr.f32.gmra.mxu1 %v9346_v26  ;;  %8445 = vmatprep.subr.mxu0 %v15356_v41  ;;  %v9350_v26 = vpop.eup %9349 }
 0x40a   :  { %8459 = vmatprep.subr.mxu1 %v15357_v57  ;;  %8446 = vmatpush3.msra.mxu0 %v15356_v41  ;;  %v9352_v41 = vpop.eup %9351 }
 0x40b   :  { %8460 = vmatpush3.msra.mxu1 %v15357_v57  ;;  %8487 = vmatprep.mubr.f32.mxu1 %v9348_v30  ;;  %v15362_v30 = vld [vmem:[#allocation51_spill] sm:$0xff]  ;;  %v15363_v57 = vld [vmem:[#allocation61_spill] sm:$0xff] }
 0x40c   :  { %8447 = vmatprep.subr.mxu0 %v15359_v6  ;;  %8461 = vmatprep.subr.mxu1 %v15360_v60  ;;  %v11956_v14 = vpop.permute.xlu1 %4388  ;;  %v11966_v43 = vpop.permute.xlu0 %4392 }
 0x40d   :  { %5917 = vbcast.lane.b32.xlu1 %v15361_v37, 352  ;;  %5921 = vbcast.lane.b32.xlu0 %v15361_v37, 360 }
 0x40e   :  { %8448 = vmatpush3.msra.mxu0 %v15359_v6  ;;  %8462 = vmatpush3.msra.mxu1 %v15360_v60  ;;  %v15366_v6 = vld [vmem:[#allocation73_spill] sm:$0xff] }
 0x40f   :  { %8450 = vmatmul.mubr.f32.vlgmr.msra.gmra.mxu0 %v9350_v26  ;;  %8463 = vmatprep.subr.mxu1 %v15362_v30  ;;  %v9354_v26 = vpop.eup %9353 }
 0x410   :  { %8493 = vmatprep.subr.mxu0 %v15363_v57  ;;  %8452 = vmatprep.mubr.f32.mxu0 %v9352_v41  ;;  %v15367_v41 = vld [vmem:[#allocation60_spill] sm:$0xff] }
 0x411   :  { %8464 = vmatpush3.msra.mxu1 %v15362_v30  ;;  %8494 = vmatpush3.msra.mxu0 %v15363_v57  ;;  %v11968_v56 = vpop.permute.xlu1 %4404  ;;  %v9356_v57 = vpop.eup %9355  ;;  %v15368_v30 = vld [vmem:[#allocation87_spill] sm:$0xff] }
 0x412   :  { %15364 = vst [vmem:[#allocation155_spill] sm:$0xff] %v11968_v56  ;;  %8465 = vmatprep.subr.mxu1 %v15365_v12  ;;  %8495 = vmatprep.subr.mxu0 %v15366_v6  ;;  %v15370_v56 = vld [vmem:[#allocation183_spill] sm:$0xff] }
 0x413   :  { %4324 = vbcast.lane.b32.xlu1 %v15336_v1, 336  ;;  %4328 = vbcast.lane.b32.xlu0 %v15336_v1, 344  ;;  %v2794_v27 = vmul.f32 %v15370_v56, %v10878_v33  ;;  %v11984_v1 = vpop.permute.xlu0 %4252 }
 0x414   :  { %8466 = vmatpush3.msra.mxu1 %v15365_v12  ;;  %8496 = vmatpush3.msra.mxu0 %v15366_v6  ;;  %v15371_v6 = vld [vmem:[#allocation84_spill] sm:$0xff]  ;;  %v15372_v12 = vld [vmem:[#allocation70_spill] sm:$0xff] }
 0x415   :  { %8453 = vmatmul.mubr.f32.gmra.mxu0 %v9354_v26  ;;  %8467 = vmatprep.subr.mxu1 %v15367_v41  ;;  %v2795_v26 = vmul.f32 %v15371_v6, %v10878_v33  ;;  %v2954_v51 = vsub.f32 %v2794_v27, %v15374_v16  ;;  %v15378_v16 = vld [vmem:[#allocation59_spill] sm:$0xff] }
 0x416   :  { %8497 = vmatprep.subr.mxu0 %v15368_v30  ;;  %8468 = vmatpush3.msra.mxu1 %v15367_v41  ;;  %v11979_v60 = vpop.permute.xlu1 %4408  ;;  %v2796_v27 = vmul.f32 %v15378_v16, %v10878_v33  ;;  %v15385_v16 = vld [vmem:[#allocation80_spill] sm:$0xff] }
 0x417   :  { %15369 = vst [vmem:[#allocation150_spill] sm:$0xff] %v11979_v60  ;;  %8498 = vmatpush3.msra.mxu0 %v15368_v30  ;;  %8525 = vmatprep.mubr.f32.mxu0 %v9356_v57  ;;  %v2955_v56 = vsub.f32 %v2795_v26, %v11659_v32  ;;  %v15375_v57 = vld [vmem:[#allocation133_spill] sm:$0xff]  ;;  %v15376_v30 = vld [vmem:[#allocation135_spill] sm:$0xff]  ;;  %v3003_v41 = vmul.f32 1.442695, %v2954_v51  ;;  %v15380_v32 = vld [vmem:[#allocation90_spill] sm:$0xff]  ;;  %v12006_v26 = vpop.permute.xlu0 %4256 }
 0x418   :  { %8469 = vmatprep.subr.mxu1 %v15372_v12  ;;  %8499 = vmatprep.subr.mxu0 %v15373_v9  ;;  %v15379_v60 = vld [vmem:[#allocation69_spill] sm:$0xff]  ;;  %15381 = vst [vmem:[#allocation152_spill] sm:$0xff] %v12006_v26  ;;  %v15384_v51 = vld [vmem:[#allocation58_spill] sm:$0xff] }
 0x419   :  { %5765 = vbcast.lane.b32.xlu1 %v15349_v39, 368  ;;  %4484 = vbcast.lane.b32.xlu0 %v15350_v58, 336  ;;  %9357 = vpow2.f32 %v3003_v41  ;;  %v15389_v41 = vld [vmem:[#allocation72_spill] sm:$0xff]  ;;  %v15402_v26 = vld [vmem:[#allocation117_spill] sm:$0xff] }
 0x41a   :  { %8470 = vmatpush3.msra.mxu1 %v15372_v12  ;;  %8500 = vmatpush3.msra.mxu0 %v15373_v9  ;;  %v3005_v9 = vmul.f32 1.442695, %v2955_v56  ;;  %v15382_v12 = vld [vmem:[#allocation185_spill] sm:$0xff] }
 0x41b   :  { %8471 = vmatprep.subr.mxu1 %v15375_v57  ;;  %8501 = vmatprep.subr.mxu0 %v15376_v30  ;;  %v11998_v6 = vpop.permute.xlu1 %4268 }
 0x41c   :  { %15377 = vst [vmem:[#allocation153_spill] sm:$0xff] %v11998_v6  ;;  %8472 = vmatpush3.msra.mxu1 %v15375_v57  ;;  %8502 = vmatpush3.msra.mxu0 %v15376_v30  ;;  %v15383_v6 = vld [vmem:[#allocation86_spill] sm:$0xff]  ;;  %v2956_v30 = vsub.f32 %v2796_v27, %v11657_v31  ;;  %9359 = vpow2.f32 %v3005_v9  ;;  %v15388_v27 = vld [vmem:[#allocation136_spill] sm:$0xff] }
 0x41d   :  { %8473 = vmatprep.subr.mxu1 %v15379_v60  ;;  %8503 = vmatprep.subr.mxu0 %v15380_v32  ;;  %v2801_v57 = vmul.f32 %v15383_v6, %v15382_v12  ;;  %v15386_v6 = vld [vmem:[#allocation142_spill] sm:$0xff] }
 0x41e   :  { %5769 = vbcast.lane.b32.xlu1 %v15349_v39, 376  ;;  %4488 = vbcast.lane.b32.xlu0 %v15350_v58, 344  ;;  %v15387_v31 = vld [vmem:[#allocation66_spill] sm:$0xff]  ;;  %v2798_v58 = vmul.f32 %v15388_v27, %v10977_v48  ;;  %v15393_v27 = vld [vmem:[#allocation56_spill] sm:$0xff] }
 0x41f   :  { %8474 = vmatpush3.msra.mxu1 %v15379_v60  ;;  %8504 = vmatpush3.msra.mxu0 %v15380_v32  ;;  %v2961_v56 = vsub.f32 %v2801_v57, %v11712_v29  ;;  %v3007_v32 = vmul.f32 1.442695, %v2956_v30  ;;  %v12028_v29 = vpop.permute.xlu0 %4272  ;;  %v15391_v57 = vld [vmem:[#allocation187_spill] sm:$0xff] }
 0x420   :  { %8475 = vmatprep.subr.mxu1 %v15384_v51  ;;  %8505 = vmatprep.subr.mxu0 %v15385_v16  ;;  %15390 = vst [vmem:[#allocation154_spill] sm:$0xff] %v12028_v29  ;;  %v2958_v9 = vsub.f32 %v2798_v58, %v11682_v36  ;;  %v15392_v60 = vld [vmem:[#allocation139_spill] sm:$0xff]  ;;  %v15397_v36 = vld [vmem:[#allocation88_spill] sm:$0xff] }
 0x421   :  { %8476 = vmatpush3.msra.mxu1 %v15384_v51  ;;  %8506 = vmatpush3.msra.mxu0 %v15385_v16  ;;  %v12020_v39 = vpop.permute.xlu1 %4412  ;;  %v2799_v16 = vmul.f32 %v15391_v57, %v10977_v48  ;;  %v3017_v51 = vmul.f32 1.442695, %v2961_v56  ;;  %9361 = vpow2.f32 %v3007_v32  ;;  %v15395_v57 = vld [vmem:[#allocation78_spill] sm:$0xff]  ;;  %v2800_v58 = vmul.f32 %v15397_v36, %v10977_v48 }
 0x422   :  { %8477 = vmatprep.subr.mxu1 %v15386_v6  ;;  %8507 = vmatprep.subr.mxu0 %v15387_v31  ;;  %v3011_v56 = vmul.f32 1.442695, %v2958_v9  ;;  %v15404_v9 = vld [vmem:[#allocation83_spill] sm:$0xff]  ;;  %v15431_v48 = vld [vmem:[#allocation158_spill] sm:$0xff] }
 0x423   :  { %5925 = vbcast.lane.b32.xlu1 %v15361_v37, 368  ;;  %5773 = vbcast.lane.b32.xlu0 %v15389_v41, 352  ;;  %v2959_v30 = vsub.f32 %v2799_v16, %v11699_v19  ;;  %9363 = vpow2.f32 %v3017_v51  ;;  %v12050_v19 = vpop.permute.xlu0 %4416  ;;  %v15398_v16 = vld [vmem:[#allocation54_spill] sm:$0xff]  ;;  %v15403_v51 = vld [vmem:[#allocation63_spill] sm:$0xff] }
 0x424   :  { %8478 = vmatpush3.msra.mxu1 %v15386_v6  ;;  %8508 = vmatpush3.msra.mxu0 %v15387_v31  ;;  %v15396_v6 = vld [vmem:[#allocation140_spill] sm:$0xff]  ;;  %9365 = vpow2.f32 %v3011_v56  ;;  %v15408_v56 = vld [vmem:[#allocation110_spill] sm:$0xff] }
 0x425   :  { %8479 = vmatprep.subr.mxu1 %v15392_v60  ;;  %8509 = vmatprep.subr.mxu0 %v15393_v27  ;;  %v3013_v32 = vmul.f32 1.442695, %v2959_v30 }
 0x426   :  { %8480 = vmatpush3.msra.mxu1 %v15392_v60  ;;  %8510 = vmatpush3.msra.mxu0 %v15393_v27  ;;  %v12040_v29 = vpop.permute.xlu1 %4428  ;;  %v15399_v27 = vld [vmem:[#allocation74_spill] sm:$0xff]  ;;  %v15400_v60 = vld [vmem:[#allocation188_spill] sm:$0xff] }
 0x427   :  { %15394 = vst [vmem:[#allocation89_spill] sm:$0xff] %v12040_v29  ;;  %8481 = vmatprep.subr.mxu1 %v15395_v57  ;;  %8511 = vmatprep.subr.mxu0 %v15396_v6  ;;  %v2960_v29 = vsub.f32 %v2800_v58, %v15402_v26  ;;  %9367 = vpow2.f32 %v3013_v32  ;;  %v15410_v32 = vld [vmem:[#allocation111_spill] sm:$0xff] }
 0x428   :  { %5929 = vbcast.lane.b32.xlu1 %v15361_v37, 376  ;;  %5777 = vbcast.lane.b32.xlu0 %v15389_v41, 360  ;;  %v15401_v37 = vld [vmem:[#allocation190_spill] sm:$0xff] }
 0x429   :  { %8482 = vmatpush3.msra.mxu1 %v15395_v57  ;;  %8512 = vmatpush3.msra.mxu0 %v15396_v6  ;;  %v2805_v31 = vmul.f32 %v15401_v37, %v15400_v60  ;;  %v15405_v6 = vld [vmem:[#allocation76_spill] sm:$0xff]  ;;  %v9358_v37 = vpop.eup %9357  ;;  %v3015_v58 = vmul.f32 1.442695, %v2960_v29  ;;  %v15412_v29 = vld [vmem:[#allocation129_spill] sm:$0xff]  ;;  %v15421_v57 = vld [vmem:[#allocation107_spill] sm:$0xff] }
 0x42a   :  { %8483 = vmatprep.subr.mxu1 %v15398_v16  ;;  %8513 = vmatprep.subr.mxu0 %v15399_v27  ;;  %v9360_v26 = vpop.eup %9359 }
 0x42b   :  { %8484 = vmatpush3.msra.mxu1 %v15398_v16  ;;  %8514 = vmatpush3.msra.mxu0 %v15399_v27  ;;  %v2965_v30 = vsub.f32 %v2805_v31, %v11753_v24  ;;  %v15406_v27 = vld [vmem:[#allocation146_spill] sm:$0xff]  ;;  %v12069_v16 = vpop.permute.xlu0 %4432  ;;  %9369 = vpow2.f32 %v3015_v58  ;;  %v15415_v58 = vld [vmem:[#allocation79_spill] sm:$0xff] }
 0x42c   :  { %8485 = vmatprep.subr.mxu1 %v15403_v51  ;;  %8515 = vmatprep.subr.mxu0 %v15404_v9  ;;  %v12061_v36 = vpop.permute.xlu1 %4260  ;;  %15407 = vst [vmem:[#allocation157_spill] sm:$0xff] %v12069_v16  ;;  %v15409_v31 = vld [vmem:[#allocation82_spill] sm:$0xff]  ;;  %v15422_v16 = vld [vmem:[#allocation127_spill] sm:$0xff] }
 0x42d   :  { %5789 = vbcast.lane.b32.xlu1 %v15405_v6, 352  ;;  %5793 = vbcast.lane.b32.xlu0 %v15405_v6, 360  ;;  %v3025_v24 = vmul.f32 1.442695, %v2965_v30  ;;  %v15413_v30 = vld [vmem:[#allocation68_spill] sm:$0xff] }
 0x42e   :  { %8486 = vmatpush3.msra.mxu1 %v15403_v51  ;;  %8516 = vmatpush3.msra.mxu0 %v15404_v9  ;;  %v15416_v51 = vld [vmem:[#allocation109_spill] sm:$0xff] }
 0x42f   :  { %8488 = vmatmul.mubr.f32.vlgmr.msra.gmra.mxu1 %v9358_v37  ;;  %8517 = vmatprep.subr.mxu0 %v15406_v27  ;;  %v9362_v37 = vpop.eup %9361  ;;  %9371 = vpow2.f32 %v3025_v24  ;;  %v15417_v24 = vld [vmem:[#allocation130_spill] sm:$0xff] }
 0x430   :  { %8531 = vmatprep.subr.mxu1 %v15408_v56  ;;  %8490 = vmatprep.mubr.f32.mxu1 %v9360_v26  ;;  %v12083_v26 = vpop.permute.xlu0 %4264 }
 0x431   :  { %8518 = vmatpush3.msra.mxu0 %v15406_v27  ;;  %8532 = vmatpush3.msra.mxu1 %v15408_v56  ;;  %v9364_v56 = vpop.eup %9363  ;;  %v15414_v27 = vld [vmem:[#allocation108_spill] sm:$0xff] }
 0x432   :  { %8519 = vmatprep.subr.mxu0 %v15409_v31  ;;  %8533 = vmatprep.subr.mxu1 %v15410_v32  ;;  %v12076_v9 = vpop.permute.xlu1 %4276 }
 0x433   :  { %15411 = vst [vmem:[#allocation156_spill] sm:$0xff] %v12076_v9  ;;  %5933 = vbcast.lane.b32.xlu1 %v15412_v29, 352  ;;  %5937 = vbcast.lane.b32.xlu0 %v15412_v29, 360 }
 0x434   :  { %8520 = vmatpush3.msra.mxu0 %v15409_v31  ;;  %8534 = vmatpush3.msra.mxu1 %v15410_v32 }
 0x435   :  { %8491 = vmatmul.mubr.f32.gmra.mxu1 %v9362_v37  ;;  %8521 = vmatprep.subr.mxu0 %v15413_v30  ;;  %v9366_v37 = vpop.eup %9365 }
 0x436   :  { %8535 = vmatprep.subr.mxu1 %v15414_v27  ;;  %8522 = vmatpush3.msra.mxu0 %v15413_v30  ;;  %v9368_v32 = vpop.eup %9367  ;;  %v15418_v30 = vld [vmem:[#allocation106_spill] sm:$0xff] }
 0x437   :  { %8536 = vmatpush3.msra.mxu1 %v15414_v27  ;;  %8563 = vmatprep.mubr.f32.mxu1 %v9364_v56  ;;  %v12090_v31 = vpop.permute.xlu1 %4420  ;;  %v12097_v56 = vpop.permute.xlu0 %4280  ;;  %v15420_v27 = vld [vmem:[#allocation126_spill] sm:$0xff] }
 0x438   :  { %8523 = vmatprep.subr.mxu0 %v15415_v58  ;;  %8537 = vmatprep.subr.mxu1 %v15416_v51  ;;  %15419 = vst [vmem:[#allocation94_spill] sm:$0xff] %v12097_v56  ;;  %v15427_v56 = vld [vmem:[#allocation64_spill] sm:$0xff] }
 0x439   :  { %5949 = vbcast.lane.b32.xlu1 %v15417_v24, 352  ;;  %5953 = vbcast.lane.b32.xlu0 %v15417_v24, 360 }
 0x43a   :  { %8524 = vmatpush3.msra.mxu0 %v15415_v58  ;;  %8538 = vmatpush3.msra.mxu1 %v15416_v51  ;;  %v15426_v51 = vld [vmem:[#allocation124_spill] sm:$0xff] }
 0x43b   :  { %8526 = vmatmul.mubr.f32.vlgmr.msra.gmra.mxu0 %v9366_v37  ;;  %8539 = vmatprep.subr.mxu1 %v15418_v30  ;;  %v9370_v37 = vpop.eup %9369 }
 0x43c   :  { %8569 = vmatprep.subr.mxu0 %v15420_v27  ;;  %8528 = vmatprep.mubr.f32.mxu0 %v9368_v32  ;;  %v12104_v58 = vpop.permute.xlu1 %4436  ;;  %v15424_v32 = vld [vmem:[#allocation104_spill] sm:$0xff] }
 0x43d   :  { %8540 = vmatpush3.msra.mxu1 %v15418_v30  ;;  %8570 = vmatpush3.msra.mxu0 %v15420_v27  ;;  %15423 = vst [vmem:[#allocation184_spill] sm:$0xff] %v12104_v58  ;;  %v12111_v30 = vpop.permute.xlu0 %4424  ;;  %v9372_v27 = vpop.eup %9371  ;;  %v2802_v58 = vmul.f32 %v15427_v56, %v15382_v12 }
 0x43e   :  { %8541 = vmatprep.subr.mxu1 %v15421_v57  ;;  %8571 = vmatprep.subr.mxu0 %v15422_v16  ;;  %15425 = vst [vmem:[#allocation75_spill] sm:$0xff] %v12111_v30 }
 0x43f   :  { %5781 = vbcast.lane.b32.xlu1 %v15389_v41, 368  ;;  %5785 = vbcast.lane.b32.xlu0 %v15389_v41, 376  ;;  %v15428_v41 = vld [vmem:[#allocation189_spill] sm:$0xff]  ;;  %v2962_v30 = vsub.f32 %v2802_v58, %v15431_v48 }
 0x440   :  { %8542 = vmatpush3.msra.mxu1 %v15421_v57  ;;  %8572 = vmatpush3.msra.mxu0 %v15422_v16  ;;  %v2803_v57 = vmul.f32 %v15428_v41, %v15382_v12  ;;  %v15429_v16 = vld [vmem:[#allocation105_spill] sm:$0xff]  ;;  %v15433_v41 = vld [vmem:[#allocation144_spill] sm:$0xff] }
 0x441   :  { %8529 = vmatmul.mubr.f32.gmra.mxu0 %v9370_v37  ;;  %8543 = vmatprep.subr.mxu1 %v15424_v32  ;;  %v15430_v37 = vld [vmem:[#allocation125_spill] sm:$0xff] }
 0x442   :  { %8573 = vmatprep.subr.mxu0 %v15426_v51  ;;  %8544 = vmatpush3.msra.mxu1 %v15424_v32  ;;  %v12122_v9 = vpop.permute.xlu1 %4440  ;;  %v2963_v56 = vsub.f32 %v2803_v57, %v11731_v8  ;;  %v15434_v48 = vld [vmem:[#allocation141_spill] sm:$0xff]  ;;  %v15435_v32 = vld [vmem:[#allocation102_spill] sm:$0xff] }
 0x443   :  { %8574 = vmatpush3.msra.mxu0 %v15426_v51  ;;  %8601 = vmatprep.mubr.f32.mxu0 %v9372_v27  ;;  %v15432_v27 = vld [vmem:[#allocation143_spill] sm:$0xff]  ;;  %v12132_v51 = vpop.permute.xlu0 %4284  ;;  %v2804_v58 = vmul.f32 %v15434_v48, %v15382_v12  ;;  %v15436_v8 = vld [vmem:[#allocation122_spill] sm:$0xff] }
 0x444   :  { %8545 = vmatprep.subr.mxu1 %v15429_v16  ;;  %8575 = vmatprep.subr.mxu0 %v15430_v37  ;;  %v3021_v57 = vmul.f32 1.442695, %v2963_v56  ;;  %v15438_v48 = vld [vmem:[#allocation123_spill] sm:$0xff] }
 0x445   :  { %5797 = vbcast.lane.b32.xlu1 %v15405_v6, 368  ;;  %5801 = vbcast.lane.b32.xlu0 %v15405_v6, 376  ;;  %v3019_v6 = vmul.f32 1.442695, %v2962_v30  ;;  %v15437_v30 = vld [vmem:[#allocation103_spill] sm:$0xff] }
 0x446   :  { %8546 = vmatpush3.msra.mxu1 %v15429_v16  ;;  %8576 = vmatpush3.msra.mxu0 %v15430_v37  ;;  %v2964_v16 = vsub.f32 %v2804_v58, %v11729_v40  ;;  %v15440_v40 = vld [vmem:[#allocation145_spill] sm:$0xff]  ;;  %v15442_v58 = vld [vmem:[#allocation71_spill] sm:$0xff] }
 0x447   :  { %8547 = vmatprep.subr.mxu1 %v15432_v27  ;;  %8577 = vmatprep.subr.mxu0 %v15433_v41  ;;  %v12142_v37 = vpop.permute.xlu1 %4300  ;;  %9373 = vpow2.f32 %v3019_v6  ;;  %v15443_v6 = vld [vmem:[#allocation81_spill] sm:$0xff] }
 0x448   :  { %8548 = vmatpush3.msra.mxu1 %v15432_v27  ;;  %8578 = vmatpush3.msra.mxu0 %v15433_v41  ;;  %v4330_v41 = vmul.f32 %v11796_v47, %v15273_v62  ;;  %9375 = vpow2.f32 %v3021_v57  ;;  %v15441_v47 = vld [vmem:[#allocation100_spill] sm:$0xff] }
 0x449   :  { %8549 = vmatprep.subr.mxu1 %v15435_v32  ;;  %8579 = vmatprep.subr.mxu0 %v15436_v8 }
 0x44a   :  { %5941 = vbcast.lane.b32.xlu1 %v15412_v29, 368  ;;  %5945 = vbcast.lane.b32.xlu0 %v15412_v29, 376  ;;  %v4490_v56 = vsub.f32 %v4330_v41, %v11810_v52  ;;  %v12154_v29 = vpop.permute.xlu0 %4288  ;;  %v15444_v52 = vld [vmem:[#allocation192_spill] sm:$0xff] }
 0x44b   :  { %8550 = vmatpush3.msra.mxu1 %v15435_v32  ;;  %8580 = vmatpush3.msra.mxu0 %v15436_v8  ;;  %15439 = vst [vmem:[#allocation182_spill] sm:$0xff] %v12154_v29  ;;  %v2806_v8 = vmul.f32 %v15442_v58, %v15400_v60  ;;  %v3023_v32 = vmul.f32 1.442695, %v2964_v16  ;;  %v2807_v41 = vmul.f32 %v15444_v52, %v15400_v60  ;;  %v15446_v29 = vld [vmem:[#allocation120_spill] sm:$0xff]  ;;  %v15447_v58 = vld [vmem:[#allocation101_spill] sm:$0xff] }
 0x44c   :  { %8551 = vmatprep.subr.mxu1 %v15437_v30  ;;  %8581 = vmatprep.subr.mxu0 %v15438_v48  ;;  %v4522_v27 = vmul.f32 1.442695, %v4490_v56  ;;  %v15448_v52 = vld [vmem:[#allocation121_spill] sm:$0xff] }
 0x44d   :  { %8552 = vmatpush3.msra.mxu1 %v15437_v30  ;;  %8582 = vmatpush3.msra.mxu0 %v15438_v48  ;;  %v12166_v57 = vpop.permute.xlu1 %4444  ;;  %v15445_v48 = vld [vmem:[#allocation151_spill] sm:$0xff]  ;;  %v2967_v16 = vsub.f32 %v2807_v41, %v11774_v55  ;;  %9377 = vpow2.f32 %v3023_v32  ;;  %v15451_v32 = vld [vmem:[#allocation97_spill] sm:$0xff]  ;;  %v15452_v41 = vld [vmem:[#allocation118_spill] sm:$0xff] }
 0x44e   :  { %8553 = vmatprep.subr.mxu1 %v15440_v40  ;;  %8583 = vmatprep.subr.mxu0 %v15441_v47  ;;  %v2966_v30 = vsub.f32 %v2806_v8, %v15445_v48  ;;  %v15450_v8 = vld [vmem:[#allocation191_spill] sm:$0xff]  ;;  %9379 = vpow2.f32 %v4522_v27  ;;  %v15453_v27 = vld [vmem:[#allocation148_spill] sm:$0xff] }
 0x44f   :  { %5957 = vbcast.lane.b32.xlu1 %v15417_v24, 368  ;;  %5805 = vbcast.lane.b32.xlu0 %v15443_v6, 352  ;;  %v2808_v48 = vmul.f32 %v15450_v8, %v15400_v60  ;;  %v3029_v55 = vmul.f32 1.442695, %v2967_v16  ;;  %v15455_v8 = vld [vmem:[#allocation85_spill] sm:$0xff] }
 0x450   :  { %8554 = vmatpush3.msra.mxu1 %v15440_v40  ;;  %8584 = vmatpush3.msra.mxu0 %v15441_v47  ;;  %v15449_v40 = vld [vmem:[#allocation147_spill] sm:$0xff]  ;;  %v12176_v47 = vpop.permute.xlu0 %4304  ;;  %v3027_v56 = vmul.f32 1.442695, %v2966_v30 }
 0x451   :  { %8555 = vmatprep.subr.mxu1 %v15446_v29  ;;  %8585 = vmatprep.subr.mxu0 %v15447_v58  ;;  %v15454_v30 = vld [vmem:[#allocation99_spill] sm:$0xff] }
 0x452   :  { %8556 = vmatpush3.msra.mxu1 %v15446_v29  ;;  %8586 = vmatpush3.msra.mxu0 %v15447_v58  ;;  %v4334_v29 = vmul.f32 %v11838_v17, %v10702_v10  ;;  %9381 = vpow2.f32 %v3027_v56  ;;  %v15457_v56 = vld [vmem:[#allocation13_spill] sm:$0xff] }
 0x453   :  { %8557 = vmatprep.subr.mxu1 %v15448_v52  ;;  %8587 = vmatprep.subr.mxu0 %v15449_v40  ;;  %v12186_v58 = vpop.permute.xlu1 %4460  ;;  %9383 = vpow2.f32 %v3029_v55  ;;  %v15458_v55 = vld [vmem:[#allocation116_spill] sm:$0xff] }
 0x454   :  { %5961 = vbcast.lane.b32.xlu1 %v15417_v24, 376  ;;  %5809 = vbcast.lane.b32.xlu0 %v15443_v6, 360  ;;  %v2968_v24 = vsub.f32 %v2808_v48, %v11772_v0  ;;  %v4494_v16 = vsub.f32 %v4334_v29, %v11886_v21  ;;  %v9374_v0 = vpop.eup %9373 }
 0x455   :  { %8558 = vmatpush3.msra.mxu1 %v15448_v52  ;;  %8588 = vmatpush3.msra.mxu0 %v15449_v40  ;;  %v12198_v40 = vpop.permute.xlu0 %4448  ;;  %v9376_v17 = vpop.eup %9375  ;;  %v15468_v52 = vld [vmem:[#allocation31_spill] sm:$0xff] }
 0x456   :  { %8559 = vmatprep.subr.mxu1 %v15451_v32  ;;  %8589 = vmatprep.subr.mxu0 %v15452_v41  ;;  %v3031_v48 = vmul.f32 1.442695, %v2968_v24  ;;  %v4530_v29 = vmul.f32 1.442695, %v4494_v16  ;;  %v15461_v16 = vld [vmem:[#allocation149_spill] sm:$0xff] }
 0x457   :  { %8560 = vmatpush3.msra.mxu1 %v15451_v32  ;;  %8590 = vmatpush3.msra.mxu0 %v15452_v41  ;;  %v15456_v41 = vld [vmem:[#allocation93_spill] sm:$0xff]  ;;  %v15464_v32 = vld [vmem:[#allocation16_spill] sm:$0xff] }
 0x458   :  { %8561 = vmatprep.subr.mxu1 %v15453_v27  ;;  %8591 = vmatprep.subr.mxu0 %v15454_v30  ;;  %9385 = vpow2.f32 %v3031_v48 }
 0x459   :  { %5821 = vbcast.lane.b32.xlu1 %v15455_v8, 352  ;;  %5825 = vbcast.lane.b32.xlu0 %v15455_v8, 360  ;;  %v12204_v21 = vpop.permute.xlu1 %4292  ;;  %v12212_v24 = vpop.permute.xlu0 %4464  ;;  %9387 = vpow2.f32 %v4530_v29 }
 0x45a   :  { %8562 = vmatpush3.msra.mxu1 %v15453_v27  ;;  %8592 = vmatpush3.msra.mxu0 %v15454_v30  ;;  %v15459_v27 = vld [vmem:[#allocation14_spill] sm:$0xff]  ;;  %v15460_v30 = vld [vmem:[#allocation131_spill] sm:$0xff] }
 0x45b   :  { %8564 = vmatmul.mubr.f32.vlgmr.msra.gmra.mxu1 %v9374_v0  ;;  %8593 = vmatprep.subr.mxu0 %v15456_v41  ;;  %v9378_v0 = vpop.eup %9377 }
 0x45c   :  { %8607 = vmatprep.subr.mxu1 %v15457_v56  ;;  %8566 = vmatprep.mubr.f32.mxu1 %v9376_v17  ;;  %v9380_v17 = vpop.eup %9379 }
 0x45d   :  { %8594 = vmatpush3.msra.mxu0 %v15456_v41  ;;  %8608 = vmatpush3.msra.mxu1 %v15457_v56  ;;  %v15462_v56 = vld [vmem:[#allocation15_spill] sm:$0xff]  ;;  %v15463_v41 = vld [vmem:[#allocation96_spill] sm:$0xff]  ;;  %v12226_v29 = vpop.permute.xlu0 %4296 }
 0x45e   :  { %8595 = vmatprep.subr.mxu0 %v15458_v55  ;;  %8609 = vmatprep.subr.mxu1 %v15459_v27 }
 0x45f   :  { %5965 = vbcast.lane.b32.xlu1 %v15460_v30, 352  ;;  %5969 = vbcast.lane.b32.xlu0 %v15460_v30, 360  ;;  %v12219_v48 = vpop.permute.xlu1 %4308 }
 0x460   :  { %8596 = vmatpush3.msra.mxu0 %v15458_v55  ;;  %8610 = vmatpush3.msra.mxu1 %v15459_v27  ;;  %v15465_v27 = vld [vmem:[#allocation17_spill] sm:$0xff]  ;;  %v15467_v55 = vld [vmem:[#allocation19_spill] sm:$0xff] }
 0x461   :  { %8567 = vmatmul.mubr.f32.gmra.mxu1 %v9378_v0  ;;  %8597 = vmatprep.subr.mxu0 %v15461_v16  ;;  %v9382_v0 = vpop.eup %9381 }
 0x462   :  { %8611 = vmatprep.subr.mxu1 %v15462_v56  ;;  %8598 = vmatpush3.msra.mxu0 %v15461_v16  ;;  %v9384_v16 = vpop.eup %9383 }
 0x463   :  { %8612 = vmatpush3.msra.mxu1 %v15462_v56  ;;  %8639 = vmatprep.mubr.f32.mxu1 %v9380_v17  ;;  %v15466_v17 = vld [vmem:[#allocation18_spill] sm:$0xff] }
 0x464   :  { %8599 = vmatprep.subr.mxu0 %v15463_v41  ;;  %8613 = vmatprep.subr.mxu1 %v15464_v32  ;;  %v12232_v56 = vpop.permute.xlu1 %4452 }
 0x465   :  { %5981 = vbcast.lane.b32.xlu1 %v10569_v25, 352  ;;  %5985 = vbcast.lane.b32.xlu0 %v10569_v25, 360 }
 0x466   :  { %8600 = vmatpush3.msra.mxu0 %v15463_v41  ;;  %8614 = vmatpush3.msra.mxu1 %v15464_v32  ;;  %v9386_v32 = vpop.eup %9385 }
 0x467   :  { %8602 = vmatmul.mubr.f32.vlgmr.msra.gmra.mxu0 %v9382_v0  ;;  %8615 = vmatprep.subr.mxu1 %v15465_v27  ;;  %v12240_v0 = vpop.permute.xlu0 %4312 }
 0x468   :  { %8645 = vmatprep.subr.mxu0 %v15466_v17  ;;  %8604 = vmatprep.mubr.f32.mxu0 %v9384_v16  ;;  %15469 = vst [vmem:[#allocation95_spill] sm:$0xff] %v12240_v0  ;;  %v15470_v16 = vld [vmem:[#allocation20_spill] sm:$0xff] }
 0x469   :  { %8616 = vmatpush3.msra.mxu1 %v15465_v27  ;;  %8646 = vmatpush3.msra.mxu0 %v15466_v17  ;;  %v9388_v27 = vpop.eup %9387  ;;  %v15471_v17 = vld [vmem:[#allocation32_spill] sm:$0xff]  ;;  %v12247_v41 = vpop.permute.xlu1 %4468 }
 0x46a   :  { %8617 = vmatprep.subr.mxu1 %v15467_v55  ;;  %8647 = vmatprep.subr.mxu0 %v15468_v52 }
 0x46b   :  { %5813 = vbcast.lane.b32.xlu1 %v15443_v6, 368  ;;  %5817 = vbcast.lane.b32.xlu0 %v15443_v6, 376  ;;  %v4331_v6 = vmul.f32 %v11794_v53, %v15273_v62 }
 0x46c   :  { %8618 = vmatpush3.msra.mxu1 %v15467_v55  ;;  %8648 = vmatpush3.msra.mxu0 %v15468_v52  ;;  %v4332_v55 = vmul.f32 %v11820_v3, %v15273_v62  ;;  %v15472_v52 = vld [vmem:[#allocation22_spill] sm:$0xff]  ;;  %v15475_v3 = vld [vmem:[#allocation35_spill] sm:$0xff] }
 0x46d   :  { %8605 = vmatmul.mubr.f32.gmra.mxu0 %v9386_v32  ;;  %8619 = vmatprep.subr.mxu1 %v15470_v16  ;;  %v15473_v32 = vld [vmem:[#allocation34_spill] sm:$0xff]  ;;  %v4491_v0 = vsub.f32 %v4331_v6, %v11808_v4 }
 0x46e   :  { %8649 = vmatprep.subr.mxu0 %v15471_v17  ;;  %8620 = vmatpush3.msra.mxu1 %v15470_v16  ;;  %v12259_v16 = vpop.permute.xlu0 %4456  ;;  %v4492_v53 = vsub.f32 %v4332_v55, %v11832_v23  ;;  %v12268_v4 = vpop.permute.xlu1 %4472  ;;  %v15477_v23 = vld [vmem:[#allocation36_spill] sm:$0xff] }
 0x46f   :  { %8650 = vmatpush3.msra.mxu0 %v15471_v17  ;;  %8677 = vmatprep.mubr.f32.mxu0 %v9388_v27  ;;  %v15474_v27 = vld [vmem:[#allocation23_spill] sm:$0xff]  ;;  %v4524_v6 = vmul.f32 1.442695, %v4491_v0  ;;  %v15476_v17 = vld [vmem:[#allocation24_spill] sm:$0xff] }
 0x470   :  { %8621 = vmatprep.subr.mxu1 %v15472_v52  ;;  %8651 = vmatprep.subr.mxu0 %v15473_v32  ;;  %v4526_v55 = vmul.f32 1.442695, %v4492_v53 }
 0x471   :  { %5829 = vbcast.lane.b32.xlu1 %v15455_v8, 368  ;;  %5833 = vbcast.lane.b32.xlu0 %v15455_v8, 376  ;;  %v4333_v8 = vmul.f32 %v11824_v59, %v15273_v62  ;;  %v15478_v59 = vld [vmem:[#allocation25_spill] sm:$0xff]  ;;  %9389 = vpow2.f32 %v4524_v6 }
 0x472   :  { %8622 = vmatpush3.msra.mxu1 %v15472_v52  ;;  %8652 = vmatpush3.msra.mxu0 %v15473_v32  ;;  %v12281_v0 = vpop.permute.xlu0 %4316  ;;  %9391 = vpow2.f32 %v4526_v55 }
 0x473   :  { %8623 = vmatprep.subr.mxu1 %v15474_v27  ;;  %8653 = vmatprep.subr.mxu0 %v15475_v3  ;;  %v4493_v32 = vsub.f32 %v4333_v8, %v11845_v18  ;;  %v12288_v18 = vpop.f32.mrf.mxu1  ;;  %v12292_v8 = vpop.permute.xlu1 %5757 }
 0x474   :  { %8624 = vmatpush3.msra.mxu1 %v15474_v27  ;;  %8654 = vmatpush3.msra.mxu0 %v15475_v3  ;;  %v4338_v3 = vmul.f32 %v11864_v15, %v10717_v44  ;;  %v15479_v27 = vld [vmem:[#allocation38_spill] sm:$0xff]  ;;  %9393 = vrcp.f32 %v12288_v18 }
 0x475   :  { %8625 = vmatprep.subr.mxu1 %v15476_v17  ;;  %8655 = vmatprep.subr.mxu0 %v15477_v23  ;;  %v15480_v15 = vld [vmem:[#allocation26_spill] sm:$0xff] }
 0x476   :  { %5973 = vbcast.lane.b32.xlu1 %v15460_v30, 368  ;;  %5977 = vbcast.lane.b32.xlu0 %v15460_v30, 376  ;;  %v4498_v53 = vsub.f32 %v4338_v3, %v11908_v5  ;;  %v15481_v30 = vld [vmem:[#allocation40_spill] sm:$0xff]  ;;  %v4336_v5 = vmul.f32 %v11930_v46, %v10702_v10  ;;  %v12311_v46 = vpop.f32.mrf.mxu1 }
 0x477   :  { %8626 = vmatpush3.msra.mxu1 %v15476_v17  ;;  %8656 = vmatpush3.msra.mxu0 %v15477_v23  ;;  %v4528_v23 = vmul.f32 1.442695, %v4493_v32  ;;  %v4335_v17 = vmul.f32 %v11857_v11, %v10702_v10  ;;  %v15482_v32 = vld [vmem:[#allocation41_spill] sm:$0xff]  ;;  %v12306_v11 = vpop.permute.xlu0 %4320  ;;  %15483 = vst [vmem:[#allocation186_spill] sm:$0xff] %v12311_v46 }
 0x478   :  { %8627 = vmatprep.subr.mxu1 %v15478_v59  ;;  %8657 = vmatprep.subr.mxu0 %v15479_v27  ;;  %v4538_v6 = vmul.f32 1.442695, %v4498_v53  ;;  %v4496_v55 = vsub.f32 %v4336_v5, %v11956_v14  ;;  %v4337_v5 = vmul.f32 %v11938_v20, %v10702_v10 }
 0x479   :  { %8628 = vmatpush3.msra.mxu1 %v15478_v59  ;;  %8658 = vmatpush3.msra.mxu0 %v15479_v27  ;;  %v4495_v3 = vsub.f32 %v4335_v17, %v11901_v61  ;;  %9395 = vpow2.f32 %v4528_v23  ;;  %v15484_v61 = vld [vmem:[#allocation43_spill] sm:$0xff]  ;;  %v12315_v17 = vpop.f32.mrf.mxu0  ;;  %v12319_v53 = vpop.permute.xlu1 %5761 }
 0x47a   :  { %8629 = vmatprep.subr.mxu1 %v15480_v15  ;;  %8659 = vmatprep.subr.mxu0 %v15481_v30  ;;  %15485 = vst [vmem:[#allocation67_spill] sm:$0xff] %v12315_v17  ;;  %9397 = vpow2.f32 %v4538_v6  ;;  %v4534_v23 = vmul.f32 1.442695, %v4496_v55  ;;  %v12338_v6 = vpop.f32.mrf.mxu1 }
 0x47b   :  { %5989 = vbcast.lane.b32.xlu1 %v10569_v25, 368  ;;  %5837 = vbcast.lane.b32.xlu0 %v15313_v28, 352  ;;  %v4532_v14 = vmul.f32 1.442695, %v4495_v3  ;;  %9399 = vrcp.f32 %v12311_v46  ;;  %v4342_v3 = vmul.f32 %v11984_v1, %v10747_v35  ;;  %v12334_v20 = vpop.permute.xlu0 %4476  ;;  %15487 = vst [vmem:[#allocation128_spill] sm:$0xff] %v12338_v6  ;;  %v12343_v55 = vpop.f32.mrf.mxu0 }
 0x47c   :  { %8630 = vmatpush3.msra.mxu1 %v15480_v15  ;;  %8660 = vmatpush3.msra.mxu0 %v15481_v30  ;;  %9401 = vrcp.f32 %v12315_v17  ;;  %15488 = vst [vmem:[#allocation183_spill] sm:$0xff] %v12343_v55  ;;  %v15521_v15 = vld [vmem:[#allocation134_spill] sm:$0xff] }
 0x47d   :  { %8631 = vmatprep.subr.mxu1 %v15315_v49  ;;  %8661 = vmatprep.subr.mxu0 %v15482_v32  ;;  %9403 = vpow2.f32 %v4532_v14 }
 0x47e   :  { %8632 = vmatpush3.msra.mxu1 %v15315_v49  ;;  %8662 = vmatpush3.msra.mxu0 %v15482_v32  ;;  %v15486_v32 = vld [vmem:[#allocation44_spill] sm:$0xff]  ;;  %v9390_v1 = vpop.eup %9389  ;;  %9405 = vpow2.f32 %v4534_v23 }
 0x47f   :  { %8633 = vmatprep.subr.mxu1 %v15317_v63  ;;  %8663 = vmatprep.subr.mxu0 %v15484_v61  ;;  %v9392_v46 = vpop.eup %9391  ;;  %9407 = vrcp.f32 %v12338_v6  ;;  %v15492_v6 = vld [vmem:[#allocation49_spill] sm:$0xff] }
 0x480   :  { %5993 = vbcast.lane.b32.xlu1 %v10569_v25, 376  ;;  %5841 = vbcast.lane.b32.xlu0 %v15313_v28, 360  ;;  %v4497_v25 = vsub.f32 %v4337_v5, %v11966_v43  ;;  %v4502_v43 = vsub.f32 %v4342_v3, %v12020_v39  ;;  %v12347_v5 = vpop.permute.xlu1 %5917  ;;  %v15489_v39 = vld [vmem:[#allocation37_spill] sm:$0xff]  ;;  %9409 = vrcp.f32 %v12343_v55  ;;  %v12355_v3 = vpop.permute.xlu0 %4480  ;;  %v15503_v55 = vld [vmem:[#allocation168_spill] sm:$0xff] }
 0x481   :  { %8634 = vmatpush3.msra.mxu1 %v15317_v63  ;;  %8664 = vmatpush3.msra.mxu0 %v15484_v61  ;;  %v15512_v63 = vld [vmem:[#allocation150_spill] sm:$0xff] }
 0x482   :  { %8635 = vmatprep.subr.mxu1 %v15320_v34  ;;  %8665 = vmatprep.subr.mxu0 %v15486_v32  ;;  %v4536_v14 = vmul.f32 1.442695, %v4497_v25  ;;  %v4546_v23 = vmul.f32 1.442695, %v4502_v43  ;;  %v12359_v25 = vpop.f32.mrf.mxu1  ;;  %v12363_v43 = vpop.f32.mrf.mxu0 }
 0x483   :  { %8636 = vmatpush3.msra.mxu1 %v15320_v34  ;;  %8666 = vmatpush3.msra.mxu0 %v15486_v32  ;;  %15490 = vst [vmem:[#allocation84_spill] sm:$0xff] %v12359_v25  ;;  %15491 = vst [vmem:[#allocation119_spill] sm:$0xff] %v12363_v43  ;;  %v15504_v32 = vld [vmem:[#allocation169_spill] sm:$0xff]  ;;  %v15505_v34 = vld [vmem:[#allocation115_spill] sm:$0xff] }
 0x484   :  { %8637 = vmatprep.subr.mxu1 %v15322_v54  ;;  %8667 = vmatprep.subr.mxu0 %v15323_v2  ;;  %9411 = vpow2.f32 %v4536_v14 }
 0x485   :  { %5853 = vbcast.lane.b32.xlu1 %v15324_v7, 352  ;;  %5857 = vbcast.lane.b32.xlu0 %v15324_v7, 360  ;;  %9413 = vpow2.f32 %v4546_v23  ;;  %v15493_v23 = vld [vmem:[#allocation162_spill] sm:$0xff] }
 0x486   :  { %8638 = vmatpush3.msra.mxu1 %v15322_v54  ;;  %8668 = vmatpush3.msra.mxu0 %v15323_v2  ;;  %v9394_v2 = vpop.eup %9393  ;;  %9415 = vrcp.f32 %v12359_v25 }
 0x487   :  { %8640 = vmatmul.mubr.f32.vlgmr.msra.gmra.mxu1 %v9390_v1  ;;  %8669 = vmatprep.subr.mxu0 %v15325_v38  ;;  %v12367_v1 = vpop.permute.xlu1 %4324  ;;  %9417 = vrcp.f32 %v12363_v43 }
 0x488   :  { %8683 = vmatprep.subr.mxu1 %v15489_v39  ;;  %8642 = vmatprep.mubr.f32.mxu1 %v9392_v46  ;;  %v9396_v46 = vpop.eup %9395 }
 0x489   :  { %8670 = vmatpush3.msra.mxu0 %v15325_v38  ;;  %8684 = vmatpush3.msra.mxu1 %v15489_v39  ;;  %v9398_v14 = vpop.eup %9397 }
 0x48a   :  { %8671 = vmatprep.subr.mxu0 %v15326_v42  ;;  %8685 = vmatprep.subr.mxu1 %v10736_v22 }
 0x48b   :  { %5997 = vbcast.lane.b32.xlu1 %v10582_v13, 352  ;;  %2220 = vrot.lane.b32.xlu0 %v9394_v2, %s9840_s0  ;;  %v9400_v2 = vpop.eup %9399  ;;  %v12385_v43 = vpop.permute.xlu1 %5765 }
 0x48c   :  { %8672 = vmatpush3.msra.mxu0 %v15326_v42  ;;  %8686 = vmatpush3.msra.mxu1 %v10736_v22  ;;  %v12375_v22 = vpop.permute.xlu0 %5921  ;;  %v9402_v42 = vpop.eup %9401 }
 0x48d   :  { %8643 = vmatmul.mubr.f32.gmra.mxu1 %v9396_v46  ;;  %8673 = vmatprep.subr.mxu0 %v15492_v6  ;;  %v12379_v46 = vpop.f32.mrf.mxu0  ;;  %v9404_v25 = vpop.eup %9403 }
 0x48e   :  { %8687 = vmatprep.subr.mxu1 %v10744_v50  ;;  %8674 = vmatpush3.msra.mxu0 %v15492_v6  ;;  %15494 = vst [vmem:[#allocation59_spill] sm:$0xff] %v12379_v46  ;;  %9419 = vrcp.f32 %v12379_v46  ;;  %v15496_v6 = vld [vmem:[#allocation53_spill] sm:$0xff]  ;;  %v15500_v46 = vld [vmem:[#allocation167_spill] sm:$0xff] }
 0x48f   :  { %8688 = vmatpush3.msra.mxu1 %v10744_v50  ;;  %8715 = vmatprep.mubr.f32.mxu1 %v9398_v14  ;;  %v9406_v14 = vpop.eup %9405  ;;  %v15495_v50 = vld [vmem:[#allocation163_spill] sm:$0xff] }
 0x490   :  { %8675 = vmatprep.subr.mxu0 %v15328_v45  ;;  %8689 = vmatprep.subr.mxu1 %v15493_v23  ;;  %v9408_v39 = vpop.eup %9407 }
 0x491   :  { %2218 = vrot.lane.b32.xlu1 %v9400_v2, %s9840_s0  ;;  %2228 = vrot.lane.b32.xlu0 %v9402_v42, %s9840_s0  ;;  %v12392_v42 = vpop.permute.xlu0 %4328  ;;  %v9410_v2 = vpop.eup %9409 }
 0x492   :  { %8676 = vmatpush3.msra.mxu0 %v15328_v45  ;;  %8690 = vmatpush3.msra.mxu1 %v15493_v23  ;;  %v15497_v23 = vld [vmem:[#allocation164_spill] sm:$0xff]  ;;  %v15498_v45 = vld [vmem:[#allocation165_spill] sm:$0xff] }
 0x493   :  { %8678 = vmatmul.mubr.f32.vlgmr.msra.gmra.mxu0 %v9404_v25  ;;  %8691 = vmatprep.subr.mxu1 %v15495_v50  ;;  %v9412_v25 = vpop.eup %9411 }
 0x494   :  { %8721 = vmatprep.subr.mxu0 %v15496_v6  ;;  %8680 = vmatprep.mubr.f32.mxu0 %v9406_v14  ;;  %v12400_v14 = vpop.permute.xlu1 %5769 }
 0x495   :  { %8692 = vmatpush3.msra.mxu1 %v15495_v50  ;;  %8722 = vmatpush3.msra.mxu0 %v15496_v6  ;;  %v15499_v6 = vld [vmem:[#allocation166_spill] sm:$0xff]  ;;  %v9414_v50 = vpop.eup %9413 }
 0x496   :  { %8693 = vmatprep.subr.mxu1 %v15497_v23  ;;  %8723 = vmatprep.subr.mxu0 %v15498_v45  ;;  %v9416_v38 = vpop.eup %9415 }
 0x497   :  { %2224 = vrot.lane.b32.xlu0 %v9408_v39, %s9840_s0  ;;  %2226 = vrot.lane.b32.xlu1 %v9410_v2, %s9840_s0  ;;  %v15501_v39 = vld [vmem:[#allocation114_spill] sm:$0xff]  ;;  %v12408_v2 = vpop.permute.xlu0 %4484 }
 0x498   :  { %8694 = vmatpush3.msra.mxu1 %v15497_v23  ;;  %8724 = vmatpush3.msra.mxu0 %v15498_v45  ;;  %v4339_v54 = vmul.f32 %v15501_v39, %v10717_v44  ;;  %v9418_v45 = vpop.eup %9417  ;;  %v15502_v23 = vld [vmem:[#allocation112_spill] sm:$0xff]  ;;  %v15506_v39 = vld [vmem:[#allocation155_spill] sm:$0xff] }
 0x499   :  { %8681 = vmatmul.mubr.f32.gmra.mxu0 %v9412_v25  ;;  %8695 = vmatprep.subr.mxu1 %v15499_v6  ;;  %v4340_v25 = vmul.f32 %v15502_v23, %v10717_v44  ;;  %v15508_v23 = vld [vmem:[#allocation171_spill] sm:$0xff] }
 0x49a   :  { %8725 = vmatprep.subr.mxu0 %v15500_v46  ;;  %8696 = vmatpush3.msra.mxu1 %v15499_v6  ;;  %v4499_v61 = vsub.f32 %v4339_v54, %v15505_v34 }
 0x49b   :  { %8726 = vmatpush3.msra.mxu0 %v15500_v46  ;;  %8753 = vmatprep.mubr.f32.mxu0 %v9414_v50  ;;  %v4500_v6 = vsub.f32 %v4340_v25, %v15506_v39  ;;  %v12420_v50 = vpop.permute.xlu1 %5925  ;;  %v15507_v46 = vld [vmem:[#allocation170_spill] sm:$0xff]  ;;  %v9420_v34 = vpop.eup %9419  ;;  %v15510_v25 = vld [vmem:[#allocation172_spill] sm:$0xff]  ;;  %v15511_v39 = vld [vmem:[#allocation173_spill] sm:$0xff] }
 0x49c   :  { %8697 = vmatprep.subr.mxu1 %v15503_v55  ;;  %8727 = vmatprep.subr.mxu0 %v15504_v32  ;;  %v4540_v54 = vmul.f32 1.442695, %v4499_v61  ;;  %v15514_v61 = vld [vmem:[#allocation174_spill] sm:$0xff] }
 0x49d   :  { %2222 = vrot.lane.b32.xlu1 %v9416_v38, %s9840_s0  ;;  %2232 = vrot.lane.b32.xlu0 %v9418_v45, %s9840_s0  ;;  %v15509_v38 = vld [vmem:[#allocation113_spill] sm:$0xff] }
 0x49e   :  { %8698 = vmatpush3.msra.mxu1 %v15503_v55  ;;  %8728 = vmatpush3.msra.mxu0 %v15504_v32  ;;  %v4341_v45 = vmul.f32 %v15509_v38, %v10717_v44  ;;  %v12430_v32 = vpop.permute.xlu0 %4488  ;;  %v4542_v55 = vmul.f32 1.442695, %v4500_v6  ;;  %v15515_v38 = vld [vmem:[#allocation175_spill] sm:$0xff]  ;;  %9421 = vpow2.f32 %v4540_v54  ;;  %v15516_v6 = vld [vmem:[#allocation89_spill] sm:$0xff]  ;;  %v4344_v54 = vmul.f32 %v12061_v36, %v10747_v35 }
 0x49f   :  { %8699 = vmatprep.subr.mxu1 %v15507_v46  ;;  %8729 = vmatprep.subr.mxu0 %v15508_v23  ;;  %v12441_v49 = vpop.permute.xlu1 %5929 }
 0x4a0   :  { %8700 = vmatpush3.msra.mxu1 %v15507_v46  ;;  %8730 = vmatpush3.msra.mxu0 %v15508_v23  ;;  %v4501_v46 = vsub.f32 %v4341_v45, %v15512_v63  ;;  %v15513_v23 = vld [vmem:[#allocation153_spill] sm:$0xff]  ;;  %9423 = vpow2.f32 %v4542_v55  ;;  %v12446_v63 = vpop.f32.mrf.mxu1 }
 0x4a1   :  { %8701 = vmatprep.subr.mxu1 %v15510_v25  ;;  %8731 = vmatprep.subr.mxu0 %v15511_v39  ;;  %v4346_v17 = vmul.f32 %v15513_v23, %v10878_v33  ;;  %15517 = vst [vmem:[#allocation185_spill] sm:$0xff] %v12446_v63  ;;  %v15518_v23 = vld [vmem:[#allocation176_spill] sm:$0xff]  ;;  %9425 = vrcp.f32 %v12446_v63  ;;  %v15528_v63 = vld [vmem:[#allocation21_spill] sm:$0xff] }
 0x4a2   :  { %6001 = vbcast.lane.b32.xlu0 %v10582_v13, 360  ;;  %2230 = vrot.lane.b32.xlu1 %v9420_v34, %s9840_s0  ;;  %v15519_v34 = vld [vmem:[#allocation177_spill] sm:$0xff]  ;;  %v4544_v45 = vmul.f32 1.442695, %v4501_v46  ;;  %v15522_v46 = vld [vmem:[#allocation178_spill] sm:$0xff] }
 0x4a3   :  { %8702 = vmatpush3.msra.mxu1 %v15510_v25  ;;  %8732 = vmatpush3.msra.mxu0 %v15511_v39  ;;  %v4506_v30 = vsub.f32 %v4346_v17, %v15516_v6  ;;  %v15520_v39 = vld [vmem:[#allocation152_spill] sm:$0xff]  ;;  %v12454_v17 = vpop.permute.xlu0 %5773  ;;  %v12467_v36 = vpop.permute.xlu1 %5789 }
 0x4a4   :  { %8703 = vmatprep.subr.mxu1 %v15514_v61  ;;  %8733 = vmatprep.subr.mxu0 %v15515_v38  ;;  %v4343_v25 = vmul.f32 %v15520_v39, %v10747_v35  ;;  %v15523_v39 = vld [vmem:[#allocation179_spill] sm:$0xff]  ;;  %9427 = vpow2.f32 %v4544_v45 }
 0x4a5   :  { %8704 = vmatpush3.msra.mxu1 %v15514_v61  ;;  %8734 = vmatpush3.msra.mxu0 %v15515_v38  ;;  %v4554_v6 = vmul.f32 1.442695, %v4506_v30  ;;  %v4504_v38 = vsub.f32 %v4344_v54, %v12090_v31  ;;  %v12473_v30 = vpop.f32.mrf.mxu0 }
 0x4a6   :  { %8705 = vmatprep.subr.mxu1 %v15518_v23  ;;  %8735 = vmatprep.subr.mxu0 %v15519_v34  ;;  %v4503_v55 = vsub.f32 %v4343_v25, %v12050_v19  ;;  %v15526_v19 = vld [vmem:[#allocation57_spill] sm:$0xff]  ;;  %15527 = vst [vmem:[#allocation136_spill] sm:$0xff] %v12473_v30  ;;  %v4345_v25 = vmul.f32 %v12083_v26, %v10747_v35 }
 0x4a7   :  { %6017 = vbcast.lane.b32.xlu0 %v15521_v15, 360  ;;  %6013 = vbcast.lane.b32.xlu1 %v15521_v15, 352  ;;  %9429 = vpow2.f32 %v4554_v6  ;;  %v12481_v45 = vpop.permute.xlu0 %5777  ;;  %v4550_v54 = vmul.f32 1.442695, %v4504_v38  ;;  %v15532_v6 = vld [vmem:[#allocation132_spill] sm:$0xff]  ;;  %v12494_v38 = vpop.permute.xlu1 %5933 }
 0x4a8   :  { %8706 = vmatpush3.msra.mxu1 %v15518_v23  ;;  %8736 = vmatpush3.msra.mxu0 %v15519_v34  ;;  %v12469_v23 = vpop.f32.mrf.mxu1  ;;  %v15525_v34 = vld [vmem:[#allocation180_spill] sm:$0xff]  ;;  %v4548_v31 = vmul.f32 1.442695, %v4503_v55  ;;  %v15531_v55 = vld [vmem:[#allocation181_spill] sm:$0xff] }
 0x4a9   :  { %8707 = vmatprep.subr.mxu1 %v15522_v46  ;;  %8737 = vmatprep.subr.mxu0 %v15523_v39  ;;  %15524 = vst [vmem:[#allocation86_spill] sm:$0xff] %v12469_v23  ;;  %9431 = vrcp.f32 %v12469_v23  ;;  %v4350_v26 = vmul.f32 %v12132_v51, %v15531_v55 }
 0x4aa   :  { %8708 = vmatpush3.msra.mxu1 %v15522_v46  ;;  %8738 = vmatpush3.msra.mxu0 %v15523_v39  ;;  %v15529_v39 = vld [vmem:[#allocation45_spill] sm:$0xff]  ;;  %v15530_v46 = vld [vmem:[#allocation75_spill] sm:$0xff]  ;;  %9433 = vrcp.f32 %v12473_v30 }
 0x4ab   :  { %8709 = vmatprep.subr.mxu1 %v15525_v34  ;;  %8739 = vmatprep.subr.mxu0 %v15526_v19  ;;  %9435 = vpow2.f32 %v4548_v31  ;;  %v9422_v51 = vpop.eup %9421  ;;  %v15536_v31 = vld [vmem:[#allocation55_spill] sm:$0xff] }
 0x4ac   :  { %5849 = vbcast.lane.b32.xlu0 %v15313_v28, 376  ;;  %5845 = vbcast.lane.b32.xlu1 %v15313_v28, 368  ;;  %v4505_v28 = vsub.f32 %v4345_v25, %v15530_v46  ;;  %v4510_v46 = vsub.f32 %v4350_v26, %v12166_v57  ;;  %9437 = vpow2.f32 %v4550_v54  ;;  %v12501_v25 = vpop.f32.mrf.mxu0  ;;  %v15538_v57 = vld [vmem:[#allocation138_spill] sm:$0xff] }
 0x4ad   :  { %8710 = vmatpush3.msra.mxu1 %v15525_v34  ;;  %8740 = vmatpush3.msra.mxu0 %v15526_v19  ;;  %v15533_v19 = vld [vmem:[#allocation33_spill] sm:$0xff]  ;;  %v12496_v34 = vpop.f32.mrf.mxu1  ;;  %15535 = vst [vmem:[#allocation187_spill] sm:$0xff] %v12501_v25  ;;  %v9424_v30 = vpop.eup %9423  ;;  %v15539_v26 = vld [vmem:[#allocation42_spill] sm:$0xff] }
 0x4ae   :  { %8711 = vmatprep.subr.mxu1 %v15528_v63  ;;  %8741 = vmatprep.subr.mxu0 %v15529_v39  ;;  %15534 = vst [vmem:[#allocation72_spill] sm:$0xff] %v12496_v34  ;;  %9439 = vrcp.f32 %v12496_v34  ;;  %v9426_v54 = vpop.eup %9425  ;;  %v15543_v34 = vld [vmem:[#allocation52_spill] sm:$0xff] }
 0x4af   :  { %8712 = vmatpush3.msra.mxu1 %v15528_v63  ;;  %8742 = vmatpush3.msra.mxu0 %v15529_v39  ;;  %v4552_v39 = vmul.f32 1.442695, %v4505_v28  ;;  %v12506_v63 = vpop.permute.xlu0 %5793  ;;  %9441 = vrcp.f32 %v12501_v25  ;;  %v15540_v28 = vld [vmem:[#allocation65_spill] sm:$0xff] }
 0x4b0   :  { %8713 = vmatprep.subr.mxu1 %v15532_v6  ;;  %8743 = vmatprep.subr.mxu0 %v15533_v19  ;;  %15537 = vst [vmem:[#allocation88_spill] sm:$0xff] %v12506_v63  ;;  %v15560_v63 = vld [vmem:[#allocation157_spill] sm:$0xff] }
 0x4b1   :  { %5865 = vbcast.lane.b32.xlu0 %v15324_v7, 376  ;;  %5861 = vbcast.lane.b32.xlu1 %v15324_v7, 368  ;;  %v4562_v7 = vmul.f32 1.442695, %v4510_v46  ;;  %9443 = vpow2.f32 %v4552_v39  ;;  %v12521_v46 = vpop.f32.mrf.mxu0 }
 0x4b2   :  { %8714 = vmatpush3.msra.mxu1 %v15532_v6  ;;  %8744 = vmatpush3.msra.mxu0 %v15533_v19  ;;  %v12517_v19 = vpop.f32.mrf.mxu1  ;;  %15542 = vst [vmem:[#allocation190_spill] sm:$0xff] %v12521_v46 }
 0x4b3   :  { %8716 = vmatmul.mubr.f32.vlgmr.msra.gmra.mxu1 %v9422_v51  ;;  %8745 = vmatprep.subr.mxu0 %v15536_v31  ;;  %v12515_v51 = vpop.permute.xlu1 %5949  ;;  %15541 = vst [vmem:[#allocation188_spill] sm:$0xff] %v12517_v19  ;;  %9445 = vpow2.f32 %v4562_v7  ;;  %v15545_v7 = vld [vmem:[#allocation39_spill] sm:$0xff]  ;;  %v12537_v6 = vpop.f32.mrf.mxu0 }
 0x4b4   :  { %8759 = vmatprep.subr.mxu1 %v15538_v57  ;;  %8718 = vmatprep.mubr.f32.mxu1 %v9424_v30  ;;  %v9428_v30 = vpop.eup %9427  ;;  %9447 = vrcp.f32 %v12517_v19  ;;  %15547 = vst [vmem:[#allocation117_spill] sm:$0xff] %v12537_v6  ;;  %v15550_v19 = vld [vmem:[#allocation61_spill] sm:$0xff] }
 0x4b5   :  { %8746 = vmatpush3.msra.mxu0 %v15536_v31  ;;  %8760 = vmatpush3.msra.mxu1 %v15538_v57  ;;  %v12526_v57 = vpop.permute.xlu0 %5937  ;;  %v9430_v39 = vpop.eup %9429  ;;  %v15544_v31 = vld [vmem:[#allocation77_spill] sm:$0xff]  ;;  %9449 = vrcp.f32 %v12521_v46 }
 0x4b6   :  { %8747 = vmatprep.subr.mxu0 %v15539_v26  ;;  %8761 = vmatprep.subr.mxu1 %v15540_v28  ;;  %9451 = vrcp.f32 %v12537_v6  ;;  %v15555_v6 = vld [vmem:[#allocation87_spill] sm:$0xff] }
 0x4b7   :  { %2236 = vrot.lane.b32.xlu0 %v9426_v54, %s9840_s0  ;;  %6005 = vbcast.lane.b32.xlu1 %v10582_v13, 368  ;;  %v9432_v54 = vpop.eup %9431 }
 0x4b8   :  { %8748 = vmatpush3.msra.mxu0 %v15539_v26  ;;  %8762 = vmatpush3.msra.mxu1 %v15540_v28  ;;  %v9434_v28 = vpop.eup %9433  ;;  %v12535_v26 = vpop.permute.xlu1 %5781 }
 0x4b9   :  { %8719 = vmatmul.mubr.f32.gmra.mxu1 %v9428_v30  ;;  %8749 = vmatprep.subr.mxu0 %v15543_v34  ;;  %v15546_v30 = vld [vmem:[#allocation62_spill] sm:$0xff] }
 0x4ba   :  { %8763 = vmatprep.subr.mxu1 %v15544_v31  ;;  %8750 = vmatpush3.msra.mxu0 %v15543_v34  ;;  %v9436_v34 = vpop.eup %9435 }
 0x4bb   :  { %8764 = vmatpush3.msra.mxu1 %v15544_v31  ;;  %8791 = vmatprep.mubr.f32.mxu1 %v9430_v39  ;;  %v9438_v46 = vpop.eup %9437  ;;  %v15548_v39 = vld [vmem:[#allocation51_spill] sm:$0xff]  ;;  %v12544_v31 = vpop.permute.xlu0 %5953 }
 0x4bc   :  { %8751 = vmatprep.subr.mxu0 %v15545_v7  ;;  %8765 = vmatprep.subr.mxu1 %v15546_v30  ;;  %15549 = vst [vmem:[#allocation76_spill] sm:$0xff] %v12544_v31  ;;  %v9440_v25 = vpop.eup %9439 }
 0x4bd   :  { %2234 = vrot.lane.b32.xlu1 %v9432_v54, %s9840_s0  ;;  %2244 = vrot.lane.b32.xlu0 %v9434_v28, %s9840_s0  ;;  %v9442_v28 = vpop.eup %9441  ;;  %v15551_v54 = vld [vmem:[#allocation91_spill] sm:$0xff] }
 0x4be   :  { %8752 = vmatpush3.msra.mxu0 %v15545_v7  ;;  %8766 = vmatpush3.msra.mxu1 %v15546_v30  ;;  %v15552_v30 = vld [vmem:[#allocation73_spill] sm:$0xff]  ;;  %v9444_v7 = vpop.eup %9443 }
 0x4bf   :  { %8754 = vmatmul.mubr.f32.vlgmr.msra.gmra.mxu0 %v9436_v34  ;;  %8767 = vmatprep.subr.mxu1 %v15548_v39  ;;  %v12552_v34 = vpop.permute.xlu1 %5797 }
 0x4c0   :  { %8797 = vmatprep.subr.mxu0 %v15550_v19  ;;  %8756 = vmatprep.mubr.f32.mxu0 %v9438_v46  ;;  %15553 = vst [vmem:[#allocation129_spill] sm:$0xff] %v12552_v34  ;;  %v15554_v46 = vld [vmem:[#allocation60_spill] sm:$0xff] }
 0x4c1   :  { %8768 = vmatpush3.msra.mxu1 %v15548_v39  ;;  %8798 = vmatpush3.msra.mxu0 %v15550_v19  ;;  %v12559_v19 = vpop.permute.xlu0 %5785  ;;  %v9446_v39 = vpop.eup %9445  ;;  %v15559_v34 = vld [vmem:[#allocation92_spill] sm:$0xff] }
 0x4c2   :  { %8769 = vmatprep.subr.mxu1 %v15551_v54  ;;  %8799 = vmatprep.subr.mxu0 %v15552_v30  ;;  %v9448_v23 = vpop.eup %9447 }
 0x4c3   :  { %2240 = vrot.lane.b32.xlu0 %v9440_v25, %s9840_s0  ;;  %2242 = vrot.lane.b32.xlu1 %v9442_v28, %s9840_s0  ;;  %v15556_v25 = vld [vmem:[#allocation154_spill] sm:$0xff]  ;;  %v9450_v28 = vpop.eup %9449  ;;  %v12570_v31 = vpop.permute.xlu1 %5941 }
 0x4c4   :  { %8770 = vmatpush3.msra.mxu1 %v15551_v54  ;;  %8800 = vmatpush3.msra.mxu0 %v15552_v30  ;;  %v4347_v61 = vmul.f32 %v15556_v25, %v10878_v33  ;;  %v15557_v30 = vld [vmem:[#allocation156_spill] sm:$0xff]  ;;  %v15558_v54 = vld [vmem:[#allocation70_spill] sm:$0xff] }
 0x4c5   :  { %8757 = vmatmul.mubr.f32.gmra.mxu0 %v9444_v7  ;;  %8771 = vmatprep.subr.mxu1 %v15554_v46  ;;  %v4348_v7 = vmul.f32 %v15557_v30, %v10878_v33  ;;  %v15561_v25 = vld [vmem:[#allocation184_spill] sm:$0xff]  ;;  %v15563_v30 = vld [vmem:[#allocation135_spill] sm:$0xff] }
 0x4c6   :  { %8801 = vmatprep.subr.mxu0 %v15555_v6  ;;  %8772 = vmatpush3.msra.mxu1 %v15554_v46  ;;  %v4507_v35 = vsub.f32 %v4347_v61, %v15560_v63  ;;  %v9452_v61 = vpop.eup %9451 }
 0x4c7   :  { %8802 = vmatpush3.msra.mxu0 %v15555_v6  ;;  %8829 = vmatprep.mubr.f32.mxu0 %v9446_v39  ;;  %v4508_v46 = vsub.f32 %v4348_v7, %v15561_v25  ;;  %v15562_v39 = vld [vmem:[#allocation133_spill] sm:$0xff]  ;;  %v12580_v6 = vpop.permute.xlu0 %5801  ;;  %v15566_v25 = vld [vmem:[#allocation90_spill] sm:$0xff] }
 0x4c8   :  { %8773 = vmatprep.subr.mxu1 %v15558_v54  ;;  %8803 = vmatprep.subr.mxu0 %v15559_v34  ;;  %v4556_v63 = vmul.f32 1.442695, %v4507_v35  ;;  %v15565_v7 = vld [vmem:[#allocation69_spill] sm:$0xff]  ;;  %v15567_v35 = vld [vmem:[#allocation58_spill] sm:$0xff] }
 0x4c9   :  { %2238 = vrot.lane.b32.xlu1 %v9448_v23, %s9840_s0  ;;  %2248 = vrot.lane.b32.xlu0 %v9450_v28, %s9840_s0  ;;  %v15564_v23 = vld [vmem:[#allocation94_spill] sm:$0xff] }
 0x4ca   :  { %8774 = vmatpush3.msra.mxu1 %v15558_v54  ;;  %8804 = vmatpush3.msra.mxu0 %v15559_v34  ;;  %v4349_v28 = vmul.f32 %v15564_v23, %v10878_v33  ;;  %v4558_v34 = vmul.f32 1.442695, %v4508_v46  ;;  %v12590_v54 = vpop.permute.xlu1 %5957  ;;  %v15568_v23 = vld [vmem:[#allocation80_spill] sm:$0xff]  ;;  %9453 = vpow2.f32 %v4556_v63  ;;  %v15573_v63 = vld [vmem:[#allocation98_spill] sm:$0xff] }
 0x4cb   :  { %8775 = vmatprep.subr.mxu1 %v15562_v39  ;;  %8805 = vmatprep.subr.mxu0 %v15563_v30  ;;  %v12602_v46 = vpop.permute.xlu0 %5945 }
 0x4cc   :  { %8776 = vmatpush3.msra.mxu1 %v15562_v39  ;;  %8806 = vmatpush3.msra.mxu0 %v15563_v30  ;;  %v4509_v39 = vsub.f32 %v4349_v28, %v12122_v9  ;;  %v4354_v30 = vmul.f32 %v12142_v37, %v15382_v12  ;;  %9455 = vpow2.f32 %v4558_v34  ;;  %v12604_v9 = vpop.f32.mrf.mxu1  ;;  %v15570_v37 = vld [vmem:[#allocation142_spill] sm:$0xff] }
 0x4cd   :  { %8777 = vmatprep.subr.mxu1 %v15565_v7  ;;  %8807 = vmatprep.subr.mxu0 %v15566_v25  ;;  %15569 = vst [vmem:[#allocation130_spill] sm:$0xff] %v12604_v9  ;;  %9457 = vrcp.f32 %v12604_v9  ;;  %v15581_v9 = vld [vmem:[#allocation74_spill] sm:$0xff] }
 0x4ce   :  { %6009 = vbcast.lane.b32.xlu0 %v10582_v13, 376  ;;  %2246 = vrot.lane.b32.xlu1 %v9452_v61, %s9840_s0  ;;  %v4514_v13 = vsub.f32 %v4354_v30, %v12186_v58  ;;  %v15571_v61 = vld [vmem:[#allocation66_spill] sm:$0xff]  ;;  %v4560_v28 = vmul.f32 1.442695, %v4509_v39  ;;  %v4352_v58 = vmul.f32 %v12204_v21, %v15531_v55  ;;  %v12616_v34 = vpop.permute.xlu1 %5961  ;;  %v15574_v39 = vld [vmem:[#allocation139_spill] sm:$0xff] }
 0x4cf   :  { %8778 = vmatpush3.msra.mxu1 %v15565_v7  ;;  %8808 = vmatpush3.msra.mxu0 %v15566_v25  ;;  %v15572_v25 = vld [vmem:[#allocation182_spill] sm:$0xff] }
 0x4d0   :  { %8779 = vmatprep.subr.mxu1 %v15567_v35  ;;  %8809 = vmatprep.subr.mxu0 %v15568_v23  ;;  %v4351_v7 = vmul.f32 %v15572_v25, %v15531_v55  ;;  %v15575_v25 = vld [vmem:[#allocation56_spill] sm:$0xff]  ;;  %9459 = vpow2.f32 %v4560_v28  ;;  %v15576_v21 = vld [vmem:[#allocation78_spill] sm:$0xff] }
 0x4d1   :  { %8780 = vmatpush3.msra.mxu1 %v15567_v35  ;;  %8810 = vmatpush3.msra.mxu0 %v15568_v23  ;;  %v4570_v23 = vmul.f32 1.442695, %v4514_v13  ;;  %v4512_v35 = vsub.f32 %v4352_v58, %v12232_v56  ;;  %v4353_v56 = vmul.f32 %v12226_v29, %v15531_v55  ;;  %v12635_v13 = vpop.f32.mrf.mxu0  ;;  %v15580_v58 = vld [vmem:[#allocation54_spill] sm:$0xff]  ;;  %v4358_v29 = vmul.f32 %v12281_v0, %v15400_v60 }
 0x4d2   :  { %8781 = vmatprep.subr.mxu1 %v15570_v37  ;;  %8811 = vmatprep.subr.mxu0 %v15571_v61  ;;  %v4511_v30 = vsub.f32 %v4351_v7, %v12198_v40  ;;  %v12629_v40 = vpop.f32.mrf.mxu1  ;;  %15579 = vst [vmem:[#allocation189_spill] sm:$0xff] %v12635_v13 }
 0x4d3   :  { %5869 = vbcast.lane.b32.xlu0 %v15573_v63, 352  ;;  %6021 = vbcast.lane.b32.xlu1 %v15521_v15, 368  ;;  %15578 = vst [vmem:[#allocation64_spill] sm:$0xff] %v12629_v40  ;;  %9461 = vpow2.f32 %v4570_v23  ;;  %v4566_v28 = vmul.f32 1.442695, %v4512_v35  ;;  %v15582_v35 = vld [vmem:[#allocation63_spill] sm:$0xff] }
 0x4d4   :  { %8782 = vmatpush3.msra.mxu1 %v15570_v37  ;;  %8812 = vmatpush3.msra.mxu0 %v15571_v61  ;;  %v15577_v61 = vld [vmem:[#allocation140_spill] sm:$0xff]  ;;  %v12627_v37 = vpop.permute.xlu0 %5805  ;;  %v4564_v7 = vmul.f32 1.442695, %v4511_v30  ;;  %9463 = vrcp.f32 %v12629_v40  ;;  %v15583_v23 = vld [vmem:[#allocation83_spill] sm:$0xff]  ;;  %v4518_v30 = vsub.f32 %v4358_v29, %v12334_v20  ;;  %v15586_v20 = vld [vmem:[#allocation146_spill] sm:$0xff] }
 0x4d5   :  { %8783 = vmatprep.subr.mxu1 %v15574_v39  ;;  %8813 = vmatprep.subr.mxu0 %v15575_v25  ;;  %9465 = vrcp.f32 %v12635_v13 }
 0x4d6   :  { %8784 = vmatpush3.msra.mxu1 %v15574_v39  ;;  %8814 = vmatpush3.msra.mxu0 %v15575_v25  ;;  %v12641_v25 = vpop.permute.xlu1 %5821  ;;  %9467 = vpow2.f32 %v4564_v7  ;;  %v15587_v7 = vld [vmem:[#allocation110_spill] sm:$0xff]  ;;  %v4578_v29 = vmul.f32 1.442695, %v4518_v30  ;;  %v15609_v39 = vld [vmem:[#allocation125_spill] sm:$0xff] }
 0x4d7   :  { %8785 = vmatprep.subr.mxu1 %v15576_v21  ;;  %8815 = vmatprep.subr.mxu0 %v15577_v61  ;;  %v9454_v0 = vpop.eup %9453  ;;  %9469 = vpow2.f32 %v4566_v28 }
 0x4d8   :  { %5873 = vbcast.lane.b32.xlu0 %v15573_v63, 360  ;;  %6025 = vbcast.lane.b32.xlu1 %v15521_v15, 376  ;;  %v4513_v15 = vsub.f32 %v4353_v56, %v12259_v16  ;;  %v12655_v16 = vpop.permute.xlu0 %5809  ;;  %v12657_v56 = vpop.f32.mrf.mxu1 }
 0x4d9   :  { %8786 = vmatpush3.msra.mxu1 %v15576_v21  ;;  %8816 = vmatpush3.msra.mxu0 %v15577_v61  ;;  %15584 = vst [vmem:[#allocation158_spill] sm:$0xff] %v12657_v56  ;;  %v9456_v13 = vpop.eup %9455  ;;  %9471 = vrcp.f32 %v12657_v56 }
 0x4da   :  { %8787 = vmatprep.subr.mxu1 %v15580_v58  ;;  %8817 = vmatprep.subr.mxu0 %v15581_v9  ;;  %v9458_v28 = vpop.eup %9457  ;;  %v12677_v30 = vpop.f32.mrf.mxu1 }
 0x4db   :  { %8788 = vmatpush3.msra.mxu1 %v15580_v58  ;;  %8818 = vmatpush3.msra.mxu0 %v15581_v9  ;;  %v4568_v9 = vmul.f32 1.442695, %v4513_v15  ;;  %v12661_v58 = vpop.f32.mrf.mxu0  ;;  %v15588_v15 = vld [vmem:[#allocation82_spill] sm:$0xff]  ;;  %15591 = vst [vmem:[#allocation71_spill] sm:$0xff] %v12677_v30 }
 0x4dc   :  { %8789 = vmatprep.subr.mxu1 %v15582_v35  ;;  %8819 = vmatprep.subr.mxu0 %v15583_v23  ;;  %15585 = vst [vmem:[#allocation141_spill] sm:$0xff] %v12661_v58  ;;  %9473 = vrcp.f32 %v12661_v58  ;;  %v12714_v21 = vpop.f32.mrf.mxu1 }
 0x4dd   :  { %5881 = vbcast.lane.b32.xlu0 %v15573_v63, 376  ;;  %5877 = vbcast.lane.b32.xlu1 %v15573_v63, 368  ;;  %v12665_v63 = vpop.permute.xlu1 %5965  ;;  %9475 = vpow2.f32 %v4568_v9  ;;  %v9460_v56 = vpop.eup %9459  ;;  %15603 = vst [vmem:[#allocation191_spill] sm:$0xff] %v12714_v21 }
 0x4de   :  { %8790 = vmatpush3.msra.mxu1 %v15582_v35  ;;  %8820 = vmatpush3.msra.mxu0 %v15583_v23  ;;  %v15590_v23 = vld [vmem:[#allocation137_spill] sm:$0xff]  ;;  %9477 = vpow2.f32 %v4578_v29  ;;  %v15594_v35 = vld [vmem:[#allocation108_spill] sm:$0xff] }
 0x4df   :  { %8792 = vmatmul.mubr.f32.vlgmr.msra.gmra.mxu1 %v9454_v0  ;;  %8821 = vmatprep.subr.mxu0 %v15586_v20  ;;  %v15589_v0 = vld [vmem:[#allocation111_spill] sm:$0xff]  ;;  %9479 = vrcp.f32 %v12677_v30 }
 0x4e0   :  { %8835 = vmatprep.subr.mxu1 %v15587_v7  ;;  %8794 = vmatprep.mubr.f32.mxu1 %v9456_v13  ;;  %v12675_v13 = vpop.permute.xlu0 %5825  ;;  %v9462_v9 = vpop.eup %9461 }
 0x4e1   :  { %8822 = vmatpush3.msra.mxu0 %v15586_v20  ;;  %8836 = vmatpush3.msra.mxu1 %v15587_v7  ;;  %v12681_v7 = vpop.f32.mrf.mxu0  ;;  %v15593_v20 = vld [vmem:[#allocation68_spill] sm:$0xff] }
 0x4e2   :  { %8823 = vmatprep.subr.mxu0 %v15588_v15  ;;  %8837 = vmatprep.subr.mxu1 %v15589_v0  ;;  %15592 = vst [vmem:[#allocation81_spill] sm:$0xff] %v12681_v7  ;;  %9481 = vrcp.f32 %v12681_v7  ;;  %v15598_v7 = vld [vmem:[#allocation106_spill] sm:$0xff] }
 0x4e3   :  { %6029 = vbcast.lane.b32.xlu1 %v15590_v23, 352  ;;  %2252 = vrot.lane.b32.xlu0 %v9458_v28, %s9840_s0  ;;  %v12686_v28 = vpop.permute.xlu1 %5981  ;;  %v12697_v61 = vpop.f32.mrf.mxu0 }
 0x4e4   :  { %8824 = vmatpush3.msra.mxu0 %v15588_v15  ;;  %8838 = vmatpush3.msra.mxu1 %v15589_v0  ;;  %v9464_v15 = vpop.eup %9463  ;;  %v15595_v0 = vld [vmem:[#allocation79_spill] sm:$0xff]  ;;  %15597 = vst [vmem:[#allocation192_spill] sm:$0xff] %v12697_v61  ;;  %9483 = vrcp.f32 %v12697_v61  ;;  %v15605_v61 = vld [vmem:[#allocation124_spill] sm:$0xff] }
 0x4e5   :  { %8795 = vmatmul.mubr.f32.gmra.mxu1 %v9460_v56  ;;  %8825 = vmatprep.subr.mxu0 %v15593_v20  ;;  %v15596_v56 = vld [vmem:[#allocation109_spill] sm:$0xff]  ;;  %v9466_v29 = vpop.eup %9465  ;;  %9485 = vrcp.f32 %v12714_v21 }
 0x4e6   :  { %8839 = vmatprep.subr.mxu1 %v15594_v35  ;;  %8826 = vmatpush3.msra.mxu0 %v15593_v20  ;;  %v12695_v20 = vpop.permute.xlu0 %5969  ;;  %v9468_v58 = vpop.eup %9467 }
 0x4e7   :  { %8840 = vmatpush3.msra.mxu1 %v15594_v35  ;;  %8867 = vmatprep.mubr.f32.mxu1 %v9462_v9  ;;  %v9470_v9 = vpop.eup %9469  ;;  %v15599_v35 = vld [vmem:[#allocation126_spill] sm:$0xff]  ;;  %v12703_v30 = vpop.permute.xlu1 %5813 }
 0x4e8   :  { %8827 = vmatprep.subr.mxu0 %v15595_v0  ;;  %8841 = vmatprep.subr.mxu1 %v15596_v56 }
 0x4e9   :  { %2250 = vrot.lane.b32.xlu1 %v9464_v15, %s9840_s0  ;;  %8842 = vmatpush3.msra.mxu1 %v15596_v56  ;;  %v9472_v15 = vpop.eup %9471  ;;  %v15600_v56 = vld [vmem:[#allocation107_spill] sm:$0xff] }
 0x4ea   :  { %2260 = vrot.lane.b32.xlu0 %v9466_v29, %s9840_s0  ;;  %8828 = vmatpush3.msra.mxu0 %v15595_v0  ;;  %v15601_v29 = vld [vmem:[#allocation127_spill] sm:$0xff]  ;;  %v9474_v0 = vpop.eup %9473 }
 0x4eb   :  { %8830 = vmatmul.mubr.f32.vlgmr.msra.gmra.mxu0 %v9468_v58  ;;  %8843 = vmatprep.subr.mxu1 %v15598_v7  ;;  %v12712_v58 = vpop.permute.xlu0 %5985 }
 0x4ec   :  { %8873 = vmatprep.subr.mxu0 %v15599_v35  ;;  %8832 = vmatprep.mubr.f32.mxu0 %v9470_v9  ;;  %15602 = vst [vmem:[#allocation151_spill] sm:$0xff] %v12712_v58  ;;  %v9476_v9 = vpop.eup %9475 }
 0x4ed   :  { %8844 = vmatpush3.msra.mxu1 %v15598_v7  ;;  %8874 = vmatpush3.msra.mxu0 %v15599_v35  ;;  %v15604_v35 = vld [vmem:[#allocation104_spill] sm:$0xff]  ;;  %v9478_v7 = vpop.eup %9477 }
 0x4ee   :  { %8845 = vmatprep.subr.mxu1 %v15600_v56  ;;  %8875 = vmatprep.subr.mxu0 %v15601_v29  ;;  %v9480_v40 = vpop.eup %9479 }
 0x4ef   :  { %8846 = vmatpush3.msra.mxu1 %v15600_v56  ;;  %2256 = vrot.lane.b32.xlu0 %v9472_v15, %s9840_s0  ;;  %v12721_v56 = vpop.permute.xlu1 %5829  ;;  %v4355_v15 = vmul.f32 %v12176_v47, %v15382_v12  ;;  %v9482_v58 = vpop.eup %9481 }
 0x4f0   :  { %2258 = vrot.lane.b32.xlu1 %v9474_v0, %s9840_s0  ;;  %8876 = vmatpush3.msra.mxu0 %v15601_v29  ;;  %15606 = vst [vmem:[#allocation85_spill] sm:$0xff] %v12721_v56  ;;  %v4356_v0 = vmul.f32 %v12219_v48, %v15382_v12  ;;  %v15608_v29 = vld [vmem:[#allocation105_spill] sm:$0xff]  ;;  %v12733_v56 = vpop.f32.mrf.mxu0  ;;  %v12737_v47 = vpop.permute.xlu0 %5817  ;;  %v15611_v48 = vld [vmem:[#allocation143_spill] sm:$0xff] }
 0x4f1   :  { %8833 = vmatmul.mubr.f32.gmra.mxu0 %v9476_v9  ;;  %8847 = vmatprep.subr.mxu1 %v15604_v35  ;;  %v12728_v9 = vpop.f32.mrf.mxu1  ;;  %15610 = vst [vmem:[#allocation22_spill] sm:$0xff] %v12733_v56 }
 0x4f2   :  { %8877 = vmatprep.subr.mxu0 %v15605_v61  ;;  %8848 = vmatpush3.msra.mxu1 %v15604_v35  ;;  %15607 = vst [vmem:[#allocation131_spill] sm:$0xff] %v12728_v9  ;;  %v4515_v35 = vsub.f32 %v4355_v15, %v12212_v24  ;;  %9487 = vrcp.f32 %v12728_v9  ;;  %v15612_v24 = vld [vmem:[#allocation144_spill] sm:$0xff]  ;;  %v12752_v21 = vpop.f32.mrf.mxu0  ;;  %v9484_v9 = vpop.eup %9483 }
 0x4f3   :  { %8878 = vmatpush3.msra.mxu0 %v15605_v61  ;;  %8905 = vmatprep.mubr.f32.mxu0 %v9478_v7  ;;  %v4516_v7 = vsub.f32 %v4356_v0, %v12247_v41  ;;  %v15613_v41 = vld [vmem:[#allocation95_spill] sm:$0xff]  ;;  %15614 = vst [vmem:[#allocation25_spill] sm:$0xff] %v12752_v21  ;;  %9489 = vrcp.f32 %v12733_v56 }
 0x4f4   :  { %8849 = vmatprep.subr.mxu1 %v15608_v29  ;;  %8879 = vmatprep.subr.mxu0 %v15609_v39  ;;  %v4572_v15 = vmul.f32 1.442695, %v4515_v35  ;;  %v4357_v0 = vmul.f32 %v15613_v41, %v15382_v12  ;;  %v5883_v35 = vmul.f32 %v12292_v8, %v15273_v62  ;;  %v12766_v41 = vpop.permute.xlu0 %5833  ;;  %9491 = vrcp.f32 %v12752_v21  ;;  %v15620_v8 = vld [vmem:[#allocation145_spill] sm:$0xff] }
 0x4f5   :  { %8850 = vmatpush3.msra.mxu1 %v15608_v29  ;;  %2254 = vrot.lane.b32.xlu1 %v9480_v40, %s9840_s0  ;;  %v12748_v40 = vpop.permute.xlu1 %5973  ;;  %v4574_v29 = vmul.f32 1.442695, %v4516_v7  ;;  %v15618_v7 = vld [vmem:[#allocation103_spill] sm:$0xff]  ;;  %v4359_v21 = vmul.f32 %v12306_v11, %v15400_v60  ;;  %v15624_v11 = vld [vmem:[#allocation120_spill] sm:$0xff] }
 0x4f6   :  { %2264 = vrot.lane.b32.xlu0 %v9482_v58, %s9840_s0  ;;  %8880 = vmatpush3.msra.mxu0 %v15609_v39  ;;  %v15615_v58 = vld [vmem:[#allocation102_spill] sm:$0xff]  ;;  %9493 = vpow2.f32 %v4572_v15 }
 0x4f7   :  { %8851 = vmatprep.subr.mxu1 %v15611_v48  ;;  %8881 = vmatprep.subr.mxu0 %v15612_v24  ;;  %v15616_v39 = vld [vmem:[#allocation122_spill] sm:$0xff]  ;;  %9495 = vpow2.f32 %v4574_v29  ;;  %v4519_v29 = vsub.f32 %v4359_v21, %v12355_v3  ;;  %v9486_v3 = vpop.eup %9485  ;;  %v15627_v21 = vld [vmem:[#allocation147_spill] sm:$0xff] }
 0x4f8   :  { %8852 = vmatpush3.msra.mxu1 %v15611_v48  ;;  %8882 = vmatpush3.msra.mxu0 %v15612_v24  ;;  %v4517_v24 = vsub.f32 %v4357_v0, %v12268_v4  ;;  %v12761_v48 = vpop.f32.mrf.mxu1  ;;  %v6043_v4 = vsub.f32 %v5883_v35, %v12347_v5  ;;  %v4360_v5 = vmul.f32 %v12367_v1, %v15400_v60  ;;  %v15625_v35 = vld [vmem:[#allocation101_spill] sm:$0xff] }
 0x4f9   :  { %8853 = vmatprep.subr.mxu1 %v15615_v58  ;;  %8883 = vmatprep.subr.mxu0 %v15616_v39  ;;  %15617 = vst [vmem:[#allocation38_spill] sm:$0xff] %v12761_v48  ;;  %v12776_v0 = vpop.permute.xlu1 %5989  ;;  %9497 = vrcp.f32 %v12761_v48  ;;  %v15626_v1 = vld [vmem:[#allocation121_spill] sm:$0xff] }
 0x4fa   :  { %8854 = vmatpush3.msra.mxu1 %v15615_v58  ;;  %6033 = vbcast.lane.b32.xlu0 %v15590_v23, 360  ;;  %v15619_v58 = vld [vmem:[#allocation123_spill] sm:$0xff]  ;;  %v4576_v56 = vmul.f32 1.442695, %v4517_v24  ;;  %v6075_v15 = vmul.f32 1.442695, %v6043_v4  ;;  %v12790_v24 = vpop.f32.mrf.mxu0  ;;  %v4361_v4 = vmul.f32 %v12392_v42, %v15400_v60  ;;  %v5887_v42 = vmul.f32 %v12454_v17, %v10702_v10 }
 0x4fb   :  { %2262 = vrot.lane.b32.xlu1 %v9484_v9, %s9840_s0  ;;  %8884 = vmatpush3.msra.mxu0 %v15616_v39  ;;  %v15621_v9 = vld [vmem:[#allocation100_spill] sm:$0xff]  ;;  %v12780_v39 = vpop.f32.mrf.mxu1  ;;  %15623 = vst [vmem:[#allocation112_spill] sm:$0xff] %v12790_v24  ;;  %v15632_v17 = vld [vmem:[#allocation99_spill] sm:$0xff] }
 0x4fc   :  { %8855 = vmatprep.subr.mxu1 %v15618_v7  ;;  %8885 = vmatprep.subr.mxu0 %v15619_v58  ;;  %15622 = vst [vmem:[#allocation114_spill] sm:$0xff] %v12780_v39  ;;  %9499 = vrcp.f32 %v12780_v39  ;;  %v12808_v48 = vpop.f32.mrf.mxu0  ;;  %v4521_v39 = vsub.f32 %v4361_v4, %v12430_v32  ;;  %v6047_v32 = vsub.f32 %v5887_v42, %v12494_v38  ;;  %v15633_v42 = vld [vmem:[#allocation93_spill] sm:$0xff] }
 0x4fd   :  { %8856 = vmatpush3.msra.mxu1 %v15618_v7  ;;  %8886 = vmatpush3.msra.mxu0 %v15619_v58  ;;  %v4520_v58 = vsub.f32 %v4360_v5, %v12408_v2  ;;  %9501 = vpow2.f32 %v4576_v56  ;;  %v12806_v2 = vpop.permute.xlu1 %5993  ;;  %v4580_v5 = vmul.f32 1.442695, %v4519_v29  ;;  %15628 = vst [vmem:[#allocation115_spill] sm:$0xff] %v12808_v48 }
 0x4fe   :  { %8857 = vmatprep.subr.mxu1 %v15620_v8  ;;  %8887 = vmatprep.subr.mxu0 %v15621_v9  ;;  %9503 = vpow2.f32 %v6075_v15  ;;  %v4584_v4 = vmul.f32 1.442695, %v4521_v39 }
 0x4ff   :  { %8858 = vmatpush3.msra.mxu1 %v15620_v8  ;;  %6041 = vbcast.lane.b32.xlu0 %v15590_v23, 376  ;;  %v12794_v8 = vpop.permute.xlu0 %5977  ;;  %v4582_v56 = vmul.f32 1.442695, %v4520_v58  ;;  %9505 = vrcp.f32 %v12790_v24  ;;  %v15631_v58 = vld [vmem:[#allocation148_spill] sm:$0xff] }
 0x500   :  { %6037 = vbcast.lane.b32.xlu1 %v15590_v23, 368  ;;  %8888 = vmatpush3.msra.mxu0 %v15621_v9  ;;  %v9488_v23 = vpop.eup %9487  ;;  %9507 = vrcp.f32 %v12808_v48  ;;  %v6083_v48 = vmul.f32 1.442695, %v6047_v32 }
 0x501   :  { %8859 = vmatprep.subr.mxu1 %v15624_v11  ;;  %8889 = vmatprep.subr.mxu0 %v15625_v35  ;;  %v9490_v15 = vpop.eup %9489  ;;  %9509 = vpow2.f32 %v4580_v5  ;;  %v12830_v24 = vpop.permute.xlu1 %5853 }
 0x502   :  { %8860 = vmatpush3.msra.mxu1 %v15624_v11  ;;  %8890 = vmatpush3.msra.mxu0 %v15625_v35  ;;  %v15629_v35 = vld [vmem:[#allocation97_spill] sm:$0xff]  ;;  %9511 = vpow2.f32 %v4582_v56  ;;  %v15635_v56 = vld [vmem:[#allocation116_spill] sm:$0xff] }
 0x503   :  { %8861 = vmatprep.subr.mxu1 %v15626_v1  ;;  %8891 = vmatprep.subr.mxu0 %v15627_v21  ;;  %v12820_v29 = vpop.permute.xlu0 %5837  ;;  %9513 = vpow2.f32 %v4584_v4 }
 0x504   :  { %8862 = vmatpush3.msra.mxu1 %v15626_v1  ;;  %2268 = vrot.lane.b32.xlu0 %v9486_v3, %s9840_s0  ;;  %v15630_v1 = vld [vmem:[#allocation118_spill] sm:$0xff]  ;;  %v9492_v3 = vpop.eup %9491  ;;  %9515 = vpow2.f32 %v6083_v48 }
 0x505   :  { %2266 = vrot.lane.b32.xlu1 %v9488_v23, %s9840_s0  ;;  %8892 = vmatpush3.msra.mxu0 %v15627_v21  ;;  %v9494_v23 = vpop.eup %9493 }
 0x506   :  { %8863 = vmatprep.subr.mxu1 %v15629_v35  ;;  %8893 = vmatprep.subr.mxu0 %v15630_v1  ;;  %v9496_v38 = vpop.eup %9495 }
 0x507   :  { %8864 = vmatpush3.msra.mxu1 %v15629_v35  ;;  %8894 = vmatpush3.msra.mxu0 %v15630_v1  ;;  %v15634_v1 = vld [vmem:[#allocation13_spill] sm:$0xff]  ;;  %v12836_v5 = vpop.permute.xlu0 %5841  ;;  %v9498_v39 = vpop.eup %9497  ;;  %v15646_v35 = vld [vmem:[#allocation32_spill] sm:$0xff] }
 0x508   :  { %8865 = vmatprep.subr.mxu1 %v15631_v58  ;;  %8895 = vmatprep.subr.mxu0 %v15632_v17 }
 0x509   :  { %8866 = vmatpush3.msra.mxu1 %v15631_v58  ;;  %8896 = vmatpush3.msra.mxu0 %v15632_v17  ;;  %v15644_v17 = vld [vmem:[#allocation31_spill] sm:$0xff]  ;;  %v5885_v58 = vmul.f32 %v12385_v43, %v15273_v62  ;;  %v5886_v43 = vmul.f32 %v12400_v14, %v15273_v62 }
 0x50a   :  { %2276 = vrot.lane.b32.xlu0 %v9490_v15, %s9840_s0  ;;  %2274 = vrot.lane.b32.xlu1 %v9492_v3, %s9840_s0  ;;  %v15636_v15 = vld [vmem:[#allocation14_spill] sm:$0xff]  ;;  %v9500_v3 = vpop.eup %9499 }
 0x50b   :  { %8868 = vmatmul.mubr.f32.vlgmr.msra.gmra.mxu1 %v9494_v23  ;;  %8897 = vmatprep.subr.mxu0 %v15633_v42  ;;  %v9502_v32 = vpop.eup %9501  ;;  %v15637_v23 = vld [vmem:[#allocation149_spill] sm:$0xff] }
 0x50c   :  { %8911 = vmatprep.subr.mxu1 %v15634_v1  ;;  %8870 = vmatprep.mubr.f32.mxu1 %v9496_v38  ;;  %v9504_v4 = vpop.eup %9503  ;;  %v15638_v38 = vld [vmem:[#allocation15_spill] sm:$0xff] }
 0x50d   :  { %8898 = vmatpush3.msra.mxu0 %v15633_v42  ;;  %8912 = vmatpush3.msra.mxu1 %v15634_v1  ;;  %v12844_v1 = vpop.permute.xlu1 %5997  ;;  %v9506_v48 = vpop.eup %9505  ;;  %v15642_v42 = vld [vmem:[#allocation18_spill] sm:$0xff] }
 0x50e   :  { %8899 = vmatprep.subr.mxu0 %v15635_v56  ;;  %8913 = vmatprep.subr.mxu1 %v15636_v15 }
 0x50f   :  { %8900 = vmatpush3.msra.mxu0 %v15635_v56  ;;  %8914 = vmatpush3.msra.mxu1 %v15636_v15  ;;  %v12850_v15 = vpop.permute.xlu0 %5857  ;;  %v15639_v56 = vld [vmem:[#allocation96_spill] sm:$0xff] }
 0x510   :  { %2272 = vrot.lane.b32.xlu0 %v9498_v39, %s9840_s0  ;;  %2270 = vrot.lane.b32.xlu1 %v9500_v3, %s9840_s0  ;;  %v15640_v39 = vld [vmem:[#allocation16_spill] sm:$0xff]  ;;  %v9508_v3 = vpop.eup %9507 }
 0x511   :  { %8871 = vmatmul.mubr.f32.gmra.mxu1 %v9502_v32  ;;  %8901 = vmatprep.subr.mxu0 %v15637_v23  ;;  %v9510_v32 = vpop.eup %9509 }
 0x512   :  { %8915 = vmatprep.subr.mxu1 %v15638_v38  ;;  %8902 = vmatpush3.msra.mxu0 %v15637_v23  ;;  %v12858_v23 = vpop.permute.xlu1 %2218 }
 0x513   :  { %8916 = vmatpush3.msra.mxu1 %v15638_v38  ;;  %8943 = vmatprep.mubr.f32.mxu1 %v9504_v4  ;;  %v9512_v4 = vpop.eup %9511  ;;  %v15641_v38 = vld [vmem:[#allocation17_spill] sm:$0xff] }
 0x514   :  { %8903 = vmatprep.subr.mxu0 %v15639_v56  ;;  %8917 = vmatprep.subr.mxu1 %v15640_v39 }
 0x515   :  { %8904 = vmatpush3.msra.mxu0 %v15639_v56  ;;  %8918 = vmatpush3.msra.mxu1 %v15640_v39  ;;  %v2221_v56 = vpop.permute.xlu0 %2220  ;;  %v15643_v39 = vld [vmem:[#allocation19_spill] sm:$0xff] }
 0x516   :  { %2280 = vrot.lane.b32.xlu0 %v9506_v48, %s9840_s0  ;;  %2278 = vrot.lane.b32.xlu1 %v9508_v3, %s9840_s0  ;;  %v9514_v48 = vpop.eup %9513  ;;  %v5884_v3 = vmul.f32 %v12319_v53, %v15273_v62  ;;  %v6045_v53 = vsub.f32 %v5885_v58, %v12420_v50  ;;  %v6046_v58 = vsub.f32 %v5886_v43, %v12441_v49  ;;  %v9841_v43 = vmov 0  }
 0x517   :  { %8906 = vmatmul.mubr.f32.vlgmr.msra.gmra.mxu0 %v9510_v32  ;;  %8919 = vmatprep.subr.mxu1 %v15641_v38  ;;  %v15645_v32 = vld [vmem:[#allocation20_spill] sm:$0xff]  ;;  %v5891_v62 = vmul.f32 %v12467_v36, %v10717_v44  ;;  %v5888_v49 = vmul.f32 %v12481_v45, %v10702_v10 }
 0x518   :  { %8949 = vmatprep.subr.mxu0 %v15642_v42  ;;  %8908 = vmatprep.mubr.f32.mxu0 %v9512_v4  ;;  %v12871_v4 = vpop.permute.xlu1 %2226  ;;  %v6081_v36 = vmul.f32 1.442695, %v6046_v58  ;;  %v15658_v58 = vld [vmem:[#allocation43_spill] sm:$0xff] }
 0x519   :  { %8920 = vmatpush3.msra.mxu1 %v15641_v38  ;;  %8950 = vmatpush3.msra.mxu0 %v15642_v42  ;;  %v9516_v38 = vpop.eup %9515  ;;  %v6044_v42 = vsub.f32 %v5884_v3, %v12375_v22  ;;  %v15649_v3 = vld [vmem:[#allocation35_spill] sm:$0xff] }
 0x51a   :  { %8921 = vmatprep.subr.mxu1 %v15643_v39  ;;  %8951 = vmatprep.subr.mxu0 %v15644_v17 }
 0x51b   :  { %8922 = vmatpush3.msra.mxu1 %v15643_v39  ;;  %8952 = vmatpush3.msra.mxu0 %v15644_v17  ;;  %v15647_v17 = vld [vmem:[#allocation34_spill] sm:$0xff]  ;;  %v2229_v39 = vpop.permute.xlu0 %2228  ;;  %v6077_v22 = vmul.f32 1.442695, %v6044_v42  ;;  %v2315_v42 = vmul.f32 %v12288_v18, %v2221_v56  ;;  %v5889_v18 = vmul.f32 %v12535_v26, %v10702_v10  ;;  %v15656_v56 = vld [vmem:[#allocation67_spill] sm:$0xff] }
 0x51c   :  { %8909 = vmatmul.mubr.f32.gmra.mxu0 %v9514_v48  ;;  %8923 = vmatprep.subr.mxu1 %v15645_v32  ;;  %v15648_v48 = vld [vmem:[#allocation23_spill] sm:$0xff]  ;;  %v12890_v50 = vpop.permute.xlu1 %2222 }
 0x51d   :  { %8953 = vmatprep.subr.mxu0 %v15646_v35  ;;  %8924 = vmatpush3.msra.mxu1 %v15645_v32  ;;  %v15651_v32 = vld [vmem:[#allocation36_spill] sm:$0xff]  ;;  %9517 = vpow2.f32 %v6077_v22  ;;  %v6048_v22 = vsub.f32 %v5888_v49, %v12526_v57  ;;  %v6049_v57 = vsub.f32 %v5889_v18, %v12570_v31  ;;  %v15659_v31 = vld [vmem:[#allocation29_spill] sm:$0xff] }
 0x51e   :  { %8954 = vmatpush3.msra.mxu0 %v15646_v35  ;;  %8981 = vmatprep.mubr.f32.mxu0 %v9516_v38  ;;  %v6079_v35 = vmul.f32 1.442695, %v6045_v53  ;;  %v6051_v38 = vsub.f32 %v5891_v62, %v12515_v51  ;;  %v15652_v53 = vld [vmem:[#allocation26_spill] sm:$0xff]  ;;  %v15655_v51 = vld [vmem:[#allocation41_spill] sm:$0xff]  ;;  %v15660_v49 = vld [vmem:[#allocation44_spill] sm:$0xff] }
 0x51f   :  { %8925 = vmatprep.subr.mxu1 %v15472_v52  ;;  %8955 = vmatprep.subr.mxu0 %v15647_v17  ;;  %v12901_v14 = vpop.permute.xlu0 %2224  ;;  %v6085_v26 = vmul.f32 1.442695, %v6048_v22 }
 0x520   :  { %8926 = vmatpush3.msra.mxu1 %v15472_v52  ;;  %8956 = vmatpush3.msra.mxu0 %v15647_v17  ;;  %v15650_v52 = vld [vmem:[#allocation24_spill] sm:$0xff]  ;;  %9519 = vpow2.f32 %v6079_v35  ;;  %v12913_v45 = vpop.permute.xlu1 %2230 }
 0x521   :  { %8927 = vmatprep.subr.mxu1 %v15648_v48  ;;  %8957 = vmatprep.subr.mxu0 %v15649_v3  ;;  %v15653_v17 = vld [vmem:[#allocation40_spill] sm:$0xff]  ;;  %9521 = vpow2.f32 %v6081_v36  ;;  %v12943_v36 = vpop.f32.mrf.mxu1 }
 0x522   :  { %8928 = vmatpush3.msra.mxu1 %v15648_v48  ;;  %8958 = vmatpush3.msra.mxu0 %v15649_v3  ;;  %v2319_v48 = vmul.f32 %v15656_v56, %v2229_v39  ;;  %v15657_v35 = vld [vmem:[#allocation28_spill] sm:$0xff] }
 0x523   :  { %8929 = vmatprep.subr.mxu1 %v15650_v52  ;;  %8959 = vmatprep.subr.mxu0 %v15651_v32  ;;  %v12924_v3 = vpop.permute.xlu0 %2232  ;;  %v12958_v56 = vpop.f32.mrf.mxu1 }
 0x524   :  { %8930 = vmatpush3.msra.mxu1 %v15650_v52  ;;  %8960 = vmatpush3.msra.mxu0 %v15651_v32  ;;  %v5890_v52 = vmul.f32 %v12559_v19, %v10702_v10  ;;  %v12933_v39 = vpop.permute.xlu1 %6013  ;;  %v6087_v32 = vmul.f32 1.442695, %v6049_v57  ;;  %v15662_v19 = vld [vmem:[#allocation183_spill] sm:$0xff] }
 0x525   :  { %8931 = vmatprep.subr.mxu1 %v15478_v59  ;;  %8961 = vmatprep.subr.mxu0 %v15479_v27 }
 0x526   :  { %8932 = vmatpush3.msra.mxu1 %v15478_v59  ;;  %8962 = vmatpush3.msra.mxu0 %v15479_v27  ;;  %v15654_v27 = vld [vmem:[#allocation27_spill] sm:$0xff]  ;;  %v6091_v59 = vmul.f32 1.442695, %v6051_v38  ;;  %v6050_v62 = vsub.f32 %v5890_v52, %v12602_v46  ;;  %v15661_v38 = vld [vmem:[#allocation161_spill] sm:$0xff]  ;;  %v15670_v52 = vld [vmem:[#allocation128_spill] sm:$0xff] }
 0x527   :  { %8933 = vmatprep.subr.mxu1 %v15652_v53  ;;  %8963 = vmatprep.subr.mxu0 %v15653_v17  ;;  %v5895_v10 = vmul.f32 %v12627_v37, %v15661_v38  ;;  %v12947_v46 = vpop.permute.xlu0 %6001 }
 0x528   :  { %9255 = vset.pattern.permute.xlu0 %v9841_v43  ;;  %8934 = vmatpush3.msra.mxu1 %v15652_v53  ;;  %9523 = vpow2.f32 %v6091_v59  ;;  %v15663_v53 = vld [vmem:[#allocation30_spill] sm:$0xff]  ;;  %v6089_v37 = vmul.f32 1.442695, %v6050_v62  ;;  %v12956_v57 = vpop.permute.xlu1 %5845 }
 0x529   :  { %8964 = vmatpush3.msra.mxu0 %v15653_v17  ;;  %8935 = vmatprep.subr.mxu1 %v15654_v27  ;;  %9525 = vpow2.f32 %v6085_v26  ;;  %v15664_v17 = vld [vmem:[#allocation46_spill] sm:$0xff]  ;;  %v15669_v26 = vld [vmem:[#allocation159_spill] sm:$0xff] }
 0x52a   :  { %8965 = vmatprep.subr.mxu0 %v15655_v51  ;;  %2382 = vperm.xlu0 %9255, %v2315_v42   ;;  %v2318_v42 = vmul.f32 %v12871_v4, %v15662_v19  ;;  %v9518_v22 = vpop.eup %9517  ;;  %9527 = vpow2.f32 %v6087_v32  ;;  %v15665_v4 = vld [vmem:[#allocation186_spill] sm:$0xff]  ;;  %v15671_v32 = vld [vmem:[#allocation49_spill] sm:$0xff] }
 0x52b   :  { %8936 = vmatpush3.msra.mxu1 %v15654_v27  ;;  %8966 = vmatpush3.msra.mxu0 %v15655_v51  ;;  %v2314_v18 = vmul.f32 %v12858_v23, %v15665_v4  ;;  %v15666_v27 = vld [vmem:[#allocation47_spill] sm:$0xff]  ;;  %v15667_v51 = vld [vmem:[#allocation37_spill] sm:$0xff]  ;;  %9529 = vpow2.f32 %v6089_v37  ;;  %v15668_v23 = vld [vmem:[#allocation48_spill] sm:$0xff] }
 0x52c   :  { %8937 = vmatprep.subr.mxu1 %v15657_v35  ;;  %8967 = vmatprep.subr.mxu0 %v15658_v58  ;;  %9531 = vrcp.f32 %v12958_v56  ;;  %v15676_v4 = vld [vmem:[#allocation119_spill] sm:$0xff] }
 0x52d   :  { %9256 = vset.pattern.permute.xlu1 %v9841_v43  ;;  %8938 = vmatpush3.msra.mxu1 %v15657_v35  ;;  %v6055_v43 = vsub.f32 %v5895_v10, %v12665_v63  ;;  %v9520_v59 = vpop.eup %9519  ;;  %v12960_v63 = vpop.f32.mrf.mxu0 }
 0x52e   :  { %8968 = vmatpush3.msra.mxu0 %v15658_v58  ;;  %8939 = vmatprep.subr.mxu1 %v15659_v31  ;;  %v12966_v35 = vpop.permute.xlu0 %6017  ;;  %v9522_v58 = vpop.eup %9521 }
 0x52f   :  { %8969 = vmatprep.subr.mxu0 %v15660_v49  ;;  %2394 = vperm.xlu1 %9256, %v2319_v48   ;;  %v6099_v48 = vmul.f32 1.442695, %v6055_v43  ;;  %v12974_v62 = vpop.f32.mrf.mxu0  ;;  %v12977_v10 = vpop.permute.xlu1 %5861  ;;  %v15675_v43 = vld [vmem:[#allocation162_spill] sm:$0xff] }
 0x530   :  { %8940 = vmatpush3.msra.mxu1 %v15659_v31  ;;  %8970 = vmatpush3.msra.mxu0 %v15660_v49  ;;  %v2317_v31 = vmul.f32 %v15670_v52, %v12901_v14  ;;  %v15672_v49 = vld [vmem:[#allocation160_spill] sm:$0xff]  ;;  %v15673_v14 = vld [vmem:[#allocation59_spill] sm:$0xff] }
 0x531   :  { %8941 = vmatprep.subr.mxu1 %v15663_v53  ;;  %8971 = vmatprep.subr.mxu0 %v15664_v17  ;;  %9533 = vpow2.f32 %v6099_v48  ;;  %v12999_v48 = vpop.f32.mrf.mxu0 }
 0x532   :  { %8942 = vmatpush3.msra.mxu1 %v15663_v53  ;;  %8972 = vmatpush3.msra.mxu0 %v15664_v17  ;;  %v2320_v53 = vmul.f32 %v12913_v45, %v15673_v14  ;;  %v15674_v17 = vld [vmem:[#allocation50_spill] sm:$0xff]  ;;  %9535 = vrcp.f32 %v12974_v62  ;;  %v12989_v37 = vpop.permute.xlu0 %5849 }
 0x533   :  { %8944 = vmatmul.mubr.f32.vlgmr.msra.gmra.mxu1 %v9518_v22  ;;  %8973 = vmatprep.subr.mxu0 %v15666_v27  ;;  %9537 = vrcp.f32 %v12943_v36 }
 0x534   :  { %8987 = vmatprep.subr.mxu1 %v15667_v51  ;;  %2391 = vperm.xlu0 %9255, %v2318_v42   ;;  %v12979_v42 = vpop.f32.mrf.mxu1 }
 0x535   :  { %2379 = vperm.xlu1 %9256, %v2314_v18   ;;  %8946 = vmatprep.mubr.f32.mxu1 %v9520_v59  ;;  %v9524_v19 = vpop.eup %9523  ;;  %v2321_v18 = vmul.f32 %v15676_v4, %v12924_v3  ;;  %v15678_v59 = vld [vmem:[#allocation53_spill] sm:$0xff]  ;;  %v15679_v3 = vld [vmem:[#allocation164_spill] sm:$0xff] }
 0x536   :  { %8974 = vmatpush3.msra.mxu0 %v15666_v27  ;;  %8988 = vmatpush3.msra.mxu1 %v15667_v51  ;;  %v9526_v22 = vpop.eup %9525  ;;  %v12995_v45 = vpop.f32.mrf.mxu1  ;;  %v15677_v27 = vld [vmem:[#allocation163_spill] sm:$0xff] }
 0x537   :  { %8975 = vmatprep.subr.mxu0 %v15668_v23  ;;  %8989 = vmatprep.subr.mxu1 %v15669_v26  ;;  %v9528_v51 = vpop.eup %9527  ;;  %9539 = vrcp.f32 %v12995_v45 }
 0x538   :  { %8976 = vmatpush3.msra.mxu0 %v15668_v23  ;;  %8990 = vmatpush3.msra.mxu1 %v15669_v26  ;;  %v13001_v23 = vpop.permute.xlu1 %6005  ;;  %9541 = vrcp.f32 %v12960_v63  ;;  %v15680_v26 = vld [vmem:[#allocation165_spill] sm:$0xff]  ;;  %v9530_v52 = vpop.eup %9529 }
 0x539   :  { %8947 = vmatmul.mubr.f32.gmra.mxu1 %v9522_v58  ;;  %8977 = vmatprep.subr.mxu0 %v15671_v32  ;;  %v13010_v58 = vpop.permute.xlu0 %5865  ;;  %v9532_v14 = vpop.eup %9531 }
 0x53a   :  { %8991 = vmatprep.subr.mxu1 %v15672_v49  ;;  %2388 = vperm.xlu1 %9256, %v2317_v31   ;;  %v13012_v31 = vpop.f32.mrf.mxu0 }
 0x53b   :  { %8978 = vmatpush3.msra.mxu0 %v15671_v32  ;;  %8992 = vmatpush3.msra.mxu1 %v15672_v49  ;;  %v15681_v32 = vld [vmem:[#allocation84_spill] sm:$0xff]  ;;  %9543 = vrcp.f32 %v13012_v31 }
 0x53c   :  { %9019 = vmatprep.mubr.f32.mxu1 %v9524_v19  ;;  %8979 = vmatprep.subr.mxu0 %v15674_v17  ;;  %v2316_v49 = vmul.f32 %v12890_v50, %v15681_v32  ;;  %v15682_v19 = vld [vmem:[#allocation166_spill] sm:$0xff]  ;;  %v15685_v50 = vld [vmem:[#allocation76_spill] sm:$0xff]  ;;  %9545 = vrcp.f32 %v12979_v42 }
 0x53d   :  { %8993 = vmatprep.subr.mxu1 %v15675_v43  ;;  %8980 = vmatpush3.msra.mxu0 %v15674_v17  ;;  %v15684_v17 = vld [vmem:[#allocation88_spill] sm:$0xff]  ;;  %v15689_v32 = vld [vmem:[#allocation170_spill] sm:$0xff]  ;;  %9547 = vrcp.f32 %v12999_v48 }
 0x53e   :  { %8994 = vmatpush3.msra.mxu1 %v15675_v43  ;;  %8982 = vmatmul.mubr.f32.vlgmr.msra.gmra.mxu0 %v9526_v22  ;;  %v5892_v22 = vmul.f32 %v15684_v17, %v10717_v44  ;;  %v13022_v43 = vpop.permute.xlu1 %2234  ;;  %v9534_v4 = vpop.eup %9533 }
 0x53f   :  { %8995 = vmatprep.subr.mxu1 %v15677_v27  ;;  %9025 = vmatprep.subr.mxu0 %v15678_v59 }
 0x540   :  { %2397 = vperm.xlu0 %9255, %v2320_v53   ;;  %2400 = vperm.xlu1 %9256, %v2321_v18   ;;  %v15683_v53 = vld [vmem:[#allocation167_spill] sm:$0xff]  ;;  %v6052_v18 = vsub.f32 %v5892_v22, %v15685_v50  ;;  %v5894_v22 = vmul.f32 %v12580_v6, %v10717_v44  ;;  %v5899_v6 = vmul.f32 %v12641_v25, %v10878_v33 }
 0x541   :  { %8984 = vmatprep.mubr.f32.mxu0 %v9528_v51  ;;  %8996 = vmatpush3.msra.mxu1 %v15677_v27  ;;  %v15686_v27 = vld [vmem:[#allocation168_spill] sm:$0xff] }
 0x542   :  { %9026 = vmatpush3.msra.mxu0 %v15678_v59  ;;  %8997 = vmatprep.subr.mxu1 %v15679_v3  ;;  %v15687_v59 = vld [vmem:[#allocation129_spill] sm:$0xff]  ;;  %v13043_v17 = vpop.permute.xlu1 %2242 }
 0x543   :  { %9027 = vmatprep.subr.mxu0 %v15680_v26  ;;  %8998 = vmatpush3.msra.mxu1 %v15679_v3  ;;  %v5893_v51 = vmul.f32 %v15687_v59, %v10717_v44  ;;  %v15688_v3 = vld [vmem:[#allocation169_spill] sm:$0xff]  ;;  %v15693_v59 = vld [vmem:[#allocation174_spill] sm:$0xff] }
 0x544   :  { %9028 = vmatpush3.msra.mxu0 %v15680_v26  ;;  %8999 = vmatprep.subr.mxu1 %v15682_v19  ;;  %v13034_v26 = vpop.permute.xlu0 %2236 }
 0x545   :  { %8985 = vmatmul.mubr.f32.gmra.mxu0 %v9530_v52  ;;  %9029 = vmatprep.subr.mxu0 %v15683_v53  ;;  %v9536_v52 = vpop.eup %9535 }
 0x546   :  { %3777 = vrot.lane.b32.xlu0 %v9532_v14, %s9840_s0  ;;  %2385 = vperm.xlu1 %9256, %v2316_v49   ;;  %v9538_v49 = vpop.eup %9537  ;;  %v15690_v14 = vld [vmem:[#allocation171_spill] sm:$0xff] }
 0x547   :  { %9000 = vmatpush3.msra.mxu1 %v15682_v19  ;;  %9030 = vmatpush3.msra.mxu0 %v15683_v53  ;;  %v6053_v19 = vsub.f32 %v5893_v51, %v12590_v54  ;;  %v6093_v53 = vmul.f32 1.442695, %v6052_v18  ;;  %v15692_v54 = vld [vmem:[#allocation173_spill] sm:$0xff]  ;;  %v9540_v50 = vpop.eup %9539 }
 0x548   :  { %9057 = vmatprep.mubr.f32.mxu0 %v9534_v4  ;;  %9001 = vmatprep.subr.mxu1 %v15686_v27  ;;  %v15691_v4 = vld [vmem:[#allocation172_spill] sm:$0xff]  ;;  %v13055_v51 = vpop.permute.xlu0 %2244  ;;  %v9542_v44 = vpop.eup %9541 }
 0x549   :  { %9031 = vmatprep.subr.mxu0 %v15688_v3  ;;  %9002 = vmatpush3.msra.mxu1 %v15686_v27  ;;  %v6095_v18 = vmul.f32 1.442695, %v6053_v19  ;;  %v6054_v27 = vsub.f32 %v5894_v22, %v12616_v34  ;;  %9549 = vpow2.f32 %v6093_v53  ;;  %v5896_v34 = vmul.f32 %v12655_v16, %v15661_v38  ;;  %v15696_v19 = vld [vmem:[#allocation177_spill] sm:$0xff]  ;;  %v15697_v16 = vld [vmem:[#allocation178_spill] sm:$0xff] }
 0x54a   :  { %9032 = vmatpush3.msra.mxu0 %v15688_v3  ;;  %9003 = vmatprep.subr.mxu1 %v15689_v32  ;;  %v15694_v3 = vld [vmem:[#allocation175_spill] sm:$0xff]  ;;  %v5897_v22 = vmul.f32 %v12703_v30, %v15661_v38  ;;  %v15700_v30 = vld [vmem:[#allocation180_spill] sm:$0xff] }
 0x54b   :  { %9033 = vmatprep.subr.mxu0 %v15690_v14  ;;  %3785 = vrot.lane.b32.xlu0 %v9536_v52, %s9840_s0  ;;  %v6059_v52 = vsub.f32 %v5899_v6, %v12686_v28  ;;  %9551 = vpow2.f32 %v6095_v18  ;;  %v6097_v25 = vmul.f32 1.442695, %v6054_v27  ;;  %v6056_v53 = vsub.f32 %v5896_v34, %v12695_v20  ;;  %v15699_v18 = vld [vmem:[#allocation86_spill] sm:$0xff] }
 0x54c   :  { %3779 = vrot.lane.b32.xlu1 %v9538_v49, %s9840_s0  ;;  %9004 = vmatpush3.msra.mxu1 %v15689_v32  ;;  %v15695_v32 = vld [vmem:[#allocation176_spill] sm:$0xff]  ;;  %v13068_v49 = vpop.permute.xlu1 %2238  ;;  %v2322_v20 = vmul.f32 %v13022_v43, %v15699_v18  ;;  %v6057_v27 = vsub.f32 %v5897_v22, %v12748_v40  ;;  %v15702_v43 = vld [vmem:[#allocation21_spill] sm:$0xff]  ;;  %v15709_v18 = vld [vmem:[#allocation138_spill] sm:$0xff] }
 0x54d   :  { %9034 = vmatpush3.msra.mxu0 %v15690_v14  ;;  %9005 = vmatprep.subr.mxu1 %v15691_v4  ;;  %v9544_v14 = vpop.eup %9543  ;;  %9553 = vpow2.f32 %v6097_v25  ;;  %v15703_v40 = vld [vmem:[#allocation45_spill] sm:$0xff] }
 0x54e   :  { %9035 = vmatprep.subr.mxu0 %v15692_v54  ;;  %9006 = vmatpush3.msra.mxu1 %v15691_v4  ;;  %v9546_v28 = vpop.eup %9545  ;;  %v15698_v4 = vld [vmem:[#allocation179_spill] sm:$0xff]  ;;  %v15707_v22 = vld [vmem:[#allocation185_spill] sm:$0xff] }
 0x54f   :  { %9036 = vmatpush3.msra.mxu0 %v15692_v54  ;;  %9007 = vmatprep.subr.mxu1 %v15693_v59  ;;  %v13079_v54 = vpop.permute.xlu0 %2240  ;;  %v9548_v34 = vpop.eup %9547 }
 0x550   :  { %9037 = vmatprep.subr.mxu0 %v15694_v3  ;;  %3781 = vrot.lane.b32.xlu0 %v9540_v50, %s9840_s0  ;;  %v6107_v50 = vmul.f32 1.442695, %v6059_v52  ;;  %v13090_v6 = vpop.permute.xlu1 %2246  ;;  %v6103_v52 = vmul.f32 1.442695, %v6057_v27 }
 0x551   :  { %3787 = vrot.lane.b32.xlu1 %v9542_v44, %s9840_s0  ;;  %9008 = vmatpush3.msra.mxu1 %v15693_v59  ;;  %v6101_v59 = vmul.f32 1.442695, %v6056_v53  ;;  %v15701_v44 = vld [vmem:[#allocation57_spill] sm:$0xff] }
 0x552   :  { %9038 = vmatpush3.msra.mxu0 %v15694_v3  ;;  %9009 = vmatprep.subr.mxu1 %v15695_v32  ;;  %v5898_v3 = vmul.f32 %v12737_v47, %v15661_v38  ;;  %9555 = vpow2.f32 %v6107_v50  ;;  %v5903_v47 = vmul.f32 %v12820_v29, %v15531_v55  ;;  %v15704_v38 = vld [vmem:[#allocation187_spill] sm:$0xff] }
 0x553   :  { %9039 = vmatprep.subr.mxu0 %v15696_v19  ;;  %9010 = vmatpush3.msra.mxu1 %v15695_v32  ;;  %v13100_v25 = vpop.permute.xlu0 %2248  ;;  %9557 = vpow2.f32 %v6101_v59  ;;  %v15708_v50 = vld [vmem:[#allocation55_spill] sm:$0xff]  ;;  %v15710_v59 = vld [vmem:[#allocation188_spill] sm:$0xff] }
 0x554   :  { %9040 = vmatpush3.msra.mxu0 %v15696_v19  ;;  %9011 = vmatprep.subr.mxu1 %v15697_v16  ;;  %v6058_v32 = vsub.f32 %v5898_v3, %v12794_v8  ;;  %v2326_v19 = vmul.f32 %v13043_v17, %v15704_v38  ;;  %v15706_v8 = vld [vmem:[#allocation33_spill] sm:$0xff]  ;;  %v13116_v29 = vpop.permute.xlu1 %6021  ;;  %9559 = vpow2.f32 %v6103_v52  ;;  %v15711_v3 = vld [vmem:[#allocation42_spill] sm:$0xff] }
 0x555   :  { %9041 = vmatprep.subr.mxu0 %v15698_v4  ;;  %3789 = vrot.lane.b32.xlu0 %v9544_v14, %s9840_s0  ;;  %v15705_v14 = vld [vmem:[#allocation132_spill] sm:$0xff] }
 0x556   :  { %3783 = vrot.lane.b32.xlu1 %v9546_v28, %s9840_s0  ;;  %9012 = vmatpush3.msra.mxu1 %v15697_v16  ;;  %v9550_v53 = vpop.eup %9549  ;;  %v13108_v16 = vpop.f32.mrf.mxu1  ;;  %v6063_v28 = vsub.f32 %v5903_v47, %v12844_v1  ;;  %v6105_v17 = vmul.f32 1.442695, %v6058_v32  ;;  %v15714_v32 = vld [vmem:[#allocation52_spill] sm:$0xff]  ;;  %v15715_v47 = vld [vmem:[#allocation77_spill] sm:$0xff] }
 0x557   :  { %9042 = vmatpush3.msra.mxu0 %v15698_v4  ;;  %9013 = vmatprep.subr.mxu1 %v15700_v30  ;;  %v2323_v4 = vmul.f32 %v15707_v22, %v13034_v26  ;;  %v13123_v1 = vpop.permute.xlu0 %6009  ;;  %v13125_v26 = vpop.f32.mrf.mxu0 }
 0x558   :  { %9043 = vmatprep.subr.mxu0 %v15701_v44  ;;  %9014 = vmatpush3.msra.mxu1 %v15700_v30  ;;  %v13120_v27 = vpop.f32.mrf.mxu1  ;;  %v6115_v30 = vmul.f32 1.442695, %v6063_v28  ;;  %9561 = vpow2.f32 %v6105_v17  ;;  %v15717_v28 = vld [vmem:[#allocation39_spill] sm:$0xff]  ;;  %v15719_v17 = vld [vmem:[#allocation72_spill] sm:$0xff] }
 0x559   :  { %9044 = vmatpush3.msra.mxu0 %v15701_v44  ;;  %9015 = vmatprep.subr.mxu1 %v15702_v43  ;;  %v2324_v44 = vmul.f32 %v13068_v49, %v15710_v59  ;;  %9563 = vrcp.f32 %v13120_v27  ;;  %v13138_v49 = vpop.permute.xlu1 %6025  ;;  %v13141_v38 = vpop.f32.mrf.mxu0 }
 0x55a   :  { %9045 = vmatprep.subr.mxu0 %v15703_v40  ;;  %2403 = vperm.xlu0 %9255, %v2322_v20   ;;  %v9552_v20 = vpop.eup %9551  ;;  %9565 = vpow2.f32 %v6115_v30  ;;  %v15721_v30 = vld [vmem:[#allocation61_spill] sm:$0xff] }
 0x55b   :  { %3791 = vrot.lane.b32.xlu1 %v9548_v34, %s9840_s0  ;;  %9016 = vmatpush3.msra.mxu1 %v15702_v43  ;;  %v15712_v43 = vld [vmem:[#allocation65_spill] sm:$0xff]  ;;  %v9554_v34 = vpop.eup %9553  ;;  %9567 = vrcp.f32 %v13141_v38 }
 0x55c   :  { %9046 = vmatpush3.msra.mxu0 %v15703_v40  ;;  %9017 = vmatprep.subr.mxu1 %v15705_v14  ;;  %v15713_v40 = vld [vmem:[#allocation136_spill] sm:$0xff]  ;;  %9569 = vrcp.f32 %v13108_v16 }
 0x55d   :  { %9047 = vmatprep.subr.mxu0 %v15706_v8  ;;  %9018 = vmatpush3.msra.mxu1 %v15705_v14  ;;  %v2327_v52 = vmul.f32 %v15713_v40, %v13055_v51  ;;  %v13143_v14 = vpop.f32.mrf.mxu1  ;;  %v13147_v51 = vpop.permute.xlu0 %5869 }
 0x55e   :  { %9048 = vmatpush3.msra.mxu0 %v15706_v8  ;;  %9020 = vmatmul.mubr.f32.vlgmr.msra.gmra.mxu1 %v9550_v53  ;;  %v15716_v53 = vld [vmem:[#allocation117_spill] sm:$0xff] }
 0x55f   :  { %9049 = vmatprep.subr.mxu0 %v15708_v50  ;;  %9063 = vmatprep.subr.mxu1 %v15709_v18  ;;  %v2328_v8 = vmul.f32 %v13090_v6, %v15716_v53  ;;  %v13161_v6 = vpop.f32.mrf.mxu1 }
 0x560   :  { %2415 = vperm.xlu0 %9255, %v2326_v19   ;;  %2406 = vperm.xlu1 %9256, %v2323_v4   ;;  %v9556_v19 = vpop.eup %9555  ;;  %v15718_v4 = vld [vmem:[#allocation62_spill] sm:$0xff]  ;;  %9571 = vrcp.f32 %v13161_v6 }
 0x561   :  { %9022 = vmatprep.mubr.f32.mxu1 %v9552_v20  ;;  %9050 = vmatpush3.msra.mxu0 %v15708_v50  ;;  %v9558_v22 = vpop.eup %9557  ;;  %v2325_v50 = vmul.f32 %v15719_v17, %v13079_v54  ;;  %v15720_v20 = vld [vmem:[#allocation51_spill] sm:$0xff]  ;;  %v13168_v54 = vpop.permute.xlu0 %5873  ;;  %9573 = vrcp.f32 %v13125_v26 }
 0x562   :  { %9064 = vmatpush3.msra.mxu1 %v15709_v18  ;;  %9051 = vmatprep.subr.mxu0 %v15711_v3  ;;  %v13159_v18 = vpop.permute.xlu1 %5877  ;;  %v9560_v59 = vpop.eup %9559 }
 0x563   :  { %9065 = vmatprep.subr.mxu1 %v15712_v43  ;;  %9052 = vmatpush3.msra.mxu0 %v15711_v3  ;;  %v15722_v3 = vld [vmem:[#allocation91_spill] sm:$0xff] }
 0x564   :  { %9066 = vmatpush3.msra.mxu1 %v15712_v43  ;;  %9053 = vmatprep.subr.mxu0 %v15714_v32  ;;  %v15723_v43 = vld [vmem:[#allocation73_spill] sm:$0xff] }
 0x565   :  { %9023 = vmatmul.mubr.f32.gmra.mxu1 %v9554_v34  ;;  %9067 = vmatprep.subr.mxu1 %v15715_v47  ;;  %v9562_v34 = vpop.eup %9561 }
 0x566   :  { %2409 = vperm.xlu0 %9255, %v2324_v44   ;;  %2418 = vperm.xlu1 %9256, %v2327_v52   ;;  %v13165_v44 = vpop.f32.mrf.mxu0  ;;  %v15724_v52 = vld [vmem:[#allocation190_spill] sm:$0xff]  ;;  %v9564_v53 = vpop.eup %9563 }
 0x567   :  { %9054 = vmatpush3.msra.mxu0 %v15714_v32  ;;  %9068 = vmatpush3.msra.mxu1 %v15715_v47  ;;  %v2329_v32 = vmul.f32 %v15724_v52, %v13100_v25  ;;  %v15725_v47 = vld [vmem:[#allocation60_spill] sm:$0xff]  ;;  %v13191_v25 = vpop.permute.xlu0 %5881 }
 0x568   :  { %9095 = vmatprep.mubr.f32.mxu1 %v9556_v19  ;;  %9055 = vmatprep.subr.mxu0 %v15717_v28  ;;  %v13176_v40 = vpop.f32.mrf.mxu0  ;;  %v13182_v19 = vpop.permute.xlu1 %6029 }
 0x569   :  { %9069 = vmatprep.subr.mxu1 %v15718_v4  ;;  %9056 = vmatpush3.msra.mxu0 %v15717_v28  ;;  %v5900_v28 = vmul.f32 %v12675_v13, %v10878_v33  ;;  %9575 = vrcp.f32 %v13176_v40  ;;  %v15729_v13 = vld [vmem:[#allocation85_spill] sm:$0xff] }
 0x56a   :  { %9070 = vmatpush3.msra.mxu1 %v15718_v4  ;;  %9058 = vmatmul.mubr.f32.vlgmr.msra.gmra.mxu0 %v9558_v22  ;;  %v9566_v22 = vpop.eup %9565  ;;  %v15727_v4 = vld [vmem:[#allocation151_spill] sm:$0xff]  ;;  %9577 = vrcp.f32 %v13143_v14 }
 0x56b   :  { %9071 = vmatprep.subr.mxu1 %v15720_v20  ;;  %9101 = vmatprep.subr.mxu0 %v15721_v30  ;;  %v6060_v17 = vsub.f32 %v5900_v28, %v15727_v4  ;;  %9579 = vrcp.f32 %v13165_v44  ;;  %v13212_v28 = vpop.permute.xlu0 %2252 }
 0x56c   :  { %2421 = vperm.xlu0 %9255, %v2328_v8   ;;  %2412 = vperm.xlu1 %9256, %v2325_v50   ;;  %v15726_v8 = vld [vmem:[#allocation87_spill] sm:$0xff]  ;;  %v15728_v50 = vld [vmem:[#allocation70_spill] sm:$0xff] }
 0x56d   :  { %9060 = vmatprep.mubr.f32.mxu0 %v9560_v59  ;;  %9072 = vmatpush3.msra.mxu1 %v15720_v20  ;;  %v5901_v20 = vmul.f32 %v15729_v13, %v10878_v33  ;;  %v9568_v59 = vpop.eup %9567  ;;  %v15736_v13 = vld [vmem:[#allocation80_spill] sm:$0xff] }
 0x56e   :  { %9102 = vmatpush3.msra.mxu0 %v15721_v30  ;;  %9073 = vmatprep.subr.mxu1 %v15722_v3  ;;  %v15730_v30 = vld [vmem:[#allocation92_spill] sm:$0xff] }
 0x56f   :  { %9103 = vmatprep.subr.mxu0 %v15723_v43  ;;  %9074 = vmatpush3.msra.mxu1 %v15722_v3  ;;  %v15731_v3 = vld [vmem:[#allocation133_spill] sm:$0xff]  ;;  %v6061_v52 = vsub.f32 %v5901_v20, %v12776_v0 }
 0x570   :  { %9104 = vmatpush3.msra.mxu0 %v15723_v43  ;;  %9075 = vmatprep.subr.mxu1 %v15725_v47  ;;  %v2251_v43 = vpop.permute.xlu1 %2250 }
 0x571   :  { %9061 = vmatmul.mubr.f32.gmra.mxu0 %v9562_v34  ;;  %9105 = vmatprep.subr.mxu0 %v15726_v8  ;;  %v9570_v34 = vpop.eup %9569 }
 0x572   :  { %3793 = vrot.lane.b32.xlu0 %v9564_v53, %s9840_s0  ;;  %2424 = vperm.xlu1 %9256, %v2329_v32   ;;  %v15732_v32 = vld [vmem:[#allocation135_spill] sm:$0xff]  ;;  %v5902_v53 = vmul.f32 %v12766_v41, %v10878_v33  ;;  %v9572_v4 = vpop.eup %9571  ;;  %v6111_v33 = vmul.f32 1.442695, %v6061_v52  ;;  %v5907_v41 = vmul.f32 %v12830_v24, %v15382_v12  ;;  %v15737_v24 = vld [vmem:[#allocation142_spill] sm:$0xff] }
 0x573   :  { %9076 = vmatpush3.msra.mxu1 %v15725_v47  ;;  %9106 = vmatpush3.msra.mxu0 %v15726_v8  ;;  %v6109_v47 = vmul.f32 1.442695, %v6060_v17  ;;  %v15733_v8 = vld [vmem:[#allocation69_spill] sm:$0xff]  ;;  %v15735_v17 = vld [vmem:[#allocation58_spill] sm:$0xff]  ;;  %v15739_v52 = vld [vmem:[#allocation139_spill] sm:$0xff] }
 0x574   :  { %9133 = vmatprep.mubr.f32.mxu0 %v9566_v22  ;;  %9077 = vmatprep.subr.mxu1 %v15728_v50  ;;  %v6062_v0 = vsub.f32 %v5902_v53, %v12806_v2  ;;  %v15734_v22 = vld [vmem:[#allocation90_spill] sm:$0xff]  ;;  %v2259_v2 = vpop.permute.xlu1 %2258  ;;  %v6067_v20 = vsub.f32 %v5907_v41, %v12933_v39  ;;  %v15743_v41 = vld [vmem:[#allocation140_spill] sm:$0xff] }
 0x575   :  { %9107 = vmatprep.subr.mxu0 %v15730_v30  ;;  %9078 = vmatpush3.msra.mxu1 %v15728_v50  ;;  %v9574_v50 = vpop.eup %9573  ;;  %9581 = vpow2.f32 %v6109_v47 }
 0x576   :  { %9108 = vmatpush3.msra.mxu0 %v15730_v30  ;;  %9079 = vmatprep.subr.mxu1 %v15731_v3  ;;  %v6113_v30 = vmul.f32 1.442695, %v6062_v0  ;;  %9583 = vpow2.f32 %v6111_v33  ;;  %v9576_v39 = vpop.eup %9575  ;;  %v6123_v53 = vmul.f32 1.442695, %v6067_v20  ;;  %v15740_v0 = vld [vmem:[#allocation56_spill] sm:$0xff] }
 0x577   :  { %9109 = vmatprep.subr.mxu0 %v15732_v32  ;;  %3801 = vrot.lane.b32.xlu0 %v9568_v59, %s9840_s0  ;;  %v5904_v59 = vmul.f32 %v12836_v5, %v15531_v55  ;;  %v15741_v5 = vld [vmem:[#allocation64_spill] sm:$0xff] }
 0x578   :  { %3795 = vrot.lane.b32.xlu1 %v9570_v34, %s9840_s0  ;;  %9080 = vmatpush3.msra.mxu1 %v15731_v3  ;;  %v15738_v3 = vld [vmem:[#allocation66_spill] sm:$0xff]  ;;  %v13232_v34 = vpop.permute.xlu0 %2260  ;;  %9585 = vpow2.f32 %v6113_v30 }
 0x579   :  { %9110 = vmatpush3.msra.mxu0 %v15732_v32  ;;  %9081 = vmatprep.subr.mxu1 %v15733_v8  ;;  %v9578_v32 = vpop.eup %9577  ;;  %v6064_v47 = vsub.f32 %v5904_v59, %v12947_v46  ;;  %v15742_v46 = vld [vmem:[#allocation78_spill] sm:$0xff]  ;;  %9587 = vpow2.f32 %v6123_v53  ;;  %v15747_v59 = vld [vmem:[#allocation63_spill] sm:$0xff] }
 0x57a   :  { %9111 = vmatprep.subr.mxu0 %v15734_v22  ;;  %9082 = vmatpush3.msra.mxu1 %v15733_v8  ;;  %v5905_v8 = vmul.f32 %v12956_v57, %v15531_v55  ;;  %v15750_v53 = vld [vmem:[#allocation146_spill] sm:$0xff] }
 0x57b   :  { %9112 = vmatpush3.msra.mxu0 %v15734_v22  ;;  %9083 = vmatprep.subr.mxu1 %v15735_v17  ;;  %v2330_v22 = vmul.f32 %v2251_v43, %v15741_v5  ;;  %v6117_v57 = vmul.f32 1.442695, %v6064_v47  ;;  %v15744_v43 = vld [vmem:[#allocation54_spill] sm:$0xff] }
 0x57c   :  { %9113 = vmatprep.subr.mxu0 %v15736_v13  ;;  %3797 = vrot.lane.b32.xlu0 %v9572_v4, %s9840_s0  ;;  %v2255_v4 = vpop.permute.xlu1 %2254  ;;  %v6065_v33 = vsub.f32 %v5905_v8, %v13001_v23  ;;  %v9580_v23 = vpop.eup %9579  ;;  %v15749_v47 = vld [vmem:[#allocation130_spill] sm:$0xff] }
 0x57d   :  { %3803 = vrot.lane.b32.xlu1 %v9574_v50, %s9840_s0  ;;  %9084 = vmatpush3.msra.mxu1 %v15735_v17  ;;  %v5906_v17 = vmul.f32 %v12989_v37, %v15531_v55  ;;  %v13253_v50 = vpop.permute.xlu0 %2256  ;;  %v5911_v55 = vmul.f32 %v13147_v51, %v15400_v60  ;;  %v15746_v37 = vld [vmem:[#allocation141_spill] sm:$0xff]  ;;  %9589 = vpow2.f32 %v6117_v57  ;;  %v2331_v51 = vmul.f32 %v15749_v47, %v13212_v28  ;;  %v15751_v8 = vld [vmem:[#allocation110_spill] sm:$0xff] }
 0x57e   :  { %9114 = vmatpush3.msra.mxu0 %v15736_v13  ;;  %9085 = vmatprep.subr.mxu1 %v15737_v24  ;;  %v15745_v13 = vld [vmem:[#allocation74_spill] sm:$0xff]  ;;  %v6119_v20 = vmul.f32 1.442695, %v6065_v33  ;;  %v15752_v33 = vld [vmem:[#allocation71_spill] sm:$0xff] }
 0x57f   :  { %9115 = vmatprep.subr.mxu0 %v15738_v3  ;;  %9086 = vmatpush3.msra.mxu1 %v15737_v24  ;;  %v6066_v30 = vsub.f32 %v5906_v17, %v13123_v1  ;;  %v2334_v24 = vmul.f32 %v2259_v2, %v15746_v37  ;;  %v6071_v1 = vsub.f32 %v5911_v55, %v13182_v19  ;;  %v13279_v19 = vpop.f32.mrf.mxu0 }
 0x580   :  { %9116 = vmatpush3.msra.mxu0 %v15738_v3  ;;  %9087 = vmatprep.subr.mxu1 %v15739_v52  ;;  %v2263_v3 = vpop.permute.xlu1 %2262  ;;  %9591 = vpow2.f32 %v6119_v20  ;;  %v15757_v20 = vld [vmem:[#allocation108_spill] sm:$0xff] }
 0x581   :  { %9117 = vmatprep.subr.mxu0 %v15740_v0  ;;  %3805 = vrot.lane.b32.xlu0 %v9576_v39, %s9840_s0  ;;  %v6121_v2 = vmul.f32 1.442695, %v6066_v30  ;;  %v6131_v28 = vmul.f32 1.442695, %v6071_v1  ;;  %v13296_v37 = vpop.f32.mrf.mxu0  ;;  %v15760_v1 = vld [vmem:[#allocation79_spill] sm:$0xff] }
 0x582   :  { %3799 = vrot.lane.b32.xlu1 %v9578_v32, %s9840_s0  ;;  %9088 = vmatpush3.msra.mxu1 %v15739_v52  ;;  %v9582_v39 = vpop.eup %9581  ;;  %v13264_v52 = vpop.f32.mrf.mxu1  ;;  %v15748_v32 = vld [vmem:[#allocation83_spill] sm:$0xff] }
 0x583   :  { %9118 = vmatpush3.msra.mxu0 %v15740_v0  ;;  %9089 = vmatprep.subr.mxu1 %v15742_v46  ;;  %v13274_v0 = vpop.permute.xlu0 %2264  ;;  %v9584_v5 = vpop.eup %9583  ;;  %9593 = vpow2.f32 %v6121_v2 }
 0x584   :  { %9119 = vmatprep.subr.mxu0 %v15743_v41  ;;  %9090 = vmatpush3.msra.mxu1 %v15742_v46  ;;  %v2332_v46 = vmul.f32 %v2255_v4, %v15752_v33  ;;  %v13284_v57 = vpop.permute.xlu1 %6037  ;;  %v15756_v4 = vld [vmem:[#allocation68_spill] sm:$0xff]  ;;  %v13319_v33 = vpop.f32.mrf.mxu0 }
 0x585   :  { %9120 = vmatpush3.msra.mxu0 %v15743_v41  ;;  %9091 = vmatprep.subr.mxu1 %v15744_v43  ;;  %v15753_v41 = vld [vmem:[#allocation111_spill] sm:$0xff]  ;;  %v9586_v17 = vpop.eup %9585 }
 0x586   :  { %9121 = vmatprep.subr.mxu0 %v15745_v13  ;;  %2427 = vperm.xlu0 %9255, %v2330_v22   ;;  %v13276_v22 = vpop.f32.mrf.mxu1  ;;  %v9588_v55 = vpop.eup %9587 }
 0x587   :  { %3807 = vrot.lane.b32.xlu1 %v9580_v23, %s9840_s0  ;;  %9092 = vmatpush3.msra.mxu1 %v15744_v43  ;;  %v15754_v43 = vld [vmem:[#allocation82_spill] sm:$0xff]  ;;  %9595 = vrcp.f32 %v13276_v22  ;;  %v15755_v23 = vld [vmem:[#allocation189_spill] sm:$0xff]  ;;  %v13294_v30 = vpop.permute.xlu0 %6033 }
 0x588   :  { %9122 = vmatpush3.msra.mxu0 %v15745_v13  ;;  %9093 = vmatprep.subr.mxu1 %v15747_v59  ;;  %v2335_v13 = vmul.f32 %v15755_v23, %v13232_v34  ;;  %9597 = vpow2.f32 %v6131_v28  ;;  %v15758_v34 = vld [vmem:[#allocation192_spill] sm:$0xff]  ;;  %v15766_v23 = vld [vmem:[#allocation81_spill] sm:$0xff] }
 0x589   :  { %9123 = vmatprep.subr.mxu0 %v15748_v32  ;;  %9094 = vmatpush3.msra.mxu1 %v15747_v59  ;;  %v2336_v59 = vmul.f32 %v2263_v3, %v15758_v34  ;;  %9599 = vrcp.f32 %v13296_v37  ;;  %v15762_v3 = vld [vmem:[#allocation106_spill] sm:$0xff]  ;;  %v5908_v34 = vmul.f32 %v12850_v15, %v15382_v12  ;;  %v5909_v15 = vmul.f32 %v12977_v10, %v15382_v12 }
 0x58a   :  { %9124 = vmatpush3.msra.mxu0 %v15748_v32  ;;  %9096 = vmatmul.mubr.f32.vlgmr.msra.gmra.mxu1 %v9582_v39  ;;  %v15759_v39 = vld [vmem:[#allocation109_spill] sm:$0xff]  ;;  %v13304_v32 = vpop.permute.xlu1 %2266  ;;  %v9590_v47 = vpop.eup %9589  ;;  %9601 = vrcp.f32 %v13264_v52  ;;  %v5910_v10 = vmul.f32 %v13010_v58, %v15382_v12 }
 0x58b   :  { %9125 = vmatprep.subr.mxu0 %v15750_v53  ;;  %9139 = vmatprep.subr.mxu1 %v15751_v8 }
 0x58c   :  { %2439 = vperm.xlu0 %9255, %v2334_v24   ;;  %2430 = vperm.xlu1 %9256, %v2331_v51   ;;  %v13298_v24 = vpop.f32.mrf.mxu1  ;;  %v15761_v51 = vld [vmem:[#allocation158_spill] sm:$0xff] }
 0x58d   :  { %9098 = vmatprep.mubr.f32.mxu1 %v9584_v5  ;;  %9140 = vmatpush3.msra.mxu1 %v15751_v8  ;;  %v2333_v2 = vmul.f32 %v15761_v51, %v13253_v50  ;;  %v15763_v8 = vld [vmem:[#allocation126_spill] sm:$0xff]  ;;  %v13317_v5 = vpop.permute.xlu0 %6041  ;;  %v9592_v28 = vpop.eup %9591  ;;  %v15764_v50 = vld [vmem:[#allocation107_spill] sm:$0xff] }
 0x58e   :  { %9126 = vmatpush3.msra.mxu0 %v15750_v53  ;;  %9141 = vmatprep.subr.mxu1 %v15753_v41  ;;  %v13314_v53 = vpop.f32.mrf.mxu1 }
 0x58f   :  { %9127 = vmatprep.subr.mxu0 %v15754_v43  ;;  %9142 = vmatpush3.msra.mxu1 %v15753_v41  ;;  %9603 = vrcp.f32 %v13314_v53  ;;  %v15765_v41 = vld [vmem:[#allocation127_spill] sm:$0xff] }
 0x590   :  { %9128 = vmatpush3.msra.mxu0 %v15754_v43  ;;  %9099 = vmatmul.mubr.f32.gmra.mxu1 %v9586_v17  ;;  %9605 = vrcp.f32 %v13279_v19  ;;  %v9594_v17 = vpop.eup %9593  ;;  %v13330_v43 = vpop.f32.mrf.mxu0 }
 0x591   :  { %9129 = vmatprep.subr.mxu0 %v15756_v4  ;;  %9143 = vmatprep.subr.mxu1 %v15757_v20  ;;  %9607 = vrcp.f32 %v13330_v43 }
 0x592   :  { %2433 = vperm.xlu0 %9255, %v2332_v46   ;;  %2442 = vperm.xlu1 %9256, %v2335_v13   ;;  %v13325_v46 = vpop.permute.xlu1 %2274  ;;  %v2337_v13 = vmul.f32 %v15766_v23, %v13274_v0  ;;  %9609 = vrcp.f32 %v13298_v24  ;;  %v6068_v0 = vsub.f32 %v5908_v34, %v12966_v35  ;;  %v6069_v35 = vsub.f32 %v5909_v15, %v13116_v29  ;;  %v15772_v23 = vld [vmem:[#allocation102_spill] sm:$0xff]  ;;  %v15775_v15 = vld [vmem:[#allocation145_spill] sm:$0xff] }
 0x593   :  { %9144 = vmatpush3.msra.mxu1 %v15757_v20  ;;  %9171 = vmatprep.mubr.f32.mxu1 %v9588_v55  ;;  %v13337_v55 = vpop.permute.xlu0 %2268  ;;  %9611 = vrcp.f32 %v13319_v33  ;;  %v6070_v29 = vsub.f32 %v5910_v10, %v13138_v49  ;;  %v5913_v34 = vmul.f32 %v13159_v18, %v15400_v60  ;;  %v5912_v18 = vmul.f32 %v13168_v54, %v15400_v60  ;;  %v15778_v10 = vld [vmem:[#allocation131_spill] sm:$0xff] }
 0x594   :  { %9130 = vmatpush3.msra.mxu0 %v15756_v4  ;;  %9145 = vmatprep.subr.mxu1 %v15759_v39  ;;  %v15767_v4 = vld [vmem:[#allocation104_spill] sm:$0xff]  ;;  %v9596_v20 = vpop.eup %9595  ;;  %v6127_v12 = vmul.f32 1.442695, %v6069_v35 }
 0x595   :  { %9131 = vmatprep.subr.mxu0 %v15760_v1  ;;  %9146 = vmatpush3.msra.mxu1 %v15759_v39  ;;  %v15768_v39 = vld [vmem:[#allocation105_spill] sm:$0xff] }
 0x596   :  { %9132 = vmatpush3.msra.mxu0 %v15760_v1  ;;  %9147 = vmatprep.subr.mxu1 %v15762_v3  ;;  %v13348_v1 = vpop.permute.xlu1 %2270 }
 0x597   :  { %9134 = vmatmul.mubr.f32.vlgmr.msra.gmra.mxu0 %v9590_v47  ;;  %9177 = vmatprep.subr.mxu0 %v15763_v8  ;;  %v15769_v47 = vld [vmem:[#allocation125_spill] sm:$0xff] }
 0x598   :  { %2445 = vperm.xlu0 %9255, %v2336_v59   ;;  %2436 = vperm.xlu1 %9256, %v2333_v2   ;;  %v9598_v59 = vpop.eup %9597  ;;  %v15770_v2 = vld [vmem:[#allocation143_spill] sm:$0xff] }
 0x599   :  { %9148 = vmatpush3.msra.mxu1 %v15762_v3  ;;  %9136 = vmatprep.mubr.f32.mxu0 %v9592_v28  ;;  %v9600_v51 = vpop.eup %9599  ;;  %v15771_v28 = vld [vmem:[#allocation144_spill] sm:$0xff] }
 0x59a   :  { %9178 = vmatpush3.msra.mxu0 %v15763_v8  ;;  %9149 = vmatprep.subr.mxu1 %v15764_v50  ;;  %v9602_v3 = vpop.eup %9601 }
 0x59b   :  { %9179 = vmatprep.subr.mxu0 %v15765_v41  ;;  %9150 = vmatpush3.msra.mxu1 %v15764_v50  ;;  %v13359_v50 = vpop.permute.xlu0 %2276 }
 0x59c   :  { %9180 = vmatpush3.msra.mxu0 %v15765_v41  ;;  %9151 = vmatprep.subr.mxu1 %v15767_v4 }
 0x59d   :  { %9137 = vmatmul.mubr.f32.gmra.mxu0 %v9594_v17  ;;  %9181 = vmatprep.subr.mxu0 %v15605_v61  ;;  %v6125_v17 = vmul.f32 1.442695, %v6068_v0  ;;  %v6129_v0 = vmul.f32 1.442695, %v6070_v29 }
 0x59e   :  { %3809 = vrot.lane.b32.xlu0 %v9596_v20, %s9840_s0  ;;  %2448 = vperm.xlu1 %9256, %v2337_v13   ;;  %v15773_v13 = vld [vmem:[#allocation122_spill] sm:$0xff]  ;;  %v9604_v20 = vpop.eup %9603 }
 0x59f   :  { %9152 = vmatpush3.msra.mxu1 %v15767_v4  ;;  %9182 = vmatpush3.msra.mxu0 %v15605_v61  ;;  %v13371_v4 = vpop.permute.xlu1 %2278  ;;  %v9606_v58 = vpop.eup %9605  ;;  %9613 = vpow2.f32 %v6125_v17  ;;  %v15777_v17 = vld [vmem:[#allocation121_spill] sm:$0xff] }
 0x5a0   :  { %9209 = vmatprep.mubr.f32.mxu0 %v9598_v59  ;;  %9153 = vmatprep.subr.mxu1 %v15768_v39  ;;  %v15774_v59 = vld [vmem:[#allocation123_spill] sm:$0xff]  ;;  %v13381_v49 = vpop.permute.xlu0 %2272  ;;  %9615 = vpow2.f32 %v6127_v12  ;;  %v13411_v12 = vpop.f32.mrf.mxu1 }
 0x5a1   :  { %9183 = vmatprep.subr.mxu0 %v15769_v47  ;;  %9154 = vmatpush3.msra.mxu1 %v15768_v39  ;;  %v6073_v39 = vsub.f32 %v5913_v34, %v13284_v57  ;;  %9617 = vpow2.f32 %v6129_v0  ;;  %v15781_v34 = vld [vmem:[#allocation148_spill] sm:$0xff] }
 0x5a2   :  { %9184 = vmatpush3.msra.mxu0 %v15769_v47  ;;  %9155 = vmatprep.subr.mxu1 %v15770_v2 }
 0x5a3   :  { %9185 = vmatprep.subr.mxu0 %v15771_v28  ;;  %3817 = vrot.lane.b32.xlu0 %v9600_v51, %s9840_s0  ;;  %v6135_v35 = vmul.f32 1.442695, %v6073_v39  ;;  %v15782_v39 = vld [vmem:[#allocation99_spill] sm:$0xff] }
 0x5a4   :  { %3811 = vrot.lane.b32.xlu1 %v9602_v3, %s9840_s0  ;;  %9156 = vmatpush3.msra.mxu1 %v15770_v2  ;;  %v6072_v2 = vsub.f32 %v5912_v18, %v13294_v30  ;;  %v15776_v3 = vld [vmem:[#allocation101_spill] sm:$0xff]  ;;  %v13400_v54 = vpop.permute.xlu0 %2280  ;;  %v13424_v18 = vpop.f32.mrf.mxu1 }
 0x5a5   :  { %9186 = vmatpush3.msra.mxu0 %v15771_v28  ;;  %9157 = vmatprep.subr.mxu1 %v15772_v23  ;;  %9619 = vpow2.f32 %v6135_v35  ;;  %v15784_v35 = vld [vmem:[#allocation25_spill] sm:$0xff] }
 0x5a6   :  { %9187 = vmatprep.subr.mxu0 %v15773_v13  ;;  %9158 = vmatpush3.msra.mxu1 %v15772_v23  ;;  %v2338_v23 = vmul.f32 %v13304_v32, %v15778_v10  ;;  %v6133_v29 = vmul.f32 1.442695, %v6072_v2  ;;  %v15785_v10 = vld [vmem:[#allocation93_spill] sm:$0xff] }
 0x5a7   :  { %9188 = vmatpush3.msra.mxu0 %v15773_v13  ;;  %9159 = vmatprep.subr.mxu1 %v15618_v7 }
 0x5a8   :  { %9189 = vmatprep.subr.mxu0 %v15774_v59  ;;  %3813 = vrot.lane.b32.xlu0 %v9604_v20, %s9840_s0  ;;  %v15779_v20 = vld [vmem:[#allocation97_spill] sm:$0xff]  ;;  %v13416_v32 = vpop.permute.xlu0 %2382  ;;  %9621 = vpow2.f32 %v6133_v29 }
 0x5a9   :  { %3819 = vrot.lane.b32.xlu1 %v9606_v58, %s9840_s0  ;;  %9160 = vmatpush3.msra.mxu1 %v15618_v7  ;;  %v9608_v7 = vpop.eup %9607  ;;  %v15780_v58 = vld [vmem:[#allocation118_spill] sm:$0xff]  ;;  %9623 = vrcp.f32 %v13424_v18 }
 0x5aa   :  { %9190 = vmatpush3.msra.mxu0 %v15774_v59  ;;  %9161 = vmatprep.subr.mxu1 %v15775_v15  ;;  %v13386_v51 = vpop.permute.xlu1 %2394  ;;  %v9610_v57 = vpop.eup %9609  ;;  %9625 = vrcp.f32 %v13411_v12 }
 0x5ab   :  { %9191 = vmatprep.subr.mxu0 %v15621_v9  ;;  %9162 = vmatpush3.msra.mxu1 %v15775_v15 }
 0x5ac   :  { %9192 = vmatpush3.msra.mxu0 %v15621_v9  ;;  %9163 = vmatprep.subr.mxu1 %v15624_v11 }
 0x5ad   :  { %9193 = vmatprep.subr.mxu0 %v15776_v3  ;;  %3821 = vrot.lane.b32.xlu0 %v9608_v7, %s9840_s0  ;;  %v13426_v7 = vpop.f32.mrf.mxu0 }
 0x5ae   :  { %3815 = vrot.lane.b32.xlu1 %v9610_v57, %s9840_s0  ;;  %9164 = vmatpush3.msra.mxu1 %v15624_v11  ;;  %v9612_v11 = vpop.eup %9611  ;;  %v15783_v57 = vld [vmem:[#allocation191_spill] sm:$0xff] }
 0x5af   :  { %9194 = vmatpush3.msra.mxu0 %v15776_v3  ;;  %9165 = vmatprep.subr.mxu1 %v15777_v17  ;;  %v9614_v0 = vpop.eup %9613  ;;  %v2339_v2 = vmul.f32 %v15783_v57, %v13337_v55  ;;  %v13439_v55 = vpop.f32.mrf.mxu1 }
 0x5b0   :  { %9195 = vmatprep.subr.mxu0 %v15627_v21  ;;  %9166 = vmatpush3.msra.mxu1 %v15777_v17  ;;  %v13407_v30 = vpop.permute.xlu1 %2379  ;;  %v2342_v17 = vmul.f32 %v13325_v46, %v15784_v35  ;;  %v9616_v29 = vpop.eup %9615 }
 0x5b1   :  { %9196 = vmatpush3.msra.mxu0 %v15627_v21  ;;  %9167 = vmatprep.subr.mxu1 %v15779_v20  ;;  %v13441_v46 = vpop.f32.mrf.mxu0 }
 0x5b2   :  { %9197 = vmatprep.subr.mxu0 %v15780_v58  ;;  %2451 = vperm.xlu0 %9255, %v2338_v23   ;;  %v13435_v23 = vpop.permute.xlu0 %2391  ;;  %15786 = vst [vmem:[#allocation155_spill] sm:$0xff] %v13441_v46  ;;  %9627 = vrcp.f32 %v13441_v46 }
 0x5b3   :  { %3823 = vrot.lane.b32.xlu1 %v9612_v11, %s9840_s0  ;;  %9168 = vmatpush3.msra.mxu1 %v15779_v20  ;;  %v9618_v20 = vpop.eup %9617  ;;  %v15787_v11 = vld [vmem:[#allocation116_spill] sm:$0xff]  ;;  %9629 = vrcp.f32 %v13426_v7 }
 0x5b4   :  { %9198 = vmatpush3.msra.mxu0 %v15780_v58  ;;  %9169 = vmatprep.subr.mxu1 %v15781_v34 }
 0x5b5   :  { %9199 = vmatprep.subr.mxu0 %v15782_v39  ;;  %9170 = vmatpush3.msra.mxu1 %v15781_v34  ;;  %v13422_v15 = vpop.permute.xlu1 %2388 }
 0x5b6   :  { %9200 = vmatpush3.msra.mxu0 %v15782_v39  ;;  %9172 = vmatmul.mubr.f32.vlgmr.msra.gmra.mxu1 %v9614_v0 }
 0x5b7   :  { %9215 = vmatprep.subr.mxu1 %v15763_v8  ;;  %9201 = vmatprep.subr.mxu0 %v15785_v10 }
 0x5b8   :  { %2463 = vperm.xlu0 %9255, %v2342_v17   ;;  %2454 = vperm.xlu1 %9256, %v2339_v2   ;;  %v15789_v2 = vld [vmem:[#allocation114_spill] sm:$0xff]  ;;  %v15790_v17 = vld [vmem:[#allocation149_spill] sm:$0xff] }
 0x5b9   :  { %9174 = vmatprep.mubr.f32.mxu1 %v9616_v29  ;;  %9231 = vmatpush3.msra.mxu1 %v15763_v8  ;;  %v15788_v8 = vld [vmem:[#allocation22_spill] sm:$0xff]  ;;  %v2340_v35 = vmul.f32 %v13348_v1, %v15789_v2  ;;  %v9620_v29 = vpop.eup %9619  ;;  %v15793_v2 = vld [vmem:[#allocation96_spill] sm:$0xff] }
 0x5ba   :  { %9202 = vmatpush3.msra.mxu0 %v15785_v10  ;;  %9216 = vmatprep.subr.mxu1 %v15765_v41  ;;  %v2343_v57 = vmul.f32 %v15788_v8, %v13359_v50  ;;  %v13462_v50 = vpop.f32.mrf.mxu0 }
 0x5bb   :  { %9203 = vmatprep.subr.mxu0 %v15787_v11  ;;  %9232 = vmatpush3.msra.mxu1 %v15765_v41  ;;  %v13447_v34 = vpop.permute.xlu0 %2397  ;;  %v13449_v0 = vpop.permute.xlu1 %2400 }
 0x5bc   :  { %9204 = vmatpush3.msra.mxu0 %v15787_v11  ;;  %9175 = vmatmul.mubr.f32.gmra.mxu1 %v9618_v20  ;;  %v13459_v41 = vpop.f32.mrf.mxu1  ;;  %v15792_v20 = vld [vmem:[#allocation38_spill] sm:$0xff] }
 0x5bd   :  { %9217 = vmatprep.subr.mxu1 %v15605_v61  ;;  %9205 = vmatprep.subr.mxu0 %v15790_v17  ;;  %15791 = vst [vmem:[#allocation113_spill] sm:$0xff] %v13459_v41  ;;  %v2341_v8 = vmul.f32 %v15792_v20, %v13381_v49  ;;  %9631 = vrcp.f32 %v13459_v41  ;;  %v5914_v49 = vmul.f32 %v13191_v25, %v15400_v60 }
 0x5be   :  { %2457 = vperm.xlu0 %9255, %v2340_v35   ;;  %2466 = vperm.xlu1 %9256, %v2343_v57   ;;  %v9622_v35 = vpop.eup %9621  ;;  %9633 = vrcp.f32 %v13439_v55 }
 0x5bf   :  { %9233 = vmatpush3.msra.mxu1 %v15605_v61  ;;  %9206 = vmatpush3.msra.mxu0 %v15790_v17  ;;  %v13466_v1 = vpop.permute.xlu0 %3777  ;;  %v15794_v61 = vld [vmem:[#allocation115_spill] sm:$0xff]  ;;  %v6074_v20 = vsub.f32 %v5914_v49, %v13317_v5  ;;  %v9624_v60 = vpop.eup %9623 }
 0x5c0   :  { %9212 = vmatprep.mubr.f32.mxu1 %v9620_v29  ;;  %9218 = vmatprep.subr.mxu1 %v15769_v47  ;;  %v2344_v46 = vmul.f32 %v13371_v4, %v15794_v61  ;;  %v13481_v29 = vpop.f32.mrf.mxu0  ;;  %v15795_v4 = vld [vmem:[#allocation112_spill] sm:$0xff] }
 0x5c1   :  { %9207 = vmatprep.subr.mxu0 %v15793_v2  ;;  %9234 = vmatpush3.msra.mxu1 %v15769_v47  ;;  %v13474_v57 = vpop.permute.xlu1 %2385  ;;  %v2345_v61 = vmul.f32 %v15795_v4, %v13400_v54  ;;  %9635 = vrcp.f32 %v13481_v29  ;;  %v6137_v25 = vmul.f32 1.442695, %v6074_v20  ;;  %v9626_v54 = vpop.eup %9625 }
 0x5c2   :  { %9208 = vmatpush3.msra.mxu0 %v15793_v2  ;;  %9219 = vmatprep.subr.mxu1 %v15771_v28  ;;  %9637 = vrcp.f32 %v13462_v50 }
 0x5c3   :  { %9210 = vmatmul.mubr.f32.vlgmr.msra.gmra.mxu0 %v9622_v35  ;;  %2460 = vperm.xlu1 %9256, %v2341_v8   ;;  %v3786_v47 = vpop.permute.xlu0 %3785  ;;  %9639 = vpow2.f32 %v6137_v25  ;;  %v13510_v35 = vpop.f32.mrf.mxu1 }
 0x5c4   :  { %2469 = vperm.xlu0 %9255, %v2344_v46   ;;  %9235 = vmatpush3.msra.mxu1 %v15771_v28  ;;  %v9628_v46 = vpop.eup %9627 }
 0x5c5   :  { %9220 = vmatprep.subr.mxu1 %v15773_v13  ;;  %v3780_v41 = vpop.permute.xlu1 %3779 }
 0x5c6   :  { %9236 = vmatpush3.msra.mxu1 %v15773_v13  ;;  %v9630_v13 = vpop.eup %9629 }
 0x5c7   :  { %9221 = vmatprep.subr.mxu1 %v15774_v59  ;;  %2472 = vperm.xlu1 %9256, %v2345_v61   ;;  %v3782_v5 = vpop.permute.xlu0 %3781  ;;  %v13522_v61 = vpop.f32.mrf.mxu1 }
 0x5c8   :  { %3825 = vrot.lane.b32.xlu0 %v9624_v60, %s9840_s0  ;;  %9237 = vmatpush3.msra.mxu1 %v15774_v59  ;;  %9641 = vrcp.f32 %v13522_v61 }
 0x5c9   :  { %9222 = vmatprep.subr.mxu1 %v15621_v9  ;;  %v3788_v28 = vpop.permute.xlu1 %3787  ;;  %v13534_v60 = vpop.f32.mrf.mxu1  ;;  %9643 = vrcp.f32 %v13510_v35 }
 0x5ca   :  { %9238 = vmatpush3.msra.mxu1 %v15621_v9  ;;  %v9632_v59 = vpop.eup %9631 }
 0x5cb   :  { %9223 = vmatprep.subr.mxu1 %v15776_v3  ;;  %3827 = vrot.lane.b32.xlu1 %v9626_v54, %s9840_s0  ;;  %v3790_v9 = vpop.permute.xlu0 %3789 }
 0x5cc   :  { %3833 = vrot.lane.b32.xlu0 %v9628_v46, %s9840_s0  ;;  %9239 = vmatpush3.msra.mxu1 %v15776_v3  ;;  %v9634_v3 = vpop.eup %9633 }
 0x5cd   :  { %9224 = vmatprep.subr.mxu1 %v15627_v21  ;;  %v3784_v8 = vpop.permute.xlu1 %3783 }
 0x5ce   :  { %9240 = vmatpush3.msra.mxu1 %v15627_v21  ;;  %v9636_v49 = vpop.eup %9635  ;;  %v3873_v21 = vmul.f32 %v13466_v1, %v12958_v56  ;;  %v3877_v56 = vmul.f32 %v3786_v47, %v12974_v62  ;;  %v3875_v62 = vmul.f32 %v3782_v5, %v12995_v45 }
 0x5cf   :  { %9225 = vmatprep.subr.mxu1 %v15780_v58  ;;  %3835 = vrot.lane.b32.xlu1 %v9630_v13, %s9840_s0  ;;  %v9638_v4 = vpop.eup %9637 }
 0x5d0   :  { %3829 = vrot.lane.b32.xlu0 %v9632_v59, %s9840_s0  ;;  %9241 = vmatpush3.msra.mxu1 %v15780_v58  ;;  %v9640_v1 = vpop.eup %9639 }
 0x5d1   :  { %9226 = vmatprep.subr.mxu1 %v15782_v39  ;;  %v3792_v20 = vpop.permute.xlu1 %3791 }
 0x5d2   :  { %9242 = vmatpush3.msra.mxu1 %v15782_v39  ;;  %v13524_v39 = vpop.f32.mrf.mxu0  ;;  %v3880_v5 = vmul.f32 %v12999_v48, %v3792_v20 }
 0x5d3   :  { %9227 = vmatprep.subr.mxu1 %v15785_v10  ;;  %3831 = vrot.lane.b32.xlu1 %v9634_v3, %s9840_s0 }
 0x5d4   :  { %3837 = vrot.lane.b32.xlu0 %v9636_v49, %s9840_s0  ;;  %9243 = vmatpush3.msra.mxu1 %v15785_v10  ;;  %v3874_v10 = vmul.f32 %v12943_v36, %v3780_v41  ;;  %v13536_v25 = vpop.f32.mrf.mxu0  ;;  %v3878_v36 = vmul.f32 %v12960_v63, %v3788_v28  ;;  %v13547_v41 = vpop.f32.mrf.mxu1  ;;  %v3879_v63 = vmul.f32 %v3790_v9, %v13012_v31 }
 0x5d5   :  { %9228 = vmatprep.subr.mxu1 %v15787_v11  ;;  %v13520_v58 = vpop.permute.xlu0 %2403  ;;  %9645 = vrcp.f32 %v13536_v25 }
 0x5d6   :  { %9244 = vmatpush3.msra.mxu1 %v15787_v11  ;;  %v13549_v47 = vpop.f32.mrf.mxu0  ;;  %9647 = vrcp.f32 %v13524_v39 }
 0x5d7   :  { %9229 = vmatprep.subr.mxu1 %v15790_v17  ;;  %3839 = vrot.lane.b32.xlu1 %v9638_v4, %s9840_s0  ;;  %9649 = vrcp.f32 %v13547_v41  ;;  %v13576_v4 = vpop.f32.mrf.mxu1 }
 0x5d8   :  { %9245 = vmatpush3.msra.mxu1 %v15790_v17  ;;  %3938 = vperm.xlu0 %9255, %v3873_v21   ;;  %v13559_v45 = vpop.f32.mrf.mxu0  ;;  %9651 = vrcp.f32 %v13534_v60 }
 0x5d9   :  { %9230 = vmatprep.subr.mxu1 %v15793_v2  ;;  %9653 = vrcp.f32 %v13559_v45 }
 0x5da   :  { %9246 = vmatpush3.msra.mxu1 %v15793_v2  ;;  %v3876_v2 = vmul.f32 %v12979_v42, %v3784_v8  ;;  %v9642_v42 = vpop.eup %9641  ;;  %9655 = vrcp.f32 %v13549_v47 }
 0x5db   :  { %9213 = vmatmul.mubr.f32.vlgmr.msra.gmra.mxu1 %v9640_v1  ;;  %3941 = vperm.xlu1 %9256, %v3874_v10   ;;  %v13540_v11 = vpop.permute.xlu0 %2415  ;;  %v13542_v17 = vpop.permute.xlu1 %2406 }
 0x5dc   :  { %3950 = vperm.xlu0 %9255, %v3877_v56   ;;  %v9644_v13 = vpop.eup %9643 }
 0x5df   :  { %3953 = vperm.xlu1 %9256, %v3878_v36  }
 0x5e0   :  { %3944 = vperm.xlu0 %9255, %v3875_v62  }
 0x5e1   :  { %v13554_v28 = vpop.permute.xlu0 %2409  ;;  %v13556_v54 = vpop.permute.xlu1 %2418 }
 0x5e2   :  { %v9646_v59 = vpop.eup %9645 }
 0x5e3   :  { %3947 = vperm.xlu1 %9256, %v3876_v2   ;;  %v9648_v8 = vpop.eup %9647  ;;  %v13581_v2 = vpop.f32.mrf.mxu1 }
 0x5e4   :  { %3956 = vperm.xlu0 %9255, %v3879_v63   ;;  %v9650_v3 = vpop.eup %9649  ;;  %v13583_v63 = vpop.f32.mrf.mxu0  ;;  %9657 = vrcp.f32 %v13581_v2 }
 0x5e5   :  { %v9652_v20 = vpop.eup %9651  ;;  %9659 = vrcp.f32 %v13576_v4 }
 0x5e6   :  { %v9654_v10 = vpop.eup %9653 }
 0x5e7   :  { %3959 = vperm.xlu1 %9256, %v3880_v5   ;;  %v13564_v31 = vpop.permute.xlu0 %2421  ;;  %v13566_v46 = vpop.permute.xlu1 %2412 }
 0x5e8   :  { %5330 = vrot.lane.b32.xlu0 %v9642_v42, %s9840_s0  ;;  %v9656_v62 = vpop.eup %9655 }
 0x5eb   :  { %5332 = vrot.lane.b32.xlu1 %v9644_v13, %s9840_s0  ;;  %v3794_v48 = vpop.permute.xlu0 %3793  ;;  %v13589_v13 = vpop.f32.mrf.mxu1 }
 0x5ec   :  { %5338 = vrot.lane.b32.xlu0 %v9646_v59, %s9840_s0  ;;  %v3881_v56 = vmul.f32 %v3794_v48, %v13120_v27  ;;  %v13591_v27 = vpop.f32.mrf.mxu0 }
 0x5ed   :  { %v13572_v9 = vpop.permute.xlu1 %2424  ;;  %9661 = vrcp.f32 %v13591_v27 }
 0x5ee   :  { %9663 = vrcp.f32 %v13583_v63 }
 0x5ef   :  { %5340 = vrot.lane.b32.xlu1 %v9648_v8, %s9840_s0  ;;  %v3802_v49 = vpop.permute.xlu0 %3801 }
 0x5f0   :  { %5334 = vrot.lane.b32.xlu0 %v9650_v3, %s9840_s0  ;;  %v3885_v42 = vmul.f32 %v3802_v49, %v13141_v38  ;;  %v13599_v38 = vpop.f32.mrf.mxu0 }
 0x5f1   :  { %v3796_v21 = vpop.permute.xlu1 %3795  ;;  %15796 = vst [vmem:[#allocation150_spill] sm:$0xff] %v13599_v38 }
 0x5f2   :  { %v3882_v5 = vmul.f32 %v13108_v16, %v3796_v21  ;;  %v13597_v16 = vpop.f32.mrf.mxu1 }
 0x5f3   :  { %5336 = vrot.lane.b32.xlu1 %v9652_v20, %s9840_s0  ;;  %v3798_v1 = vpop.permute.xlu0 %3797  ;;  %9665 = vrcp.f32 %v13597_v16 }
 0x5f4   :  { %5342 = vrot.lane.b32.xlu0 %v9654_v10, %s9840_s0  ;;  %v3883_v3 = vmul.f32 %v3798_v1, %v13161_v6  ;;  %v13607_v6 = vpop.f32.mrf.mxu0  ;;  %9667 = vrcp.f32 %v13589_v13 }
 0x5f5   :  { %v3804_v36 = vpop.permute.xlu1 %3803  ;;  %15797 = vst [vmem:[#allocation153_spill] sm:$0xff] %v13607_v6  ;;  %9669 = vrcp.f32 %v13607_v6 }
 0x5f6   :  { %v3886_v48 = vmul.f32 %v13125_v26, %v3804_v36  ;;  %9671 = vrcp.f32 %v13599_v38 }
 0x5f7   :  { %5344 = vrot.lane.b32.xlu1 %v9656_v62, %s9840_s0  ;;  %v3806_v8 = vpop.permute.xlu0 %3805 }
 0x5f8   :  { %3962 = vperm.xlu0 %9255, %v3881_v56   ;;  %v3887_v21 = vmul.f32 %v3806_v8, %v13176_v40 }
 0x5f9   :  { %v3800_v59 = vpop.permute.xlu1 %3799 }
 0x5fa   :  { %v3884_v49 = vmul.f32 %v13143_v14, %v3800_v59  ;;  %v9658_v14 = vpop.eup %9657 }
 0x5fb   :  { %3965 = vperm.xlu1 %9256, %v3882_v5   ;;  %v9660_v1 = vpop.eup %9659 }
 0x5fc   :  { %3974 = vperm.xlu0 %9255, %v3885_v42   ;;  %v9662_v36 = vpop.eup %9661 }
 0x5fd   :  { %v3808_v20 = vpop.permute.xlu1 %3807  ;;  %v9664_v5 = vpop.eup %9663 }
 0x5fe   :  { %v3888_v10 = vmul.f32 %v13165_v44, %v3808_v20 }
 0x5ff   :  { %3977 = vperm.xlu1 %9256, %v3886_v48  }
 0x600   :  { %3968 = vperm.xlu0 %9255, %v3883_v3   ;;  %v9666_v42 = vpop.eup %9665 }
 0x601   :  { %v13604_v26 = vpop.permute.xlu0 %2427  ;;  %v9668_v59 = vpop.eup %9667 }
 0x602   :  { %v9670_v48 = vpop.eup %9669 }
 0x603   :  { %3971 = vperm.xlu1 %9256, %v3884_v49   ;;  %v13631_v49 = vpop.f32.mrf.mxu1 }
 0x604   :  { %3980 = vperm.xlu0 %9255, %v3887_v21   ;;  %v9672_v21 = vpop.eup %9671 }
 0x607   :  { %3983 = vperm.xlu1 %9256, %v3888_v10   ;;  %v13612_v40 = vpop.permute.xlu0 %2439  ;;  %v13614_v56 = vpop.permute.xlu1 %2430 }
 0x608   :  { %5346 = vrot.lane.b32.xlu0 %v9658_v14, %s9840_s0  ;;  %v13635_v10 = vpop.f32.mrf.mxu1 }
 0x609   :  { %15798 = vst [vmem:[#allocation89_spill] sm:$0xff] %v13635_v10  ;;  %9673 = vrcp.f32 %v13635_v10 }
 0x60b   :  { %5348 = vrot.lane.b32.xlu1 %v9660_v1, %s9840_s0  ;;  %v13638_v1 = vpop.f32.mrf.mxu0 }
 0x60c   :  { %5354 = vrot.lane.b32.xlu0 %v9662_v36, %s9840_s0  ;;  %15799 = vst [vmem:[#allocation152_spill] sm:$0xff] %v13638_v1 }
 0x60d   :  { %v13620_v44 = vpop.permute.xlu0 %2433  ;;  %v13622_v62 = vpop.permute.xlu1 %2442 }
 0x60f   :  { %5356 = vrot.lane.b32.xlu1 %v9664_v5, %s9840_s0 }
 0x610   :  { %5350 = vrot.lane.b32.xlu0 %v9666_v42, %s9840_s0  ;;  %v13643_v42 = vpop.f32.mrf.mxu1 }
 0x613   :  { %v13626_v8 = vpop.permute.xlu0 %2445  ;;  %v13628_v3 = vpop.permute.xlu1 %2436  ;;  %5352 = vrot.lane.b32.xlu1 %v9668_v59, %s9840_s0 }
 0x614   :  { %5358 = vrot.lane.b32.xlu0 %v9670_v48, %s9840_s0  ;;  %v13646_v48 = vpop.f32.mrf.mxu0 }
 0x615   :  { %9675 = vrcp.f32 %v13646_v48 }
 0x616   :  { %9677 = vrcp.f32 %v13631_v49 }
 0x617   :  { %v3810_v20 = vpop.permute.xlu0 %3809  ;;  %5360 = vrot.lane.b32.xlu1 %v9672_v21, %s9840_s0 }
 0x618   :  { %v3889_v14 = vmul.f32 %v3810_v20, %v13276_v22  ;;  %v13649_v22 = vpop.f32.mrf.mxu1 }
 0x619   :  { %v13640_v36 = vpop.permute.xlu1 %2448  ;;  %9679 = vrcp.f32 %v13649_v22 }
 0x61a   :  { %3986 = vperm.xlu0 %9255, %v3889_v14   ;;  %v13653_v14 = vpop.f32.mrf.mxu0  ;;  %9681 = vrcp.f32 %v13638_v1 }
 0x61b   :  { %v3818_v5 = vpop.permute.xlu0 %3817  ;;  %15800 = vst [vmem:[#allocation134_spill] sm:$0xff] %v13653_v14 }
 0x61c   :  { %v3893_v59 = vmul.f32 %v3818_v5, %v13296_v37 }
 0x61d   :  { %v3812_v38 = vpop.permute.xlu1 %3811 }
 0x61e   :  { %v3890_v21 = vmul.f32 %v13264_v52, %v3812_v38  ;;  %3998 = vperm.xlu0 %9255, %v3893_v59   ;;  %v13659_v38 = vpop.f32.mrf.mxu0 }
 0x61f   :  { %v3814_v6 = vpop.permute.xlu0 %3813  ;;  %15801 = vst [vmem:[#allocation75_spill] sm:$0xff] %v13659_v38  ;;  %9683 = vrcp.f32 %v13659_v38 }
 0x620   :  { %3989 = vperm.xlu1 %9256, %v3890_v21   ;;  %v3891_v20 = vmul.f32 %v3814_v6, %v13314_v53  ;;  %v15802_v6 = vld [vmem:[#allocation12_spill] sm:$0xff]  ;;  %9685 = vrcp.f32 %v13643_v42 }
 0x621   :  { %v3820_v10 = vpop.permute.xlu1 %3819  ;;  %v2478_v21 = vadd.s32 4294967288, %v15802_v6  ;;  %9687 = vrcp.f32 %v13653_v14 }
 0x622   :  { %v3894_v37 = vmul.f32 %v13279_v19, %v3820_v10  ;;  %3992 = vperm.xlu0 %9255, %v3891_v20   ;;  %v9674_v19 = vpop.eup %9673  ;;  %v2485_v10 = vadd.s32 4294967280, %v15802_v6 }
 0x623   :  { %v3822_v5 = vpop.permute.xlu0 %3821 }
 0x624   :  { %4001 = vperm.xlu1 %9256, %v3894_v37   ;;  %v3895_v52 = vmul.f32 %v3822_v5, %v13330_v43  ;;  %v15803_v37 = vld [vmem:[#allocation11_spill] sm:$0xff] }
 0x625   :  { %v3816_v59 = vpop.permute.xlu1 %3815  ;;  %v13668_v43 = vsub.s32 %v15802_v6, %v15803_v37 }
 0x626   :  { %v3892_v53 = vmul.f32 %v13298_v24, %v3816_v59  ;;  %4004 = vperm.xlu0 %9255, %v3895_v52   ;;  %v13674_v24 = vsub.s32 %v2478_v21, %v15803_v37  ;;  %v2492_v52 = vadd.s32 4294967272, %v15802_v6  ;;  %v9676_v59 = vpop.eup %9675 }
 0x627   :  { %v2477_v1 = vrot.slane %v13407_v30, %v13668_v43 }
 0x628   :  { %3995 = vperm.xlu1 %9256, %v3892_v53   ;;  %v13678_v53 = vsub.s32 %v2485_v10, %v15803_v37  ;;  %v2502_v10 = vrot.slane %v13435_v23, %v13668_v43 }
 0x629   :  { %v3824_v20 = vpop.permute.xlu1 %3823 }
 0x62a   :  { %v3896_v5 = vmul.f32 %v13319_v33, %v3824_v20  ;;  %5362 = vrot.lane.b32.xlu0 %v9674_v19, %s9840_s0  ;;  %v9678_v33 = vpop.eup %9677  ;;  %v2489_v21 = vrot.slane %v13474_v57, %v13678_v53  ;;  %v2482_v19 = vrot.slane %v13416_v32, %v13674_v24  ;;  %v13693_v20 = vsub.s32 %v2492_v52, %v15803_v37 }
 0x62b   :  { %v9680_v30 = vpop.eup %9679 }
 0x62c   :  { %4007 = vperm.xlu1 %9256, %v3896_v5   ;;  %v2511_v5 = vrot.slane %v13447_v34, %v13678_v53  ;;  %v2484_v57 = vsel %vm2483_vm2, %v2482_v19, %v2477_v1  ;;  %v9682_v32 = vpop.eup %9681  ;;  %v2496_v37 = vrot.slane %v13422_v15, %v13693_v20  ;;  %v2516_v34 = vrot.slane %v13449_v0, %v13693_v20 }
 0x62d   :  { %v13680_v38 = vpop.permute.xlu0 %2451  ;;  %v2491_v23 = vsel %vm2490_vm3, %v2489_v21, %v2484_v57  ;;  %v2525_v21 = vrot.slane %v13542_v17, %v13674_v24  ;;  %v2530_v15 = vrot.slane %v13554_v28, %v13678_v53  ;;  %v2544_v0 = vrot.slane %v13556_v54, %v13674_v24 }
 0x62e   :  { %5370 = vrot.lane.b32.xlu0 %v9676_v59, %s9840_s0  ;;  %v2506_v59 = vrot.slane %v13386_v51, %v13674_v24  ;;  %v9684_v51 = vpop.eup %9683  ;;  %v2498_v19 = vsel %vm2497_vm4, %v2496_v37, %v2491_v23  ;;  %v2540_v17 = vrot.slane %v13540_v11, %v13668_v43  ;;  %v2549_v37 = vrot.slane %v13564_v31, %v13678_v53 }
 0x62f   :  { %v2563_v23 = vrot.slane %v13614_v56, %v13674_v24  ;;  %v2573_v56 = vrot.slane %v13628_v3, %v13693_v20 }
 0x630   :  { %5364 = vrot.lane.b32.xlu1 %v9678_v33, %s9840_s0  ;;  %v2507_v33 = vsel %vm2483_vm2, %v2506_v59, %v2502_v10  ;;  %v9686_v10 = vpop.eup %9685  ;;  %v2545_v31 = vsel %vm2483_vm2, %v2544_v0, %v2540_v17 }
 0x631   :  { %v2512_v1 = vsel %vm2490_vm3, %v2511_v5, %v2507_v33  ;;  %v2521_v5 = vrot.slane %v13520_v58, %v13668_v43  ;;  %v2535_v58 = vrot.slane %v13566_v46, %v13693_v20  ;;  %v9688_v11 = vpop.eup %9687  ;;  %v2559_v46 = vrot.slane %v13604_v26, %v13668_v43 }
 0x632   :  { %5366 = vrot.lane.b32.xlu0 %v9680_v30, %s9840_s0  ;;  %v2517_v30 = vsel %vm2497_vm4, %v2516_v34, %v2512_v1  ;;  %v2568_v34 = vrot.slane %v13620_v44, %v13678_v53  ;;  %v2578_v44 = vrot.slane %v13612_v40, %v13668_v43 }
 0x633   :  { %v13703_v14 = vpop.permute.xlu0 %2463  ;;  %v2455_v52 = vpop.permute.xlu1 %2454  ;;  %v2633_v28 = vsel %vm2632_vm5, %v2517_v30, %v2498_v19  ;;  %v2526_v57 = vsel %vm2483_vm2, %v2525_v21, %v2521_v5  ;;  %v2550_v19 = vsel %vm2490_vm3, %v2549_v37, %v2545_v31  ;;  %v2564_v3 = vsel %vm2483_vm2, %v2563_v23, %v2559_v46 }
 0x634   :  { %5372 = vrot.lane.b32.xlu1 %v9682_v32, %s9840_s0  ;;  %v2554_v32 = vrot.slane %v13572_v9, %v13693_v20  ;;  %v2531_v33 = vsel %vm2490_vm3, %v2530_v15, %v2526_v57  ;;  %v2587_v9 = vrot.slane %v13626_v8, %v13678_v53  ;;  %v2601_v1 = vrot.slane %v2455_v52, %v13674_v24  ;;  %v13769_v57 = vpop.f32.mrf.mxu1  ;;  %v13786_v46 = vpop.f32.mrf.mxu0 }
 0x635   :  { %v2536_v21 = vsel %vm2497_vm4, %v2535_v58, %v2531_v33  ;;  %v2597_v52 = vrot.slane %v13680_v38, %v13668_v43  ;;  %v2569_v15 = vsel %vm2490_vm3, %v2568_v34, %v2564_v3 }
 0x636   :  { %5374 = vrot.lane.b32.xlu0 %v9684_v51, %s9840_s0  ;;  %v2582_v51 = vrot.slane %v13622_v62, %v13674_v24  ;;  %v2592_v62 = vrot.slane %v13640_v36, %v13693_v20  ;;  %v2555_v8 = vsel %vm2497_vm4, %v2554_v32, %v2550_v19  ;;  %v2574_v17 = vsel %vm2497_vm4, %v2573_v56, %v2569_v15 }
 0x637   :  { %v2602_v37 = vsel %vm2483_vm2, %v2601_v1, %v2597_v52  ;;  %v2635_v38 = vsel %vm2634_vm6, %v2536_v21, %v2633_v28  ;;  %v13796_v21 = vpop.f32.mrf.mxu0 }
 0x638   :  { %5368 = vrot.lane.b32.xlu1 %v9686_v10, %s9840_s0  ;;  %v2583_v0 = vsel %vm2483_vm2, %v2582_v51, %v2578_v44  ;;  %v2637_v32 = vsel %vm2636_vm7, %v2555_v8, %v2635_v38  ;;  %v13784_v51 = vpop.f32.mrf.mxu1 }
 0x639   :  { %v2458_v54 = vpop.permute.xlu0 %2457  ;;  %v2467_v59 = vpop.permute.xlu1 %2466  ;;  %v2588_v5 = vsel %vm2490_vm3, %v2587_v9, %v2583_v0  ;;  %v2639_v33 = vsel %vm2638_vm8, %v2574_v17, %v2637_v32  ;;  %9689 = vrcp.f32 %v13784_v51 }
 0x63a   :  { %v2606_v26 = vrot.slane %v2458_v54, %v13678_v53  ;;  %v2620_v40 = vrot.slane %v2467_v59, %v13674_v24  ;;  %v2593_v58 = vsel %vm2497_vm4, %v2592_v62, %v2588_v5  ;;  %v2616_v24 = vrot.slane %v13703_v14, %v13668_v43  ;;  %v13804_v0 = vpop.f32.mrf.mxu0 }
 0x63b   :  { %v2641_v34 = vsel %vm2640_vm9, %v2593_v58, %v2639_v33  ;;  %9691 = vrcp.f32 %v13769_v57 }
 0x63c   :  { %5376 = vrot.lane.b32.xlu1 %v9688_v11, %s9840_s0  ;;  %v2607_v59 = vsel %vm2490_vm3, %v2606_v26, %v2602_v37  ;;  %v13794_v26 = vpop.f32.mrf.mxu1  ;;  %9693 = vrcp.f32 %v13796_v21  ;;  %v13810_v5 = vpop.f32.mrf.mxu0 }
 0x63d   :  { %9695 = vrcp.f32 %v13786_v46 }
 0x63e   :  { %v2461_v10 = vpop.permute.xlu1 %2460  ;;  %v13802_v15 = vpop.f32.mrf.mxu1 }
 0x63f   :  { %v2470_v30 = vpop.permute.xlu0 %2469  ;;  %v2611_v36 = vrot.slane %v2461_v10, %v13693_v20  ;;  %v15805_v10 = vld [vmem:[#allocation113_spill] sm:$0xff]  ;;  %9697 = vrcp.f32 %v13802_v15 }
 0x640   :  { %v2625_v54 = vrot.slane %v2470_v30, %v13678_v53  ;;  %v2621_v53 = vsel %vm2483_vm2, %v2620_v40, %v2616_v24  ;;  %9699 = vrcp.f32 %v13794_v26  ;;  %vm5603_vm2 = vcmask 720512  }
 0x641   :  { %v2612_v23 = vsel %vm2497_vm4, %v2611_v36, %v2607_v59  ;;  %9701 = vrcp.f32 %v13810_v5 }
 0x642   :  { %v2473_v11 = vpop.permute.xlu1 %2472  ;;  %v2626_v14 = vsel %vm2490_vm3, %v2625_v54, %v2621_v53  ;;  %v2643_v9 = vsel %vm2642_vm10, %v2612_v23, %v2641_v34  ;;  %9703 = vrcp.f32 %v13804_v0  ;;  %vm5610_vm3 = vcmask 786112  }
 0x643   :  { %v3826_v31 = vpop.permute.xlu0 %3825  ;;  %v2630_v28 = vrot.slane %v2473_v11, %v13693_v20 }
 0x644   :  { %v3897_v43 = vmul.f32 %v3826_v31, %v13424_v18  ;;  %v15804_v18 = vld [vmem:[#allocation155_spill] sm:$0xff] }
 0x645   :  { %v2631_v56 = vsel %vm2497_vm4, %v2630_v28, %v2626_v14  ;;  %v13835_v28 = vpop.f32.mrf.mxu1  ;;  %vm5753_vm4 = vcmask 785920  }
 0x646   :  { %v2645_v1 = vsel %vm2644_vm11, %v2631_v56, %v2643_v9  ;;  %4010 = vperm.xlu0 %9255, %v3897_v43   ;;  %v3828_v19 = vpop.permute.xlu1 %3827  ;;  %v9690_v38 = vpop.eup %9689 }
 0x647   :  { %2648 = vst.msk [vmem:[#allocation7] sm:$0xff] %vm2647_vm12, %v2645_v1  ;;  %v3834_v20 = vpop.permute.xlu0 %3833  ;;  %v3898_v44 = vmul.f32 %v13411_v12, %v3828_v19  ;;  %v13842_v56 = vpop.f32.mrf.mxu1  ;;  %vm7149_vm12 = vcmask 917312  }
 0x648   :  { %v3901_v62 = vmul.f32 %v3834_v20, %v15804_v18  ;;  %v9692_v58 = vpop.eup %9691  ;;  %v13844_v1 = vpop.f32.mrf.mxu0  ;;  %9705 = vrcp.f32 %v13842_v56 }
 0x649   :  { %4013 = vperm.xlu1 %9256, %v3898_v44   ;;  %v9694_v24 = vpop.eup %9693  ;;  %9707 = vrcp.f32 %v13835_v28 }
 0x64a   :  { %4022 = vperm.xlu0 %9255, %v3901_v62   ;;  %v3836_v8 = vpop.permute.xlu1 %3835  ;;  %v9696_v32 = vpop.eup %9695 }
 0x64b   :  { %v3830_v3 = vpop.permute.xlu0 %3829  ;;  %v3902_v52 = vmul.f32 %v13426_v7, %v3836_v8  ;;  %v13850_v62 = vpop.f32.mrf.mxu1 }
 0x64c   :  { %v3899_v12 = vmul.f32 %v3830_v3, %v15805_v10  ;;  %v9698_v23 = vpop.eup %9697  ;;  %v13852_v8 = vpop.f32.mrf.mxu0 }
 0x64d   :  { %4025 = vperm.xlu1 %9256, %v3902_v52   ;;  %v9700_v53 = vpop.eup %9699  ;;  %9709 = vrcp.f32 %v13852_v8  ;;  %v13858_v10 = vpop.f32.mrf.mxu1 }
 0x64e   :  { %4016 = vperm.xlu0 %9255, %v3899_v12   ;;  %v3832_v40 = vpop.permute.xlu1 %3831  ;;  %v9702_v31 = vpop.eup %9701  ;;  %9711 = vrcp.f32 %v13844_v1 }
 0x64f   :  { %v3838_v30 = vpop.permute.xlu0 %3837  ;;  %v3900_v36 = vmul.f32 %v13439_v55, %v3832_v40  ;;  %v9704_v43 = vpop.eup %9703  ;;  %9713 = vrcp.f32 %v13858_v10 }
 0x650   :  { %v3903_v7 = vmul.f32 %v3838_v30, %v13481_v29  ;;  %v13860_v12 = vpop.f32.mrf.mxu0  ;;  %9715 = vrcp.f32 %v13850_v62 }
 0x651   :  { %4019 = vperm.xlu1 %9256, %v3900_v36  }
 0x652   :  { %4028 = vperm.xlu0 %9255, %v3903_v7   ;;  %v3840_v17 = vpop.permute.xlu1 %3839  ;;  %v13866_v36 = vpop.f32.mrf.mxu0 }
 0x653   :  { %v3904_v37 = vmul.f32 %v13462_v50, %v3840_v17  ;;  %v13814_v54 = vpop.permute.xlu0 %3938  ;;  %9717 = vrcp.f32 %v13866_v36 }
 0x654   :  { %9719 = vrcp.f32 %v13860_v12 }
 0x655   :  { %4031 = vperm.xlu1 %9256, %v3904_v37   ;;  %v9706_v37 = vpop.eup %9705 }
 0x656   :  { %5378 = vrot.lane.b32.xlu0 %v9690_v38, %s9840_s0  ;;  %v13818_v55 = vpop.permute.xlu1 %3941  ;;  %v9708_v38 = vpop.eup %9707 }
 0x657   :  { %v13821_v29 = vpop.permute.xlu0 %3950 }
 0x659   :  { %5380 = vrot.lane.b32.xlu1 %v9692_v58, %s9840_s0 }
 0x65a   :  { %5386 = vrot.lane.b32.xlu0 %v9694_v24, %s9840_s0  ;;  %v13825_v50 = vpop.permute.xlu1 %3953  ;;  %v9710_v58 = vpop.eup %9709 }
 0x65b   :  { %v13827_v59 = vpop.permute.xlu0 %3944 }
 0x65d   :  { %5388 = vrot.lane.b32.xlu1 %v9696_v32, %s9840_s0  ;;  %v9712_v32 = vpop.eup %9711 }
 0x65e   :  { %5382 = vrot.lane.b32.xlu0 %v9698_v23, %s9840_s0  ;;  %v13831_v11 = vpop.permute.xlu1 %3947  ;;  %v9714_v23 = vpop.eup %9713 }
 0x65f   :  { %v13833_v33 = vpop.permute.xlu0 %3956 }
 0x661   :  { %5384 = vrot.lane.b32.xlu1 %v9700_v53, %s9840_s0 }
 0x662   :  { %5390 = vrot.lane.b32.xlu0 %v9702_v31, %s9840_s0  ;;  %v13839_v34 = vpop.permute.xlu1 %3959 }
 0x663   :  { %v5331_v14 = vpop.permute.xlu0 %5330 }
 0x664   :  { %v5426_v9 = vmul.f32 %v5331_v14, %v13522_v61  ;;  %v9716_v14 = vpop.eup %9715 }
 0x665   :  { %5392 = vrot.lane.b32.xlu1 %v9704_v43, %s9840_s0  ;;  %v9718_v43 = vpop.eup %9717 }
 0x666   :  { %5491 = vperm.xlu0 %9255, %v5426_v9   ;;  %v5333_v19 = vpop.permute.xlu1 %5332  ;;  %v13891_v9 = vpop.f32.mrf.mxu1 }
 0x667   :  { %v5339_v20 = vpop.permute.xlu0 %5338  ;;  %v5427_v44 = vmul.f32 %v13510_v35, %v5333_v19 }
 0x668   :  { %v5430_v18 = vmul.f32 %v5339_v20, %v13536_v25 }
 0x669   :  { %5494 = vperm.xlu1 %9256, %v5427_v44   ;;  %v9720_v44 = vpop.eup %9719 }
 0x66a   :  { %5503 = vperm.xlu0 %9255, %v5430_v18   ;;  %v5341_v61 = vpop.permute.xlu1 %5340 }
 0x66b   :  { %v5335_v3 = vpop.permute.xlu0 %5334  ;;  %v5431_v52 = vmul.f32 %v13524_v39, %v5341_v61  ;;  %v13898_v61 = vpop.f32.mrf.mxu1 }
 0x66c   :  { %v5428_v35 = vmul.f32 %v5335_v3, %v13547_v41  ;;  %v13900_v3 = vpop.f32.mrf.mxu0  ;;  %9721 = vrcp.f32 %v13898_v61 }
 0x66d   :  { %5506 = vperm.xlu1 %9256, %v5431_v52   ;;  %9723 = vrcp.f32 %v13891_v9 }
 0x66e   :  { %5497 = vperm.xlu0 %9255, %v5428_v35   ;;  %v5337_v25 = vpop.permute.xlu1 %5336 }
 0x66f   :  { %v5343_v40 = vpop.permute.xlu0 %5342  ;;  %v5429_v30 = vmul.f32 %v13534_v60, %v5337_v25 }
 0x670   :  { %v5432_v39 = vmul.f32 %v5343_v40, %v13559_v45 }
 0x671   :  { %5500 = vperm.xlu1 %9256, %v5429_v30   ;;  %v13906_v30 = vpop.f32.mrf.mxu1 }
 0x672   :  { %5509 = vperm.xlu0 %9255, %v5432_v39   ;;  %v5345_v41 = vpop.permute.xlu1 %5344  ;;  %15806 = vst [vmem:[#allocation181_spill] sm:$0xff] %v13906_v30  ;;  %v13908_v39 = vpop.f32.mrf.mxu0 }
 0x673   :  { %v13869_v7 = vpop.permute.xlu0 %3962  ;;  %v5433_v17 = vmul.f32 %v13549_v47, %v5345_v41  ;;  %9725 = vrcp.f32 %v13908_v39 }
 0x674   :  { %9727 = vrcp.f32 %v13900_v3 }
 0x675   :  { %5512 = vperm.xlu1 %9256, %v5433_v17  }
 0x676   :  { %6883 = vrot.lane.b32.xlu0 %v9706_v37, %s9840_s0  ;;  %v13874_v60 = vpop.permute.xlu1 %3965  ;;  %v13914_v37 = vpop.f32.mrf.mxu1 }
 0x677   :  { %v13877_v45 = vpop.permute.xlu0 %3974  ;;  %9729 = vrcp.f32 %v13914_v37 }
 0x678   :  { %9731 = vrcp.f32 %v13906_v30 }
 0x679   :  { %6885 = vrot.lane.b32.xlu1 %v9708_v38, %s9840_s0  ;;  %v13916_v38 = vpop.f32.mrf.mxu0 }
 0x67a   :  { %6891 = vrot.lane.b32.xlu0 %v9710_v58, %s9840_s0  ;;  %v13881_v24 = vpop.permute.xlu1 %3977  ;;  %15807 = vst [vmem:[#allocation154_spill] sm:$0xff] %v13916_v38 }
 0x67b   :  { %v13883_v47 = vpop.permute.xlu0 %3968 }
 0x67d   :  { %6893 = vrot.lane.b32.xlu1 %v9712_v32, %s9840_s0 }
 0x67e   :  { %6887 = vrot.lane.b32.xlu0 %v9714_v23, %s9840_s0  ;;  %v13887_v53 = vpop.permute.xlu1 %3971  ;;  %v15808_v23 = vld [vmem:[#allocation153_spill] sm:$0xff] }
 0x67f   :  { %v13889_v31 = vpop.permute.xlu0 %3980 }
 0x681   :  { %6889 = vrot.lane.b32.xlu1 %v9716_v14, %s9840_s0  ;;  %v13922_v14 = vpop.f32.mrf.mxu0 }
 0x682   :  { %6895 = vrot.lane.b32.xlu0 %v9718_v43, %s9840_s0  ;;  %v13895_v19 = vpop.permute.xlu1 %3983  ;;  %15809 = vst [vmem:[#allocation156_spill] sm:$0xff] %v13922_v14  ;;  %v15810_v43 = vld [vmem:[#allocation150_spill] sm:$0xff]  ;;  %9733 = vrcp.f32 %v13922_v14 }
 0x683   :  { %v5347_v20 = vpop.permute.xlu0 %5346  ;;  %9735 = vrcp.f32 %v13916_v38 }
 0x684   :  { %v5434_v18 = vmul.f32 %v5347_v20, %v13581_v2 }
 0x685   :  { %6897 = vrot.lane.b32.xlu1 %v9720_v44, %s9840_s0  ;;  %v9722_v44 = vpop.eup %9721 }
 0x686   :  { %5515 = vperm.xlu0 %9255, %v5434_v18   ;;  %v5349_v52 = vpop.permute.xlu1 %5348 }
 0x687   :  { %v5355_v35 = vpop.permute.xlu0 %5354  ;;  %v5435_v25 = vmul.f32 %v13576_v4, %v5349_v52 }
 0x688   :  { %v5438_v40 = vmul.f32 %v5355_v35, %v13591_v27 }
 0x689   :  { %5518 = vperm.xlu1 %9256, %v5435_v25  }
 0x68a   :  { %5527 = vperm.xlu0 %9255, %v5438_v40   ;;  %v5357_v2 = vpop.permute.xlu1 %5356 }
 0x68b   :  { %v5351_v41 = vpop.permute.xlu0 %5350  ;;  %v5439_v17 = vmul.f32 %v13583_v63, %v5357_v2 }
 0x68c   :  { %v5436_v4 = vmul.f32 %v5351_v41, %v13597_v16 }
 0x68d   :  { %5530 = vperm.xlu1 %9256, %v5439_v17  }
 0x68e   :  { %5521 = vperm.xlu0 %9255, %v5436_v4   ;;  %v5353_v27 = vpop.permute.xlu1 %5352 }
 0x68f   :  { %v5359_v58 = vpop.permute.xlu0 %5358  ;;  %v5437_v32 = vmul.f32 %v13589_v13, %v5353_v27  ;;  %v9724_v13 = vpop.eup %9723 }
 0x690   :  { %v5440_v63 = vmul.f32 %v5359_v58, %v15808_v23  ;;  %v9726_v52 = vpop.eup %9725 }
 0x691   :  { %5524 = vperm.xlu1 %9256, %v5437_v32   ;;  %v9728_v40 = vpop.eup %9727  ;;  %v13946_v32 = vpop.f32.mrf.mxu1 }
 0x692   :  { %5533 = vperm.xlu0 %9255, %v5440_v63   ;;  %v5361_v16 = vpop.permute.xlu1 %5360  ;;  %v9730_v2 = vpop.eup %9729 }
 0x693   :  { %v5441_v20 = vmul.f32 %v15810_v43, %v5361_v16  ;;  %v9732_v4 = vpop.eup %9731  ;;  %v13952_v43 = vpop.f32.mrf.mxu1 }
 0x694   :  { %v9734_v27 = vpop.eup %9733  ;;  %15811 = vst [vmem:[#allocation157_spill] sm:$0xff] %v13952_v43  ;;  %9737 = vrcp.f32 %v13952_v43 }
 0x695   :  { %v13927_v18 = vpop.permute.xlu0 %3986  ;;  %5536 = vperm.xlu1 %9256, %v5441_v20   ;;  %v9736_v63 = vpop.eup %9735  ;;  %v15812_v20 = vld [vmem:[#allocation89_spill] sm:$0xff] }
 0x696   :  { %6899 = vrot.lane.b32.xlu0 %v9722_v44, %s9840_s0 }
 0x699   :  { %v13931_v35 = vpop.permute.xlu0 %3998  ;;  %6901 = vrot.lane.b32.xlu1 %v9724_v13, %s9840_s0  ;;  %v13955_v13 = vpop.f32.mrf.mxu0 }
 0x69a   :  { %6907 = vrot.lane.b32.xlu0 %v9726_v52, %s9840_s0 }
 0x69b   :  { %v13935_v25 = vpop.permute.xlu1 %3989 }
 0x69d   :  { %v13937_v41 = vpop.permute.xlu0 %3992  ;;  %6909 = vrot.lane.b32.xlu1 %v9728_v40, %s9840_s0 }
 0x69e   :  { %6903 = vrot.lane.b32.xlu0 %v9730_v2, %s9840_s0  ;;  %v13960_v2 = vpop.f32.mrf.mxu1 }
 0x69f   :  { %v13941_v17 = vpop.permute.xlu1 %4001  ;;  %15813 = vst [vmem:[#allocation184_spill] sm:$0xff] %v13960_v2 }
 0x6a1   :  { %v13943_v58 = vpop.permute.xlu0 %4004  ;;  %6905 = vrot.lane.b32.xlu1 %v9732_v4, %s9840_s0 }
 0x6a2   :  { %6911 = vrot.lane.b32.xlu0 %v9734_v27, %s9840_s0  ;;  %v13963_v27 = vpop.f32.mrf.mxu0 }
 0x6a3   :  { %v13949_v23 = vpop.permute.xlu1 %3995  ;;  %15814 = vst [vmem:[#allocation94_spill] sm:$0xff] %v13963_v27  ;;  %9739 = vrcp.f32 %v13963_v27 }
 0x6a4   :  { %9741 = vrcp.f32 %v13946_v32 }
 0x6a5   :  { %v5363_v16 = vpop.permute.xlu0 %5362  ;;  %6913 = vrot.lane.b32.xlu1 %v9736_v63, %s9840_s0 }
 0x6a6   :  { %v5442_v44 = vmul.f32 %v5363_v16, %v15812_v20  ;;  %v13966_v16 = vpop.f32.mrf.mxu1 }
 0x6a7   :  { %v13957_v52 = vpop.permute.xlu1 %4007  ;;  %9743 = vrcp.f32 %v13966_v16 }
 0x6a8   :  { %5539 = vperm.xlu0 %9255, %v5442_v44   ;;  %v13970_v44 = vpop.f32.mrf.mxu0  ;;  %9745 = vrcp.f32 %v13955_v13 }
 0x6a9   :  { %v5371_v40 = vpop.permute.xlu0 %5370  ;;  %15815 = vst [vmem:[#allocation182_spill] sm:$0xff] %v13970_v44 }
 0x6aa   :  { %v5446_v4 = vmul.f32 %v5371_v40, %v13646_v48  ;;  %v15816_v48 = vld [vmem:[#allocation152_spill] sm:$0xff] }
 0x6ab   :  { %v5365_v38 = vpop.permute.xlu1 %5364 }
 0x6ac   :  { %v5443_v63 = vmul.f32 %v13631_v49, %v5365_v38  ;;  %5551 = vperm.xlu0 %9255, %v5446_v4   ;;  %v15817_v49 = vld [vmem:[#allocation75_spill] sm:$0xff]  ;;  %v13976_v4 = vpop.f32.mrf.mxu0 }
 0x6ad   :  { %v5367_v14 = vpop.permute.xlu0 %5366  ;;  %15818 = vst [vmem:[#allocation98_spill] sm:$0xff] %v13976_v4  ;;  %9747 = vrcp.f32 %v13976_v4 }
 0x6ae   :  { %5542 = vperm.xlu1 %9256, %v5443_v63   ;;  %v5444_v20 = vmul.f32 %v5367_v14, %v13649_v22  ;;  %v9738_v14 = vpop.eup %9737  ;;  %9749 = vrcp.f32 %v13960_v2  ;;  %v4038_v63 = vadd.s32 4294967256, %v15802_v6 }
 0x6af   :  { %v5373_v43 = vpop.permute.xlu1 %5372  ;;  %9751 = vrcp.f32 %v13970_v44 }
 0x6b0   :  { %v5447_v40 = vmul.f32 %v15816_v48, %v5373_v43  ;;  %5545 = vperm.xlu0 %9255, %v5444_v20   ;;  %v15819_v20 = vld [vmem:[#allocation134_spill] sm:$0xff] }
 0x6b1   :  { %v5375_v30 = vpop.permute.xlu0 %5374 }
 0x6b2   :  { %5554 = vperm.xlu1 %9256, %v5447_v40   ;;  %v5448_v38 = vmul.f32 %v5375_v30, %v15817_v49  ;;  %v4045_v30 = vadd.s32 4294967248, %v15802_v6  ;;  %v4033_v40 = vadd.s32 4294967264, %v15802_v6  ;;  %v15820_v49 = vld [vmem:[#allocation11_spill] sm:$0xff] }
 0x6b3   :  { %v5369_v27 = vpop.permute.xlu1 %5368 }
 0x6b4   :  { %v5445_v22 = vmul.f32 %v13643_v42, %v5369_v27  ;;  %5557 = vperm.xlu0 %9255, %v5448_v38   ;;  %v4052_v42 = vadd.s32 4294967240, %v15802_v6  ;;  %v9740_v27 = vpop.eup %9739  ;;  %v13989_v38 = vsub.s32 %v4038_v63, %v15820_v49 }
 0x6b6   :  { %5548 = vperm.xlu1 %9256, %v5445_v22   ;;  %v9742_v22 = vpop.eup %9741  ;;  %v4085_v2 = vrot.slane %v13874_v60, %v13989_v38 }
 0x6b7   :  { %v5377_v43 = vpop.permute.xlu1 %5376  ;;  %v9744_v63 = vpop.eup %9743 }
 0x6b8   :  { %v5449_v48 = vmul.f32 %v15819_v20, %v5377_v43  ;;  %6915 = vrot.lane.b32.xlu0 %v9738_v14, %s9840_s0  ;;  %v13994_v43 = vsub.s32 %v4045_v30, %v15820_v49  ;;  %v13997_v14 = vsub.s32 %v4033_v40, %v15820_v49  ;;  %v4066_v20 = vrot.slane %v13825_v50, %v13989_v38  ;;  %v9746_v50 = vpop.eup %9745 }
 0x6b9   :  { %v4042_v30 = vrot.slane %v13818_v55, %v13989_v38 }
 0x6ba   :  { %5560 = vperm.xlu1 %9256, %v5449_v48   ;;  %v14002_v48 = vsub.s32 %v4052_v42, %v15820_v49  ;;  %v4071_v44 = vrot.slane %v13833_v33, %v13994_v43  ;;  %v4049_v42 = vrot.slane %v13827_v59, %v13994_v43  ;;  %v4037_v33 = vrot.slane %v13814_v54, %v13997_v14 }
 0x6bc   :  { %6923 = vrot.lane.b32.xlu0 %v9740_v27, %s9840_s0  ;;  %v4062_v27 = vrot.slane %v13821_v29, %v13997_v14  ;;  %v4076_v40 = vrot.slane %v13839_v34, %v14002_v48  ;;  %v4056_v55 = vrot.slane %v13831_v11, %v14002_v48  ;;  %v9748_v34 = vpop.eup %9747  ;;  %v4044_v4 = vsel %vm4043_vm13, %v4042_v30, %v4037_v33 }
 0x6bd   :  { %v4090_v11 = vrot.slane %v13883_v47, %v13994_v43  ;;  %v4100_v33 = vrot.slane %v13877_v45, %v13997_v14 }
 0x6be   :  { %6917 = vrot.lane.b32.xlu1 %v9742_v22, %s9840_s0  ;;  %v4067_v29 = vsel %vm4043_vm13, %v4066_v20, %v4062_v27  ;;  %v9750_v20 = vpop.eup %9749  ;;  %v4051_v27 = vsel %vm4050_vm14, %v4049_v42, %v4044_v4  ;;  %v4109_v4 = vrot.slane %v13889_v31, %v13994_v43  ;;  %v4114_v42 = vrot.slane %v13895_v19, %v14002_v48 }
 0x6bf   :  { %v4058_v30 = vsel %vm4057_vm15, %v4056_v55, %v4051_v27  ;;  %v9752_v55 = vpop.eup %9751  ;;  %v4128_v31 = vrot.slane %v13937_v41, %v13994_v43  ;;  %v4147_v19 = vrot.slane %v13943_v58, %v13994_v43  ;;  %v4138_v41 = vrot.slane %v13931_v35, %v13997_v14 }
 0x6c0   :  { %6919 = vrot.lane.b32.xlu0 %v9744_v63, %s9840_s0  ;;  %v4072_v63 = vsel %vm4050_vm14, %v4071_v44, %v4067_v29  ;;  %v4104_v44 = vrot.slane %v13881_v24, %v13989_v38  ;;  %v4095_v24 = vrot.slane %v13887_v53, %v14002_v48  ;;  %v4119_v53 = vrot.slane %v13927_v18, %v13997_v14 }
 0x6c1   :  { %v4011_v22 = vpop.permute.xlu0 %4010  ;;  %v4077_v59 = vsel %vm4057_vm15, %v4076_v40, %v4072_v63  ;;  %v4081_v40 = vrot.slane %v13869_v7, %v13997_v14  ;;  %v4123_v7 = vrot.slane %v13935_v25, %v13989_v38  ;;  %v4133_v25 = vrot.slane %v13949_v23, %v14002_v48 }
 0x6c2   :  { %6925 = vrot.lane.b32.xlu1 %v9746_v50, %s9840_s0  ;;  %v4192_v60 = vsel %vm2632_vm5, %v4077_v59, %v4058_v30  ;;  %v4105_v45 = vsel %vm4043_vm13, %v4104_v44, %v4100_v33 }
 0x6c3   :  { %v4086_v47 = vsel %vm4043_vm13, %v4085_v2, %v4081_v40  ;;  %v4142_v2 = vrot.slane %v13941_v17, %v13989_v38  ;;  %v4152_v17 = vrot.slane %v13957_v52, %v14002_v48  ;;  %v4124_v23 = vsel %vm4043_vm13, %v4123_v7, %v4119_v53 }
 0x6c4   :  { %v4014_v54 = vpop.permute.xlu1 %4013  ;;  %6927 = vrot.lane.b32.xlu0 %v9748_v34, %s9840_s0  ;;  %v4091_v34 = vsel %vm4050_vm14, %v4090_v11, %v4086_v47  ;;  %v4129_v44 = vsel %vm4050_vm14, %v4128_v31, %v4124_v23 }
 0x6c5   :  { %v4023_v50 = vpop.permute.xlu0 %4022  ;;  %v4161_v59 = vrot.slane %v4014_v54, %v13989_v38  ;;  %v4096_v27 = vsel %vm4057_vm15, %v4095_v24, %v4091_v34  ;;  %v4157_v54 = vrot.slane %v4011_v22, %v13997_v14  ;;  %v4143_v30 = vsel %vm4043_vm13, %v4142_v2, %v4138_v41 }
 0x6c6   :  { %6921 = vrot.lane.b32.xlu1 %v9750_v20, %s9840_s0  ;;  %v4110_v20 = vsel %vm4050_vm14, %v4109_v4, %v4105_v45  ;;  %v4148_v33 = vsel %vm4050_vm14, %v4147_v19, %v4143_v30  ;;  %v4134_v4 = vsel %vm4057_vm15, %v4133_v25, %v4129_v44  ;;  %v4193_v22 = vsel %vm2634_vm6, %v4096_v27, %v4192_v60  ;;  %v14097_v19 = vpop.f32.mrf.mxu0 }
 0x6c7   :  { %v4115_v58 = vsel %vm4057_vm15, %v4114_v42, %v4110_v20  ;;  %v4162_v47 = vsel %vm4043_vm13, %v4161_v59, %v4157_v54  ;;  %v14081_v42 = vpop.f32.mrf.mxu1  ;;  %v4153_v7 = vsel %vm4057_vm15, %v4152_v17, %v4148_v33 }
 0x6c8   :  { %v4026_v29 = vpop.permute.xlu1 %4025  ;;  %v14107_v27 = vpop.f32.mrf.mxu0 }
 0x6c9   :  { %v4017_v63 = vpop.permute.xlu0 %4016  ;;  %v4180_v35 = vrot.slane %v4026_v29, %v13989_v38  ;;  %v4194_v29 = vsel %vm2636_vm7, %v4115_v58, %v4193_v22 }
 0x6ca   :  { %6929 = vrot.lane.b32.xlu1 %v9752_v55, %s9840_s0  ;;  %v4166_v18 = vrot.slane %v4017_v63, %v13994_v43  ;;  %v4176_v55 = vrot.slane %v4023_v50, %v13997_v14  ;;  %v4195_v31 = vsel %vm2638_vm8, %v4134_v4, %v4194_v29  ;;  %v14095_v50 = vpop.f32.mrf.mxu1 }
 0x6cb   :  { %v4196_v60 = vsel %vm2640_vm9, %v4153_v7, %v4195_v31  ;;  %9753 = vrcp.f32 %v14095_v50 }
 0x6cc   :  { %v4020_v11 = vpop.permute.xlu1 %4019  ;;  %v4167_v38 = vsel %vm4050_vm14, %v4166_v18, %v4162_v47  ;;  %v4181_v2 = vsel %vm4043_vm13, %v4180_v35, %v4176_v55  ;;  %v14105_v18 = vpop.f32.mrf.mxu1  ;;  %9755 = vrcp.f32 %v14081_v42  ;;  %v5586_v35 = vadd.s32 4294967232, %v15802_v6 }
 0x6cd   :  { %v4029_v40 = vpop.permute.xlu0 %4028  ;;  %v4171_v52 = vrot.slane %v4020_v11, %v14002_v48  ;;  %9757 = vrcp.f32 %v14107_v27  ;;  %v5598_v47 = vadd.s32 4294967216, %v15802_v6  ;;  %vm7156_vm13 = vcmask 982912  }
 0x6ce   :  { %v4185_v24 = vrot.slane %v4029_v40, %v13994_v43  ;;  %v14113_v11 = vpop.f32.mrf.mxu1  ;;  %9759 = vrcp.f32 %v14097_v19  ;;  %v5591_v40 = vadd.s32 4294967224, %v15802_v6  ;;  %v14124_v33 = vsub.s32 %v5586_v35, %v15820_v49 }
 0x6cf   :  { %v4172_v34 = vsel %vm4057_vm15, %v4171_v52, %v4167_v38  ;;  %9761 = vrcp.f32 %v14113_v11  ;;  %v5605_v38 = vadd.s32 4294967208, %v15802_v6 }
 0x6d0   :  { %v4032_v45 = vpop.permute.xlu1 %4031  ;;  %v4186_v53 = vsel %vm4050_vm14, %v4185_v24, %v4181_v2  ;;  %v4197_v25 = vsel %vm2642_vm10, %v4172_v34, %v4196_v60  ;;  %9763 = vrcp.f32 %v14105_v18  ;;  %v14130_v22 = vpop.f32.mrf.mxu1  ;;  %v14137_v34 = vsub.s32 %v5598_v47, %v15820_v49 }
 0x6d1   :  { %v5379_v43 = vpop.permute.xlu0 %5378  ;;  %v4190_v63 = vrot.slane %v4032_v45, %v14002_v48  ;;  %vm7163_vm14 = vcmask 1048512  }
 0x6d2   :  { %v5450_v14 = vmul.f32 %v5379_v43, %v13784_v51  ;;  %v14139_v31 = vpop.f32.mrf.mxu1 }
 0x6d3   :  { %v4191_v59 = vsel %vm4057_vm15, %v4190_v63, %v4186_v53  ;;  %9765 = vrcp.f32 %v14139_v31 }
 0x6d4   :  { %v4198_v20 = vsel %vm2644_vm11, %v4191_v59, %v4197_v25  ;;  %5563 = vperm.xlu0 %9255, %v5450_v14   ;;  %v5381_v41 = vpop.permute.xlu1 %5380  ;;  %v14147_v14 = vsub.s32 %v5605_v38, %v15820_v49  ;;  %9767 = vrcp.f32 %v14130_v22 }
 0x6d5   :  { %v5387_v48 = vpop.permute.xlu0 %5386  ;;  %v5451_v17 = vmul.f32 %v13769_v57, %v5381_v41  ;;  %4201 = vst.msk [vmem:[#allocation7] sm:$0xff] %vm4200_vm0, %v4198_v20 }
 0x6d6   :  { %v5454_v51 = vmul.f32 %v5387_v48, %v13796_v21 }
 0x6d7   :  { %5566 = vperm.xlu1 %9256, %v5451_v17  }
 0x6d8   :  { %5575 = vperm.xlu0 %9255, %v5454_v51   ;;  %v5389_v58 = vpop.permute.xlu1 %5388  ;;  %v9754_v24 = vpop.eup %9753 }
 0x6d9   :  { %v5383_v23 = vpop.permute.xlu0 %5382  ;;  %v5455_v54 = vmul.f32 %v13786_v46, %v5389_v58  ;;  %v9756_v29 = vpop.eup %9755 }
 0x6da   :  { %v5452_v57 = vmul.f32 %v5383_v23, %v13802_v15  ;;  %v9758_v45 = vpop.eup %9757 }
 0x6db   :  { %5578 = vperm.xlu1 %9256, %v5455_v54   ;;  %v9760_v25 = vpop.eup %9759 }
 0x6dc   :  { %5569 = vperm.xlu0 %9255, %v5452_v57   ;;  %v5385_v21 = vpop.permute.xlu1 %5384  ;;  %v9762_v20 = vpop.eup %9761 }
 0x6dd   :  { %v5391_v44 = vpop.permute.xlu0 %5390  ;;  %v5453_v30 = vmul.f32 %v13794_v26, %v5385_v21  ;;  %v14127_v26 = vsub.s32 %v5591_v40, %v15820_v49  ;;  %v9764_v23 = vpop.eup %9763 }
 0x6de   :  { %v5456_v46 = vmul.f32 %v5391_v44, %v13810_v5 }
 0x6df   :  { %5572 = vperm.xlu1 %9256, %v5453_v30  }
 0x6e0   :  { %5581 = vperm.xlu0 %9255, %v5456_v46   ;;  %v5393_v15 = vpop.permute.xlu1 %5392 }
 0x6e1   :  { %v5457_v52 = vmul.f32 %v13804_v0, %v5393_v15  ;;  %v5492_v4 = vpop.permute.xlu0 %5491 }
 0x6e2   :  { %v5590_v7 = vrot.slane %v5492_v4, %v14124_v33 }
 0x6e3   :  { %5584 = vperm.xlu1 %9256, %v5457_v52  }
 0x6e4   :  { %6931 = vrot.lane.b32.xlu0 %v9754_v24, %s9840_s0  ;;  %v5495_v5 = vpop.permute.xlu1 %5494  ;;  %v9766_v24 = vpop.eup %9765 }
 0x6e5   :  { %v5504_v0 = vpop.permute.xlu0 %5503  ;;  %v5595_v55 = vrot.slane %v5495_v5, %v14127_v26 }
 0x6e6   :  { %v5615_v63 = vrot.slane %v5504_v0, %v14124_v33  ;;  %v9768_v0 = vpop.eup %9767 }
 0x6e7   :  { %6933 = vrot.lane.b32.xlu1 %v9756_v29, %s9840_s0  ;;  %v5597_v2 = vsel %vm5596_vm1, %v5595_v55, %v5590_v7 }
 0x6e8   :  { %6939 = vrot.lane.b32.xlu0 %v9758_v45, %s9840_s0  ;;  %v5507_v43 = vpop.permute.xlu1 %5506 }
 0x6e9   :  { %v5498_v60 = vpop.permute.xlu0 %5497  ;;  %v5619_v53 = vrot.slane %v5507_v43, %v14127_v26 }
 0x6ea   :  { %v5602_v59 = vrot.slane %v5498_v60, %v14137_v34 }
 0x6eb   :  { %6941 = vrot.lane.b32.xlu1 %v9760_v25, %s9840_s0  ;;  %v5620_v41 = vsel %vm5596_vm1, %v5619_v53, %v5615_v63 }
 0x6ec   :  { %6935 = vrot.lane.b32.xlu0 %v9762_v20, %s9840_s0  ;;  %v5604_v48 = vsel %vm5603_vm2, %v5602_v59, %v5597_v2  ;;  %v5501_v17 = vpop.permute.xlu1 %5500 }
 0x6ed   :  { %v5510_v51 = vpop.permute.xlu0 %5509  ;;  %v5609_v58 = vrot.slane %v5501_v17, %v14147_v14 }
 0x6ee   :  { %v5624_v54 = vrot.slane %v5510_v51, %v14137_v34 }
 0x6ef   :  { %6937 = vrot.lane.b32.xlu1 %v9764_v23, %s9840_s0  ;;  %v5611_v57 = vsel %vm5610_vm3, %v5609_v58, %v5604_v48 }
 0x6f0   :  { %v5625_v21 = vsel %vm5603_vm2, %v5624_v54, %v5620_v41  ;;  %v5513_v44 = vpop.permute.xlu1 %5512 }
 0x6f1   :  { %v6884_v30 = vpop.permute.xlu0 %6883  ;;  %v5629_v35 = vrot.slane %v5513_v44, %v14147_v14 }
 0x6f2   :  { %v6979_v40 = vmul.f32 %v6884_v30, %v13842_v56 }
 0x6f3   :  { %v5630_v46 = vsel %vm5610_vm3, %v5629_v35, %v5625_v21 }
 0x6f4   :  { %v5745_v15 = vsel %vm2632_vm5, %v5630_v46, %v5611_v57  ;;  %7044 = vperm.xlu0 %9255, %v6979_v40   ;;  %v6886_v52 = vpop.permute.xlu1 %6885 }
 0x6f5   :  { %v6892_v4 = vpop.permute.xlu0 %6891  ;;  %v6980_v47 = vmul.f32 %v13835_v28, %v6886_v52 }
 0x6f6   :  { %v6983_v45 = vmul.f32 %v6892_v4, %v13852_v8 }
 0x6f7   :  { %7047 = vperm.xlu1 %9256, %v6980_v47  }
 0x6f8   :  { %6943 = vrot.lane.b32.xlu0 %v9766_v24, %s9840_s0  ;;  %v6894_v5 = vpop.permute.xlu1 %6893 }
 0x6f9   :  { %v6888_v7 = vpop.permute.xlu0 %6887  ;;  %v6984_v2 = vmul.f32 %v13844_v1, %v6894_v5 }
 0x6fa   :  { %v6981_v55 = vmul.f32 %v6888_v7, %v13858_v10 }
 0x6fb   :  { %6945 = vrot.lane.b32.xlu1 %v9768_v0, %s9840_s0 }
 0x6fc   :  { %7050 = vperm.xlu0 %9255, %v6981_v55   ;;  %v6890_v56 = vpop.permute.xlu1 %6889 }
 0x6fd   :  { %v6896_v38 = vpop.permute.xlu0 %6895  ;;  %v6982_v29 = vmul.f32 %v13850_v62, %v6890_v56 }
 0x6fe   :  { %v6985_v63 = vmul.f32 %v6896_v38, %v13866_v36  ;;  %v15821_v38 = vld [vmem:[#allocation181_spill] sm:$0xff] }
 0x6ff   :  { %7053 = vperm.xlu1 %9256, %v6982_v29  }
 0x700   :  { %7056 = vperm.xlu0 %9255, %v6983_v45   ;;  %v6898_v28 = vpop.permute.xlu1 %6897  ;;  %v15822_v45 = vld [vmem:[#allocation156_spill] sm:$0xff] }
 0x701   :  { %v5516_v43 = vpop.permute.xlu0 %5515  ;;  %v6986_v53 = vmul.f32 %v13860_v12, %v6898_v28 }
 0x702   :  { %v5634_v60 = vrot.slane %v5516_v43, %v14124_v33 }
 0x703   :  { %7059 = vperm.xlu1 %9256, %v6984_v2  }
 0x704   :  { %7062 = vperm.xlu0 %9255, %v6985_v63   ;;  %v5519_v10 = vpop.permute.xlu1 %5518 }
 0x705   :  { %v5528_v25 = vpop.permute.xlu0 %5527  ;;  %v5638_v62 = vrot.slane %v5519_v10, %v14127_v26 }
 0x706   :  { %v5653_v20 = vrot.slane %v5528_v25, %v14124_v33 }
 0x707   :  { %v5639_v8 = vsel %vm5596_vm1, %v5638_v62, %v5634_v60  ;;  %7065 = vperm.xlu1 %9256, %v6986_v53   ;;  %v15824_v62 = vld [vmem:[#allocation157_spill] sm:$0xff] }
 0x708   :  { %v5531_v59 = vpop.permute.xlu1 %5530 }
 0x709   :  { %v5522_v1 = vpop.permute.xlu0 %5521  ;;  %v5657_v41 = vrot.slane %v5531_v59, %v14127_v26 }
 0x70a   :  { %v5643_v36 = vrot.slane %v5522_v1, %v14137_v34  ;;  %v15825_v1 = vld [vmem:[#allocation94_spill] sm:$0xff] }
 0x70b   :  { %v5658_v48 = vsel %vm5596_vm1, %v5657_v41, %v5653_v20 }
 0x70c   :  { %v5644_v17 = vsel %vm5603_vm2, %v5643_v36, %v5639_v8  ;;  %v5525_v51 = vpop.permute.xlu1 %5524 }
 0x70d   :  { %v5534_v12 = vpop.permute.xlu0 %5533  ;;  %v5648_v58 = vrot.slane %v5525_v51, %v14147_v14 }
 0x70e   :  { %v5662_v23 = vrot.slane %v5534_v12, %v14137_v34 }
 0x70f   :  { %v5649_v54 = vsel %vm5610_vm3, %v5648_v58, %v5644_v17 }
 0x710   :  { %v5663_v57 = vsel %vm5603_vm2, %v5662_v23, %v5658_v48  ;;  %v5746_v21 = vsel %vm2634_vm6, %v5649_v54, %v5745_v15  ;;  %v5537_v44 = vpop.permute.xlu1 %5536  ;;  %v15826_v54 = vld [vmem:[#allocation184_spill] sm:$0xff] }
 0x711   :  { %v6900_v30 = vpop.permute.xlu0 %6899  ;;  %v5667_v35 = vrot.slane %v5537_v44, %v14147_v14 }
 0x712   :  { %v6987_v40 = vmul.f32 %v6900_v30, %v13898_v61  ;;  %v15827_v30 = vld [vmem:[#allocation98_spill] sm:$0xff] }
 0x713   :  { %v5668_v46 = vsel %vm5610_vm3, %v5667_v35, %v5663_v57 }
 0x714   :  { %v14191_v52 = vsel %vm2636_vm7, %v5668_v46, %v5746_v21  ;;  %7068 = vperm.xlu0 %9255, %v6987_v40   ;;  %v6902_v4 = vpop.permute.xlu1 %6901  ;;  %v15828_v40 = vld [vmem:[#allocation182_spill] sm:$0xff] }
 0x715   :  { %v6908_v47 = vpop.permute.xlu0 %6907  ;;  %v6988_v24 = vmul.f32 %v13891_v9, %v6902_v4 }
 0x716   :  { %v6991_v5 = vmul.f32 %v6908_v47, %v13908_v39  ;;  %v15823_v39 = vld [vmem:[#allocation154_spill] sm:$0xff] }
 0x717   :  { %7071 = vperm.xlu1 %9256, %v6988_v24  }
 0x718   :  { %7080 = vperm.xlu0 %9255, %v6991_v5   ;;  %v6910_v15 = vpop.permute.xlu1 %6909 }
 0x719   :  { %v6904_v7 = vpop.permute.xlu0 %6903  ;;  %v6992_v0 = vmul.f32 %v13900_v3, %v6910_v15 }
 0x71a   :  { %v6989_v61 = vmul.f32 %v6904_v7, %v13914_v37 }
 0x71b   :  { %7083 = vperm.xlu1 %9256, %v6992_v0  }
 0x71c   :  { %7074 = vperm.xlu0 %9255, %v6989_v61   ;;  %v6906_v55 = vpop.permute.xlu1 %6905 }
 0x71d   :  { %v6912_v56 = vpop.permute.xlu0 %6911  ;;  %v6990_v29 = vmul.f32 %v15821_v38, %v6906_v55 }
 0x71e   :  { %v6993_v28 = vmul.f32 %v6912_v56, %v15822_v45 }
 0x71f   :  { %7077 = vperm.xlu1 %9256, %v6990_v29  }
 0x720   :  { %7086 = vperm.xlu0 %9255, %v6993_v28   ;;  %v6914_v9 = vpop.permute.xlu1 %6913 }
 0x721   :  { %v6994_v2 = vmul.f32 %v15823_v39, %v6914_v9 }
 0x723   :  { %v5540_v43 = vpop.permute.xlu0 %5539  ;;  %7089 = vperm.xlu1 %9256, %v6994_v2  }
 0x724   :  { %v5672_v7 = vrot.slane %v5540_v43, %v14124_v33 }
 0x727   :  { %v5552_v63 = vpop.permute.xlu0 %5551 }
 0x728   :  { %v5691_v56 = vrot.slane %v5552_v63, %v14124_v33 }
 0x729   :  { %v5543_v10 = vpop.permute.xlu1 %5542 }
 0x72b   :  { %v5546_v3 = vpop.permute.xlu0 %5545 }
 0x72d   :  { %v5555_v60 = vpop.permute.xlu1 %5554 }
 0x72e   :  { %v5695_v5 = vrot.slane %v5555_v60, %v14127_v26 }
 0x72f   :  { %v5558_v37 = vpop.permute.xlu0 %5557 }
 0x730   :  { %v5700_v0 = vrot.slane %v5558_v37, %v14137_v34  ;;  %v5696_v2 = vsel %vm5596_vm1, %v5695_v5, %v5691_v56 }
 0x731   :  { %v5549_v53 = vpop.permute.xlu1 %5548 }
 0x732   :  { %v5686_v61 = vrot.slane %v5549_v53, %v14147_v14  ;;  %v5701_v63 = vsel %vm5603_vm2, %v5700_v0, %v5696_v2 }
 0x733   :  { %v6916_v25 = vpop.permute.xlu0 %6915 }
 0x734   :  { %v6995_v8 = vmul.f32 %v6916_v25, %v15824_v62 }
 0x735   :  { %v5561_v59 = vpop.permute.xlu1 %5560 }
 0x736   :  { %7092 = vperm.xlu1 %9256, %v6995_v8   ;;  %v5705_v38 = vrot.slane %v5561_v59, %v14147_v14 }
 0x737   :  { %v6924_v20 = vpop.permute.xlu0 %6923 }
 0x738   :  { %v6999_v41 = vmul.f32 %v6924_v20, %v15825_v1  ;;  %v5706_v25 = vsel %vm5610_vm3, %v5705_v38, %v5701_v63  ;;  %v7151_v63 = vadd.s32 4294967184, %v15802_v6 }
 0x739   :  { %v6918_v36 = vpop.permute.xlu1 %6917 }
 0x73a   :  { %v6996_v48 = vmul.f32 %v13946_v32, %v6918_v36  ;;  %7104 = vperm.xlu1 %9256, %v6999_v41  }
 0x73b   :  { %v6920_v17 = vpop.permute.xlu0 %6919 }
 0x73c   :  { %7095 = vperm.xlu0 %9255, %v6996_v48   ;;  %v6997_v23 = vmul.f32 %v6920_v17, %v13966_v16  ;;  %v5681_v16 = vrot.slane %v5546_v3, %v14137_v34 }
 0x73d   :  { %v6926_v51 = vpop.permute.xlu1 %6925 }
 0x73e   :  { %v7000_v12 = vmul.f32 %v13955_v13, %v6926_v51  ;;  %v5676_v13 = vrot.slane %v5543_v10, %v14127_v26 }
 0x73f   :  { %v6928_v21 = vpop.permute.xlu0 %6927 }
 0x740   :  { %7107 = vperm.xlu0 %9255, %v7000_v12   ;;  %v7001_v35 = vmul.f32 %v6928_v21, %v15827_v30  ;;  %v5677_v45 = vsel %vm5596_vm1, %v5676_v13, %v5672_v7 }
 0x741   :  { %v6922_v58 = vpop.permute.xlu1 %6921  ;;  %v5682_v39 = vsel %vm5603_vm2, %v5681_v16, %v5677_v45 }
 0x742   :  { %v6998_v57 = vmul.f32 %v15826_v54, %v6922_v58  ;;  %v5687_v60 = vsel %vm5610_vm3, %v5686_v61, %v5682_v39 }
 0x743   :  { %v5748_v20 = vsel %vm2638_vm8, %v5687_v60, %v14191_v52 }
 0x744   :  { %7098 = vperm.xlu0 %9255, %v6997_v23   ;;  %7101 = vperm.xlu1 %9256, %v6998_v57   ;;  %v5749_v48 = vsel %vm2640_vm9, %v5706_v25, %v5748_v20  ;;  %v7158_v25 = vadd.s32 4294967176, %v15802_v6 }
 0x745   :  { %v6930_v44 = vpop.permute.xlu1 %6929 }
 0x746   :  { %v7002_v32 = vmul.f32 %v15828_v40, %v6930_v44  ;;  %v7144_v40 = vadd.s32 4294967192, %v15802_v6 }
 0x748   :  { %7110 = vperm.xlu0 %9255, %v7001_v35   ;;  %7113 = vperm.xlu1 %9256, %v7002_v32   ;;  %v7139_v35 = vadd.s32 4294967200, %v15802_v6  ;;  %v14253_v32 = vsub.s32 %v7144_v40, %v15820_v49 }
 0x74f   :  { %v5564_v46 = vpop.permute.xlu0 %5563 }
 0x750   :  { %v5710_v28 = vrot.slane %v5564_v46, %v14124_v33 }
 0x752   :  { %v5567_v4 = vpop.permute.xlu1 %5566 }
 0x753   :  { %v5576_v47 = vpop.permute.xlu0 %5575  ;;  %v5714_v55 = vrot.slane %v5567_v4, %v14127_v26 }
 0x754   :  { %v5729_v62 = vrot.slane %v5576_v47, %v14124_v33 }
 0x755   :  { %v5715_v37 = vsel %vm5596_vm1, %v5714_v55, %v5710_v28 }
 0x756   :  { %v5579_v24 = vpop.permute.xlu1 %5578 }
 0x757   :  { %v5570_v15 = vpop.permute.xlu0 %5569  ;;  %v5733_v43 = vrot.slane %v5579_v24, %v14127_v26 }
 0x758   :  { %v5719_v29 = vrot.slane %v5570_v15, %v14137_v34 }
 0x759   :  { %v5734_v1 = vsel %vm5596_vm1, %v5733_v43, %v5729_v62 }
 0x75a   :  { %v5573_v9 = vpop.permute.xlu1 %5572  ;;  %v5720_v8 = vsel %vm5603_vm2, %v5719_v29, %v5715_v37 }
 0x75b   :  { %v5582_v10 = vpop.permute.xlu0 %5581  ;;  %v5724_v3 = vrot.slane %v5573_v9, %v14147_v14 }
 0x75c   :  { %v5738_v53 = vrot.slane %v5582_v10, %v14137_v34 }
 0x75d   :  { %v5725_v59 = vsel %vm5610_vm3, %v5724_v3, %v5720_v8 }
 0x75e   :  { %v5585_v26 = vpop.permute.xlu1 %5584  ;;  %v5739_v34 = vsel %vm5603_vm2, %v5738_v53, %v5734_v1  ;;  %v5750_v33 = vsel %vm2642_vm10, %v5725_v59, %v5749_v48  ;;  %v14270_v53 = vsub.s32 %v7151_v63, %v15820_v49  ;;  %v14277_v1 = vsub.s32 %v7158_v25, %v15820_v49 }
 0x75f   :  { %v6932_v41 = vpop.permute.xlu0 %6931  ;;  %v5743_v36 = vrot.slane %v5585_v26, %v14147_v14 }
 0x760   :  { %v7003_v17 = vmul.f32 %v6932_v41, %v14095_v50 }
 0x761   :  { %v5744_v51 = vsel %vm5610_vm3, %v5743_v36, %v5739_v34 }
 0x762   :  { %v5751_v12 = vsel %vm2644_vm11, %v5744_v51, %v5750_v33  ;;  %7116 = vperm.xlu1 %9256, %v7003_v17   ;;  %v6934_v52 = vpop.permute.xlu1 %6933 }
 0x763   :  { %v6940_v58 = vpop.permute.xlu0 %6939  ;;  %v7004_v23 = vmul.f32 %v14081_v42, %v6934_v52  ;;  %5754 = vst.msk [vmem:[#allocation7] sm:$0xff] %vm5753_vm4, %v5751_v12  ;;  %v14250_v42 = vsub.s32 %v7139_v35, %v15820_v49 }
 0x764   :  { %v7007_v14 = vmul.f32 %v6940_v58, %v14107_v27 }
 0x765   :  { %7119 = vperm.xlu0 %9255, %v7004_v23  }
 0x766   :  { %7128 = vperm.xlu1 %9256, %v7007_v14   ;;  %v6942_v54 = vpop.permute.xlu1 %6941 }
 0x767   :  { %v7008_v50 = vmul.f32 %v14097_v19, %v6942_v54  ;;  %v6936_v57 = vpop.permute.xlu0 %6935 }
 0x768   :  { %v7005_v44 = vmul.f32 %v6936_v57, %v14113_v11 }
 0x769   :  { %7131 = vperm.xlu0 %9255, %v7008_v50  }
 0x76a   :  { %v6938_v21 = vpop.permute.xlu1 %6937 }
 0x76b   :  { %v7006_v30 = vmul.f32 %v14105_v18, %v6938_v21 }
 0x76d   :  { %7122 = vperm.xlu0 %9255, %v7005_v44   ;;  %7125 = vperm.xlu1 %9256, %v7006_v30  }
 0x76f   :  { %v7045_v27 = vpop.permute.xlu0 %7044 }
 0x770   :  { %v7143_v46 = vrot.slane %v7045_v27, %v14250_v42 }
 0x772   :  { %v7048_v19 = vpop.permute.xlu1 %7047 }
 0x773   :  { %v6944_v11 = vpop.permute.xlu0 %6943  ;;  %v7148_v18 = vrot.slane %v7048_v19, %v14253_v32 }
 0x774   :  { %v7009_v4 = vmul.f32 %v6944_v11, %v14139_v31 }
 0x775   :  { %v7150_v47 = vsel %vm7149_vm12, %v7148_v18, %v7143_v46 }
 0x776   :  { %7134 = vperm.xlu0 %9255, %v7009_v4   ;;  %v6946_v13 = vpop.permute.xlu1 %6945 }
 0x777   :  { %v7010_v24 = vmul.f32 %v14130_v22, %v6946_v13  ;;  %v7051_v16 = vpop.permute.xlu0 %7050 }
 0x778   :  { %v7155_v26 = vrot.slane %v7051_v16, %v14270_v53 }
 0x779   :  { %7137 = vperm.xlu1 %9256, %v7010_v24  }
 0x77a   :  { %v14260_v5 = vpop.permute.xlu1 %7053  ;;  %v7157_v17 = vsel %vm7156_vm13, %v7155_v26, %v7150_v47 }
 0x77b   :  { %v7057_v15 = vpop.permute.xlu0 %7056  ;;  %v7162_v33 = vrot.slane %v14260_v5, %v14277_v1 }
 0x77c   :  { %v7168_v20 = vrot.slane %v7057_v15, %v14250_v42 }
 0x77e   :  { %v7060_v7 = vpop.permute.xlu1 %7059 }
 0x77f   :  { %v7063_v0 = vpop.permute.xlu0 %7062  ;;  %v7172_v8 = vrot.slane %v7060_v7, %v14253_v32 }
 0x780   :  { %v7177_v36 = vrot.slane %v7063_v0, %v14270_v53 }
 0x781   :  { %v7173_v48 = vsel %vm7149_vm12, %v7172_v8, %v7168_v20 }
 0x782   :  { %v7066_v55 = vpop.permute.xlu1 %7065  ;;  %v7178_v51 = vsel %vm7156_vm13, %v7177_v36, %v7173_v48 }
 0x783   :  { %v7182_v34 = vrot.slane %v7066_v55, %v14277_v1 }
 0x785   :  { %v7183_v58 = vsel %vm7163_vm14, %v7182_v34, %v7178_v51 }
 0x78f   :  { %v7069_v61 = vpop.permute.xlu0 %7068 }
 0x790   :  { %v7187_v49 = vrot.slane %v7069_v61, %v14250_v42 }
 0x792   :  { %v7072_v56 = vpop.permute.xlu1 %7071 }
 0x793   :  { %v7081_v38 = vpop.permute.xlu0 %7080  ;;  %v7191_v6 = vrot.slane %v7072_v56, %v14253_v32 }
 0x794   :  { %v7206_v23 = vrot.slane %v7081_v38, %v14250_v42 }
 0x795   :  { %v7192_v57 = vsel %vm7149_vm12, %v7191_v6, %v7187_v49 }
 0x796   :  { %v7084_v29 = vpop.permute.xlu1 %7083 }
 0x797   :  { %v7075_v45 = vpop.permute.xlu0 %7074  ;;  %v7210_v12 = vrot.slane %v7084_v29, %v14253_v32 }
 0x798   :  { %v7196_v14 = vrot.slane %v7075_v45, %v14270_v53  ;;  %v7164_v45 = vsel %vm7163_vm14, %v7162_v33, %v7157_v17 }
 0x799   :  { %v7211_v46 = vsel %vm7149_vm12, %v7210_v12, %v7206_v23 }
 0x79a   :  { %v7078_v31 = vpop.permute.xlu1 %7077  ;;  %v7197_v13 = vsel %vm7156_vm13, %v7196_v14, %v7192_v57 }
 0x79b   :  { %v7087_v28 = vpop.permute.xlu0 %7086  ;;  %v7201_v21 = vrot.slane %v7078_v31, %v14277_v1 }
 0x79c   :  { %v7215_v35 = vrot.slane %v7087_v28, %v14270_v53 }
 0x79d   :  { %v7202_v15 = vsel %vm7163_vm14, %v7201_v21, %v7197_v13 }
 0x79e   :  { %v14262_v39 = vpop.permute.xlu1 %7089  ;;  %v7216_v55 = vsel %vm7156_vm13, %v7215_v35, %v7211_v46 }
 0x79f   :  { %v7220_v11 = vrot.slane %v14262_v39, %v14277_v1 }
 0x7a1   :  { %v7221_v31 = vsel %vm7163_vm14, %v7220_v11, %v7216_v55 }
 0x7b1   :  { %v7093_v2 = vpop.permute.xlu1 %7092 }
 0x7b2   :  { %v7225_v40 = vrot.slane %v7093_v2, %v14250_v42  ;;  %v7298_v2 = vsel %vm2632_vm5, %v7183_v58, %v7164_v45  ;;  %vm7306_vm5 = vcmask 1048320  }
 0x7b5   :  { %v7105_v43 = vpop.permute.xlu1 %7104 }
 0x7b6   :  { %v7244_v18 = vrot.slane %v7105_v43, %v14250_v42 }
 0x7b7   :  { %v7096_v9 = vpop.permute.xlu0 %7095 }
 0x7b8   :  { %v7229_v54 = vrot.slane %v7096_v9, %v14253_v32 }
 0x7ba   :  { %v7230_v24 = vsel %vm7149_vm12, %v7229_v54, %v7225_v40 }
 0x7bb   :  { %v7108_v22 = vpop.permute.xlu0 %7107 }
 0x7bc   :  { %v7248_v44 = vrot.slane %v7108_v22, %v14253_v32 }
 0x7be   :  { %v7249_v7 = vsel %vm7149_vm12, %v7248_v44, %v7244_v18 }
 0x7bf   :  { %v7099_v10 = vpop.permute.xlu0 %7098  ;;  %v14264_v3 = vpop.permute.xlu1 %7101 }
 0x7c0   :  { %v7234_v30 = vrot.slane %v7099_v10, %v14270_v53  ;;  %v7239_v16 = vrot.slane %v14264_v3, %v14277_v1  ;;  %v7299_v10 = vsel %vm2634_vm6, %v7202_v15, %v7298_v2 }
 0x7c2   :  { %v7235_v0 = vsel %vm7156_vm13, %v7234_v30, %v7230_v24 }
 0x7c3   :  { %v7111_v60 = vpop.permute.xlu0 %7110  ;;  %v14267_v37 = vpop.permute.xlu1 %7113  ;;  %v7240_v22 = vsel %vm7163_vm14, %v7239_v16, %v7235_v0 }
 0x7c4   :  { %v7253_v27 = vrot.slane %v7111_v60, %v14270_v53  ;;  %v7258_v61 = vrot.slane %v14267_v37, %v14277_v1  ;;  %v7300_v60 = vsel %vm2636_vm7, %v7221_v31, %v7299_v10 }
 0x7c5   :  { %v7301_v25 = vsel %vm2638_vm8, %v7240_v22, %v7300_v60 }
 0x7c6   :  { %v7254_v56 = vsel %vm7156_vm13, %v7253_v27, %v7249_v7 }
 0x7c7   :  { %v7259_v3 = vsel %vm7163_vm14, %v7258_v61, %v7254_v56 }
 0x7dd   :  { %v7117_v59 = vpop.permute.xlu1 %7116 }
 0x7de   :  { %v7263_v5 = vrot.slane %v7117_v59, %v14250_v42 }
 0x7e0   :  { %v7120_v62 = vpop.permute.xlu0 %7119 }
 0x7e1   :  { %v7129_v52 = vpop.permute.xlu1 %7128  ;;  %v7267_v19 = vrot.slane %v7120_v62, %v14253_v32 }
 0x7e2   :  { %v7282_v63 = vrot.slane %v7129_v52, %v14250_v42 }
 0x7e3   :  { %v7268_v38 = vsel %vm7149_vm12, %v7267_v19, %v7263_v5 }
 0x7e4   :  { %v7132_v41 = vpop.permute.xlu0 %7131 }
 0x7e5   :  { %v7286_v28 = vrot.slane %v7132_v41, %v14253_v32 }
 0x7e7   :  { %v7287_v62 = vsel %vm7149_vm12, %v7286_v28, %v7282_v63 }
 0x7e8   :  { %v7123_v50 = vpop.permute.xlu0 %7122  ;;  %v7126_v47 = vpop.permute.xlu1 %7125 }
 0x7e9   :  { %v7272_v4 = vrot.slane %v7123_v50, %v14270_v53  ;;  %v7277_v29 = vrot.slane %v7126_v47, %v14277_v1 }
 0x7eb   :  { %v7273_v9 = vsel %vm7156_vm13, %v7272_v4, %v7268_v38 }
 0x7ec   :  { %v7278_v37 = vsel %vm7163_vm14, %v7277_v29, %v7273_v9 }
 0x7f1   :  { %v7135_v39 = vpop.permute.xlu0 %7134 }
 0x7f2   :  { %v7291_v43 = vrot.slane %v7135_v39, %v14270_v53  ;;  %v7302_v53 = vsel %vm2640_vm9, %v7259_v3, %v7301_v25 }
 0x7f3   :  { %v7303_v42 = vsel %vm2642_vm10, %v7278_v37, %v7302_v53 }
 0x7f4   :  { %v7138_v32 = vpop.permute.xlu1 %7137  ;;  %v7292_v59 = vsel %vm7156_vm13, %v7291_v43, %v7287_v62 }
 0x7f5   :  { %v7296_v8 = vrot.slane %v7138_v32, %v14277_v1 }
 0x7f7   :  { %v7297_v26 = vsel %vm7163_vm14, %v7296_v8, %v7292_v59 }
 0x7f8   :  { %v7304_v20 = vsel %vm2644_vm11, %v7297_v26, %v7303_v42 }
 0x7f9   :  { %7307 = vst.msk [vmem:[#allocation7] sm:$0xff] %vm7306_vm5, %v7304_v20 }
 0x7fa   :  { %9820 = shalt.err (!%p9817_p0)
}
 0x7fb   :  { %7317 = dma.vmem_to_hbm [thread:$0]  %s7315_s21, 128, %s14345_s2, [#allocation4]  }
 0x7fc   :  { %9833 = dma.done.wait [#allocation4], 128  }
 0x7fd   :  { %9834 = vsyncadd [#allocation4], 4294967168 }
 0x7fe   :  { %7321 = vsyncpa [#allocation3], 1 }
 0x7ff   :  { %7322 = vsyncpa [#allocation6], 1 }
 0x800   :  { %7323 = vsyncpa [#allocation4], 1 }

</bundles_post_ra>
